<compile_context>
chip_gen: v5e
topology: v5e:2x2
jax: 0.10.0
libtpu: 0.0.40
codegen_flags: <defaults>
</compile_context>

<pallas_src>
import jax
import jax.numpy as jnp
from jax.experimental import pallas as pl
from jax.experimental.pallas import tpu as pltpu

D = 768           # CLIP ViT-B hidden size (input dim of nn.Linear(768, class_num))
PATCH = 32        # ViT-B/32 patch size
EPS_LN = 1e-5     # LayerNorm eps (CLIP default)
EPS_NORM = 1e-12  # F.normalize eps


def _round_up(x, m):
    return (x + m - 1) // m * m


def _pick_tm(M, tm_max=512):
    """Row-tile size for the patch-embed matmul.

    - M > tm_max: fixed 512-row tiles (fits 32 MiB scoped VMEM with the
      resident weight; ragged last tile handled by Pallas).
    - 128 <= M <= tm_max: split into >=2 tiles so both v7x TensorCores get
      work; multiples of 16 keep bf16 sublane packing dense; tm <= M so no
      block ever exceeds the array.
    - small M: one tile equal to the full row extent (always a legal block).
    """
    if M > tm_max:
        return tm_max
    if M >= 128:
        return max(16, (M // 2) // 16 * 16)
    return M


# --------------------------------------------------------------------------
# Kernel 1: patch-embedding matmul (bf16 operands, f32 accumulation, bf16 out)
# --------------------------------------------------------------------------
def _patch_embed_kernel(p_ref, w_ref, o_ref):
    o_ref[...] = jnp.dot(p_ref[...], w_ref[...],
                         preferred_element_type=jnp.float32).astype(o_ref.dtype)


def patch_embed(patches_bf16, w, *, tm_max=512):
    """[M, K] bf16 @ [K, D] -> [M, D] bf16.

    One column tile (tn == D): LHS read from HBM exactly once, weight block
    index constant so it is DMA'd once and stays VMEM-resident.  Grid is
    pl.cdiv(M, tm): no host-side padding copy; a partial last block only
    produces rows that are never stored (out_shape is exactly (M, D))."""
    M, K = patches_bf16.shape
    Dd = w.shape[1]
    w_bf = w.astype(jnp.bfloat16)
    tm = _pick_tm(M, tm_max)

    return pl.pallas_call(
        _patch_embed_kernel,
        out_shape=jax.ShapeDtypeStruct((M, Dd), jnp.bfloat16),
        grid=(pl.cdiv(M, tm),),
        in_specs=[pl.BlockSpec((tm, K), lambda i: (i, 0)),
                  pl.BlockSpec((K, Dd), lambda i: (0, 0))],
        out_specs=pl.BlockSpec((tm, Dd), lambda i: (i, 0)),
        compiler_params=pltpu.CompilerParams(
            dimension_semantics=("parallel",),
            # 512x3072 bf16 LHS + resident 3072x768 bf16 weight + bf16 out,
            # double-buffered ~16.5 MiB: above v5e's 16 MiB scoped default.
            vmem_limit_bytes=32 * 1024 * 1024),
    )(patches_bf16, w_bf)


# --------------------------------------------------------------------------
# Kernel 2: fused tail, TB images per grid step.
#   cls/pos add + pre-LN + sequence F.normalize + pooler post-LN
#   + fc head (lane-padded, bf16 weight) + feature F.normalize.
# --------------------------------------------------------------------------
def _tail_kernel(emb_ref, cls0_ref, posr_ref, g1_ref, b1_ref, g2_ref, b2_ref,
                 w_ref, fb_ref, pf_ref, logits_ref, feats_ref):
    # emb_ref : (TB, N, D) bf16 patch embeddings
    # cls0_ref: (1, D)  f32  cls_embedding + pos_embedding[0]
    # posr_ref: (N, D)  f32  pos_embedding[1:]
    # g1/b1   : (1, D)       pre-LN params  (-> last_hidden_state)
    # g2/b2   : (1, D)       post-LN params (-> pooler_output)
    # w/fb    : (D, Cp) bf16 / (1, Cp) f32   fc weight (transposed) / bias
    # outputs : pf (TB, L, D), logits (TB, Cp), feats (TB, D)   (all f32)

    def _ln(x, g, b):
        mu = jnp.mean(x, axis=-1, keepdims=True)
        var = jnp.mean((x - mu) ** 2, axis=-1, keepdims=True)
        return (x - mu) * jax.lax.rsqrt(var + EPS_LN) * g + b

    g1 = g1_ref[...]
    b1 = b1_ref[...]

    # pre-LN over the feature axis (stands in for last_hidden_state)
    emb = emb_ref[...].astype(jnp.float32) + posr_ref[...]        # (TB, N, D)
    ln_p = _ln(emb, g1, b1)                                       # (TB, N, D)
    ln_c = _ln(cls0_ref[...], g1, b1)                             # (1, D)

    tb = emb.shape[0]
    cls_rows = jnp.broadcast_to(ln_c[None], (tb, 1, ln_c.shape[-1]))
    hidden = jnp.concatenate([cls_rows, ln_p], axis=1)            # (TB, L, D)

    # patch_feats = F.normalize(last_hidden_state, dim=1): L2 over the
    # SEQUENCE axis (cls + patches).  rsqrt keeps the work on the EUP slot.
    ssq = jnp.sum(hidden * hidden, axis=1, keepdims=True)         # (TB, 1, D)
    inv = jax.lax.rsqrt(jnp.maximum(ssq, EPS_NORM * EPS_NORM))
    pf_ref[...] = hidden * inv            # one aligned full-tile store

    # pooler (post-LN of the cls row) + fc head + feature L2-normalize
    pooled = _ln(ln_c, g2_ref[...], b2_ref[...])                  # (1, D)
    logits = jnp.dot(pooled.astype(jnp.bfloat16), w_ref[...],
                     preferred_element_type=jnp.float32) + fb_ref[...]   # (1, Cp)
    logits_ref[...] = jnp.broadcast_to(logits, logits_ref.shape)
    inv_f = jax.lax.rsqrt(jnp.maximum(
        jnp.sum(pooled * pooled, axis=-1, keepdims=True),
        EPS_NORM * EPS_NORM))
    feats_ref[...] = jnp.broadcast_to(pooled * inv_f, feats_ref.shape)


def encoder_tail_and_head(emb, cls_emb, pos_emb, pre_g, pre_b, post_g, post_b,
                          fc_w, fc_b, *, tb_max=8):
    B, N, Dd = emb.shape
    L = N + 1
    C = fc_w.shape[1]
    Cp = _round_up(C, 128)          # lane-dense fc output; slice back outside
    if Cp != C:
        fc_w = jnp.pad(fc_w, ((0, 0), (0, Cp - C)))
        fc_b = jnp.pad(fc_b, (0, Cp - C))
    fc_w_bf = fc_w.astype(jnp.bfloat16)

    cls0 = (cls_emb + pos_emb[0]).reshape(1, Dd)
    posr = pos_emb[1:]
    g1 = pre_g.reshape(1, Dd)
    b1 = pre_b.reshape(1, Dd)
    g2 = post_g.reshape(1, Dd)
    b2 = post_b.reshape(1, Dd)
    fb = fc_b.reshape(1, Cp)

    TB = min(tb_max, B)             # images per grid step; partial last block
                                    # only produces rows that are never stored.
    pf, logits_p, feats = pl.pallas_call(
        _tail_kernel,
        out_shape=(jax.ShapeDtypeStruct((B, L, Dd), jnp.float32),
                   jax.ShapeDtypeStruct((B, Cp), jnp.float32),
                   jax.ShapeDtypeStruct((B, Dd), jnp.float32)),
        grid=(pl.cdiv(B, TB),),
        in_specs=[pl.BlockSpec((TB, N, Dd), lambda b: (b, 0, 0)),
                  pl.BlockSpec((1, Dd), lambda b: (0, 0)),
                  pl.BlockSpec((N, Dd), lambda b: (0, 0)),
                  pl.BlockSpec((1, Dd), lambda b: (0, 0)),
                  pl.BlockSpec((1, Dd), lambda b: (0, 0)),
                  pl.BlockSpec((1, Dd), lambda b: (0, 0)),
                  pl.BlockSpec((1, Dd), lambda b: (0, 0)),
                  pl.BlockSpec((Dd, Cp), lambda b: (0, 0)),
                  pl.BlockSpec((1, Cp), lambda b: (0, 0))],
        out_specs=(pl.BlockSpec((TB, L, Dd), lambda b: (b, 0, 0)),
                   pl.BlockSpec((TB, Cp), lambda b: (b, 0)),
                   pl.BlockSpec((TB, Dd), lambda b: (b, 0))),
        compiler_params=pltpu.CompilerParams(
            dimension_semantics=("parallel",)),
    )(emb, cls0, posr, g1, b1, g2, b2, fc_w_bf, fb)

    return logits_p[:, :C], feats, pf


# ------------------------------------------------------------ full forward ---
def init_params(key, class_num, img_size):
    n_patches = (img_size // PATCH) ** 2
    L = n_patches + 1
    ks = jax.random.split(key, 5)
    return {
        "patch_w": jax.random.normal(ks[0], (3 * PATCH * PATCH, D), jnp.float32) * 0.02,
        "cls_emb": jax.random.normal(ks[1], (D,), jnp.float32) * 0.02,
        "pos_emb": jax.random.normal(ks[2], (L, D), jnp.float32) * 0.02,
        "pre_ln_g": jnp.ones((D,), jnp.float32),
        "pre_ln_b": jnp.zeros((D,), jnp.float32),
        "post_ln_g": jnp.ones((D,), jnp.float32),
        "post_ln_b": jnp.zeros((D,), jnp.float32),
        "fc_w": jax.random.normal(ks[3], (D, class_num), jnp.float32) * 0.02,
        "fc_b": jax.random.normal(ks[4], (class_num,), jnp.float32) * 0.02,
    }


def clip_linear_forward(x, params):
    """x: [B, 3, H, W] float32 (NCHW).  Returns dict(logits, feats, patch_feats)."""
    B, C, H, W = x.shape
    nh, nw = H // PATCH, W // PATCH
    N = nh * nw

    # glue: extract non-overlapping patches (conv stride == kernel size).
    # Cast to bf16 BEFORE the transpose/flatten so the XLA transpose and the
    # materialized [M, C*P*P] patch matrix move half the bytes.
    xb = x.astype(jnp.bfloat16)
    patches = xb.reshape(B, C, nh, PATCH, nw, PATCH)
    patches = patches.transpose(0, 2, 4, 1, 3, 5).reshape(B * N, C * PATCH * PATCH)

    # Pallas: tiled bf16 patch-embedding matmul (bf16 output for the round trip)
    emb = patch_embed(patches, params["patch_w"]).reshape(B, N, D)

    # Pallas: fused cls/pos add + pre-LN + seq-normalize + pooler + fc + L2-norm
    logits, feats, patch_feats = encoder_tail_and_head(
        emb, params["cls_emb"], params["pos_emb"],
        params["pre_ln_g"], params["pre_ln_b"],
        params["post_ln_g"], params["post_ln_b"],
        params["fc_w"], params["fc_b"])

    return dict(logits=logits, feats=feats, patch_feats=patch_feats)


if __name__ == "__main__":
    key = jax.random.PRNGKey(0)
    k_x, k_p = jax.random.split(key)

    BATCH, IMG = 2, 64                   # 64x64 image, 32x32 patches -> 4 patches (+1 cls)
    CLASS_NUM = 10
    x = jax.random.normal(k_x, (BATCH, 3, IMG, IMG), jnp.float32)
    params = init_params(k_p, CLASS_NUM, IMG)

    out = jax.jit(clip_linear_forward)(x, params)
    jax.block_until_ready(out)

    L = (IMG // PATCH) ** 2 + 1
    assert out["logits"].shape == (BATCH, CLASS_NUM)
    assert out["feats"].shape == (BATCH, D)
    assert out["patch_feats"].shape == (BATCH, L, D)
    print("KERNEL_OK")
</pallas_src>

<mosaic_0001>
module attributes {stable_mosaic.version = 11 : i64} {
  func.func @_patch_embed_kernel(%arg0: i32, %arg1: memref<8x3072xbf16, #tpu.memory_space<vmem>>, %arg2: memref<3072x768xbf16, #tpu.memory_space<vmem>>, %arg3: memref<8x768xbf16, #tpu.memory_space<vmem>>) attributes {dimension_semantics = [#tpu.dimension_semantics<parallel>], iteration_bounds = array<i64: 1>, scalar_prefetch = 0 : i64, scratch_operands = 0 : i64, tpu.core_type = #tpu.core_type<tc>, window_params = [{transform_indices = @transform_0, window_bounds = array<i64: 8, 3072>}, {pipeline_mode = #tpu.pipeline_mode<synchronous>, transform_indices = @transform_1, window_bounds = array<i64: 3072, 768>}, {transform_indices = @transform_2, window_bounds = array<i64: 8, 768>}]} {
    %c0 = arith.constant 0 : index
    %c0_0 = arith.constant 0 : index
    %0 = vector.load %arg1[%c0, %c0_0] : memref<8x3072xbf16, #tpu.memory_space<vmem>>, vector<8x3072xbf16>
    %c0_1 = arith.constant 0 : index
    %c0_2 = arith.constant 0 : index
    %1 = vector.load %arg2[%c0_1, %c0_2] : memref<3072x768xbf16, #tpu.memory_space<vmem>>, vector<3072x768xbf16>
    %cst = arith.constant dense<0.000000e+00> : vector<8x768xf32>
    %2 = tpu.matmul %0, %1, %cst {dimension_numbers = #tpu.dot_dimension_numbers<[1], [0], [0], [1], [0, 0, 1, 1], [], []>} : vector<8x3072xbf16>, vector<3072x768xbf16>, vector<8x768xf32> -> vector<8x768xf32>
    %3 = arith.truncf %2 : vector<8x768xf32> to vector<8x768xbf16>
    %c0_3 = arith.constant 0 : index
    %c0_4 = arith.constant 0 : index
    %4 = vector.load %arg3[%c0_3, %c0_4] : memref<8x768xbf16, #tpu.memory_space<vmem>>, vector<8x768xbf16>
    tpu.vector_store %arg3[%c0_3, %c0_4], %3 {strides = array<i32>} : memref<8x768xbf16, #tpu.memory_space<vmem>>, vector<8x768xbf16>,
    return
  }
  func.func @transform_0(%arg0: i32) -> (i32, i32) {
    %c0_i32 = arith.constant 0 : i32
    %c0_i32_0 = arith.constant 0 : i32
    return %arg0, %c0_i32 : i32, i32
  }
  func.func @transform_1(%arg0: i32) -> (i32, i32) {
    %c0_i32 = arith.constant 0 : i32
    %c0_i32_0 = arith.constant 0 : i32
    %c0_i32_1 = arith.constant 0 : i32
    return %c0_i32, %c0_i32_0 : i32, i32
  }
  func.func @transform_2(%arg0: i32) -> (i32, i32) {
    %c0_i32 = arith.constant 0 : i32
    %c0_i32_0 = arith.constant 0 : i32
    return %arg0, %c0_i32 : i32, i32
  }
}

module attributes {stable_mosaic.version = 11 : i64} {
  func.func @_tail_kernel(%arg0: i32, %arg1: memref<2x4x768xbf16, #tpu.memory_space<vmem>>, %arg2: memref<1x768xf32, #tpu.memory_space<vmem>>, %arg3: memref<4x768xf32, #tpu.memory_space<vmem>>, %arg4: memref<1x768xf32, #tpu.memory_space<vmem>>, %arg5: memref<1x768xf32, #tpu.memory_space<vmem>>, %arg6: memref<1x768xf32, #tpu.memory_space<vmem>>, %arg7: memref<1x768xf32, #tpu.memory_space<vmem>>, %arg8: memref<768x128xbf16, #tpu.memory_space<vmem>>, %arg9: memref<1x128xf32, #tpu.memory_space<vmem>>, %arg10: memref<2x5x768xf32, #tpu.memory_space<vmem>>, %arg11: memref<2x128xf32, #tpu.memory_space<vmem>>, %arg12: memref<2x768xf32, #tpu.memory_space<vmem>>) attributes {dimension_semantics = [#tpu.dimension_semantics<parallel>], iteration_bounds = array<i64: 1>, scalar_prefetch = 0 : i64, scratch_operands = 0 : i64, tpu.core_type = #tpu.core_type<tc>, window_params = [{transform_indices = @transform_0, window_bounds = array<i64: 2, 4, 768>}, {pipeline_mode = #tpu.pipeline_mode<synchronous>, transform_indices = @transform_1, window_bounds = array<i64: 1, 768>}, {pipeline_mode = #tpu.pipeline_mode<synchronous>, transform_indices = @transform_2, window_bounds = array<i64: 4, 768>}, {pipeline_mode = #tpu.pipeline_mode<synchronous>, transform_indices = @transform_3, window_bounds = array<i64: 1, 768>}, {pipeline_mode = #tpu.pipeline_mode<synchronous>, transform_indices = @transform_4, window_bounds = array<i64: 1, 768>}, {pipeline_mode = #tpu.pipeline_mode<synchronous>, transform_indices = @transform_5, window_bounds = array<i64: 1, 768>}, {pipeline_mode = #tpu.pipeline_mode<synchronous>, transform_indices = @transform_6, window_bounds = array<i64: 1, 768>}, {pipeline_mode = #tpu.pipeline_mode<synchronous>, transform_indices = @transform_7, window_bounds = array<i64: 768, 128>}, {pipeline_mode = #tpu.pipeline_mode<synchronous>, transform_indices = @transform_8, window_bounds = array<i64: 1, 128>}, {transform_indices = @transform_9, window_bounds = array<i64: 2, 5, 768>}, {transform_indices = @transform_10, window_bounds = array<i64: 2, 128>}, {transform_indices = @transform_11, window_bounds = array<i64: 2, 768>}]} {
    %c0 = arith.constant 0 : index
    %c0_0 = arith.constant 0 : index
    %0 = vector.load %arg4[%c0, %c0_0] : memref<1x768xf32, #tpu.memory_space<vmem>>, vector<1x768xf32>
    %c0_1 = arith.constant 0 : index
    %c0_2 = arith.constant 0 : index
    %1 = vector.load %arg5[%c0_1, %c0_2] : memref<1x768xf32, #tpu.memory_space<vmem>>, vector<1x768xf32>
    %c0_3 = arith.constant 0 : index
    %c0_4 = arith.constant 0 : index
    %c0_5 = arith.constant 0 : index
    %2 = vector.load %arg1[%c0_3, %c0_4, %c0_5] : memref<2x4x768xbf16, #tpu.memory_space<vmem>>, vector<2x4x768xbf16>
    %3 = arith.extf %2 : vector<2x4x768xbf16> to vector<2x4x768xf32>
    %c0_6 = arith.constant 0 : index
    %c0_7 = arith.constant 0 : index
    %4 = vector.load %arg3[%c0_6, %c0_7] : memref<4x768xf32, #tpu.memory_space<vmem>>, vector<4x768xf32>
    %5 = vector.shape_cast %4 : vector<4x768xf32> to vector<1x4x768xf32>
    %6 = vector.broadcast %5 : vector<1x4x768xf32> to vector<2x4x768xf32>
    %7 = arith.addf %3, %6 : vector<2x4x768xf32>
    %cst = arith.constant dense<0.000000e+00> : vector<2x4xf32>
    %8 = vector.multi_reduction <add>, %7, %cst [2] : vector<2x4x768xf32> to vector<2x4xf32>
    %9 = vector.shape_cast %8 : vector<2x4xf32> to vector<2x4x1xf32>
    %cst_8 = arith.constant 7.680000e+02 : f32
    %10 = vector.broadcast %cst_8 : f32 to vector<2x4x1xf32>
    %11 = arith.divf %9, %10 : vector<2x4x1xf32>
    %12 = vector.broadcast %11 : vector<2x4x1xf32> to vector<2x4x768xf32>
    %13 = arith.subf %7, %12 : vector<2x4x768xf32>
    %14 = arith.mulf %13, %13 : vector<2x4x768xf32>
    %cst_9 = arith.constant dense<0.000000e+00> : vector<2x4xf32>
    %15 = vector.multi_reduction <add>, %14, %cst_9 [2] : vector<2x4x768xf32> to vector<2x4xf32>
    %16 = vector.shape_cast %15 : vector<2x4xf32> to vector<2x4x1xf32>
    %cst_10 = arith.constant 7.680000e+02 : f32
    %17 = vector.broadcast %cst_10 : f32 to vector<2x4x1xf32>
    %18 = arith.divf %16, %17 : vector<2x4x1xf32>
    %19 = vector.broadcast %11 : vector<2x4x1xf32> to vector<2x4x768xf32>
    %20 = arith.subf %7, %19 : vector<2x4x768xf32>
    %cst_11 = arith.constant 9.99999974E-6 : f32
    %21 = vector.broadcast %cst_11 : f32 to vector<2x4x1xf32>
    %22 = arith.addf %18, %21 : vector<2x4x1xf32>
    %23 = math.rsqrt %22 : vector<2x4x1xf32>
    %24 = vector.broadcast %23 : vector<2x4x1xf32> to vector<2x4x768xf32>
    %25 = arith.mulf %20, %24 : vector<2x4x768xf32>
    %26 = vector.shape_cast %0 : vector<1x768xf32> to vector<1x1x768xf32>
    %27 = vector.broadcast %26 : vector<1x1x768xf32> to vector<2x4x768xf32>
    %28 = arith.mulf %25, %27 : vector<2x4x768xf32>
    %29 = vector.shape_cast %1 : vector<1x768xf32> to vector<1x1x768xf32>
    %30 = vector.broadcast %29 : vector<1x1x768xf32> to vector<2x4x768xf32>
    %31 = arith.addf %28, %30 : vector<2x4x768xf32>
    %c0_12 = arith.constant 0 : index
    %c0_13 = arith.constant 0 : index
    %32 = vector.load %arg2[%c0_12, %c0_13] : memref<1x768xf32, #tpu.memory_space<vmem>>, vector<1x768xf32>
    %cst_14 = arith.constant dense<0.000000e+00> : vector<1xf32>
    %33 = vector.multi_reduction <add>, %32, %cst_14 [1] : vector<1x768xf32> to vector<1xf32>
    %34 = vector.shape_cast %33 : vector<1xf32> to vector<1x1xf32>
    %cst_15 = arith.constant 7.680000e+02 : f32
    %35 = vector.broadcast %cst_15 : f32 to vector<1x1xf32>
    %36 = arith.divf %34, %35 : vector<1x1xf32>
    %37 = vector.broadcast %36 : vector<1x1xf32> to vector<1x768xf32>
    %38 = arith.subf %32, %37 : vector<1x768xf32>
    %39 = arith.mulf %38, %38 : vector<1x768xf32>
    %cst_16 = arith.constant dense<0.000000e+00> : vector<1xf32>
    %40 = vector.multi_reduction <add>, %39, %cst_16 [1] : vector<1x768xf32> to vector<1xf32>
    %41 = vector.shape_cast %40 : vector<1xf32> to vector<1x1xf32>
    %cst_17 = arith.constant 7.680000e+02 : f32
    %42 = vector.broadcast %cst_17 : f32 to vector<1x1xf32>
    %43 = arith.divf %41, %42 : vector<1x1xf32>
    %44 = vector.broadcast %36 : vector<1x1xf32> to vector<1x768xf32>
    %45 = arith.subf %32, %44 : vector<1x768xf32>
    %cst_18 = arith.constant 9.99999974E-6 : f32
    %46 = vector.broadcast %cst_18 : f32 to vector<1x1xf32>
    %47 = arith.addf %43, %46 : vector<1x1xf32>
    %48 = math.rsqrt %47 : vector<1x1xf32>
    %49 = vector.broadcast %48 : vector<1x1xf32> to vector<1x768xf32>
    %50 = arith.mulf %45, %49 : vector<1x768xf32>
    %51 = arith.mulf %50, %0 : vector<1x768xf32>
    %52 = arith.addf %51, %1 : vector<1x768xf32>
    %53 = vector.shape_cast %52 : vector<1x768xf32> to vector<1x1x768xf32>
    %54 = vector.shape_cast %53 : vector<1x1x768xf32> to vector<1x1x768xf32>
    %55 = vector.broadcast %54 : vector<1x1x768xf32> to vector<2x1x768xf32>
    %56 = tpu.concatenate %55, %31 in 1 : vector<2x1x768xf32>, vector<2x4x768xf32> -> vector<2x5x768xf32>
    %57 = arith.mulf %56, %56 : vector<2x5x768xf32>
    %cst_19 = arith.constant dense<0.000000e+00> : vector<2x768xf32>
    %58 = vector.multi_reduction <add>, %57, %cst_19 [1] : vector<2x5x768xf32> to vector<2x768xf32>
    %59 = vector.shape_cast %58 : vector<2x768xf32> to vector<2x1x768xf32>
    %cst_20 = arith.constant 1.000000e-24 : f32
    %60 = vector.broadcast %cst_20 : f32 to vector<2x1x768xf32>
    %61 = arith.maximumf %59, %60 : vector<2x1x768xf32>
    %62 = math.rsqrt %61 : vector<2x1x768xf32>
    %63 = vector.broadcast %62 : vector<2x1x768xf32> to vector<2x5x768xf32>
    %64 = arith.mulf %56, %63 : vector<2x5x768xf32>
    %c0_21 = arith.constant 0 : index
    %c0_22 = arith.constant 0 : index
    %c0_23 = arith.constant 0 : index
    %65 = vector.load %arg10[%c0_21, %c0_22, %c0_23] : memref<2x5x768xf32, #tpu.memory_space<vmem>>, vector<2x5x768xf32>
    tpu.vector_store %arg10[%c0_21, %c0_22, %c0_23], %64 {strides = array<i32>} : memref<2x5x768xf32, #tpu.memory_space<vmem>>, vector<2x5x768xf32>,
    %c0_24 = arith.constant 0 : index
    %c0_25 = arith.constant 0 : index
    %66 = vector.load %arg6[%c0_24, %c0_25] : memref<1x768xf32, #tpu.memory_space<vmem>>, vector<1x768xf32>
    %c0_26 = arith.constant 0 : index
    %c0_27 = arith.constant 0 : index
    %67 = vector.load %arg7[%c0_26, %c0_27] : memref<1x768xf32, #tpu.memory_space<vmem>>, vector<1x768xf32>
    %cst_28 = arith.constant dense<0.000000e+00> : vector<1xf32>
    %68 = vector.multi_reduction <add>, %52, %cst_28 [1] : vector<1x768xf32> to vector<1xf32>
    %69 = vector.shape_cast %68 : vector<1xf32> to vector<1x1xf32>
    %cst_29 = arith.constant 7.680000e+02 : f32
    %70 = vector.broadcast %cst_29 : f32 to vector<1x1xf32>
    %71 = arith.divf %69, %70 : vector<1x1xf32>
    %72 = vector.broadcast %71 : vector<1x1xf32> to vector<1x768xf32>
    %73 = arith.subf %52, %72 : vector<1x768xf32>
    %74 = arith.mulf %73, %73 : vector<1x768xf32>
    %cst_30 = arith.constant dense<0.000000e+00> : vector<1xf32>
    %75 = vector.multi_reduction <add>, %74, %cst_30 [1] : vector<1x768xf32> to vector<1xf32>
    %76 = vector.shape_cast %75 : vector<1xf32> to vector<1x1xf32>
    %cst_31 = arith.constant 7.680000e+02 : f32
    %77 = vector.broadcast %cst_31 : f32 to vector<1x1xf32>
    %78 = arith.divf %76, %77 : vector<1x1xf32>
    %79 = vector.broadcast %71 : vector<1x1xf32> to vector<1x768xf32>
    %80 = arith.subf %52, %79 : vector<1x768xf32>
    %cst_32 = arith.constant 9.99999974E-6 : f32
    %81 = vector.broadcast %cst_32 : f32 to vector<1x1xf32>
    %82 = arith.addf %78, %81 : vector<1x1xf32>
    %83 = math.rsqrt %82 : vector<1x1xf32>
    %84 = vector.broadcast %83 : vector<1x1xf32> to vector<1x768xf32>
    %85 = arith.mulf %80, %84 : vector<1x768xf32>
    %86 = arith.mulf %85, %66 : vector<1x768xf32>
    %87 = arith.addf %86, %67 : vector<1x768xf32>
    %88 = arith.truncf %87 : vector<1x768xf32> to vector<1x768xbf16>
    %c0_33 = arith.constant 0 : index
    %c0_34 = arith.constant 0 : index
    %89 = vector.load %arg8[%c0_33, %c0_34] : memref<768x128xbf16, #tpu.memory_space<vmem>>, vector<768x128xbf16>
    %cst_35 = arith.constant dense<0.000000e+00> : vector<1x128xf32>
    %90 = tpu.matmul %88, %89, %cst_35 {dimension_numbers = #tpu.dot_dimension_numbers<[1], [0], [0], [1], [0, 0, 1, 1], [], []>} : vector<1x768xbf16>, vector<768x128xbf16>, vector<1x128xf32> -> vector<1x128xf32>
    %c0_36 = arith.constant 0 : index
    %c0_37 = arith.constant 0 : index
    %91 = vector.load %arg9[%c0_36, %c0_37] : memref<1x128xf32, #tpu.memory_space<vmem>>, vector<1x128xf32>
    %92 = arith.addf %90, %91 : vector<1x128xf32>
    %93 = vector.shape_cast %92 : vector<1x128xf32> to vector<1x128xf32>
    %94 = vector.broadcast %93 : vector<1x128xf32> to vector<2x128xf32>
    %c0_38 = arith.constant 0 : index
    %c0_39 = arith.constant 0 : index
    %95 = vector.load %arg11[%c0_38, %c0_39] : memref<2x128xf32, #tpu.memory_space<vmem>>, vector<2x128xf32>
    tpu.vector_store %arg11[%c0_38, %c0_39], %94 {strides = array<i32>} : memref<2x128xf32, #tpu.memory_space<vmem>>, vector<2x128xf32>,
    %96 = arith.mulf %87, %87 : vector<1x768xf32>
    %cst_40 = arith.constant dense<0.000000e+00> : vector<1xf32>
    %97 = vector.multi_reduction <add>, %96, %cst_40 [1] : vector<1x768xf32> to vector<1xf32>
    %98 = vector.shape_cast %97 : vector<1xf32> to vector<1x1xf32>
    %cst_41 = arith.constant 1.000000e-24 : f32
    %99 = vector.broadcast %cst_41 : f32 to vector<1x1xf32>
    %100 = arith.maximumf %98, %99 : vector<1x1xf32>
    %101 = math.rsqrt %100 : vector<1x1xf32>
    %102 = vector.broadcast %101 : vector<1x1xf32> to vector<1x768xf32>
    %103 = arith.mulf %87, %102 : vector<1x768xf32>
    %104 = vector.shape_cast %103 : vector<1x768xf32> to vector<1x768xf32>
    %105 = vector.broadcast %104 : vector<1x768xf32> to vector<2x768xf32>
    %c0_42 = arith.constant 0 : index
    %c0_43 = arith.constant 0 : index
    %106 = vector.load %arg12[%c0_42, %c0_43] : memref<2x768xf32, #tpu.memory_space<vmem>>, vector<2x768xf32>
    tpu.vector_store %arg12[%c0_42, %c0_43], %105 {strides = array<i32>} : memref<2x768xf32, #tpu.memory_space<vmem>>, vector<2x768xf32>,
    return
  }
  func.func @transform_0(%arg0: i32) -> (i32, i32, i32) {
    %c0_i32 = arith.constant 0 : i32
    %c0_i32_0 = arith.constant 0 : i32
    %c0_i32_1 = arith.constant 0 : i32
    return %arg0, %c0_i32, %c0_i32_0 : i32, i32, i32
  }
  func.func @transform_1(%arg0: i32) -> (i32, i32) {
    %c0_i32 = arith.constant 0 : i32
    %c0_i32_0 = arith.constant 0 : i32
    %c0_i32_1 = arith.constant 0 : i32
    return %c0_i32, %c0_i32_0 : i32, i32
  }
  func.func @transform_2(%arg0: i32) -> (i32, i32) {
    %c0_i32 = arith.constant 0 : i32
    %c0_i32_0 = arith.constant 0 : i32
    %c0_i32_1 = arith.constant 0 : i32
    return %c0_i32, %c0_i32_0 : i32, i32
  }
  func.func @transform_3(%arg0: i32) -> (i32, i32) {
    %c0_i32 = arith.constant 0 : i32
    %c0_i32_0 = arith.constant 0 : i32
    %c0_i32_1 = arith.constant 0 : i32
    return %c0_i32, %c0_i32_0 : i32, i32
  }
  func.func @transform_4(%arg0: i32) -> (i32, i32) {
    %c0_i32 = arith.constant 0 : i32
    %c0_i32_0 = arith.constant 0 : i32
    %c0_i32_1 = arith.constant 0 : i32
    return %c0_i32, %c0_i32_0 : i32, i32
  }
  func.func @transform_5(%arg0: i32) -> (i32, i32) {
    %c0_i32 = arith.constant 0 : i32
    %c0_i32_0 = arith.constant 0 : i32
    %c0_i32_1 = arith.constant 0 : i32
    return %c0_i32, %c0_i32_0 : i32, i32
  }
  func.func @transform_6(%arg0: i32) -> (i32, i32) {
    %c0_i32 = arith.constant 0 : i32
    %c0_i32_0 = arith.constant 0 : i32
    %c0_i32_1 = arith.constant 0 : i32
    return %c0_i32, %c0_i32_0 : i32, i32
  }
  func.func @transform_7(%arg0: i32) -> (i32, i32) {
    %c0_i32 = arith.constant 0 : i32
    %c0_i32_0 = arith.constant 0 : i32
    %c0_i32_1 = arith.constant 0 : i32
    return %c0_i32, %c0_i32_0 : i32, i32
  }
  func.func @transform_8(%arg0: i32) -> (i32, i32) {
    %c0_i32 = arith.constant 0 : i32
    %c0_i32_0 = arith.constant 0 : i32
    %c0_i32_1 = arith.constant 0 : i32
    return %c0_i32, %c0_i32_0 : i32, i32
  }
  func.func @transform_9(%arg0: i32) -> (i32, i32, i32) {
    %c0_i32 = arith.constant 0 : i32
    %c0_i32_0 = arith.constant 0 : i32
    %c0_i32_1 = arith.constant 0 : i32
    return %arg0, %c0_i32, %c0_i32_0 : i32, i32, i32
  }
  func.func @transform_10(%arg0: i32) -> (i32, i32) {
    %c0_i32 = arith.constant 0 : i32
    %c0_i32_0 = arith.constant 0 : i32
    return %arg0, %c0_i32 : i32, i32
  }
  func.func @transform_11(%arg0: i32) -> (i32, i32) {
    %c0_i32 = arith.constant 0 : i32
    %c0_i32_0 = arith.constant 0 : i32
    return %arg0, %c0_i32 : i32, i32
  }
}

</mosaic_0001>

<bundles_post_ra>
// kernel: clip_linear_forward.3
= control target key start
LH: loop header
LB: loop body
LE: loop exit
PB: predicated region body
PF: predicated region fallthrough
CT: control target
= control target key end

     0   :  { %17 = vsyncpa [#allocation3], 0  ;;  %vm322_vm0 = vcmask 1040384   ;;  %s2347_s0 = inlined_call_operand.vmem [shape: bf16[2,4,768], index: 0, kind: input, shape index: {}]   ;;  %s2348_s1 = inlined_call_operand.vmem [shape: f32[1,768], index: 1, kind: input, shape index: {}]   ;;  %s2349_s2 = inlined_call_operand.vmem [shape: f32[4,768], index: 2, kind: input, shape index: {}]   ;;  %s2350_s3 = inlined_call_operand.vmem [shape: f32[1,768], index: 3, kind: input, shape index: {}]   ;;  %s2351_s4 = inlined_call_operand.vmem [shape: f32[1,768], index: 4, kind: input, shape index: {}]   ;;  %s2352_s5 = inlined_call_operand.vmem [shape: f32[1,768], index: 5, kind: input, shape index: {}]   ;;  %s2353_s6 = inlined_call_operand.vmem [shape: f32[1,768], index: 6, kind: input, shape index: {}]   ;;  %s2354_s7 = inlined_call_operand.vmem [shape: bf16[768,128], index: 7, kind: input, shape index: {}]   ;;  %s2355_s8 = inlined_call_operand.vmem [shape: f32[1,128], index: 8, kind: input, shape index: {}]   ;;  %s2356_s9 = inlined_call_operand.vmem [shape: f32[2,5,768], index: 9, kind: output, shape index: {0}]   ;;  %s2357_s10 = inlined_call_operand.hbm [shape: f32[2,128], index: 10, kind: output, shape index: {1}]   ;;  %s2358_s11 = inlined_call_operand.hbm [shape: f32[2,768], index: 11, kind: output, shape index: {2}]  }
   0x1   :  { %v1762_v0 = vld [vmem:[%s2348_s1] sm:$0x3f]  ;;  %v40_v6 = vld [vmem:[%s2347_s0 + $0x8] sm:$0xf]  ;;  %v51_v15 = vld [vmem:[%s2349_s2 + $0x10] sm:$0xff] }
   0x2   :  { %v39_v1 = vld [vmem:[%s2347_s0] sm:$0xff]  ;;  %v310_v2 = vperm.slane %v1762_v0, 0  ;;  %v311_v3 = vperm.slane %v1762_v0, 1  ;;  %v312_v4 = vperm.slane %v1762_v0, 2  ;;  %v313_v5 = vperm.slane %v1762_v0, 3  ;;  %v50_v11 = vld [vmem:[%s2349_s2 + $0x8] sm:$0xff] }
   0x3   :  { %v314_v7 = vperm.slane %v1762_v0, 4  ;;  %v43_v8 = vunpack.c.l.bf16 %v39_v1  ;;  %v44_v9 = vunpack.c.h.bf16 %v39_v1  ;;  %v49_v10 = vld [vmem:[%s2349_s2] sm:$0xff] }
   0x4   :  { %v323_v12 = vsel %vm322_vm0, %v310_v2, 0.0  ;;  %v324_v13 = vsel %vm322_vm0, %v311_v3, 0.0  ;;  %v326_v14 = vsel %vm322_vm0, %v312_v4, 0.0 }
   0x5   :  { %18 = vsyncpa [#allocation5], 0  ;;  %v325_v16 = vadd.f32 %v324_v13, %v323_v12  ;;  %v41_v17 = vld [vmem:[%s2347_s0 + $0xc] sm:$0xff]  ;;  %v45_v18 = vunpack.c.l.bf16 %v40_v6  ;;  %v315_v19 = vperm.slane %v1762_v0, 5  ;;  %v328_v20 = vsel %vm322_vm0, %v313_v5, 0.0  ;;  %s1336_s18 = sshll.u32 %s2357_s10, 4  ;;  %s1337_s18 = int_to_ptr.hbm [resolvable:$true] %s1336_s18 }
   0x6   :  { %v46_v21 = vunpack.c.l.bf16 %v41_v17  ;;  %v1792_v22 = vadd.f32 %v49_v10, %v43_v8  ;;  %v42_v24 = vld [vmem:[%s2347_s0 + $0x14] sm:$0xf]  ;;  %v1797_v25 = vadd.f32 %v50_v11, %v44_v9  ;;  %v330_v27 = vsel %vm322_vm0, %v314_v7, 0.0  ;;  %s1698_s10 = smov [#allocation4]   ;;  %s1347_s22 = sshll.u32 %s2358_s11, 4  ;;  %s1348_s22 = int_to_ptr.hbm [resolvable:$true] %s1347_s22 }
   0x7   :  { %v327_v23 = vadd.f32 %v326_v14, %v325_v16  ;;  %v1799_v26 = vadd.f32 %v51_v15, %v45_v18  ;;  %v332_v30 = vsel %vm322_vm0, %v315_v19, 0.0  ;;  %v48_v31 = vunpack.c.l.bf16 %v42_v24  ;;  %s1345_s19 = sshll.u32 %s1698_s10, 4  ;;  %s1346_s19 = int_to_ptr.vmem [resolvable:$true] %s1345_s19 }
   0x8   :  { %v1802_v28 = vadd.f32 %v49_v10, %v46_v21  ;;  %64 = vst [vmem:[#allocation1] ss:$2 sm:$0xff] %v1792_v22  ;;  %v47_v33 = vunpack.c.h.bf16 %v41_v17  ;;  %vm97_vm1 = vcmask 1043456   ;;  %v1695_v54 = vmov 768.0  }
   0x9   :  { %v329_v29 = vadd.f32 %v328_v20, %v327_v23  ;;  %66 = vst [vmem:[#allocation1 + $0x10] ss:$2 sm:$0xff] %v1797_v25  ;;  %v1809_v35 = vadd.f32 %v51_v15, %v48_v31  ;;  %1607 = vrcp.f32 %v1695_v54  ;;  %v1696_v3 = vmov 839922192  }
   0xa   :  { %68 = vst [vmem:[#allocation1 + $0x20] ss:$2 sm:$0xff] %v1799_v26  ;;  %v1811_v36 = vadd.f32 %v50_v11, %v47_v33  ;;  %v136_v4 = vunpack.c.l.s4 %v1696_v3  ;;  %vm474_vm9 = vcmask 1044480  }
   0xb   :  { %v331_v32 = vadd.f32 %v330_v27, %v329_v29  ;;  %76 = vst [vmem:[#allocation1 + $0x30] ss:$2 sm:$0xff] %v1802_v28 }
   0xc   :  { %v1831_v14 = vunpack.c.0.s8 %v136_v4 }
   0xd   :  { %v333_v34 = vadd.f32 %v332_v30, %v331_v32 }
   0xf   :  { %334 = vadd.xlane.f32.xlu0 %v333_v34  ;;  %v69_v37 = vld.sshfl [vmem:[#allocation1] sm:$0xff pattern:$0x75316420]  ;;  %v70_v38 = vld.sshfl [vmem:[#allocation1 + $0x8] sm:$0xff pattern:$0x75316420]  ;;  %v1608_v55 = vpop.eup %1607 }
  0x10   :  { %v71_v39 = vld.sshfl [vmem:[#allocation1 + $0x10] sm:$0xff pattern:$0x75316420]  ;;  %v72_v40 = vld.sshfl [vmem:[#allocation1 + $0x18] sm:$0xff pattern:$0x75316420]  ;;  %vm129_vm2 = vweird.f32 %v1608_v55 }
  0x11   :  { %80 = vst [vmem:[#allocation1 + $0x10] ss:$2 sm:$0xff] %v1809_v35  ;;  %v98_v41 = vsel %vm97_vm1, %v69_v37, 0.0  ;;  %v99_v42 = vsel %vm97_vm1, %v70_v38, 0.0  ;;  %v101_v43 = vsel %vm97_vm1, %v71_v39, 0.0  ;;  %v103_v46 = vsel %vm97_vm1, %v72_v40, 0.0 }
  0x12   :  { %v73_v44 = vld.sshfl [vmem:[#allocation1 + $0x20] sm:$0xff pattern:$0x75316420]  ;;  %v100_v45 = vadd.f32 %v99_v42, %v98_v41  ;;  %79 = vst [vmem:[#allocation1] ss:$2 sm:$0xff] %v1811_v36  ;;  %v125_v56 = vmul.f32 768.0, %v1608_v55 }
  0x13   :  { %v74_v47 = vld.sshfl [vmem:[#allocation1 + $0x28] sm:$0xff pattern:$0x75316420]  ;;  %v105_v49 = vsel %vm97_vm1, %v73_v44, 0.0 }
  0x14   :  { %v102_v48 = vadd.f32 %v101_v43, %v100_v45  ;;  %v107_v51 = vsel %vm97_vm1, %v74_v47, 0.0  ;;  %v126_v57 = vsub.f32 1.0, %v125_v56  ;;  %v77_v13 = vld.sshfl [vmem:[#allocation1 + $0x30] sm:$0xff pattern:$0x75316420] }
  0x15   :  { %v78_v16 = vld.sshfl [vmem:[#allocation1 + $0x38] sm:$0xff pattern:$0x75316420]  ;;  %v111_v17 = vsel %vm97_vm1, %v77_v13, 0.0 }
  0x16   :  { %v104_v50 = vadd.f32 %v103_v46, %v102_v48  ;;  %v127_v58 = vmul.f32 %v1608_v55, %v126_v57  ;;  %v112_v21 = vsel %vm97_vm1, %v78_v16, 0.0 }
  0x17   :  { %v113_v30 = vadd.f32 %v112_v21, %v111_v17 }
  0x18   :  { %v106_v52 = vadd.f32 %v105_v49, %v104_v50  ;;  %v128_v59 = vadd.f32 %v1608_v55, %v127_v58  ;;  %v83_v33 = vld.sshfl [vmem:[#allocation1 + $0x10] sm:$0xff pattern:$0x75316420]  ;;  %v84_v42 = vld.sshfl [vmem:[#allocation1 + $0x18] sm:$0xff pattern:$0x75316420] }
  0x19   :  { %v81_v11 = vld.sshfl [vmem:[#allocation1] sm:$0xff pattern:$0x75316420]  ;;  %v82_v24 = vld.sshfl [vmem:[#allocation1 + $0x8] sm:$0xff pattern:$0x75316420] }
  0x1a   :  { %v108_v53 = vadd.f32 %v107_v51, %v106_v52  ;;  %v1821_v60 = vsel %vm129_vm2, %v1608_v55, %v128_v59  ;;  %v114_v23 = vsel %vm97_vm1, %v81_v11, 0.0  ;;  %v116_v32 = vsel %vm97_vm1, %v82_v24, 0.0 }
  0x1b   :  { %v115_v38 = vadd.f32 %v114_v23, %v113_v30  ;;  %v118_v41 = vsel %vm97_vm1, %v83_v33, 0.0  ;;  %v120_v48 = vsel %vm97_vm1, %v84_v42, 0.0 }
  0x1c   :  { %109 = vadd.xlane.f32.xlu2 %v108_v53 }
  0x1d   :  { %v117_v46 = vadd.f32 %v116_v32, %v115_v38 }
  0x1f   :  { %v119_v51 = vadd.f32 %v118_v41, %v117_v46 }
  0x82   :  { %v335_v61 = vpop.xlane.xlu0 %334 }
  0x83   :  { %v336_v62 = vmul.f32 %v335_v61, %v1821_v60 }
  0x85   :  { %v338_v63 = vperm.slane %v336_v62, 0 }
  0x87   :  { %v1825_v1 = vsub.f32 %v1762_v0, %v338_v63 }
  0x89   :  { %v341_v2 = vmul.f32 %v1825_v1, %v1825_v1 }
  0x8b   :  { %v343_v5 = vperm.slane %v341_v2, 0  ;;  %v344_v6 = vperm.slane %v341_v2, 1  ;;  %v345_v7 = vperm.slane %v341_v2, 2  ;;  %v346_v8 = vperm.slane %v341_v2, 3 }
  0x8c   :  { %v347_v0 = vperm.slane %v341_v2, 4  ;;  %v348_v19 = vperm.slane %v341_v2, 5 }
  0x8d   :  { %v355_v9 = vsel %vm322_vm0, %v343_v5, 0.0  ;;  %v356_v10 = vsel %vm322_vm0, %v344_v6, 0.0  ;;  %v358_v15 = vsel %vm322_vm0, %v345_v7, 0.0  ;;  %v360_v29 = vsel %vm322_vm0, %v346_v8, 0.0 }
  0x8e   :  { %v357_v12 = vadd.f32 %v356_v10, %v355_v9  ;;  %v362_v37 = vsel %vm322_vm0, %v347_v0, 0.0  ;;  %v364_v40 = vsel %vm322_vm0, %v348_v19, 0.0 }
  0x8f   :  { %v110_v18 = vpop.xlane.xlu2 %109 }
  0x90   :  { %v359_v20 = vadd.f32 %v358_v15, %v357_v12  ;;  %v131_v27 = vmul.f32 %v1821_v60, %v110_v18 }
  0x92   :  { %v361_v31 = vadd.f32 %v360_v29, %v359_v20  ;;  %v138_v34 = vperm.slane %v131_v27, %v1831_v14 }
  0x94   :  { %v363_v39 = vadd.f32 %v362_v37, %v361_v31  ;;  %v1845_v43 = vsub.f32 %v1792_v22, %v138_v34  ;;  %v1848_v44 = vsub.f32 %v1797_v25, %v138_v34  ;;  %v1851_v45 = vsub.f32 %v1799_v26, %v138_v34  ;;  %v37_v31 = vld [vmem:[%s2350_s3] sm:$0x3f] }
  0x95   :  { %v121_v25 = vadd.f32 %v120_v48, %v119_v51  ;;  %v266_v51 = vperm.slane %v37_v31, 1 }
  0x96   :  { %v365_v47 = vadd.f32 %v364_v40, %v363_v39  ;;  %v151_v49 = vmul.f32 %v1845_v43, %v1845_v43  ;;  %v152_v50 = vmul.f32 %v1848_v44, %v1848_v44  ;;  %v153_v22 = vmul.f32 %v1851_v45, %v1851_v45 }
  0x97   :  { %122 = vadd.xlane.f32.xlu2 %v121_v25 }
  0x98   :  { %366 = vadd.xlane.f32.xlu0 %v365_v47  ;;  %163 = vst [vmem:[#allocation1] ss:$2 sm:$0xff] %v151_v49 }
  0x99   :  { %165 = vst [vmem:[#allocation1 + $0x10] ss:$2 sm:$0xff] %v152_v50 }
  0x9a   :  { %167 = vst [vmem:[#allocation1 + $0x20] ss:$2 sm:$0xff] %v153_v22 }
  0x9f   :  { %v168_v26 = vld.sshfl [vmem:[#allocation1] sm:$0xff pattern:$0x75316420]  ;;  %v169_v52 = vld.sshfl [vmem:[#allocation1 + $0x8] sm:$0xff pattern:$0x75316420] }
  0xa0   :  { %v170_v53 = vld.sshfl [vmem:[#allocation1 + $0x10] sm:$0xff pattern:$0x75316420]  ;;  %v171_v54 = vld.sshfl [vmem:[#allocation1 + $0x18] sm:$0xff pattern:$0x75316420] }
  0xa1   :  { %v196_v55 = vsel %vm97_vm1, %v168_v26, 0.0  ;;  %v197_v56 = vsel %vm97_vm1, %v169_v52, 0.0  ;;  %v199_v57 = vsel %vm97_vm1, %v170_v53, 0.0  ;;  %v172_v58 = vld.sshfl [vmem:[#allocation1 + $0x20] sm:$0xff pattern:$0x75316420] }
  0xa2   :  { %v198_v59 = vadd.f32 %v197_v56, %v196_v55  ;;  %v201_v61 = vsel %vm97_vm1, %v171_v54, 0.0  ;;  %v173_v62 = vld.sshfl [vmem:[#allocation1 + $0x28] sm:$0xff pattern:$0x75316420]  ;;  %v203_v2 = vsel %vm97_vm1, %v172_v58, 0.0  ;;  %v268_v26 = vperm.slane %v37_v31, 3 }
  0xa3   :  { %v205_v4 = vsel %vm97_vm1, %v173_v62, 0.0  ;;  %v270_v52 = vperm.slane %v37_v31, 5 }
  0xa4   :  { %v200_v63 = vadd.f32 %v199_v57, %v198_v59  ;;  %v265_v57 = vperm.slane %v37_v31, 0 }
  0xa6   :  { %v202_v3 = vadd.f32 %v201_v61, %v200_v63 }
  0xa8   :  { %v204_v5 = vadd.f32 %v203_v2, %v202_v3 }
  0xaa   :  { %v206_v6 = vadd.f32 %v205_v4, %v204_v5  ;;  %v267_v4 = vperm.slane %v37_v31, 2  ;;  %v269_v5 = vperm.slane %v37_v31, 4 }
  0xac   :  { %207 = vadd.xlane.f32.xlu0 %v206_v6  ;;  %v271_v6 = vrot.slane %v266_v51, 4 }
 0x10a   :  { %v123_v10 = vpop.xlane.xlu2 %122 }
 0x10b   :  { %v367_v7 = vpop.xlane.xlu0 %366  ;;  %v132_v11 = vmul.f32 %v1821_v60, %v123_v10  ;;  %v273_v10 = vrot.slane %v270_v52, 4 }
 0x10c   :  { %v368_v8 = vmul.f32 %v367_v7, %v1821_v60 }
 0x10d   :  { %v142_v12 = vperm.slane %v132_v11, %v1831_v14 }
 0x10e   :  { %v369_v9 = vadd.f32 1e-05, %v368_v8 }
 0x10f   :  { %v1870_v13 = vsub.f32 %v1811_v36, %v142_v12  ;;  %v1873_v0 = vsub.f32 %v1809_v35, %v142_v12  ;;  %v1880_v35 = vsub.f32 %v1802_v28, %v142_v12  ;;  %v38_v28 = vld [vmem:[%s2351_s4] sm:$0x3f] }
 0x110   :  { %1609 = vrsqrt.f32 %v369_v9  ;;  %vm376_vm4 = vweird.f32 %v369_v9  ;;  %v288_v58 = vperm.slane %v38_v28, 1  ;;  %v290_v62 = vperm.slane %v38_v28, 3 }
 0x111   :  { %v155_v16 = vmul.f32 %v1870_v13, %v1870_v13  ;;  %v156_v17 = vmul.f32 %v1873_v0, %v1873_v0  ;;  %v154_v30 = vmul.f32 %v1880_v35, %v1880_v35  ;;  %v292_v63 = vperm.slane %v38_v28, 5 }
 0x112   :  { %v287_v12 = vperm.slane %v38_v28, 0 }
 0x113   :  { %178 = vst [vmem:[#allocation1] ss:$2 sm:$0xff] %v155_v16  ;;  %v291_v16 = vperm.slane %v38_v28, 4 }
 0x114   :  { %179 = vst [vmem:[#allocation1 + $0x10] ss:$2 sm:$0xff] %v156_v17 }
 0x115   :  { %175 = vst [vmem:[#allocation1 + $0x30] ss:$2 sm:$0xff] %v154_v30 }
 0x116   :  { %v1610_v15 = vpop.eup %1609 }
 0x117   :  { %v371_v18 = vmul.f32 %v1610_v15, %v369_v9  ;;  %vm377_vm3 = vweird.f32 %v1610_v15  ;;  %v272_v9 = vrot.slane %v268_v26, 4 }
 0x118   :  { %vm378_vm5 = vmor %vm376_vm4, %vm377_vm3 }
 0x119   :  { %v372_v19 = vmul.f32 %v1610_v15, %v371_v18  ;;  %v293_v18 = vrot.slane %v288_v58, 4 }
 0x11b   :  { %v373_v20 = vmul.f32 0.5, %v372_v19  ;;  %v294_v19 = vrot.slane %v290_v62, 4 }
 0x11d   :  { %v374_v21 = vsub.f32 1.5, %v373_v20  ;;  %v295_v20 = vrot.slane %v292_v63, 4 }
 0x11f   :  { %v375_v23 = vmul.f32 %v1610_v15, %v374_v21  ;;  %v208_v24 = vpop.xlane.xlu0 %207 }
 0x120   :  { %v222_v29 = vmul.f32 %v208_v24, %v1821_v60  ;;  %v1938_v24 = vsel %vm97_vm1, %v269_v5, %v273_v10 }
 0x121   :  { %v379_v36 = vsel %vm378_vm5, %v1610_v15, %v375_v23  ;;  %v289_v15 = vperm.slane %v38_v28, 2  ;;  %v1932_v23 = vsel %vm97_vm1, %v265_v57, %v271_v6 }
 0x122   :  { %v381_v27 = vperm.slane %v379_v36, 0  ;;  %v224_v33 = vadd.f32 1e-05, %v222_v29  ;;  %v1935_v36 = vsel %vm97_vm1, %v267_v4, %v272_v9 }
 0x124   :  { %v383_v32 = vmul.f32 %v381_v27, %v1825_v1  ;;  %1611 = vrsqrt.f32 %v224_v33  ;;  %vm232_vm6 = vweird.f32 %v224_v33 }
 0x126   :  { %v384_v34 = vmul.f32 %v383_v32, %v37_v31  ;;  %v1944_v31 = vsel %vm97_vm1, %v287_v12, %v293_v18  ;;  %v1947_v32 = vsel %vm97_vm1, %v289_v15, %v294_v19 }
 0x128   :  { %v1892_v37 = vadd.f32 %v384_v34, %v38_v28 }
 0x12a   :  { %v1895_v38 = vperm.slane %v1892_v37, 0  ;;  %v1898_v39 = vperm.slane %v1892_v37, 1  ;;  %v1901_v40 = vperm.slane %v1892_v37, 2  ;;  %v1612_v1 = vpop.eup %1611  ;;  %v1904_v41 = vperm.slane %v1892_v37, 3 }
 0x12b   :  { %v227_v47 = vmul.f32 %v1612_v1, %v224_v33  ;;  %v1911_v49 = vperm.slane %v1892_v37, 4  ;;  %v1916_v53 = vperm.slane %v1892_v37, 5  ;;  %vm233_vm7 = vweird.f32 %v1612_v1 }
 0x12c   :  { %v717_v42 = vsel %vm322_vm0, %v1895_v38, 0.0  ;;  %v718_v46 = vsel %vm322_vm0, %v1898_v39, 0.0  ;;  %v720_v50 = vsel %vm322_vm0, %v1901_v40, 0.0  ;;  %v722_v54 = vsel %vm322_vm0, %v1904_v41, 0.0  ;;  %vm1922_vm8 = vmor %vm232_vm6, %vm233_vm7 }
 0x12d   :  { %v719_v48 = vadd.f32 %v718_v46, %v717_v42  ;;  %v228_v22 = vmul.f32 %v1612_v1, %v227_v47  ;;  %v724_v59 = vsel %vm322_vm0, %v1911_v49, 0.0  ;;  %v726_v7 = vsel %vm322_vm0, %v1916_v53, 0.0  ;;  %v1958_v42 = vld.sshfl [vmem:[#allocation1] sm:$0xff pattern:$0x75316420] }
 0x12e   :  { %v1950_v33 = vsel %vm97_vm1, %v291_v16, %v295_v20  ;;  %v1960_v46 = vld.sshfl [vmem:[#allocation1 + $0x8] sm:$0xff pattern:$0x75316420]  ;;  %v1962_v47 = vld.sshfl [vmem:[#allocation1 + $0x10] sm:$0xff pattern:$0x75316420] }
 0x12f   :  { %v721_v25 = vadd.f32 %v720_v50, %v719_v48  ;;  %v229_v55 = vmul.f32 0.5, %v228_v22  ;;  %v1964_v48 = vld.sshfl [vmem:[#allocation1 + $0x18] sm:$0xff pattern:$0x75316420] }
 0x131   :  { %v723_v56 = vadd.f32 %v722_v54, %v721_v25  ;;  %v230_v61 = vsub.f32 1.5, %v229_v55 }
 0x133   :  { %v725_v2 = vadd.f32 %v724_v59, %v723_v56  ;;  %v231_v8 = vmul.f32 %v1612_v1, %v230_v61 }
 0x135   :  { %v727_v11 = vadd.f32 %v726_v7, %v725_v2  ;;  %v235_v17 = vsel %vm1922_vm8, %v1612_v1, %v231_v8 }
 0x136   :  { %v251_v21 = vperm.slane %v235_v17, %v1831_v14 }
 0x137   :  { %728 = vadd.xlane.f32.xlu1 %v727_v11 }
 0x138   :  { %v258_v27 = vmul.f32 %v251_v21, %v1845_v43  ;;  %v259_v29 = vmul.f32 %v251_v21, %v1848_v44  ;;  %v260_v30 = vmul.f32 %v251_v21, %v1851_v45 }
 0x13a   :  { %v280_v28 = vmul.f32 %v1932_v23, %v258_v27  ;;  %v281_v34 = vmul.f32 %v1935_v36, %v259_v29  ;;  %v282_v1 = vmul.f32 %v1938_v24, %v260_v30 }
 0x13c   :  { %v302_v43 = vadd.f32 %v1944_v31, %v280_v28  ;;  %v303_v44 = vadd.f32 %v1947_v32, %v281_v34  ;;  %v304_v45 = vadd.f32 %v1950_v33, %v282_v1 }
 0x13e   :  { %409 = vst [vmem:[#allocation1 + $0x20] ss:$2 sm:$0xff] %v304_v45 }
 0x13f   :  { %405 = vst [vmem:[#allocation1] ss:$2 sm:$0xff] %v302_v43 }
 0x140   :  { %407 = vst [vmem:[#allocation1 + $0x10] ss:$2 sm:$0xff] %v303_v44 }
 0x145   :  { %v414_v50 = vld.sshfl [vmem:[#allocation1 + $0x20] sm:$0xff pattern:$0x75316420]  ;;  %v415_v22 = vld.sshfl [vmem:[#allocation1 + $0x28] sm:$0xff pattern:$0x75316420] }
 0x146   :  { %v430_v51 = vrot.slane %v414_v50, 7  ;;  %v431_v25 = vrot.slane %v415_v22, 7  ;;  %v410_v26 = vld.sshfl [vmem:[#allocation1] sm:$0xff pattern:$0x75316420] }
 0x147   :  { %v411_v52 = vld.sshfl [vmem:[#allocation1 + $0x8] sm:$0xff pattern:$0x75316420]  ;;  %v412_v54 = vld.sshfl [vmem:[#allocation1 + $0x10] sm:$0xff pattern:$0x75316420] }
 0x148   :  { %v1968_v55 = vsel %vm322_vm0, %v1911_v49, %v430_v51  ;;  %v1972_v56 = vsel %vm322_vm0, %v1916_v53, %v431_v25  ;;  %v413_v57 = vld.sshfl [vmem:[#allocation1 + $0x18] sm:$0xff pattern:$0x75316420]  ;;  %v426_v58 = vrot.slane %v410_v26, 7  ;;  %v427_v59 = vrot.slane %v411_v52, 7 }
 0x149   :  { %v466_v61 = vmul.f32 %v1968_v55, %v1968_v55  ;;  %v467_v62 = vmul.f32 %v1972_v56, %v1972_v56  ;;  %v428_v63 = vrot.slane %v412_v54, 7  ;;  %v429_v2 = vrot.slane %v413_v57, 7 }
 0x14a   :  { %v1980_v3 = vsel %vm322_vm0, %v1895_v38, %v426_v58  ;;  %v1984_v4 = vsel %vm322_vm0, %v1898_v39, %v427_v59 }
 0x14b   :  { %v503_v5 = vsel %vm474_vm9, %v466_v61, 0.0  ;;  %v510_v6 = vsel %vm474_vm9, %v467_v62, 0.0  ;;  %v1990_v7 = vsel %vm322_vm0, %v1901_v40, %v428_v63  ;;  %v1994_v8 = vsel %vm322_vm0, %v1904_v41, %v429_v2 }
 0x14c   :  { %v504_v9 = vrot.slane %v503_v5, 4  ;;  %v511_v10 = vrot.slane %v510_v6, 4  ;;  %v462_v11 = vmul.f32 %v1980_v3, %v1980_v3  ;;  %v463_v12 = vmul.f32 %v1984_v4, %v1984_v4 }
 0x14d   :  { %v464_v15 = vmul.f32 %v1990_v7, %v1990_v7  ;;  %v465_v16 = vmul.f32 %v1994_v8, %v1994_v8 }
 0x14e   :  { %v505_v17 = vadd.f32 %v504_v9, %v503_v5  ;;  %v512_v18 = vadd.f32 %v511_v10, %v510_v6  ;;  %v475_v19 = vsel %vm474_vm9, %v462_v11, 0.0  ;;  %v482_v20 = vsel %vm474_vm9, %v463_v12, 0.0 }
 0x14f   :  { %v476_v21 = vrot.slane %v475_v19, 4  ;;  %v483_v27 = vrot.slane %v482_v20, 4  ;;  %v489_v29 = vsel %vm474_vm9, %v464_v15, 0.0  ;;  %v496_v30 = vsel %vm474_vm9, %v465_v16, 0.0 }
 0x150   :  { %v506_v28 = vrot.slane %v505_v17, 2  ;;  %v513_v34 = vrot.slane %v512_v18, 2  ;;  %v490_v1 = vrot.slane %v489_v29, 4  ;;  %v497_v43 = vrot.slane %v496_v30, 4 }
 0x151   :  { %v477_v44 = vadd.f32 %v476_v21, %v475_v19  ;;  %v484_v45 = vadd.f32 %v483_v27, %v482_v20 }
 0x152   :  { %v507_v50 = vadd.f32 %v506_v28, %v505_v17  ;;  %v514_v22 = vadd.f32 %v513_v34, %v512_v18  ;;  %v491_v51 = vadd.f32 %v490_v1, %v489_v29  ;;  %v498_v25 = vadd.f32 %v497_v43, %v496_v30 }
 0x153   :  { %v478_v26 = vrot.slane %v477_v44, 2  ;;  %v485_v52 = vrot.slane %v484_v45, 2 }
 0x154   :  { %v508_v54 = vrot.slane %v507_v50, 1  ;;  %v515_v57 = vrot.slane %v514_v22, 1  ;;  %v492_v58 = vrot.slane %v491_v51, 2  ;;  %v499_v59 = vrot.slane %v498_v25, 2 }
 0x155   :  { %v479_v61 = vadd.f32 %v478_v26, %v477_v44  ;;  %v486_v62 = vadd.f32 %v485_v52, %v484_v45 }
 0x156   :  { %v509_v63 = vadd.f32 %v508_v54, %v507_v50  ;;  %v516_v2 = vadd.f32 %v515_v57, %v514_v22  ;;  %v493_v5 = vadd.f32 %v492_v58, %v491_v51  ;;  %v500_v6 = vadd.f32 %v499_v59, %v498_v25 }
 0x157   :  { %v480_v9 = vrot.slane %v479_v61, 1  ;;  %v487_v10 = vrot.slane %v486_v62, 1 }
 0x158   :  { %v563_v11 = vmax.f32 %v509_v63, 1e-24  ;;  %v564_v12 = vmax.f32 %v516_v2, 1e-24  ;;  %v494_v15 = vrot.slane %v493_v5, 1  ;;  %v501_v16 = vrot.slane %v500_v6, 1 }
 0x159   :  { %v481_v17 = vadd.f32 %v480_v9, %v479_v61  ;;  %v488_v18 = vadd.f32 %v487_v10, %v486_v62 }
 0x15a   :  { %1613 = vrsqrt.f32 %v563_v11  ;;  %v495_v19 = vadd.f32 %v494_v15, %v493_v5  ;;  %v502_v20 = vadd.f32 %v501_v16, %v500_v6  ;;  %vm617_vm10 = vweird.f32 %v563_v11 }
 0x15b   :  { %1615 = vrsqrt.f32 %v564_v12  ;;  %v559_v21 = vmax.f32 %v481_v17, 1e-24  ;;  %v560_v27 = vmax.f32 %v488_v18, 1e-24  ;;  %vm627_vm11 = vweird.f32 %v564_v12 }
 0x15c   :  { %v2008_v29 = vmax.f32 %v495_v19, 1e-24  ;;  %v2010_v30 = vmax.f32 %v502_v20, 1e-24 }
 0x15d   :  { %1617 = vrsqrt.f32 %v559_v21  ;;  %vm577_vm12 = vweird.f32 %v559_v21  ;;  %vm587_vm13 = vweird.f32 %v560_v27 }
 0x15e   :  { %1619 = vrsqrt.f32 %v560_v27 }
 0x15f   :  { %1621 = vrsqrt.f32 %v2008_v29 }
 0x160   :  { %v1614_v28 = vpop.eup %1613  ;;  %1623 = vrsqrt.f32 %v2010_v30 }
 0x161   :  { %v1616_v34 = vpop.eup %1615  ;;  %v612_v1 = vmul.f32 %v1614_v28, %v563_v11  ;;  %vm618_vm14 = vweird.f32 %v1614_v28 }
 0x162   :  { %v622_v43 = vmul.f32 %v1616_v34, %v564_v12  ;;  %vm628_vm15 = vweird.f32 %v1616_v34  ;;  %vm619_vm3 = vmor %vm617_vm10, %vm618_vm14  ;;  %vm607_vm14 = vweird.f32 %v2010_v30 }
 0x163   :  { %v1618_v44 = vpop.eup %1617  ;;  %v613_v45 = vmul.f32 %v1614_v28, %v612_v1  ;;  %vm629_vm5 = vmor %vm627_vm11, %vm628_vm15  ;;  %vm597_vm11 = vweird.f32 %v2008_v29 }
 0x164   :  { %v1620_v50 = vpop.eup %1619  ;;  %v623_v22 = vmul.f32 %v1616_v34, %v622_v43  ;;  %v572_v51 = vmul.f32 %v1618_v44, %v559_v21  ;;  %vm578_vm2 = vweird.f32 %v1618_v44 }
 0x165   :  { %v1622_v25 = vpop.eup %1621  ;;  %v614_v26 = vmul.f32 0.5, %v613_v45  ;;  %v582_v52 = vmul.f32 %v1620_v50, %v560_v27  ;;  %vm588_vm4 = vweird.f32 %v1620_v50  ;;  %vm579_vm7 = vmor %vm577_vm12, %vm578_vm2 }
 0x166   :  { %v1624_v54 = vpop.eup %1623  ;;  %v624_v57 = vmul.f32 0.5, %v623_v22  ;;  %v573_v58 = vmul.f32 %v1618_v44, %v572_v51  ;;  %v592_v59 = vmul.f32 %v1622_v25, %v2008_v29  ;;  %vm598_vm6 = vweird.f32 %v1622_v25  ;;  %vm589_vm10 = vmor %vm587_vm13, %vm588_vm4 }
 0x167   :  { %v615_v61 = vsub.f32 1.5, %v614_v26  ;;  %v583_v62 = vmul.f32 %v1620_v50, %v582_v52  ;;  %v602_v63 = vmul.f32 %v1624_v54, %v2010_v30  ;;  %vm608_vm8 = vweird.f32 %v1624_v54  ;;  %vm599_vm12 = vmor %vm597_vm11, %vm598_vm6  ;;  %v1569_v30 = vld [vmem:[%s2354_s7 + $0x70] sm:$0xff] }
 0x168   :  { %v625_v2 = vsub.f32 1.5, %v624_v57  ;;  %v574_v5 = vmul.f32 0.5, %v573_v58  ;;  %v593_v6 = vmul.f32 %v1622_v25, %v592_v59  ;;  %vm609_vm15 = vmor %vm607_vm14, %vm608_vm8  ;;  %v177_v58 = vld.sshfl [vmem:[#allocation1 + $0x38] sm:$0xff pattern:$0x75316420]  ;;  %v1560_v59 = vld [vmem:[%s2354_s7 + $0x28] sm:$0xff] }
 0x169   :  { %v616_v9 = vmul.f32 %v1614_v28, %v615_v61  ;;  %v584_v10 = vmul.f32 0.5, %v583_v62  ;;  %v603_v15 = vmul.f32 %v1624_v54, %v602_v63  ;;  %v1568_v61 = vld [vmem:[%s2354_s7 + $0x68] sm:$0xff] }
 0x16a   :  { %v626_v16 = vmul.f32 %v1616_v34, %v625_v2  ;;  %v575_v17 = vsub.f32 1.5, %v574_v5  ;;  %v594_v18 = vmul.f32 0.5, %v593_v6  ;;  %v210_v5 = vsel %vm97_vm1, %v177_v58, 0.0  ;;  %v1575_v58 = vld [vmem:[%s2354_s7 + $0xa0] sm:$0xff] }
 0x16b   :  { %v620_v19 = vsel %vm619_vm3, %v1614_v28, %v616_v9  ;;  %v585_v20 = vsub.f32 1.5, %v584_v10  ;;  %v604_v1 = vmul.f32 0.5, %v603_v15 }
 0x16c   :  { %v630_v43 = vsel %vm629_vm5, %v1616_v34, %v626_v16  ;;  %v695_v45 = vmul.f32 %v620_v19, %v1968_v55  ;;  %v576_v22 = vmul.f32 %v1618_v44, %v575_v17  ;;  %v595_v51 = vsub.f32 1.5, %v594_v18 }
 0x16d   :  { %v696_v26 = vmul.f32 %v630_v43, %v1972_v56  ;;  %v586_v11 = vmul.f32 %v1620_v50, %v585_v20  ;;  %v605_v52 = vsub.f32 1.5, %v604_v1 }
 0x16e   :  { %707 = vst [vmem:[%s2356_s9 + $0x20] sm:$0x1f] %v695_v45  ;;  %v580_v12 = vsel %vm579_vm7, %v1618_v44, %v576_v22  ;;  %v596_v28 = vmul.f32 %v1622_v25, %v595_v51 }
 0x16f   :  { %708 = vst [vmem:[%s2356_s9 + $0x28] sm:$0x1f] %v696_v26  ;;  %v590_v55 = vsel %vm589_vm10, %v1620_v50, %v586_v11  ;;  %v606_v56 = vmul.f32 %v1624_v54, %v605_v52  ;;  %v691_v21 = vmul.f32 %v580_v12, %v1980_v3  ;;  %v1562_v3 = vld [vmem:[%s2354_s7 + $0x38] sm:$0xff]  ;;  %v214_v26 = vsel %vm97_vm1, %v1960_v46, 0.0  ;;  %v1559_v46 = vld [vmem:[%s2354_s7 + $0x20] sm:$0xff] }
 0x170   :  { %v600_v34 = vsel %vm599_vm12, %v1622_v25, %v596_v28  ;;  %v692_v27 = vmul.f32 %v590_v55, %v1984_v4  ;;  %v1570_v4 = vld [vmem:[%s2354_s7 + $0x78] sm:$0xff]  ;;  %1184 = vmatpush.bf16.msra.mxu0 %v1562_v3  ;;  %v1577_v3 = vld [vmem:[%s2354_s7 + $0xb0] sm:$0xff] }
 0x171   :  { %v610_v44 = vsel %vm609_vm15, %v1624_v54, %v606_v56  ;;  %v693_v57 = vmul.f32 %v600_v34, %v1990_v7  ;;  %703 = vst [vmem:[%s2356_s9] sm:$0x1f] %v691_v21  ;;  %1197 = vmatpush.bf16.msra.mxu1 %v1570_v4  ;;  %v176_v54 = vld.sshfl [vmem:[#allocation1 + $0x30] sm:$0xff pattern:$0x75316420]  ;;  %v218_v34 = vsel %vm97_vm1, %v1964_v48, 0.0  ;;  %v1558_v48 = vld [vmem:[%s2354_s7 + $0x18] sm:$0xff] }
 0x172   :  { %v694_v29 = vmul.f32 %v610_v44, %v1994_v8  ;;  %704 = vst [vmem:[%s2356_s9 + $0x8] sm:$0x1f] %v692_v27  ;;  %v1561_v8 = vld [vmem:[%s2354_s7 + $0x30] sm:$0xff]  ;;  %v209_v2 = vsel %vm97_vm1, %v176_v54, 0.0  ;;  %v1567_v44 = vld [vmem:[%s2354_s7 + $0x60] sm:$0xff]  ;;  %v1564_v54 = vld [vmem:[%s2354_s7 + $0x48] sm:$0xff] }
 0x173   :  { %705 = vst [vmem:[%s2356_s9 + $0x10] sm:$0x1f] %v693_v57  ;;  %v211_v15 = vadd.f32 %v210_v5, %v209_v2  ;;  %v1586_v57 = vld [vmem:[%s2354_s7 + $0xf8] sm:$0xff]  ;;  %v1585_v4 = vld [vmem:[%s2354_s7 + $0xf0] sm:$0xff] }
 0x174   :  { %706 = vst [vmem:[%s2356_s9 + $0x18] sm:$0x1f] %v694_v29  ;;  %1185 = vmatpush.bf16.msra.mxu0 %v1561_v8  ;;  %1223 = vmatpush.bf16.msra.mxu3 %v1586_v57  ;;  %v1566_v29 = vld [vmem:[%s2354_s7 + $0x58] sm:$0xff]  ;;  %v1565_v8 = vld [vmem:[%s2354_s7 + $0x50] sm:$0xff] }
 0x175   :  { %1198 = vmatpush.bf16.msra.mxu1 %v1569_v30  ;;  %v1576_v30 = vld [vmem:[%s2354_s7 + $0xa8] sm:$0xff]  ;;  %v1574_v2 = vld [vmem:[%s2354_s7 + $0x98] sm:$0xff] }
 0x176   :  { %v1582_v5 = vld [vmem:[%s2354_s7 + $0xd8] sm:$0xff] }
 0x178   :  { %1186 = vmatpush.bf16.msra.mxu0 %v1560_v59  ;;  %1224 = vmatpush.bf16.msra.mxu3 %v1585_v4  ;;  %v1583_v59 = vld [vmem:[%s2354_s7 + $0xe0] sm:$0xff]  ;;  %v1588_v4 = vld [vmem:[%s2354_s7 + $0x108] sm:$0xff] }
 0x179   :  { %1199 = vmatpush.bf16.msra.mxu1 %v1568_v61  ;;  %v1555_v61 = vld [vmem:[%s2354_s7] sm:$0xff] }
 0x17c   :  { %1187 = vmatpush.bf16.msra.mxu0 %v1559_v46  ;;  %v1589_v46 = vld [vmem:[%s2354_s7 + $0x110] sm:$0xff] }
 0x17d   :  { %1200 = vmatpush.bf16.msra.mxu1 %v1567_v44  ;;  %v1597_v44 = vld [vmem:[%s2354_s7 + $0x150] sm:$0xff] }
 0x180   :  { %1188 = vmatpush.bf16.msra.mxu0 %v1558_v48 }
 0x181   :  { %1201 = vmatpush.bf16.msra.mxu1 %v1566_v29 }
 0x185   :  { %1202 = vmatpush.bf16.msra.mxu1 %v1565_v8 }
 0x189   :  { %1203 = vmatpush.bf16.msra.mxu1 %v1564_v54  ;;  %v716_v54 = vld [vmem:[%s2353_s6] sm:$0x3f] }
 0x1aa   :  { %v729_v7 = vpop.xlane.xlu1 %728 }
 0x1ab   :  { %v730_v50 = vmul.f32 %v729_v7, %v1821_v60  ;;  %v1557_v7 = vld [vmem:[%s2354_s7 + $0x10] sm:$0xff] }
 0x1ac   :  { %1189 = vmatpush.bf16.msra.mxu0 %v1557_v7  ;;  %v1596_v7 = vld [vmem:[%s2354_s7 + $0x148] sm:$0xff] }
 0x1ad   :  { %v732_v25 = vperm.slane %v730_v50, 0  ;;  %v1584_v50 = vld [vmem:[%s2354_s7 + $0xe8] sm:$0xff] }
 0x1ae   :  { %1225 = vmatpush.bf16.msra.mxu3 %v1584_v50 }
 0x1af   :  { %v2069_v62 = vsub.f32 %v1892_v37, %v732_v25  ;;  %v212_v37 = vsel %vm97_vm1, %v1958_v42, 0.0  ;;  %v216_v42 = vsel %vm97_vm1, %v1962_v47, 0.0  ;;  %v1578_v47 = vld [vmem:[%s2354_s7 + $0xb8] sm:$0xff]  ;;  %v1556_v25 = vld [vmem:[%s2354_s7 + $0x8] sm:$0xff] }
 0x1b0   :  { %v213_v45 = vadd.f32 %v212_v37, %v211_v15  ;;  %1210 = vmatpush.bf16.msra.mxu2 %v1578_v47  ;;  %1190 = vmatpush.bf16.msra.mxu0 %v1556_v25 }
 0x1b1   :  { %v735_v63 = vmul.f32 %v2069_v62, %v2069_v62 }
 0x1b2   :  { %v215_v28 = vadd.f32 %v214_v26, %v213_v45  ;;  %1226 = vmatpush.bf16.msra.mxu3 %v1583_v59  ;;  %v1600_v45 = vld [vmem:[%s2354_s7 + $0x168] sm:$0xff]  ;;  %v1571_v26 = vld [vmem:[%s2354_s7 + $0x80] sm:$0xff] }
 0x1b3   :  { %v737_v6 = vperm.slane %v735_v63, 0  ;;  %v738_v9 = vperm.slane %v735_v63, 1  ;;  %v739_v10 = vperm.slane %v735_v63, 2  ;;  %v740_v16 = vperm.slane %v735_v63, 3  ;;  %v1587_v59 = vld [vmem:[%s2354_s7 + $0x100] sm:$0xff] }
 0x1b4   :  { %v741_v20 = vperm.slane %v735_v63, 4  ;;  %v742_v22 = vperm.slane %v735_v63, 5  ;;  %v217_v21 = vadd.f32 %v216_v42, %v215_v28  ;;  %1211 = vmatpush.bf16.msra.mxu2 %v1577_v3  ;;  %v1563_v63 = vld [vmem:[%s2354_s7 + $0x40] sm:$0xff]  ;;  %1191 = vmatpush.bf16.msra.mxu0 %v1555_v61 }
 0x1b5   :  { %v749_v17 = vsel %vm322_vm0, %v737_v6, 0.0  ;;  %v750_v18 = vsel %vm322_vm0, %v738_v9, 0.0  ;;  %v752_v1 = vsel %vm322_vm0, %v739_v10, 0.0  ;;  %v754_v51 = vsel %vm322_vm0, %v740_v16, 0.0  ;;  %v1594_v6 = vld [vmem:[%s2354_s7 + $0x138] sm:$0xff]  ;;  %1204 = vmatpush.bf16.msra.mxu1 %v1563_v63  ;;  %v1573_v16 = vld [vmem:[%s2354_s7 + $0x90] sm:$0xff] }
 0x1b6   :  { %v751_v19 = vadd.f32 %v750_v18, %v749_v17  ;;  %v756_v52 = vsel %vm322_vm0, %v741_v20, 0.0  ;;  %v758_v55 = vsel %vm322_vm0, %v742_v22, 0.0  ;;  %v219_v27 = vadd.f32 %v218_v34, %v217_v21  ;;  %v1602_v9 = vld [vmem:[%s2354_s7 + $0x178] sm:$0xff]  ;;  %1227 = vmatpush.bf16.msra.mxu3 %v1582_v5  ;;  %v1581_v17 = vld [vmem:[%s2354_s7 + $0xd0] sm:$0xff]  ;;  %v1572_v20 = vld [vmem:[%s2354_s7 + $0x88] sm:$0xff] }
 0x1b7   :  { %v1593_v18 = vld [vmem:[%s2354_s7 + $0x130] sm:$0xff]  ;;  %v1598_v21 = vld [vmem:[%s2354_s7 + $0x158] sm:$0xff]  ;;  %v1595_v61 = vld [vmem:[%s2354_s7 + $0x140] sm:$0xff] }
 0x1b8   :  { %v753_v43 = vadd.f32 %v752_v1, %v751_v19  ;;  %1212 = vmatpush.bf16.msra.mxu2 %v1576_v30  ;;  %1236 = vmatpush.bf16.msrb.mxu0 %v1594_v6  ;;  %v1601_v19 = vld [vmem:[%s2354_s7 + $0x170] sm:$0xff]  ;;  %v1580_v1 = vld [vmem:[%s2354_s7 + $0xc8] sm:$0xff]  ;;  %v715_v30 = vld [vmem:[%s2352_s5] sm:$0x3f] }
 0x1b9   :  { %1249 = vmatpush.bf16.msrb.mxu1 %v1602_v9 }
 0x1ba   :  { %v755_v11 = vadd.f32 %v754_v51, %v753_v43  ;;  %1228 = vmatpush.bf16.msra.mxu3 %v1581_v17  ;;  %v1592_v43 = vld [vmem:[%s2354_s7 + $0x128] sm:$0xff] }
 0x1bc   :  { %v757_v12 = vadd.f32 %v756_v52, %v755_v11  ;;  %1213 = vmatpush.bf16.msra.mxu2 %v1575_v58  ;;  %1237 = vmatpush.bf16.msrb.mxu0 %v1593_v18  ;;  %v1579_v11 = vld [vmem:[%s2354_s7 + $0xc0] sm:$0xff] }
 0x1bd   :  { %1250 = vmatpush.bf16.msrb.mxu1 %v1601_v19  ;;  %v1591_v52 = vld [vmem:[%s2354_s7 + $0x120] sm:$0xff] }
 0x1be   :  { %v759_v56 = vadd.f32 %v758_v55, %v757_v12  ;;  %1229 = vmatpush.bf16.msra.mxu3 %v1580_v1 }
 0x1c0   :  { %760 = vadd.xlane.f32.xlu1 %v759_v56  ;;  %1214 = vmatpush.bf16.msra.mxu2 %v1574_v2  ;;  %v1590_v56 = vld [vmem:[%s2354_s7 + $0x118] sm:$0xff] }
 0x1c1   :  { %1238 = vmatpush.bf16.msrb.mxu0 %v1592_v43  ;;  %1251 = vmatpush.bf16.msrb.mxu1 %v1600_v45 }
 0x1c2   :  { %1230 = vmatpush.bf16.msra.mxu3 %v1579_v11 }
 0x1c4   :  { %1215 = vmatpush.bf16.msra.mxu2 %v1573_v16 }
 0x1c5   :  { %1239 = vmatpush.bf16.msrb.mxu0 %v1591_v52 }
 0x1c8   :  { %220 = vadd.xlane.f32.xlu1 %v219_v27  ;;  %1216 = vmatpush.bf16.msra.mxu2 %v1572_v20 }
 0x1c9   :  { %1240 = vmatpush.bf16.msrb.mxu0 %v1590_v56 }
 0x1cc   :  { %1217 = vmatpush.bf16.msra.mxu2 %v1571_v26 }
 0x1cd   :  { %1241 = vmatpush.bf16.msrb.mxu0 %v1589_v46 }
 0x1d1   :  { %1242 = vmatpush.bf16.msrb.mxu0 %v1588_v4 }
 0x1d5   :  { %1243 = vmatpush.bf16.msrb.mxu0 %v1587_v59 }
 0x233   :  { %v761_v10 = vpop.xlane.xlu1 %760 }
 0x234   :  { %v762_v15 = vmul.f32 %v761_v10, %v1821_v60 }
 0x236   :  { %v763_v37 = vadd.f32 1e-05, %v762_v15 }
 0x238   :  { %1625 = vrsqrt.f32 %v763_v37  ;;  %vm770_vm2 = vweird.f32 %v763_v37 }
 0x23b   :  { %v221_v22 = vpop.xlane.xlu1 %220 }
 0x23c   :  { %v223_v51 = vmul.f32 %v221_v22, %v1821_v60  ;;  %v1599_v60 = vld [vmem:[%s2354_s7 + $0x160] sm:$0xff] }
 0x23d   :  { %1252 = vmatpush.bf16.msrb.mxu1 %v1599_v60 }
 0x23e   :  { %v1626_v12 = vpop.eup %1625  ;;  %v225_v28 = vadd.f32 1e-05, %v223_v51 }
 0x23f   :  { %v765_v55 = vmul.f32 %v1626_v12, %v763_v37  ;;  %vm771_vm13 = vweird.f32 %v1626_v12 }
 0x240   :  { %1627 = vrsqrt.f32 %v225_v28  ;;  %vm772_vm3 = vmor %vm770_vm2, %vm771_vm13  ;;  %vm242_vm4 = vweird.f32 %v225_v28 }
 0x241   :  { %v766_v42 = vmul.f32 %v1626_v12, %v765_v55  ;;  %1253 = vmatpush.bf16.msrb.mxu1 %v1598_v21 }
 0x243   :  { %v767_v34 = vmul.f32 0.5, %v766_v42 }
 0x245   :  { %v768_v27 = vsub.f32 1.5, %v767_v34  ;;  %1254 = vmatpush.bf16.msrb.mxu1 %v1597_v44 }
 0x246   :  { %v1628_v47 = vpop.eup %1627 }
 0x247   :  { %v769_v57 = vmul.f32 %v1626_v12, %v768_v27  ;;  %v237_v48 = vmul.f32 %v1628_v47, %v225_v28  ;;  %vm243_vm5 = vweird.f32 %v1628_v47 }
 0x248   :  { %vm244_vm6 = vmor %vm242_vm4, %vm243_vm5 }
 0x249   :  { %v773_v29 = vsel %vm772_vm3, %v1626_v12, %v769_v57  ;;  %v238_v3 = vmul.f32 %v1628_v47, %v237_v48  ;;  %1255 = vmatpush.bf16.msrb.mxu1 %v1596_v7 }
 0x24a   :  { %v775_v8 = vperm.slane %v773_v29, 0 }
 0x24b   :  { %v239_v50 = vmul.f32 0.5, %v238_v3 }
 0x24c   :  { %v777_v25 = vmul.f32 %v775_v8, %v2069_v62 }
 0x24d   :  { %v240_v58 = vsub.f32 1.5, %v239_v50  ;;  %1256 = vmatpush.bf16.msrb.mxu1 %v1595_v61 }
 0x24e   :  { %v778_v63 = vmul.f32 %v777_v25, %v715_v30 }
 0x24f   :  { %v241_v2 = vmul.f32 %v1628_v47, %v240_v58 }
 0x250   :  { %v2224_v5 = vadd.f32 %v778_v63, %v716_v54 }
 0x251   :  { %v245_v62 = vsel %vm244_vm6, %v1628_v47, %v241_v2 }
 0x252   :  { %v255_v6 = vperm.slane %v245_v62, %v1831_v14  ;;  %v781_v9 = vperm.slane %v2224_v5, 0  ;;  %v782_v10 = vperm.slane %v2224_v5, 1  ;;  %v783_v15 = vperm.slane %v2224_v5, 2 }
 0x253   :  { %v784_v16 = vperm.slane %v2224_v5, 3  ;;  %v1264_v17 = vmul.f32 %v2224_v5, %v2224_v5  ;;  %v785_v56 = vperm.slane %v2224_v5, 4  ;;  %v786_v27 = vperm.slane %v2224_v5, 5 }
 0x254   :  { %v261_v18 = vmul.f32 %v255_v6, %v1880_v35  ;;  %v262_v37 = vmul.f32 %v255_v6, %v1870_v13  ;;  %v263_v19 = vmul.f32 %v255_v6, %v1873_v0  ;;  %v793_v20 = vpack.c.bf16 %v781_v9, %v781_v9 }
 0x255   :  { %v794_v1 = vpack.c.bf16 %v782_v10, %v782_v10  ;;  %v795_v14 = vpack.c.bf16 %v783_v15, %v783_v15  ;;  %v796_v43 = vpack.c.bf16 %v784_v16, %v784_v16  ;;  %v1266_v45 = vperm.slane %v1264_v17, 0 }
 0x256   :  { %v283_v22 = vmul.f32 %v1932_v23, %v261_v18  ;;  %v284_v51 = vmul.f32 %v1935_v36, %v262_v37  ;;  %v285_v26 = vmul.f32 %v1938_v24, %v263_v19  ;;  %1192 = vmatmul.bf16.vlgmr.msra.gmra.mxu0 %v793_v20  ;;  %v1267_v11 = vperm.slane %v1264_v17, 1 }
 0x257   :  { %1205 = vmatmul.bf16.vlgmr.msra.gmra.mxu1 %v794_v1  ;;  %1218 = vmatmul.bf16.vlgmr.msra.gmra.mxu2 %v795_v14  ;;  %v1268_v35 = vperm.slane %v1264_v17, 2  ;;  %v1278_v12 = vsel %vm322_vm0, %v1266_v45, 0.0  ;;  %v1269_v28 = vperm.slane %v1264_v17, 3  ;;  %v1270_v24 = vperm.slane %v1264_v17, 4 }
 0x258   :  { %v305_v13 = vadd.f32 %v1944_v31, %v283_v22  ;;  %v306_v0 = vadd.f32 %v1947_v32, %v284_v51  ;;  %v307_v52 = vadd.f32 %v1950_v33, %v285_v26  ;;  %1231 = vmatmul.bf16.vlgmr.msra.gmra.mxu3 %v796_v43  ;;  %v1279_v23 = vsel %vm322_vm0, %v1267_v11, 0.0 }
 0x259   :  { %v1280_v36 = vadd.f32 %v1279_v23, %v1278_v12  ;;  %v1281_v60 = vsel %vm322_vm0, %v1268_v35, 0.0  ;;  %v1271_v55 = vperm.slane %v1264_v17, 5  ;;  %v1283_v31 = vsel %vm322_vm0, %v1269_v28, 0.0 }
 0x25a   :  { %417 = vst [vmem:[#allocation1 + $0x30] ss:$2 sm:$0xff] %v305_v13  ;;  %v1285_v33 = vsel %vm322_vm0, %v1270_v24, 0.0  ;;  %v797_v4 = vpack.c.bf16 %v785_v56, %v785_v56  ;;  %v798_v58 = vpack.c.bf16 %v786_v27, %v786_v27 }
 0x25b   :  { %420 = vst [vmem:[#allocation1] ss:$2 sm:$0xff] %v306_v0  ;;  %v1282_v42 = vadd.f32 %v1281_v60, %v1280_v36  ;;  %v1287_v34 = vsel %vm322_vm0, %v1271_v55, 0.0 }
 0x25c   :  { %421 = vst [vmem:[#allocation1 + $0x10] ss:$2 sm:$0xff] %v307_v52 }
 0x25d   :  { %v1284_v32 = vadd.f32 %v1283_v31, %v1282_v42 }
 0x25f   :  { %v1286_v21 = vadd.f32 %v1285_v33, %v1284_v32 }
 0x261   :  { %v418_v46 = vld.sshfl [vmem:[#allocation1 + $0x30] sm:$0xff pattern:$0x75316420]  ;;  %v419_v44 = vld.sshfl [vmem:[#allocation1 + $0x38] sm:$0xff pattern:$0x75316420]  ;;  %v1288_v48 = vadd.f32 %v1287_v34, %v1286_v21 }
 0x262   :  { %v422_v47 = vld.sshfl [vmem:[#allocation1] sm:$0xff pattern:$0x75316420]  ;;  %v423_v57 = vld.sshfl [vmem:[#allocation1 + $0x8] sm:$0xff pattern:$0x75316420] }
 0x263   :  { %v424_v29 = vld.sshfl [vmem:[#allocation1 + $0x10] sm:$0xff pattern:$0x75316420]  ;;  %v425_v3 = vld.sshfl [vmem:[#allocation1 + $0x18] sm:$0xff pattern:$0x75316420]  ;;  %1289 = vadd.xlane.f32.xlu2 %v1288_v48 }
 0x264   :  { %v432_v7 = vrot.slane %v418_v46, 7  ;;  %v433_v8 = vrot.slane %v419_v44, 7  ;;  %v434_v30 = vrot.slane %v422_v47, 7  ;;  %v435_v50 = vrot.slane %v423_v57, 7 }
 0x265   :  { %v436_v25 = vrot.slane %v424_v29, 7  ;;  %v437_v54 = vrot.slane %v425_v3, 7 }
 0x266   :  { %v2252_v59 = vsel %vm322_vm0, %v1895_v38, %v432_v7  ;;  %v2256_v61 = vsel %vm322_vm0, %v1898_v39, %v433_v8  ;;  %v2260_v63 = vsel %vm322_vm0, %v1901_v40, %v434_v30  ;;  %v2264_v2 = vsel %vm322_vm0, %v1904_v41, %v435_v50  ;;  %1244 = vmatmul.bf16.vlgmr.msrb.gmra.mxu0 %v797_v4 }
 0x267   :  { %v2268_v62 = vsel %vm322_vm0, %v1911_v49, %v436_v25  ;;  %v2272_v38 = vsel %vm322_vm0, %v1916_v53, %v437_v54  ;;  %v468_v39 = vmul.f32 %v2252_v59, %v2252_v59  ;;  %v469_v40 = vmul.f32 %v2256_v61, %v2256_v61  ;;  %1257 = vmatmul.bf16.vlgmr.msrb.gmra.mxu1 %v798_v58 }
 0x268   :  { %v470_v41 = vmul.f32 %v2260_v63, %v2260_v63  ;;  %v471_v6 = vmul.f32 %v2264_v2, %v2264_v2  ;;  %v472_v49 = vmul.f32 %v2268_v62, %v2268_v62  ;;  %v473_v53 = vmul.f32 %v2272_v38, %v2272_v38 }
 0x269   :  { %v517_v9 = vsel %vm474_vm9, %v468_v39, 0.0  ;;  %v524_v10 = vsel %vm474_vm9, %v469_v40, 0.0 }
 0x26a   :  { %v518_v15 = vrot.slane %v517_v9, 4  ;;  %v525_v16 = vrot.slane %v524_v10, 4  ;;  %v531_v17 = vsel %vm474_vm9, %v470_v41, 0.0  ;;  %v538_v18 = vsel %vm474_vm9, %v471_v6, 0.0 }
 0x26b   :  { %v532_v37 = vrot.slane %v531_v17, 4  ;;  %v539_v19 = vrot.slane %v538_v18, 4  ;;  %v545_v20 = vsel %vm474_vm9, %v472_v49, 0.0  ;;  %v552_v1 = vsel %vm474_vm9, %v473_v53, 0.0 }
 0x26c   :  { %v519_v14 = vadd.f32 %v518_v15, %v517_v9  ;;  %v526_v43 = vadd.f32 %v525_v16, %v524_v10  ;;  %v546_v45 = vrot.slane %v545_v20, 4  ;;  %v553_v22 = vrot.slane %v552_v1, 4 }
 0x26d   :  { %v533_v51 = vadd.f32 %v532_v37, %v531_v17  ;;  %v540_v26 = vadd.f32 %v539_v19, %v538_v18 }
 0x26e   :  { %v520_v11 = vrot.slane %v519_v14, 2  ;;  %v527_v35 = vrot.slane %v526_v43, 2  ;;  %v547_v13 = vadd.f32 %v546_v45, %v545_v20  ;;  %v554_v0 = vadd.f32 %v553_v22, %v552_v1 }
 0x26f   :  { %v534_v52 = vrot.slane %v533_v51, 2  ;;  %v541_v12 = vrot.slane %v540_v26, 2 }
 0x270   :  { %v521_v28 = vadd.f32 %v520_v11, %v519_v14  ;;  %v528_v23 = vadd.f32 %v527_v35, %v526_v43  ;;  %v548_v36 = vrot.slane %v547_v13, 2  ;;  %v555_v24 = vrot.slane %v554_v0, 2 }
 0x271   :  { %v535_v60 = vadd.f32 %v534_v52, %v533_v51  ;;  %v542_v55 = vadd.f32 %v541_v12, %v540_v26 }
 0x272   :  { %v522_v42 = vrot.slane %v521_v28, 1  ;;  %v529_v31 = vrot.slane %v528_v23, 1  ;;  %v549_v32 = vadd.f32 %v548_v36, %v547_v13  ;;  %v556_v33 = vadd.f32 %v555_v24, %v554_v0 }
 0x273   :  { %v536_v56 = vrot.slane %v535_v60, 1  ;;  %v543_v21 = vrot.slane %v542_v55, 1 }
 0x274   :  { %v523_v34 = vadd.f32 %v522_v42, %v521_v28  ;;  %v530_v27 = vadd.f32 %v529_v31, %v528_v23  ;;  %v550_v46 = vrot.slane %v549_v32, 1  ;;  %v557_v44 = vrot.slane %v556_v33, 1 }
 0x275   :  { %v537_v47 = vadd.f32 %v536_v56, %v535_v60  ;;  %v544_v57 = vadd.f32 %v543_v21, %v542_v55 }
 0x276   :  { %v551_v48 = vadd.f32 %v550_v46, %v549_v32  ;;  %v558_v29 = vadd.f32 %v557_v44, %v556_v33  ;;  %v565_v3 = vmax.f32 %v523_v34, 1e-24  ;;  %v566_v4 = vmax.f32 %v530_v27, 1e-24  ;;  %v895_v46 = vld [vmem:[%s2355_s8] sm:$0x1] }
 0x277   :  { %v567_v7 = vmax.f32 %v537_v47, 1e-24  ;;  %v568_v8 = vmax.f32 %v544_v57, 1e-24  ;;  %s1697_s8 = smov [#allocation2]  }
 0x278   :  { %v2292_v30 = vmax.f32 %v551_v48, 1e-24  ;;  %1629 = vrsqrt.f32 %v565_v3  ;;  %v2294_v50 = vmax.f32 %v558_v29, 1e-24  ;;  %vm637_vm0 = vweird.f32 %v565_v3 }
 0x279   :  { %1631 = vrsqrt.f32 %v566_v4  ;;  %vm647_vm9 = vweird.f32 %v566_v4  ;;  %vm657_vm7 = vweird.f32 %v567_v7  ;;  %vm667_vm8 = vweird.f32 %v568_v8 }
 0x27a   :  { %1633 = vrsqrt.f32 %v567_v7  ;;  %vm677_vm6 = vweird.f32 %v2292_v30 }
 0x27b   :  { %1635 = vrsqrt.f32 %v568_v8 }
 0x27c   :  { %1637 = vrsqrt.f32 %v2292_v30 }
 0x27d   :  { %1639 = vrsqrt.f32 %v2294_v50 }
 0x27e   :  { %v1630_v25 = vpop.eup %1629 }
 0x27f   :  { %v1632_v54 = vpop.eup %1631  ;;  %v632_v58 = vmul.f32 %v1630_v25, %v565_v3  ;;  %vm638_vm10 = vweird.f32 %v1630_v25 }
 0x280   :  { %v1634_v39 = vpop.eup %1633  ;;  %v642_v40 = vmul.f32 %v1632_v54, %v566_v4  ;;  %vm648_vm11 = vweird.f32 %v1632_v54  ;;  %vm639_vm15 = vmor %vm637_vm0, %vm638_vm10 }
 0x281   :  { %v1636_v41 = vpop.eup %1635  ;;  %v633_v6 = vmul.f32 %v1630_v25, %v632_v58  ;;  %v652_v49 = vmul.f32 %v1634_v39, %v567_v7  ;;  %vm658_vm12 = vweird.f32 %v1634_v39  ;;  %vm649_vm2 = vmor %vm647_vm9, %vm648_vm11  ;;  %vm687_vm9 = vweird.f32 %v2294_v50 }
 0x282   :  { %v1638_v53 = vpop.eup %1637  ;;  %v643_v9 = vmul.f32 %v1632_v54, %v642_v40  ;;  %v662_v10 = vmul.f32 %v1636_v41, %v568_v8  ;;  %vm668_vm14 = vweird.f32 %v1636_v41  ;;  %vm659_vm4 = vmor %vm657_vm7, %vm658_vm12  ;;  %vm1317_vm12 = vcmask 1041408  }
 0x283   :  { %v1640_v15 = vpop.eup %1639  ;;  %v634_v16 = vmul.f32 0.5, %v633_v6  ;;  %v653_v17 = vmul.f32 %v1634_v39, %v652_v49  ;;  %v672_v18 = vmul.f32 %v1638_v53, %v2292_v30  ;;  %vm678_vm13 = vweird.f32 %v1638_v53  ;;  %vm669_vm5 = vmor %vm667_vm8, %vm668_vm14 }
 0x284   :  { %v644_v37 = vmul.f32 0.5, %v643_v9  ;;  %v663_v19 = vmul.f32 %v1636_v41, %v662_v10  ;;  %v682_v20 = vmul.f32 %v1640_v15, %v2294_v50  ;;  %vm688_vm3 = vweird.f32 %v1640_v15  ;;  %vm679_vm0 = vmor %vm677_vm6, %vm678_vm13 }
 0x285   :  { %v635_v1 = vsub.f32 1.5, %v634_v16  ;;  %v654_v14 = vmul.f32 0.5, %v653_v17  ;;  %v673_v43 = vmul.f32 %v1638_v53, %v672_v18  ;;  %vm689_vm7 = vmor %vm687_vm9, %vm688_vm3  ;;  %vm1319_vm14 = vcmask 1045508  }
 0x286   :  { %v645_v45 = vsub.f32 1.5, %v644_v37  ;;  %v664_v22 = vmul.f32 0.5, %v663_v19  ;;  %v683_v51 = vmul.f32 %v1640_v15, %v682_v20 }
 0x287   :  { %v636_v26 = vmul.f32 %v1630_v25, %v635_v1  ;;  %v655_v11 = vsub.f32 1.5, %v654_v14  ;;  %v674_v35 = vmul.f32 0.5, %v673_v43 }
 0x288   :  { %v646_v13 = vmul.f32 %v1632_v54, %v645_v45  ;;  %v665_v0 = vsub.f32 1.5, %v664_v22  ;;  %v684_v52 = vmul.f32 0.5, %v683_v51 }
 0x289   :  { %v640_v12 = vsel %vm639_vm15, %v1630_v25, %v636_v26  ;;  %v656_v28 = vmul.f32 %v1634_v39, %v655_v11  ;;  %v675_v23 = vsub.f32 1.5, %v674_v35 }
 0x28a   :  { %v650_v36 = vsel %vm649_vm2, %v1632_v54, %v646_v13  ;;  %v666_v24 = vmul.f32 %v1636_v41, %v665_v0  ;;  %v685_v60 = vsub.f32 1.5, %v684_v52  ;;  %v697_v55 = vmul.f32 %v640_v12, %v2252_v59 }
 0x28b   :  { %v660_v42 = vsel %vm659_vm4, %v1634_v39, %v656_v28  ;;  %v676_v31 = vmul.f32 %v1638_v53, %v675_v23  ;;  %v698_v32 = vmul.f32 %v650_v36, %v2256_v61 }
 0x28c   :  { %v670_v33 = vsel %vm669_vm5, %v1636_v41, %v666_v24  ;;  %v686_v56 = vmul.f32 %v1640_v15, %v685_v60  ;;  %v699_v21 = vmul.f32 %v660_v42, %v2260_v63  ;;  %709 = vst [vmem:[%s2356_s9 + $0x30] sm:$0x1f] %v697_v55 }
 0x28d   :  { %v680_v59 = vsel %vm679_vm0, %v1638_v53, %v676_v31  ;;  %v700_v34 = vmul.f32 %v670_v33, %v2264_v2  ;;  %710 = vst [vmem:[%s2356_s9 + $0x38] sm:$0x1f] %v698_v32 }
 0x28e   :  { %v690_v61 = vsel %vm689_vm7, %v1640_v15, %v686_v56  ;;  %v701_v27 = vmul.f32 %v680_v59, %v2268_v62  ;;  %711 = vst [vmem:[%s2356_s9 + $0x40] sm:$0x1f] %v699_v21 }
 0x28f   :  { %v702_v63 = vmul.f32 %v690_v61, %v2272_v38  ;;  %712 = vst [vmem:[%s2356_s9 + $0x48] sm:$0x1f] %v700_v34 }
 0x290   :  { %713 = vst [vmem:[%s2356_s9 + $0x50] sm:$0x1f] %v701_v27 }
 0x291   :  { %714 = vst [vmem:[%s2356_s9 + $0x58] sm:$0x1f] %v702_v63  ;;  %s1334_s9 = sshll.u32 %s1697_s8, 4  ;;  %s1335_s9 = int_to_ptr.vmem [resolvable:$true] %s1334_s9 }
 0x2d3   :  { %v1193_v2 = vpop.f32.mrf.mxu0 }
 0x2d4   :  { %v1206_v62 = vpop.f32.mrf.mxu1  ;;  %v1194_v38 = vadd.f32 %v1193_v2, %v895_v46 }
 0x2d6   :  { %v1290_v44 = vpop.xlane.xlu2 %1289  ;;  %v1207_v3 = vadd.f32 %v1206_v62, %v1194_v38 }
 0x2d7   :  { %v1291_v47 = vmax.f32 %v1290_v44, 1e-24 }
 0x2d9   :  { %1641 = vrsqrt.f32 %v1291_v47  ;;  %vm1298_vm10 = vweird.f32 %v1291_v47 }
 0x2da   :  { %v1219_v57 = vpop.f32.mrf.mxu2 }
 0x2db   :  { %v1232_v48 = vpop.f32.mrf.mxu3  ;;  %v1195_v29 = vpop.f32.mrf.mxu0  ;;  %v1220_v7 = vadd.f32 %v1219_v57, %v1207_v3 }
 0x2dc   :  { %v1208_v4 = vpop.f32.mrf.mxu1 }
 0x2dd   :  { %v1233_v50 = vadd.f32 %v1232_v48, %v1220_v7 }
 0x2df   :  { %v1642_v8 = vpop.eup %1641 }
 0x2e0   :  { %v1293_v30 = vmul.f32 %v1642_v8, %v1291_v47  ;;  %vm1299_vm8 = vweird.f32 %v1642_v8 }
 0x2e1   :  { %vm1300_vm11 = vmor %vm1298_vm10, %vm1299_vm8 }
 0x2e2   :  { %v1221_v25 = vpop.f32.mrf.mxu2  ;;  %v1294_v54 = vmul.f32 %v1642_v8, %v1293_v30 }
 0x2e3   :  { %v1234_v58 = vpop.f32.mrf.mxu3  ;;  %v1245_v39 = vpop.f32.mrf.mxu0 }
 0x2e4   :  { %v1246_v40 = vadd.f32 %v1245_v39, %v1233_v50  ;;  %v1258_v41 = vpop.f32.mrf.mxu1  ;;  %v1295_v6 = vmul.f32 0.5, %v1294_v54 }
 0x2e6   :  { %v1259_v49 = vadd.f32 %v1258_v41, %v1246_v40  ;;  %v1296_v53 = vsub.f32 1.5, %v1295_v6 }
 0x2e8   :  { %v1262_v9 = vperm.slane %v1259_v49, 0  ;;  %v1297_v10 = vmul.f32 %v1642_v8, %v1296_v53 }
 0x2ea   :  { %1263 = vst [vmem:[#allocation2] sm:$0x3] %v1262_v9  ;;  %v1301_v15 = vsel %vm1300_vm11, %v1642_v8, %v1297_v10 }
 0x2eb   :  { %v1247_v16 = vpop.f32.mrf.mxu0  ;;  %1339 = dma.vmem_to_hbm [thread:$0]  %s1335_s9, 32, %s1337_s18, [#allocation3]   ;;  %v1303_v17 = vperm.slane %v1301_v15, 0 }
 0x2ec   :  { %v1260_v18 = vpop.f32.mrf.mxu1 }
 0x2ed   :  { %v1305_v37 = vmul.f32 %v1303_v17, %v2224_v5 }
 0x2ef   :  { %v1308_v19 = vperm.slane %v1305_v37, 1  ;;  %v1309_v20 = vperm.slane %v1305_v37, 2  ;;  %v1310_v1 = vperm.slane %v1305_v37, 3  ;;  %v1312_v14 = vperm.slane %v1305_v37, 5 }
 0x2f0   :  { %v1307_v43 = vperm.slane %v1305_v37, 0  ;;  %v1311_v26 = vperm.slane %v1305_v37, 4 }
 0x2f1   :  { %v1313_v45 = vrot.slane %v1308_v19, 6  ;;  %v1314_v22 = vrot.slane %v1309_v20, 4  ;;  %v1315_v51 = vrot.slane %v1310_v1, 2  ;;  %v1316_v11 = vrot.slane %v1312_v14, 6 }
 0x2f3   :  { %v1318_v35 = vsel %vm1317_vm12, %v1307_v43, %v1313_v45  ;;  %v1320_v5 = vsel %vm1319_vm14, %v1314_v22, %v1315_v51  ;;  %v1322_v0 = vsel %vm1317_vm12, %v1311_v26, %v1316_v11 }
 0x2f4   :  { %v1321_v13 = vsel %vm97_vm1, %v1318_v35, %v1320_v5  ;;  %1326 = vst [vmem:[#allocation4 + $0x8] sm:$0xf] %v1322_v0 }
 0x2f5   :  { %1325 = vst [vmem:[#allocation4] sm:$0xff] %v1321_v13 }
 0x2f6   :  { %1350 = dma.vmem_to_hbm [thread:$0]  %s1346_s19, 192, %s1348_s22, [#allocation5]  }
 0x2f7   :  { %1691 = dma.done.wait [#allocation3], 32  }
 0x2f8   :  { %1692 = vsyncadd [#allocation3], 4294967264 }
 0x2f9   :  { %1693 = dma.done.wait [#allocation5], 192  }
 0x2fa   :  { %1694 = vsyncadd [#allocation5], 4294967104 }
 0x2fb   :  { %1361 = vsyncpa [#allocation3], 1 }
 0x2fc   :  { %1362 = vsyncpa [#allocation5], 1 }

// kernel: clip_linear_forward.2
= control target key start
LH: loop header
LB: loop body
LE: loop exit
PB: predicated region body
PF: predicated region fallthrough
CT: control target
= control target key end

     0   :  { %s21945_s1 = inlined_call_operand.vmem [shape: bf16[3072,768], index: 1, kind: input, shape index: {}]   ;;  %s21946_s0 = inlined_call_operand.vmem [shape: bf16[8,3072], index: 0, kind: input, shape index: {}]   ;;  %s21947_s2 = inlined_call_operand.vmem [shape: bf16[8,768], index: 2, kind: output, shape index: {}]  }
   0x1   :  { %v9071_v0 = vld [vmem:[%s21945_s1 + $0x150] sm:$0xf]  ;;  %v13554_v1 = vld [vmem:[%s21945_s1 + $0x164] sm:$0xf0]  ;;  %v9047_v11 = vld [vmem:[%s21945_s1 + $0x120] sm:$0xf] }
   0x2   :  { %v9263_v2 = vld [vmem:[%s21945_s1 + $0x2d0] sm:$0xf]  ;;  %v9072_v3 = vor.u32 %v13554_v1, %v9071_v0  ;;  %v13602_v4 = vld [vmem:[%s21945_s1 + $0x2e4] sm:$0xf0]  ;;  %v13548_v13 = vld [vmem:[%s21945_s1 + $0x134] sm:$0xf0] }
   0x3   :  { %v9455_v5 = vld [vmem:[%s21945_s1 + $0x450] sm:$0xf]  ;;  %v13650_v6 = vld [vmem:[%s21945_s1 + $0x464] sm:$0xf0]  ;;  %v9264_v7 = vor.u32 %v13602_v4, %v9263_v2  ;;  %v9239_v14 = vld [vmem:[%s21945_s1 + $0x2a0] sm:$0xf]  ;;  %v9048_v16 = vor.u32 %v13548_v13, %v9047_v11 }
   0x4   :  { %v9456_v8 = vor.u32 %v13650_v6, %v9455_v5  ;;  %v9647_v9 = vld [vmem:[%s21945_s1 + $0x5d0] sm:$0xf]  ;;  %v13698_v10 = vld [vmem:[%s21945_s1 + $0x5e4] sm:$0xf0]  ;;  %7019 = vmatpush.bf16.msra.mxu0 %v9072_v3  ;;  %v13596_v15 = vld [vmem:[%s21945_s1 + $0x2b4] sm:$0xf0] }
   0x5   :  { %v9648_v12 = vor.u32 %v13698_v10, %v9647_v9  ;;  %7032 = vmatpush.bf16.msra.mxu1 %v9264_v7  ;;  %v9240_v17 = vor.u32 %v13596_v15, %v9239_v14  ;;  %v9431_v18 = vld [vmem:[%s21945_s1 + $0x420] sm:$0xf]  ;;  %v13644_v19 = vld [vmem:[%s21945_s1 + $0x434] sm:$0xf0]  ;;  %v9023_v23 = vld [vmem:[%s21945_s1 + $0xf0] sm:$0xf] }
   0x6   :  { %7045 = vmatpush.bf16.msra.mxu2 %v9456_v8  ;;  %v9623_v20 = vld [vmem:[%s21945_s1 + $0x5a0] sm:$0xf]  ;;  %v9432_v21 = vor.u32 %v13644_v19, %v9431_v18  ;;  %v13692_v22 = vld [vmem:[%s21945_s1 + $0x5b4] sm:$0xf0]  ;;  %v13542_v24 = vld [vmem:[%s21945_s1 + $0x104] sm:$0xf0] }
   0x7   :  { %7058 = vmatpush.bf16.msra.mxu3 %v9648_v12  ;;  %v9624_v25 = vor.u32 %v13692_v22, %v9623_v20  ;;  %v9215_v26 = vld [vmem:[%s21945_s1 + $0x270] sm:$0xf]  ;;  %v13590_v27 = vld [vmem:[%s21945_s1 + $0x284] sm:$0xf0]  ;;  %v9024_v29 = vor.u32 %v13542_v24, %v9023_v23  ;;  %v8999_v35 = vld [vmem:[%s21945_s1 + $0xc0] sm:$0xf] }
   0x8   :  { %v9407_v28 = vld [vmem:[%s21945_s1 + $0x3f0] sm:$0xf]  ;;  %7020 = vmatpush.bf16.msra.mxu0 %v9048_v16  ;;  %v13638_v30 = vld [vmem:[%s21945_s1 + $0x404] sm:$0xf0]  ;;  %v9216_v33 = vor.u32 %v13590_v27, %v9215_v26  ;;  %v13536_v36 = vld [vmem:[%s21945_s1 + $0xd4] sm:$0xf0] }
   0x9   :  { %v9599_v31 = vld [vmem:[%s21945_s1 + $0x570] sm:$0xf]  ;;  %v13686_v32 = vld [vmem:[%s21945_s1 + $0x584] sm:$0xf0]  ;;  %7033 = vmatpush.bf16.msra.mxu1 %v9240_v17  ;;  %v9408_v34 = vor.u32 %v13638_v30, %v9407_v28  ;;  %v9191_v37 = vld [vmem:[%s21945_s1 + $0x240] sm:$0xf]  ;;  %v9000_v44 = vor.u32 %v13536_v36, %v8999_v35 }
   0xa   :  { %7046 = vmatpush.bf16.msra.mxu2 %v9432_v21  ;;  %v9600_v38 = vor.u32 %v13686_v32, %v9599_v31  ;;  %v13584_v39 = vld [vmem:[%s21945_s1 + $0x254] sm:$0xf0]  ;;  %v9383_v40 = vld [vmem:[%s21945_s1 + $0x3c0] sm:$0xf]  ;;  %v8975_v47 = vld [vmem:[%s21945_s1 + $0x90] sm:$0xf] }
   0xb   :  { %7059 = vmatpush.bf16.msra.mxu3 %v9624_v25  ;;  %v13632_v41 = vld [vmem:[%s21945_s1 + $0x3d4] sm:$0xf0]  ;;  %v9575_v42 = vld [vmem:[%s21945_s1 + $0x540] sm:$0xf]  ;;  %v9192_v45 = vor.u32 %v13584_v39, %v9191_v37  ;;  %v13530_v48 = vld [vmem:[%s21945_s1 + $0xa4] sm:$0xf0] }
   0xc   :  { %v13680_v43 = vld [vmem:[%s21945_s1 + $0x554] sm:$0xf0]  ;;  %7021 = vmatpush.bf16.msra.mxu0 %v9024_v29  ;;  %v9384_v46 = vor.u32 %v13632_v41, %v9383_v40  ;;  %v9167_v49 = vld [vmem:[%s21945_s1 + $0x210] sm:$0xf]  ;;  %v13578_v51 = vld [vmem:[%s21945_s1 + $0x224] sm:$0xf0]  ;;  %v8976_v56 = vor.u32 %v13530_v48, %v8975_v47 }
   0xd   :  { %7034 = vmatpush.bf16.msra.mxu1 %v9216_v33  ;;  %v9576_v50 = vor.u32 %v13680_v43, %v9575_v42  ;;  %v9359_v52 = vld [vmem:[%s21945_s1 + $0x390] sm:$0xf]  ;;  %v13626_v53 = vld [vmem:[%s21945_s1 + $0x3a4] sm:$0xf0]  ;;  %v9168_v57 = vor.u32 %v13578_v51, %v9167_v49  ;;  %v8951_v59 = vld [vmem:[%s21945_s1 + $0x60] sm:$0xf] }
   0xe   :  { %7047 = vmatpush.bf16.msra.mxu2 %v9408_v34  ;;  %v9551_v54 = vld [vmem:[%s21945_s1 + $0x510] sm:$0xf]  ;;  %v13674_v55 = vld [vmem:[%s21945_s1 + $0x524] sm:$0xf0]  ;;  %v9360_v58 = vor.u32 %v13626_v53, %v9359_v52  ;;  %v13524_v60 = vld [vmem:[%s21945_s1 + $0x74] sm:$0xf0] }
   0xf   :  { %7060 = vmatpush.bf16.msra.mxu3 %v9600_v38  ;;  %v9143_v61 = vld [vmem:[%s21945_s1 + $0x1e0] sm:$0xf]  ;;  %v9552_v62 = vor.u32 %v13674_v55, %v9551_v54  ;;  %v13572_v63 = vld [vmem:[%s21945_s1 + $0x1f4] sm:$0xf0]  ;;  %v8952_v4 = vor.u32 %v13524_v60, %v8951_v59  ;;  %v8927_v7 = vld [vmem:[%s21945_s1 + $0x30] sm:$0xf] }
  0x10   :  { %7022 = vmatpush.bf16.msra.mxu0 %v9000_v44  ;;  %v9335_v0 = vld [vmem:[%s21945_s1 + $0x360] sm:$0xf]  ;;  %v13620_v1 = vld [vmem:[%s21945_s1 + $0x374] sm:$0xf0]  ;;  %v9144_v5 = vor.u32 %v13572_v63, %v9143_v61  ;;  %v13518_v8 = vld [vmem:[%s21945_s1 + $0x44] sm:$0xf0] }
  0x11   :  { %7035 = vmatpush.bf16.msra.mxu1 %v9192_v45  ;;  %v9527_v2 = vld [vmem:[%s21945_s1 + $0x4e0] sm:$0xf]  ;;  %v13668_v3 = vld [vmem:[%s21945_s1 + $0x4f4] sm:$0xf0]  ;;  %v9336_v6 = vor.u32 %v13620_v1, %v9335_v0  ;;  %v9119_v9 = vld [vmem:[%s21945_s1 + $0x1b0] sm:$0xf]  ;;  %v8928_v16 = vor.u32 %v13518_v8, %v8927_v7 }
  0x12   :  { %7048 = vmatpush.bf16.msra.mxu2 %v9384_v46  ;;  %v9528_v10 = vor.u32 %v13668_v3, %v9527_v2  ;;  %v13566_v11 = vld [vmem:[%s21945_s1 + $0x1c4] sm:$0xf0]  ;;  %v9311_v12 = vld [vmem:[%s21945_s1 + $0x330] sm:$0xf]  ;;  %v8903_v17 = vld [vmem:[%s21945_s1] sm:$0xf] }
  0x13   :  { %7061 = vmatpush.bf16.msra.mxu3 %v9576_v50  ;;  %v13614_v13 = vld [vmem:[%s21945_s1 + $0x344] sm:$0xf0]  ;;  %v9503_v14 = vld [vmem:[%s21945_s1 + $0x4b0] sm:$0xf]  ;;  %v13512_v18 = vld [vmem:[%s21945_s1 + $0x14] sm:$0xf0]  ;;  %v9120_v19 = vor.u32 %v13566_v11, %v9119_v9 }
  0x14   :  { %7023 = vmatpush.bf16.msra.mxu0 %v8976_v56  ;;  %v13662_v15 = vld [vmem:[%s21945_s1 + $0x4c4] sm:$0xf0]  ;;  %v9312_v20 = vor.u32 %v13614_v13, %v9311_v12  ;;  %v9095_v21 = vld [vmem:[%s21945_s1 + $0x180] sm:$0xf]  ;;  %v13560_v22 = vld [vmem:[%s21945_s1 + $0x194] sm:$0xf0]  ;;  %v8904_v31 = vor.u32 %v13512_v18, %v8903_v17 }
  0x15   :  { %7036 = vmatpush.bf16.msra.mxu1 %v9168_v57  ;;  %v9287_v23 = vld [vmem:[%s21945_s1 + $0x300] sm:$0xf]  ;;  %v9504_v24 = vor.u32 %v13662_v15, %v9503_v14  ;;  %v13608_v25 = vld [vmem:[%s21945_s1 + $0x314] sm:$0xf0]  ;;  %v9839_v28 = vld [vmem:[%s21945_s1 + $0x750] sm:$0xf]  ;;  %v9096_v35 = vor.u32 %v13560_v22, %v9095_v21 }
  0x16   :  { %7049 = vmatpush.bf16.msra.mxu2 %v9360_v58  ;;  %v9479_v26 = vld [vmem:[%s21945_s1 + $0x480] sm:$0xf]  ;;  %v13656_v27 = vld [vmem:[%s21945_s1 + $0x494] sm:$0xf0]  ;;  %v13746_v29 = vld [vmem:[%s21945_s1 + $0x764] sm:$0xf0]  ;;  %v9288_v36 = vor.u32 %v13608_v25, %v9287_v23 }
  0x17   :  { %7062 = vmatpush.bf16.msra.mxu3 %v9552_v62  ;;  %v10031_v30 = vld [vmem:[%s21945_s1 + $0x8d0] sm:$0xf]  ;;  %v13794_v32 = vld [vmem:[%s21945_s1 + $0x8e4] sm:$0xf0]  ;;  %v9480_v39 = vor.u32 %v13656_v27, %v9479_v26  ;;  %v9840_v40 = vor.u32 %v13746_v29, %v9839_v28  ;;  %v9815_v43 = vld [vmem:[%s21945_s1 + $0x720] sm:$0xf] }
  0x18   :  { %7024 = vmatpush.bf16.msra.mxu0 %v8952_v4  ;;  %v10223_v33 = vld [vmem:[%s21945_s1 + $0xa50] sm:$0xf]  ;;  %v13842_v34 = vld [vmem:[%s21945_s1 + $0xa64] sm:$0xf0]  ;;  %v10032_v41 = vor.u32 %v13794_v32, %v10031_v30  ;;  %v13740_v44 = vld [vmem:[%s21945_s1 + $0x734] sm:$0xf0] }
  0x19   :  { %7037 = vmatpush.bf16.msra.mxu1 %v9144_v5  ;;  %v10415_v37 = vld [vmem:[%s21945_s1 + $0xbd0] sm:$0xf]  ;;  %v13890_v38 = vld [vmem:[%s21945_s1 + $0xbe4] sm:$0xf0]  ;;  %v10224_v42 = vor.u32 %v13842_v34, %v10223_v33  ;;  %v10007_v45 = vld [vmem:[%s21945_s1 + $0x8a0] sm:$0xf]  ;;  %v9816_v52 = vor.u32 %v13740_v44, %v9815_v43 }
  0x1a   :  { %7050 = vmatpush.bf16.msra.mxu2 %v9336_v6  ;;  %v10416_v46 = vor.u32 %v13890_v38, %v10415_v37  ;;  %v13788_v47 = vld [vmem:[%s21945_s1 + $0x8b4] sm:$0xf0]  ;;  %v10199_v48 = vld [vmem:[%s21945_s1 + $0xa20] sm:$0xf]  ;;  %v9791_v53 = vld [vmem:[%s21945_s1 + $0x6f0] sm:$0xf] }
  0x1b   :  { %7063 = vmatpush.bf16.msra.mxu3 %v9528_v10  ;;  %v13836_v49 = vld [vmem:[%s21945_s1 + $0xa34] sm:$0xf0]  ;;  %v10391_v50 = vld [vmem:[%s21945_s1 + $0xba0] sm:$0xf]  ;;  %v10008_v54 = vor.u32 %v13788_v47, %v10007_v45  ;;  %v13734_v56 = vld [vmem:[%s21945_s1 + $0x704] sm:$0xf0] }
  0x1c   :  { %7025 = vmatpush.bf16.msra.mxu0 %v8928_v16  ;;  %v13884_v51 = vld [vmem:[%s21945_s1 + $0xbb4] sm:$0xf0]  ;;  %v10200_v55 = vor.u32 %v13836_v49, %v10199_v48  ;;  %v9983_v57 = vld [vmem:[%s21945_s1 + $0x870] sm:$0xf]  ;;  %v12_v58 = vld [vmem:[%s21946_s0 + $0x8] sm:$0xff]  ;;  %v9792_v3 = vor.u32 %v13734_v56, %v9791_v53 }
  0x1d   :  { %7038 = vmatpush.bf16.msra.mxu1 %v9120_v19  ;;  %v10392_v59 = vor.u32 %v13884_v51, %v10391_v50  ;;  %v13782_v60 = vld [vmem:[%s21945_s1 + $0x884] sm:$0xf0]  ;;  %v10175_v61 = vld [vmem:[%s21945_s1 + $0x9f0] sm:$0xf]  ;;  %v1189_v63 = vunpack.c.l.b16 %v12_v58  ;;  %v1190_v0 = vunpack.c.h.b16 %v12_v58  ;;  %v11_v5 = vld [vmem:[%s21946_s0] sm:$0xff] }
  0x1e   :  { %7051 = vmatpush.bf16.msra.mxu2 %v9312_v20  ;;  %v13830_v62 = vld [vmem:[%s21945_s1 + $0xa04] sm:$0xf0]  ;;  %v10367_v1 = vld [vmem:[%s21945_s1 + $0xb70] sm:$0xf]  ;;  %v9984_v7 = vor.u32 %v13782_v60, %v9983_v57  ;;  %v9767_v9 = vld [vmem:[%s21945_s1 + $0x6c0] sm:$0xf]  ;;  %v1187_v12 = vunpack.c.l.b16 %v11_v5  ;;  %v1188_v13 = vunpack.c.h.b16 %v11_v5 }
  0x1f   :  { %7064 = vmatpush.bf16.msra.mxu3 %v9504_v24  ;;  %v13878_v2 = vld [vmem:[%s21945_s1 + $0xb84] sm:$0xf0]  ;;  %v14943_v4 = vpack.c.b16 %v1189_v63, %v1189_v63  ;;  %v14948_v6 = vpack.c.b16 %v1190_v0, %v1190_v0  ;;  %v10176_v8 = vor.u32 %v13830_v62, %v10175_v61  ;;  %v13728_v10 = vld [vmem:[%s21945_s1 + $0x6d4] sm:$0xf0]  ;;  %v9959_v11 = vld [vmem:[%s21945_s1 + $0x840] sm:$0xf] }
  0x20   :  { %7026 = vmatpush.bf16.msra.mxu0 %v8904_v31  ;;  %v10368_v14 = vor.u32 %v13878_v2, %v10367_v1  ;;  %v13776_v15 = vld [vmem:[%s21945_s1 + $0x854] sm:$0xf0]  ;;  %v10151_v16 = vld [vmem:[%s21945_s1 + $0x9c0] sm:$0xf]  ;;  %v14975_v20 = vpack.c.b16 %v1187_v12, %v1187_v12  ;;  %v14978_v21 = vpack.c.b16 %v1188_v13, %v1188_v13  ;;  %v9768_v22 = vor.u32 %v13728_v10, %v9767_v9  ;;  %v9743_v25 = vld [vmem:[%s21945_s1 + $0x690] sm:$0xf] }
  0x21   :  { %7039 = vmatpush.bf16.msra.mxu1 %v9096_v35  ;;  %v13824_v17 = vld [vmem:[%s21945_s1 + $0x9d4] sm:$0xf0]  ;;  %v10343_v18 = vld [vmem:[%s21945_s1 + $0xb40] sm:$0xf]  ;;  %v9960_v23 = vor.u32 %v13776_v15, %v9959_v11  ;;  %v13722_v26 = vld [vmem:[%s21945_s1 + $0x6a4] sm:$0xf0] }
  0x22   :  { %7052 = vmatpush.bf16.msra.mxu2 %v9288_v36  ;;  %v13872_v19 = vld [vmem:[%s21945_s1 + $0xb54] sm:$0xf0]  ;;  %v10152_v24 = vor.u32 %v13824_v17, %v10151_v16  ;;  %v9935_v27 = vld [vmem:[%s21945_s1 + $0x810] sm:$0xf]  ;;  %v13770_v29 = vld [vmem:[%s21945_s1 + $0x824] sm:$0xf0]  ;;  %v9744_v34 = vor.u32 %v13722_v26, %v9743_v25 }
  0x23   :  { %7065 = vmatpush.bf16.msra.mxu3 %v9480_v39  ;;  %v10344_v28 = vor.u32 %v13872_v19, %v10343_v18  ;;  %v10127_v30 = vld [vmem:[%s21945_s1 + $0x990] sm:$0xf]  ;;  %v13818_v31 = vld [vmem:[%s21945_s1 + $0x9a4] sm:$0xf0]  ;;  %7027 = vmatmul.bf16.vlgmr.msra.gmra.mxu0 %v14975_v20  ;;  %v9936_v35 = vor.u32 %v13770_v29, %v9935_v27  ;;  %v9719_v37 = vld [vmem:[%s21945_s1 + $0x660] sm:$0xf] }
  0x24   :  { %7071 = vmatpush.bf16.msrb.mxu0 %v9840_v40  ;;  %v10319_v32 = vld [vmem:[%s21945_s1 + $0xb10] sm:$0xf]  ;;  %v13866_v33 = vld [vmem:[%s21945_s1 + $0xb24] sm:$0xf0]  ;;  %7040 = vmatmul.bf16.vlgmr.msra.gmra.mxu1 %v14978_v21  ;;  %v10128_v36 = vor.u32 %v13818_v31, %v10127_v30  ;;  %v13716_v38 = vld [vmem:[%s21945_s1 + $0x674] sm:$0xf0] }
  0x25   :  { %7084 = vmatpush.bf16.msrb.mxu1 %v10032_v41  ;;  %7053 = vmatmul.bf16.vlgmr.msra.gmra.mxu2 %v14943_v4  ;;  %v9911_v39 = vld [vmem:[%s21945_s1 + $0x7e0] sm:$0xf]  ;;  %v10320_v40 = vor.u32 %v13866_v33, %v10319_v32  ;;  %v13764_v41 = vld [vmem:[%s21945_s1 + $0x7f4] sm:$0xf0]  ;;  %v9695_v49 = vld [vmem:[%s21945_s1 + $0x630] sm:$0xf] }
  0x26   :  { %7097 = vmatpush.bf16.msrb.mxu2 %v10224_v42  ;;  %7066 = vmatmul.bf16.vlgmr.msra.gmra.mxu3 %v14948_v6  ;;  %v10103_v42 = vld [vmem:[%s21945_s1 + $0x960] sm:$0xf]  ;;  %v13812_v43 = vld [vmem:[%s21945_s1 + $0x974] sm:$0xf0]  ;;  %v9912_v47 = vor.u32 %v13764_v41, %v9911_v39  ;;  %v13710_v50 = vld [vmem:[%s21945_s1 + $0x644] sm:$0xf0] }
  0x27   :  { %7110 = vmatpush.bf16.msrb.mxu3 %v10416_v46  ;;  %v10295_v44 = vld [vmem:[%s21945_s1 + $0xae0] sm:$0xf]  ;;  %v13860_v45 = vld [vmem:[%s21945_s1 + $0xaf4] sm:$0xf0]  ;;  %v9720_v46 = vor.u32 %v13716_v38, %v9719_v37  ;;  %v10104_v48 = vor.u32 %v13812_v43, %v10103_v42  ;;  %v9887_v51 = vld [vmem:[%s21945_s1 + $0x7b0] sm:$0xf] }
  0x28   :  { %7072 = vmatpush.bf16.msrb.mxu0 %v9816_v52  ;;  %v10296_v52 = vor.u32 %v13860_v45, %v10295_v44  ;;  %v13758_v53 = vld [vmem:[%s21945_s1 + $0x7c4] sm:$0xf0]  ;;  %v10271_v56 = vld [vmem:[%s21945_s1 + $0xab0] sm:$0xf]  ;;  %v9671_v58 = vld [vmem:[%s21945_s1 + $0x600] sm:$0xf] }
  0x29   :  { %7085 = vmatpush.bf16.msrb.mxu1 %v10008_v54  ;;  %v10079_v54 = vld [vmem:[%s21945_s1 + $0x930] sm:$0xf]  ;;  %v13854_v57 = vld [vmem:[%s21945_s1 + $0xac4] sm:$0xf0]  ;;  %v13704_v60 = vld [vmem:[%s21945_s1 + $0x614] sm:$0xf0]  ;;  %v9888_v63 = vor.u32 %v13758_v53, %v9887_v51 }
  0x2a   :  { %7098 = vmatpush.bf16.msrb.mxu2 %v10200_v55  ;;  %v13806_v55 = vld [vmem:[%s21945_s1 + $0x944] sm:$0xf0]  ;;  %v9863_v61 = vld [vmem:[%s21945_s1 + $0x780] sm:$0xf]  ;;  %v13752_v62 = vld [vmem:[%s21945_s1 + $0x794] sm:$0xf0]  ;;  %v10272_v5 = vor.u32 %v13854_v57, %v10271_v56  ;;  %v9672_v13 = vor.u32 %v13704_v60, %v9671_v58 }
  0x2b   :  { %7111 = vmatpush.bf16.msrb.mxu3 %v10392_v59  ;;  %v9696_v59 = vor.u32 %v13710_v50, %v9695_v49  ;;  %v10080_v0 = vor.u32 %v13806_v55, %v10079_v54  ;;  %v10055_v1 = vld [vmem:[%s21945_s1 + $0x900] sm:$0xf]  ;;  %v13800_v2 = vld [vmem:[%s21945_s1 + $0x914] sm:$0xf0]  ;;  %v13_v9 = vld [vmem:[%s21946_s0 + $0x10] sm:$0xff]  ;;  %v9864_v18 = vor.u32 %v13752_v62, %v9863_v61 }
  0x2c   :  { %7073 = vmatpush.bf16.msrb.mxu0 %v9792_v3  ;;  %v14_v3 = vld [vmem:[%s21946_s0 + $0x18] sm:$0xff]  ;;  %v10607_v10 = vld [vmem:[%s21945_s1 + $0xd50] sm:$0xf]  ;;  %v13938_v11 = vld [vmem:[%s21945_s1 + $0xd64] sm:$0xf0]  ;;  %v10056_v19 = vor.u32 %v13800_v2, %v10055_v1 }
  0x2d   :  { %7086 = vmatpush.bf16.msrb.mxu1 %v9984_v7  ;;  %v10247_v7 = vld [vmem:[%s21945_s1 + $0xa80] sm:$0xf]  ;;  %v10799_v12 = vld [vmem:[%s21945_s1 + $0xed0] sm:$0xf]  ;;  %v14034_v16 = vld [vmem:[%s21945_s1 + $0x1064] sm:$0xf0]  ;;  %v1193_v17 = vunpack.c.l.b16 %v14_v3  ;;  %v1194_v25 = vunpack.c.h.b16 %v14_v3  ;;  %v10608_v27 = vor.u32 %v13938_v11, %v10607_v10 }
  0x2e   :  { %7099 = vmatpush.bf16.msrb.mxu2 %v10176_v8  ;;  %v13848_v8 = vld [vmem:[%s21945_s1 + $0xa94] sm:$0xf0]  ;;  %v10991_v15 = vld [vmem:[%s21945_s1 + $0x1050] sm:$0xf]  ;;  %v10583_v31 = vld [vmem:[%s21945_s1 + $0xd20] sm:$0xf] }
  0x2f   :  { %7112 = vmatpush.bf16.msrb.mxu3 %v10368_v14  ;;  %v13986_v14 = vld [vmem:[%s21945_s1 + $0xee4] sm:$0xf0]  ;;  %v10248_v26 = vor.u32 %v13848_v8, %v10247_v7  ;;  %v10992_v30 = vor.u32 %v14034_v16, %v10991_v15  ;;  %v13932_v32 = vld [vmem:[%s21945_s1 + $0xd34] sm:$0xf0]  ;;  %v10775_v33 = vld [vmem:[%s21945_s1 + $0xea0] sm:$0xf]  ;;  %v15126_v38 = vpack.c.b16 %v1193_v17, %v1193_v17  ;;  %v15136_v42 = vpack.c.b16 %v1194_v25, %v1194_v25 }
  0x30   :  { %7074 = vmatpush.bf16.msrb.mxu0 %v9768_v22  ;;  %v11183_v22 = vld [vmem:[%s21945_s1 + $0x11d0] sm:$0xf]  ;;  %v10800_v29 = vor.u32 %v13986_v14, %v10799_v12  ;;  %v14028_v37 = vld [vmem:[%s21945_s1 + $0x1034] sm:$0xf0]  ;;  %v11159_v39 = vld [vmem:[%s21945_s1 + $0x11a0] sm:$0xf]  ;;  %v10584_v43 = vor.u32 %v13932_v32, %v10583_v31 }
  0x31   :  { %7087 = vmatpush.bf16.msrb.mxu1 %v9960_v23  ;;  %v14082_v23 = vld [vmem:[%s21945_s1 + $0x11e4] sm:$0xf0]  ;;  %v10751_v49 = vld [vmem:[%s21945_s1 + $0xe70] sm:$0xf]  ;;  %v13920_v60 = vld [vmem:[%s21945_s1 + $0xcd4] sm:$0xf0] }
  0x32   :  { %7100 = vmatpush.bf16.msrb.mxu2 %v10152_v24  ;;  %v1191_v24 = vunpack.c.l.b16 %v13_v9  ;;  %v13974_v51 = vld [vmem:[%s21945_s1 + $0xe84] sm:$0xf0]  ;;  %v11135_v54 = vld [vmem:[%s21945_s1 + $0x1170] sm:$0xf]  ;;  %v10727_v61 = vld [vmem:[%s21945_s1 + $0xe40] sm:$0xf] }
  0x33   :  { %7113 = vmatpush.bf16.msrb.mxu3 %v10344_v28  ;;  %v1192_v28 = vunpack.c.h.b16 %v13_v9  ;;  %v14022_v53 = vld [vmem:[%s21945_s1 + $0x1004] sm:$0xf0]  ;;  %v10752_v57 = vor.u32 %v13974_v51, %v10751_v49  ;;  %v14016_v1 = vld [vmem:[%s21945_s1 + $0xfd4] sm:$0xf0]  ;;  %v11111_v2 = vld [vmem:[%s21945_s1 + $0x1140] sm:$0xf] }
  0x34   :  { %7075 = vmatpush.bf16.msrb.mxu0 %v9744_v34  ;;  %v11184_v34 = vor.u32 %v14082_v23, %v11183_v22  ;;  %v15134_v41 = vpack.c.b16 %v1191_v24, %v1191_v24  ;;  %v14070_v55 = vld [vmem:[%s21945_s1 + $0x1184] sm:$0xf0]  ;;  %v14064_v3 = vld [vmem:[%s21945_s1 + $0x1154] sm:$0xf0]  ;;  %v10511_v9 = vld [vmem:[%s21945_s1 + $0xc90] sm:$0xf] }
  0x35   :  { %7088 = vmatpush.bf16.msrb.mxu1 %v9936_v35  ;;  %v13980_v35 = vld [vmem:[%s21945_s1 + $0xeb4] sm:$0xf0]  ;;  %v15138_v44 = vpack.c.b16 %v1192_v28, %v1192_v28  ;;  %v11136_v62 = vor.u32 %v14070_v55, %v11135_v54  ;;  %v13914_v10 = vld [vmem:[%s21945_s1 + $0xca4] sm:$0xf0]  ;;  %v10703_v11 = vld [vmem:[%s21945_s1 + $0xe10] sm:$0xf]  ;;  %v11112_v12 = vor.u32 %v14064_v3, %v11111_v2 }
  0x36   :  { %7101 = vmatpush.bf16.msrb.mxu2 %v10128_v36  ;;  %v10967_v36 = vld [vmem:[%s21945_s1 + $0x1020] sm:$0xf]  ;;  %v10776_v45 = vor.u32 %v13980_v35, %v10775_v33  ;;  %v10895_v14 = vld [vmem:[%s21945_s1 + $0xf90] sm:$0xf]  ;;  %v14010_v15 = vld [vmem:[%s21945_s1 + $0xfa4] sm:$0xf0] }
  0x37   :  { %7114 = vmatpush.bf16.msrb.mxu3 %v10320_v40  ;;  %v14076_v40 = vld [vmem:[%s21945_s1 + $0x11b4] sm:$0xf0]  ;;  %v11087_v16 = vld [vmem:[%s21945_s1 + $0x1110] sm:$0xf]  ;;  %v14058_v17 = vld [vmem:[%s21945_s1 + $0x1124] sm:$0xf0]  ;;  %v10896_v22 = vor.u32 %v14010_v15, %v10895_v14 }
  0x38   :  { %7076 = vmatpush.bf16.msrb.mxu0 %v9720_v46  ;;  %v10968_v46 = vor.u32 %v14028_v37, %v10967_v36  ;;  %v11160_v50 = vor.u32 %v14076_v40, %v11159_v39  ;;  %v10487_v23 = vld [vmem:[%s21945_s1 + $0xc60] sm:$0xf]  ;;  %v13908_v24 = vld [vmem:[%s21945_s1 + $0xc74] sm:$0xf0]  ;;  %v10463_v35 = vld [vmem:[%s21945_s1 + $0xc30] sm:$0xf] }
  0x39   :  { %7089 = vmatpush.bf16.msrb.mxu1 %v9912_v47  ;;  %v10559_v47 = vld [vmem:[%s21945_s1 + $0xcf0] sm:$0xf]  ;;  %v10679_v25 = vld [vmem:[%s21945_s1 + $0xde0] sm:$0xf]  ;;  %v14052_v31 = vld [vmem:[%s21945_s1 + $0x10f4] sm:$0xf0]  ;;  %v10488_v32 = vor.u32 %v13908_v24, %v10487_v23 }
  0x3a   :  { %7102 = vmatpush.bf16.msrb.mxu2 %v10104_v48  ;;  %v13926_v48 = vld [vmem:[%s21945_s1 + $0xd04] sm:$0xf0]  ;;  %v10871_v28 = vld [vmem:[%s21945_s1 + $0xf60] sm:$0xf]  ;;  %v10655_v37 = vld [vmem:[%s21945_s1 + $0xdb0] sm:$0xf] }
  0x3b   :  { %7115 = vmatpush.bf16.msrb.mxu3 %v10296_v52  ;;  %v10943_v52 = vld [vmem:[%s21945_s1 + $0xff0] sm:$0xf]  ;;  %v10560_v56 = vor.u32 %v13926_v48, %v10559_v47  ;;  %v13902_v36 = vld [vmem:[%s21945_s1 + $0xc44] sm:$0xf0]  ;;  %v10439_v48 = vld [vmem:[%s21945_s1 + $0xc00] sm:$0xf] }
  0x3c   :  { %7077 = vmatpush.bf16.msrb.mxu0 %v9696_v59  ;;  %v10944_v58 = vor.u32 %v14022_v53, %v10943_v52  ;;  %v10535_v59 = vld [vmem:[%s21945_s1 + $0xcc0] sm:$0xf]  ;;  %v13950_v40 = vld [vmem:[%s21945_s1 + $0xdc4] sm:$0xf0]  ;;  %v10464_v49 = vor.u32 %v13902_v36, %v10463_v35  ;;  %v13944_v52 = vld [vmem:[%s21945_s1 + $0xd94] sm:$0xf0] }
  0x3d   :  { %7090 = vmatpush.bf16.msrb.mxu1 %v9888_v63  ;;  %v13968_v63 = vld [vmem:[%s21945_s1 + $0xe54] sm:$0xf0]  ;;  %v14046_v47 = vld [vmem:[%s21945_s1 + $0x10c4] sm:$0xf0]  ;;  %v10631_v51 = vld [vmem:[%s21945_s1 + $0xd80] sm:$0xf]  ;;  %v10656_v53 = vor.u32 %v13950_v40, %v10655_v37 }
  0x3e   :  { %7103 = vmatpush.bf16.msrb.mxu2 %v10080_v0  ;;  %v10919_v0 = vld [vmem:[%s21945_s1 + $0xfc0] sm:$0xf]  ;;  %v10728_v7 = vor.u32 %v13968_v63, %v10727_v61  ;;  %v16_v61 = vld [vmem:[%s21946_s0 + $0x28] sm:$0xff]  ;;  %v11759_v3 = vld [vmem:[%s21945_s1 + $0x1650] sm:$0xf] }
  0x3f   :  { %7116 = vmatpush.bf16.msrb.mxu3 %v10272_v5  ;;  %v10536_v5 = vor.u32 %v13920_v60, %v10535_v59  ;;  %v10920_v8 = vor.u32 %v14016_v1, %v10919_v0  ;;  %v10823_v55 = vld [vmem:[%s21945_s1 + $0xf00] sm:$0xf]  ;;  %v14040_v60 = vld [vmem:[%s21945_s1 + $0x1094] sm:$0xf0]  ;;  %v14130_v63 = vld [vmem:[%s21945_s1 + $0x1364] sm:$0xf0] }
  0x40   :  { %7078 = vmatpush.bf16.msrb.mxu0 %v9672_v13  ;;  %v13962_v13 = vld [vmem:[%s21945_s1 + $0xe24] sm:$0xf0]  ;;  %v11015_v59 = vld [vmem:[%s21945_s1 + $0x1080] sm:$0xf]  ;;  %v11567_v0 = vld [vmem:[%s21945_s1 + $0x14d0] sm:$0xf] }
  0x41   :  { %7091 = vmatpush.bf16.msrb.mxu1 %v9864_v18  ;;  %v10512_v18 = vor.u32 %v13914_v10, %v10511_v9  ;;  %v14178_v2 = vld [vmem:[%s21945_s1 + $0x14e4] sm:$0xf0]  ;;  %v11951_v10 = vld [vmem:[%s21945_s1 + $0x17d0] sm:$0xf]  ;;  %v11016_v14 = vor.u32 %v14040_v60, %v11015_v59  ;;  %v11543_v23 = vld [vmem:[%s21945_s1 + $0x14a0] sm:$0xf] }
  0x42   :  { %7104 = vmatpush.bf16.msrb.mxu2 %v10056_v19  ;;  %v10704_v19 = vor.u32 %v13962_v13, %v10703_v11  ;;  %v14274_v11 = vld [vmem:[%s21945_s1 + $0x17e4] sm:$0xf0]  ;;  %v11327_v37 = vld [vmem:[%s21945_s1 + $0x12f0] sm:$0xf]  ;;  %v14208_v59 = vld [vmem:[%s21945_s1 + $0x15d4] sm:$0xf0] }
  0x43   :  { %7117 = vmatpush.bf16.msrb.mxu3 %v10248_v26  ;;  %7079 = vmatmul.bf16.vlgmr.msrb.gmra.mxu0 %v15134_v41  ;;  %v11088_v26 = vor.u32 %v14058_v17, %v11087_v16  ;;  %v1198_v16 = vunpack.c.h.b16 %v16_v61  ;;  %v11568_v17 = vor.u32 %v14178_v2, %v11567_v0  ;;  %v11952_v24 = vor.u32 %v14274_v11, %v11951_v10  ;;  %v11519_v40 = vld [vmem:[%s21945_s1 + $0x1470] sm:$0xf]  ;;  %v11879_v60 = vld [vmem:[%s21945_s1 + $0x1740] sm:$0xf]  ;;  %v14106_v2 = vld [vmem:[%s21945_s1 + $0x12a4] sm:$0xf0] }
  0x44   :  { %7123 = vmatpush.bf16.msra.mxu0 %v10608_v27  ;;  %7092 = vmatmul.bf16.vlgmr.msrb.gmra.mxu1 %v15138_v44  ;;  %v13956_v27 = vld [vmem:[%s21945_s1 + $0xdf4] sm:$0xf0]  ;;  %v11855_v10 = vld [vmem:[%s21945_s1 + $0x1710] sm:$0xf]  ;;  %v14250_v11 = vld [vmem:[%s21945_s1 + $0x1724] sm:$0xf0] }
  0x45   :  { %7136 = vmatpush.bf16.msra.mxu1 %v10800_v29  ;;  %7105 = vmatmul.bf16.vlgmr.msrb.gmra.mxu2 %v15126_v38  ;;  %v14004_v29 = vld [vmem:[%s21945_s1 + $0xf74] sm:$0xf0]  ;;  %v10680_v33 = vor.u32 %v13956_v27, %v10679_v25  ;;  %v11735_v27 = vld [vmem:[%s21945_s1 + $0x1620] sm:$0xf] }
  0x46   :  { %7149 = vmatpush.bf16.msra.mxu2 %v10992_v30  ;;  %7118 = vmatmul.bf16.vlgmr.msrb.gmra.mxu3 %v15136_v42  ;;  %v11063_v30 = vld [vmem:[%s21945_s1 + $0x10e0] sm:$0xf] }
  0x47   :  { %7162 = vmatpush.bf16.msra.mxu3 %v11184_v34  ;;  %v10872_v34 = vor.u32 %v14004_v29, %v10871_v28  ;;  %v11064_v39 = vor.u32 %v14052_v31, %v11063_v30  ;;  %v14220_v28 = vld [vmem:[%s21945_s1 + $0x1634] sm:$0xf0]  ;;  %v11927_v31 = vld [vmem:[%s21945_s1 + $0x17a0] sm:$0xf] }
  0x48   :  { %7124 = vmatpush.bf16.msra.mxu0 %v10584_v43  ;;  %v10847_v43 = vld [vmem:[%s21945_s1 + $0xf30] sm:$0xf]  ;;  %v11736_v36 = vor.u32 %v14220_v28, %v11735_v27 }
  0x49   :  { %7137 = vmatpush.bf16.msra.mxu1 %v10776_v45  ;;  %v13998_v45 = vld [vmem:[%s21945_s1 + $0xf44] sm:$0xf0] }
  0x4a   :  { %7150 = vmatpush.bf16.msra.mxu2 %v10968_v46  ;;  %v11039_v46 = vld [vmem:[%s21945_s1 + $0x10b0] sm:$0xf]  ;;  %v10848_v54 = vor.u32 %v13998_v45, %v10847_v43  ;;  %v14166_v45 = vld [vmem:[%s21945_s1 + $0x1484] sm:$0xf0] }
  0x4b   :  { %7163 = vmatpush.bf16.msra.mxu3 %v11160_v50  ;;  %v13896_v50 = vld [vmem:[%s21945_s1 + $0xc14] sm:$0xf0] }
  0x4c   :  { %7125 = vmatpush.bf16.msra.mxu0 %v10560_v56  ;;  %v13992_v56 = vld [vmem:[%s21945_s1 + $0xf14] sm:$0xf0]  ;;  %v10440_v1 = vor.u32 %v13896_v50, %v10439_v48  ;;  %v11903_v48 = vld [vmem:[%s21945_s1 + $0x1770] sm:$0xf] }
  0x4d   :  { %7138 = vmatpush.bf16.msra.mxu1 %v10752_v57  ;;  %v15_v57 = vld [vmem:[%s21946_s0 + $0x20] sm:$0xff]  ;;  %v10824_v9 = vor.u32 %v13992_v56, %v10823_v55 }
  0x4e   :  { %7151 = vmatpush.bf16.msra.mxu2 %v10944_v58  ;;  %v11040_v58 = vor.u32 %v14046_v47, %v11039_v46  ;;  %v1196_v13 = vunpack.c.h.b16 %v15_v57  ;;  %v11711_v46 = vld [vmem:[%s21945_s1 + $0x15f0] sm:$0xf]  ;;  %v14214_v47 = vld [vmem:[%s21945_s1 + $0x1604] sm:$0xf0]  ;;  %v11495_v55 = vld [vmem:[%s21945_s1 + $0x1440] sm:$0xf] }
  0x4f   :  { %7164 = vmatpush.bf16.msra.mxu3 %v11136_v62  ;;  %v11375_v62 = vld [vmem:[%s21945_s1 + $0x1350] sm:$0xf] }
  0x50   :  { %7126 = vmatpush.bf16.msra.mxu0 %v10536_v5  ;;  %v14226_v5 = vld [vmem:[%s21945_s1 + $0x1664] sm:$0xf0]  ;;  %v11376_v15 = vor.u32 %v14130_v63, %v11375_v62  ;;  %v15340_v30 = vpack.c.b16 %v1196_v13, %v1196_v13 }
  0x51   :  { %7139 = vmatpush.bf16.msra.mxu1 %v10728_v7  ;;  %v1195_v7 = vunpack.c.l.b16 %v15_v57  ;;  %v14160_v57 = vld [vmem:[%s21945_s1 + $0x1454] sm:$0xf0] }
  0x52   :  { %7152 = vmatpush.bf16.msra.mxu2 %v10920_v8  ;;  %v10632_v8 = vor.u32 %v13944_v52, %v10631_v51  ;;  %v11520_v51 = vor.u32 %v14166_v45, %v11519_v40  ;;  %v11712_v52 = vor.u32 %v14214_v47, %v11711_v46  ;;  %v11496_v63 = vor.u32 %v14160_v57, %v11495_v55  ;;  %v14190_v40 = vld [vmem:[%s21945_s1 + $0x1544] sm:$0xf0]  ;;  %v11207_v46 = vld [vmem:[%s21945_s1 + $0x1200] sm:$0xf]  ;;  %v17_v55 = vld [vmem:[%s21946_s0 + $0x30] sm:$0xff] }
  0x53   :  { %7165 = vmatpush.bf16.msra.mxu3 %v11112_v12  ;;  %v1197_v12 = vunpack.c.l.b16 %v16_v61  ;;  %v15327_v25 = vpack.c.b16 %v1195_v7, %v1195_v7  ;;  %v14256_v61 = vld [vmem:[%s21945_s1 + $0x1754] sm:$0xf0]  ;;  %v14154_v7 = vld [vmem:[%s21945_s1 + $0x1424] sm:$0xf0]  ;;  %v11783_v57 = vld [vmem:[%s21945_s1 + $0x1680] sm:$0xf] }
  0x54   :  { %7127 = vmatpush.bf16.msra.mxu0 %v10512_v18  ;;  %v11760_v18 = vor.u32 %v14226_v5, %v11759_v3  ;;  %v11471_v3 = vld [vmem:[%s21945_s1 + $0x1410] sm:$0xf]  ;;  %v11880_v5 = vor.u32 %v14256_v61, %v11879_v60  ;;  %v14238_v45 = vld [vmem:[%s21945_s1 + $0x16c4] sm:$0xf0] }
  0x55   :  { %7140 = vmatpush.bf16.msra.mxu1 %v10704_v19  ;;  %v11351_v19 = vld [vmem:[%s21945_s1 + $0x1320] sm:$0xf]  ;;  %v15338_v29 = vpack.c.b16 %v1197_v12, %v1197_v12  ;;  %v11472_v13 = vor.u32 %v14154_v7, %v11471_v3  ;;  %v12143_v60 = vld [vmem:[%s21945_s1 + $0x1950] sm:$0xf]  ;;  %v14322_v61 = vld [vmem:[%s21945_s1 + $0x1964] sm:$0xf0]  ;;  %v1199_v3 = vunpack.c.l.b16 %v17_v55 }
  0x56   :  { %7153 = vmatpush.bf16.msra.mxu2 %v10896_v22  ;;  %v14124_v22 = vld [vmem:[%s21945_s1 + $0x1334] sm:$0xf0] }
  0x57   :  { %7166 = vmatpush.bf16.msra.mxu3 %v11088_v26  ;;  %v14172_v26 = vld [vmem:[%s21945_s1 + $0x14b4] sm:$0xf0] }
  0x58   :  { %7128 = vmatpush.bf16.msra.mxu0 %v10488_v32  ;;  %v14268_v32 = vld [vmem:[%s21945_s1 + $0x17b4] sm:$0xf0]  ;;  %v11544_v35 = vor.u32 %v14172_v26, %v11543_v23 }
  0x59   :  { %7141 = vmatpush.bf16.msra.mxu1 %v10680_v33  ;;  %v15348_v33 = vpack.c.b16 %v1198_v16, %v1198_v16  ;;  %v11928_v43 = vor.u32 %v14268_v32, %v11927_v31  ;;  %v14100_v16 = vld [vmem:[%s21945_s1 + $0x1274] sm:$0xf0]  ;;  %v11231_v32 = vld [vmem:[%s21945_s1 + $0x1230] sm:$0xf] }
  0x5a   :  { %7154 = vmatpush.bf16.msra.mxu2 %v10872_v34  ;;  %v11352_v34 = vor.u32 %v14124_v22, %v11351_v19  ;;  %v14148_v19 = vld [vmem:[%s21945_s1 + $0x13f4] sm:$0xf0]  ;;  %v11639_v22 = vld [vmem:[%s21945_s1 + $0x1560] sm:$0xf] }
  0x5b   :  { %7167 = vmatpush.bf16.msra.mxu3 %v11064_v39  ;;  %v14118_v39 = vld [vmem:[%s21945_s1 + $0x1304] sm:$0xf0]  ;;  %v14196_v23 = vld [vmem:[%s21945_s1 + $0x1574] sm:$0xf0] }
  0x5c   :  { %7129 = vmatpush.bf16.msra.mxu0 %v10464_v49  ;;  %v14262_v49 = vld [vmem:[%s21945_s1 + $0x1784] sm:$0xf0]  ;;  %v11328_v50 = vor.u32 %v14118_v39, %v11327_v37  ;;  %v14244_v26 = vld [vmem:[%s21945_s1 + $0x16f4] sm:$0xf0]  ;;  %v11640_v31 = vor.u32 %v14196_v23, %v11639_v22  ;;  %v11615_v39 = vld [vmem:[%s21945_s1 + $0x1530] sm:$0xf]  ;;  %v15537_v23 = vpack.c.b16 %v1199_v3, %v1199_v3 }
  0x5d   :  { %7142 = vmatpush.bf16.msra.mxu1 %v10656_v53  ;;  %v11303_v53 = vld [vmem:[%s21945_s1 + $0x12c0] sm:$0xf]  ;;  %v11904_v56 = vor.u32 %v14262_v49, %v11903_v48  ;;  %v14142_v37 = vld [vmem:[%s21945_s1 + $0x13c4] sm:$0xf0]  ;;  %v14088_v48 = vld [vmem:[%s21945_s1 + $0x1214] sm:$0xf0] }
  0x5e   :  { %7155 = vmatpush.bf16.msra.mxu2 %v10848_v54  ;;  %v14112_v54 = vld [vmem:[%s21945_s1 + $0x12d4] sm:$0xf0]  ;;  %v11399_v49 = vld [vmem:[%s21945_s1 + $0x1380] sm:$0xf]  ;;  %v12047_v3 = vld [vmem:[%s21945_s1 + $0x1890] sm:$0xf] }
  0x5f   :  { %7168 = vmatpush.bf16.msra.mxu3 %v11040_v58  ;;  %v11687_v58 = vld [vmem:[%s21945_s1 + $0x15c0] sm:$0xf]  ;;  %v11304_v62 = vor.u32 %v14112_v54, %v11303_v53  ;;  %v14184_v54 = vld [vmem:[%s21945_s1 + $0x1514] sm:$0xf0] }
  0x60   :  { %7130 = vmatpush.bf16.msra.mxu0 %v10440_v1  ;;  %v11688_v0 = vor.u32 %v14208_v59, %v11687_v58  ;;  %v11279_v1 = vld [vmem:[%s21945_s1 + $0x1290] sm:$0xf]  ;;  %v11591_v53 = vld [vmem:[%s21945_s1 + $0x1500] sm:$0xf]  ;;  %v14232_v58 = vld [vmem:[%s21945_s1 + $0x1694] sm:$0xf0] }
  0x61   :  { %7143 = vmatpush.bf16.msra.mxu1 %v10632_v8  ;;  %v11663_v8 = vld [vmem:[%s21945_s1 + $0x1590] sm:$0xf]  ;;  %v11280_v12 = vor.u32 %v14106_v2, %v11279_v1  ;;  %v18_v59 = vld [vmem:[%s21946_s0 + $0x38] sm:$0xff]  ;;  %v14418_v2 = vld [vmem:[%s21945_s1 + $0x1c64] sm:$0xf0]  ;;  %v11592_v7 = vor.u32 %v14184_v54, %v11591_v53 }
  0x62   :  { %7156 = vmatpush.bf16.msra.mxu2 %v10824_v9  ;;  %v14202_v9 = vld [vmem:[%s21945_s1 + $0x15a4] sm:$0xf0]  ;;  %v12527_v1 = vld [vmem:[%s21945_s1 + $0x1c50] sm:$0xf] }
  0x63   :  { %7169 = vmatpush.bf16.msra.mxu3 %v11016_v14  ;;  %7131 = vmatmul.bf16.vlgmr.msra.gmra.mxu0 %v15327_v25  ;;  %v11664_v14 = vor.u32 %v14202_v9, %v11663_v8  ;;  %v12719_v8 = vld [vmem:[%s21945_s1 + $0x1dd0] sm:$0xf]  ;;  %v14466_v9 = vld [vmem:[%s21945_s1 + $0x1de4] sm:$0xf0] }
  0x64   :  { %7175 = vmatpush.bf16.msrb.mxu0 %v11376_v15  ;;  %7144 = vmatmul.bf16.vlgmr.msra.gmra.mxu1 %v15340_v30  ;;  %v11255_v15 = vld [vmem:[%s21945_s1 + $0x1260] sm:$0xf]  ;;  %v12720_v22 = vor.u32 %v14466_v9, %v12719_v8  ;;  %v14346_v9 = vld [vmem:[%s21945_s1 + $0x1a24] sm:$0xf0] }
  0x65   :  { %7188 = vmatpush.bf16.msrb.mxu1 %v11568_v17  ;;  %7157 = vmatmul.bf16.vlgmr.msra.gmra.mxu2 %v15338_v29  ;;  %v11447_v17 = vld [vmem:[%s21945_s1 + $0x13e0] sm:$0xf]  ;;  %v11256_v27 = vor.u32 %v14100_v16, %v11255_v15  ;;  %v12528_v16 = vor.u32 %v14418_v2, %v12527_v1 }
  0x66   :  { %7201 = vmatpush.bf16.msrb.mxu2 %v11760_v18  ;;  %7170 = vmatmul.bf16.vlgmr.msra.gmra.mxu3 %v15348_v33  ;;  %v11856_v18 = vor.u32 %v14250_v11, %v11855_v10  ;;  %v11448_v28 = vor.u32 %v14148_v19, %v11447_v17  ;;  %v1201_v10 = vunpack.c.l.b16 %v18_v59  ;;  %v1200_v11 = vunpack.c.h.b16 %v17_v55  ;;  %v12119_v17 = vld [vmem:[%s21945_s1 + $0x1920] sm:$0xf] }
  0x67   :  { %7214 = vmatpush.bf16.msrb.mxu3 %v11952_v24  ;;  %v11831_v24 = vld [vmem:[%s21945_s1 + $0x16e0] sm:$0xf] }
  0x68   :  { %7176 = vmatpush.bf16.msrb.mxu0 %v11352_v34  ;;  %v14094_v34 = vld [vmem:[%s21945_s1 + $0x1244] sm:$0xf0]  ;;  %v12311_v19 = vld [vmem:[%s21945_s1 + $0x1aa0] sm:$0xf] }
  0x69   :  { %7189 = vmatpush.bf16.msrb.mxu1 %v11544_v35  ;;  %v11423_v35 = vld [vmem:[%s21945_s1 + $0x13b0] sm:$0xf]  ;;  %v11232_v47 = vor.u32 %v14094_v34, %v11231_v32  ;;  %v12695_v32 = vld [vmem:[%s21945_s1 + $0x1da0] sm:$0xf]  ;;  %v14460_v34 = vld [vmem:[%s21945_s1 + $0x1db4] sm:$0xf0] }
  0x6a   :  { %7202 = vmatpush.bf16.msrb.mxu2 %v11736_v36  ;;  %v11832_v36 = vor.u32 %v14244_v26, %v11831_v24  ;;  %v14364_v24 = vld [vmem:[%s21945_s1 + $0x1ab4] sm:$0xf0]  ;;  %v12503_v26 = vld [vmem:[%s21945_s1 + $0x1c20] sm:$0xf] }
  0x6b   :  { %7215 = vmatpush.bf16.msrb.mxu3 %v11928_v43  ;;  %v11807_v43 = vld [vmem:[%s21945_s1 + $0x16b0] sm:$0xf]  ;;  %v12071_v55 = vld [vmem:[%s21945_s1 + $0x18c0] sm:$0xf] }
  0x6c   :  { %7177 = vmatpush.bf16.msrb.mxu0 %v11328_v50  ;;  %v14136_v50 = vld [vmem:[%s21945_s1 + $0x1394] sm:$0xf0] }
  0x6d   :  { %7190 = vmatpush.bf16.msrb.mxu1 %v11520_v51  ;;  %v11424_v51 = vor.u32 %v14142_v37, %v11423_v35  ;;  %v12312_v37 = vor.u32 %v14364_v24, %v12311_v19  ;;  %v12215_v19 = vld [vmem:[%s21945_s1 + $0x19e0] sm:$0xf]  ;;  %v14340_v24 = vld [vmem:[%s21945_s1 + $0x19f4] sm:$0xf0] }
  0x6e   :  { %7203 = vmatpush.bf16.msrb.mxu2 %v11712_v52  ;;  %v11616_v52 = vor.u32 %v14190_v40, %v11615_v39  ;;  %v12095_v40 = vld [vmem:[%s21945_s1 + $0x18f0] sm:$0xf] }
  0x6f   :  { %7216 = vmatpush.bf16.msrb.mxu3 %v11904_v56  ;;  %v11808_v56 = vor.u32 %v14238_v45, %v11807_v43  ;;  %v14310_v43 = vld [vmem:[%s21945_s1 + $0x1904] sm:$0xf0]  ;;  %v12287_v45 = vld [vmem:[%s21945_s1 + $0x1a70] sm:$0xf] }
  0x70   :  { %7178 = vmatpush.bf16.msrb.mxu0 %v11304_v62  ;;  %v12335_v62 = vld [vmem:[%s21945_s1 + $0x1ad0] sm:$0xf] }
  0x71   :  { %7191 = vmatpush.bf16.msrb.mxu1 %v11496_v63  ;;  %v11208_v63 = vor.u32 %v14088_v48, %v11207_v46  ;;  %v12696_v46 = vor.u32 %v14460_v34, %v12695_v32  ;;  %v12479_v48 = vld [vmem:[%s21945_s1 + $0x1bf0] sm:$0xf]  ;;  %v12599_v32 = vld [vmem:[%s21945_s1 + $0x1ce0] sm:$0xf]  ;;  %v14436_v34 = vld [vmem:[%s21945_s1 + $0x1cf4] sm:$0xf0] }
  0x72   :  { %7204 = vmatpush.bf16.msrb.mxu2 %v11688_v0  ;;  %v14370_v0 = vld [vmem:[%s21945_s1 + $0x1ae4] sm:$0xf0] }
  0x73   :  { %7217 = vmatpush.bf16.msrb.mxu3 %v11880_v5  ;;  %v11400_v5 = vor.u32 %v14136_v50, %v11399_v49  ;;  %v12336_v15 = vor.u32 %v14370_v0, %v12335_v62  ;;  %v14406_v49 = vld [vmem:[%s21945_s1 + $0x1c04] sm:$0xf0]  ;;  %v12671_v50 = vld [vmem:[%s21945_s1 + $0x1d70] sm:$0xf]  ;;  %v12647_v62 = vld [vmem:[%s21945_s1 + $0x1d40] sm:$0xf] }
  0x74   :  { %7179 = vmatpush.bf16.msrb.mxu0 %v11280_v12  ;;  %v11784_v12 = vor.u32 %v14232_v58, %v11783_v57  ;;  %v12480_v54 = vor.u32 %v14406_v49, %v12479_v48  ;;  %v12263_v57 = vld [vmem:[%s21945_s1 + $0x1a40] sm:$0xf]  ;;  %v12383_v48 = vld [vmem:[%s21945_s1 + $0x1b30] sm:$0xf]  ;;  %v14382_v49 = vld [vmem:[%s21945_s1 + $0x1b44] sm:$0xf0] }
  0x75   :  { %7192 = vmatpush.bf16.msrb.mxu1 %v11472_v13  ;;  %v12144_v13 = vor.u32 %v14322_v61, %v12143_v60  ;;  %v12455_v60 = vld [vmem:[%s21945_s1 + $0x1bc0] sm:$0xf]  ;;  %v14400_v61 = vld [vmem:[%s21945_s1 + $0x1bd4] sm:$0xf0] }
  0x76   :  { %7205 = vmatpush.bf16.msrb.mxu2 %v11664_v14  ;;  %v1202_v14 = vunpack.c.h.b16 %v18_v59  ;;  %v14352_v59 = vld [vmem:[%s21945_s1 + $0x1a54] sm:$0xf0]  ;;  %v12456_v2 = vor.u32 %v14400_v61, %v12455_v60  ;;  %v19_v61 = vld [vmem:[%s21946_s0 + $0x40] sm:$0xff] }
  0x77   :  { %7218 = vmatpush.bf16.msrb.mxu3 %v11856_v18  ;;  %v14316_v18 = vld [vmem:[%s21945_s1 + $0x1934] sm:$0xf0]  ;;  %v12264_v1 = vor.u32 %v14352_v59, %v12263_v57  ;;  %v12359_v59 = vld [vmem:[%s21945_s1 + $0x1b00] sm:$0xf] }
  0x78   :  { %7180 = vmatpush.bf16.msrb.mxu0 %v11256_v27  ;;  %v14412_v27 = vld [vmem:[%s21945_s1 + $0x1c34] sm:$0xf0]  ;;  %v15558_v35 = vpack.c.b16 %v1202_v14, %v1202_v14 }
  0x79   :  { %7193 = vmatpush.bf16.msrb.mxu1 %v11448_v28  ;;  %v15548_v28 = vpack.c.b16 %v1201_v10, %v1201_v10  ;;  %v12504_v39 = vor.u32 %v14412_v27, %v12503_v26  ;;  %v12431_v10 = vld [vmem:[%s21945_s1 + $0x1b90] sm:$0xf]  ;;  %v12407_v26 = vld [vmem:[%s21945_s1 + $0x1b60] sm:$0xf]  ;;  %v14388_v27 = vld [vmem:[%s21945_s1 + $0x1b74] sm:$0xf0] }
  0x7a   :  { %7206 = vmatpush.bf16.msrb.mxu2 %v11640_v31  ;;  %v15550_v31 = vpack.c.b16 %v1200_v11, %v1200_v11  ;;  %v14394_v11 = vld [vmem:[%s21945_s1 + $0x1ba4] sm:$0xf0]  ;;  %v14376_v60 = vld [vmem:[%s21945_s1 + $0x1b14] sm:$0xf0] }
  0x7b   :  { %7219 = vmatpush.bf16.msrb.mxu3 %v11832_v36  ;;  %v12120_v36 = vor.u32 %v14316_v18, %v12119_v17  ;;  %v12023_v17 = vld [vmem:[%s21945_s1 + $0x1860] sm:$0xf]  ;;  %v14292_v18 = vld [vmem:[%s21945_s1 + $0x1874] sm:$0xf0] }
  0x7c   :  { %7181 = vmatpush.bf16.msrb.mxu0 %v11232_v47  ;;  %v14358_v47 = vld [vmem:[%s21945_s1 + $0x1a84] sm:$0xf0] }
  0x7d   :  { %7194 = vmatpush.bf16.msrb.mxu1 %v11424_v51  ;;  %v14454_v51 = vld [vmem:[%s21945_s1 + $0x1d84] sm:$0xf0]  ;;  %v12288_v53 = vor.u32 %v14358_v47, %v12287_v45  ;;  %v12191_v45 = vld [vmem:[%s21945_s1 + $0x19b0] sm:$0xf] }
  0x7e   :  { %7207 = vmatpush.bf16.msrb.mxu2 %v11616_v52  ;;  %v12096_v52 = vor.u32 %v14310_v43, %v12095_v40  ;;  %v12672_v58 = vor.u32 %v14454_v51, %v12671_v50  ;;  %v11999_v40 = vld [vmem:[%s21945_s1 + $0x1830] sm:$0xf]  ;;  %v14286_v43 = vld [vmem:[%s21945_s1 + $0x1844] sm:$0xf0] }
  0x7f   :  { %7220 = vmatpush.bf16.msrb.mxu3 %v11808_v56  ;;  %v14304_v56 = vld [vmem:[%s21945_s1 + $0x18d4] sm:$0xf0]  ;;  %v14334_v47 = vld [vmem:[%s21945_s1 + $0x19c4] sm:$0xf0]  ;;  %v12575_v50 = vld [vmem:[%s21945_s1 + $0x1cb0] sm:$0xf] }
  0x80   :  { %7182 = vmatpush.bf16.msrb.mxu0 %v11208_v63  ;;  %v14448_v63 = vld [vmem:[%s21945_s1 + $0x1d54] sm:$0xf0]  ;;  %v12072_v0 = vor.u32 %v14304_v56, %v12071_v55  ;;  %v14430_v51 = vld [vmem:[%s21945_s1 + $0x1cc4] sm:$0xf0]  ;;  %v12167_v55 = vld [vmem:[%s21945_s1 + $0x1980] sm:$0xf]  ;;  %v12192_v57 = vor.u32 %v14334_v47, %v12191_v45 }
  0x81   :  { %7195 = vmatpush.bf16.msrb.mxu1 %v11400_v5  ;;  %v14298_v5 = vld [vmem:[%s21945_s1 + $0x18a4] sm:$0xf0]  ;;  %v12648_v8 = vor.u32 %v14448_v63, %v12647_v62  ;;  %v14328_v56 = vld [vmem:[%s21945_s1 + $0x1994] sm:$0xf0]  ;;  %v12576_v62 = vor.u32 %v14430_v51, %v12575_v50  ;;  %v12551_v63 = vld [vmem:[%s21945_s1 + $0x1c80] sm:$0xf] }
  0x82   :  { %7208 = vmatpush.bf16.msrb.mxu2 %v11592_v7  ;;  %v12239_v7 = vld [vmem:[%s21945_s1 + $0x1a10] sm:$0xf]  ;;  %v12048_v14 = vor.u32 %v14298_v5, %v12047_v3  ;;  %v14514_v3 = vld [vmem:[%s21945_s1 + $0x1f64] sm:$0xf0]  ;;  %v13463_v47 = vld [vmem:[%s21945_s1 + $0x23a0] sm:$0xf] }
  0x83   :  { %7221 = vmatpush.bf16.msrb.mxu3 %v11784_v12  ;;  %7183 = vmatmul.bf16.vlgmr.msrb.gmra.mxu0 %v15537_v23  ;;  %v12623_v12 = vld [vmem:[%s21945_s1 + $0x1d10] sm:$0xf] }
  0x84   :  { %7227 = vmatpush.bf16.msra.mxu0 %v12144_v13  ;;  %7196 = vmatmul.bf16.vlgmr.msrb.gmra.mxu1 %v15550_v31  ;;  %v14442_v13 = vld [vmem:[%s21945_s1 + $0x1d24] sm:$0xf0]  ;;  %v13103_v5 = vld [vmem:[%s21945_s1 + $0x20d0] sm:$0xf] }
  0x85   :  { %7240 = vmatpush.bf16.msra.mxu1 %v12336_v15  ;;  %7209 = vmatmul.bf16.vlgmr.msrb.gmra.mxu2 %v15548_v28  ;;  %v12240_v15 = vor.u32 %v14346_v9, %v12239_v7  ;;  %v13295_v9 = vld [vmem:[%s21945_s1 + $0x2250] sm:$0xf] }
  0x86   :  { %7253 = vmatpush.bf16.msra.mxu2 %v12528_v16  ;;  %7222 = vmatmul.bf16.vlgmr.msrb.gmra.mxu3 %v15558_v35  ;;  %v12432_v16 = vor.u32 %v14394_v11, %v12431_v10  ;;  %v14610_v10 = vld [vmem:[%s21945_s1 + $0x2264] sm:$0xf0]  ;;  %v1203_v11 = vunpack.c.l.b16 %v19_v61 }
  0x87   :  { %7266 = vmatpush.bf16.msra.mxu3 %v12720_v22  ;;  %v12624_v22 = vor.u32 %v14442_v13, %v12623_v12  ;;  %v12168_v12 = vor.u32 %v14328_v56, %v12167_v55  ;;  %v12360_v13 = vor.u32 %v14376_v60, %v12359_v59  ;;  %v13055_v55 = vld [vmem:[%s21945_s1 + $0x2070] sm:$0xf]  ;;  %v14598_v59 = vld [vmem:[%s21945_s1 + $0x2204] sm:$0xf0] }
  0x88   :  { %7228 = vmatpush.bf16.msra.mxu0 %v12120_v36  ;;  %v12024_v36 = vor.u32 %v14292_v18, %v12023_v17  ;;  %v1204_v17 = vunpack.c.h.b16 %v19_v61  ;;  %v13439_v60 = vld [vmem:[%s21945_s1 + $0x2370] sm:$0xf]  ;;  %v14646_v61 = vld [vmem:[%s21945_s1 + $0x2384] sm:$0xf0] }
  0x89   :  { %7241 = vmatpush.bf16.msra.mxu1 %v12312_v37  ;;  %v12216_v37 = vor.u32 %v14340_v24, %v12215_v19 }
  0x8a   :  { %7254 = vmatpush.bf16.msra.mxu2 %v12504_v39  ;;  %v12408_v39 = vor.u32 %v14388_v27, %v12407_v26  ;;  %v13296_v26 = vor.u32 %v14610_v10, %v13295_v9  ;;  %v12887_v27 = vld [vmem:[%s21945_s1 + $0x1f20] sm:$0xf]  ;;  %v14592_v9 = vld [vmem:[%s21945_s1 + $0x21d4] sm:$0xf0] }
  0x8b   :  { %7267 = vmatpush.bf16.msra.mxu3 %v12696_v46  ;;  %v12600_v46 = vor.u32 %v14436_v34, %v12599_v32  ;;  %v14508_v32 = vld [vmem:[%s21945_s1 + $0x1f34] sm:$0xf0]  ;;  %v13079_v34 = vld [vmem:[%s21945_s1 + $0x20a0] sm:$0xf] }
  0x8c   :  { %7229 = vmatpush.bf16.msra.mxu0 %v12096_v52  ;;  %v11975_v52 = vld [vmem:[%s21945_s1 + $0x1800] sm:$0xf]  ;;  %v12888_v50 = vor.u32 %v14508_v32, %v12887_v27  ;;  %v14634_v27 = vld [vmem:[%s21945_s1 + $0x2324] sm:$0xf0] }
  0x8d   :  { %7242 = vmatpush.bf16.msra.mxu1 %v12288_v53  ;;  %v12000_v53 = vor.u32 %v14286_v43, %v11999_v40  ;;  %v13271_v40 = vld [vmem:[%s21945_s1 + $0x2220] sm:$0xf]  ;;  %v14604_v43 = vld [vmem:[%s21945_s1 + $0x2234] sm:$0xf0] }
  0x8e   :  { %7255 = vmatpush.bf16.msra.mxu2 %v12480_v54  ;;  %v14280_v54 = vld [vmem:[%s21945_s1 + $0x1814] sm:$0xf0]  ;;  %v13415_v10 = vld [vmem:[%s21945_s1 + $0x2340] sm:$0xf] }
  0x8f   :  { %7268 = vmatpush.bf16.msra.mxu3 %v12672_v58  ;;  %v12384_v58 = vor.u32 %v14382_v49, %v12383_v48  ;;  %v11976_v7 = vor.u32 %v14280_v54, %v11975_v52  ;;  %v14652_v48 = vld [vmem:[%s21945_s1 + $0x23b4] sm:$0xf0]  ;;  %v13272_v52 = vor.u32 %v14604_v43, %v13271_v40  ;;  %v14502_v54 = vld [vmem:[%s21945_s1 + $0x1f04] sm:$0xf0]  ;;  %v12983_v43 = vld [vmem:[%s21945_s1 + $0x1fe0] sm:$0xf] }
  0x90   :  { %7230 = vmatpush.bf16.msra.mxu0 %v12072_v0  ;;  %v14424_v0 = vld [vmem:[%s21945_s1 + $0x1c94] sm:$0xf0]  ;;  %v13464_v56 = vor.u32 %v14652_v48, %v13463_v47 }
  0x91   :  { %7243 = vmatpush.bf16.msra.mxu1 %v12264_v1  ;;  %v20_v1 = vld [vmem:[%s21946_s0 + $0x48] sm:$0xff]  ;;  %v12552_v18 = vor.u32 %v14424_v0, %v12551_v63  ;;  %v14484_v40 = vld [vmem:[%s21945_s1 + $0x1e74] sm:$0xf0] }
  0x92   :  { %7256 = vmatpush.bf16.msra.mxu2 %v12456_v2  ;;  %v12911_v2 = vld [vmem:[%s21945_s1 + $0x1f50] sm:$0xf]  ;;  %v14532_v48 = vld [vmem:[%s21945_s1 + $0x1ff4] sm:$0xf0] }
  0x93   :  { %7269 = vmatpush.bf16.msra.mxu3 %v12648_v8  ;;  %v14562_v8 = vld [vmem:[%s21945_s1 + $0x20e4] sm:$0xf0]  ;;  %v12912_v19 = vor.u32 %v14514_v3, %v12911_v2  ;;  %v14496_v2 = vld [vmem:[%s21945_s1 + $0x1ed4] sm:$0xf0]  ;;  %v13031_v3 = vld [vmem:[%s21945_s1 + $0x2040] sm:$0xf] }
  0x94   :  { %7231 = vmatpush.bf16.msra.mxu0 %v12048_v14  ;;  %v13487_v14 = vld [vmem:[%s21945_s1 + $0x23d0] sm:$0xf]  ;;  %v13104_v24 = vor.u32 %v14562_v8, %v13103_v5  ;;  %v13440_v5 = vor.u32 %v14646_v61, %v13439_v60  ;;  %v13223_v8 = vld [vmem:[%s21945_s1 + $0x21c0] sm:$0xf]  ;;  %v14478_v60 = vld [vmem:[%s21945_s1 + $0x1e44] sm:$0xf0] }
  0x95   :  { %7244 = vmatpush.bf16.msra.mxu1 %v12240_v15  ;;  %v14658_v15 = vld [vmem:[%s21945_s1 + $0x23e4] sm:$0xf0]  ;;  %v12959_v61 = vld [vmem:[%s21945_s1 + $0x1fb0] sm:$0xf] }
  0x96   :  { %7257 = vmatpush.bf16.msra.mxu2 %v12432_v16  ;;  %v1205_v16 = vunpack.c.l.b16 %v20_v1 }
  0x97   :  { %7270 = vmatpush.bf16.msra.mxu3 %v12624_v22  ;;  %v1206_v22 = vunpack.c.h.b16 %v20_v1  ;;  %v12839_v1 = vld [vmem:[%s21945_s1 + $0x1ec0] sm:$0xf] }
  0x98   :  { %7232 = vmatpush.bf16.msra.mxu0 %v12024_v36  ;;  %v13488_v36 = vor.u32 %v14658_v15, %v13487_v14  ;;  %v15758_v45 = vpack.c.b16 %v1205_v16, %v1205_v16  ;;  %v13224_v14 = vor.u32 %v14592_v9, %v13223_v8  ;;  %v12815_v15 = vld [vmem:[%s21945_s1 + $0x1e90] sm:$0xf]  ;;  %v14490_v16 = vld [vmem:[%s21945_s1 + $0x1ea4] sm:$0xf0]  ;;  %v12743_v9 = vld [vmem:[%s21945_s1 + $0x1e00] sm:$0xf] }
  0x99   :  { %7245 = vmatpush.bf16.msra.mxu1 %v12216_v37  ;;  %v15747_v37 = vpack.c.b16 %v1203_v11, %v1203_v11  ;;  %v15768_v49 = vpack.c.b16 %v1206_v22, %v1206_v22  ;;  %v14640_v11 = vld [vmem:[%s21945_s1 + $0x2354] sm:$0xf0]  ;;  %v13199_v22 = vld [vmem:[%s21945_s1 + $0x2190] sm:$0xf]  ;;  %v12816_v32 = vor.u32 %v14490_v16, %v12815_v15  ;;  %v14622_v8 = vld [vmem:[%s21945_s1 + $0x22c4] sm:$0xf0] }
  0x9a   :  { %7258 = vmatpush.bf16.msra.mxu2 %v12408_v39  ;;  %v14556_v39 = vld [vmem:[%s21945_s1 + $0x20b4] sm:$0xf0] }
  0x9b   :  { %7271 = vmatpush.bf16.msra.mxu3 %v12600_v46  ;;  %v15760_v46 = vpack.c.b16 %v1204_v17, %v1204_v17  ;;  %v13080_v51 = vor.u32 %v14556_v39, %v13079_v34  ;;  %v13007_v17 = vld [vmem:[%s21945_s1 + $0x2010] sm:$0xf]  ;;  %v12791_v39 = vld [vmem:[%s21945_s1 + $0x1e60] sm:$0xf] }
  0x9c   :  { %7233 = vmatpush.bf16.msra.mxu0 %v12000_v53  ;;  %v12863_v53 = vld [vmem:[%s21945_s1 + $0x1ef0] sm:$0xf] }
  0x9d   :  { %7246 = vmatpush.bf16.msra.mxu1 %v12192_v57  ;;  %v14550_v57 = vld [vmem:[%s21945_s1 + $0x2084] sm:$0xf0] }
  0x9e   :  { %7259 = vmatpush.bf16.msra.mxu2 %v12384_v58  ;;  %v13247_v58 = vld [vmem:[%s21945_s1 + $0x21f0] sm:$0xf]  ;;  %v13056_v63 = vor.u32 %v14550_v57, %v13055_v55  ;;  %v12792_v55 = vor.u32 %v14484_v40, %v12791_v39  ;;  %v12984_v57 = vor.u32 %v14532_v48, %v12983_v43  ;;  %v13599_v39 = vld [vmem:[%s21945_s1 + $0x2d4] sm:$0xf] }
  0x9f   :  { %7272 = vmatpush.bf16.msra.mxu3 %v12576_v62  ;;  %v12864_v62 = vor.u32 %v14502_v54, %v12863_v53  ;;  %v13248_v0 = vor.u32 %v14598_v59, %v13247_v58  ;;  %v14628_v53 = vld [vmem:[%s21945_s1 + $0x22f4] sm:$0xf0]  ;;  %v12767_v59 = vld [vmem:[%s21945_s1 + $0x1e30] sm:$0xf]  ;;  %v13647_v48 = vld [vmem:[%s21945_s1 + $0x454] sm:$0xf] }
  0xa0   :  { %7234 = vmatpush.bf16.msra.mxu0 %v11976_v7  ;;  %v14544_v7 = vld [vmem:[%s21945_s1 + $0x2054] sm:$0xf0]  ;;  %v7028_v54 = vpop.f32.mrf.mxu0 }
  0xa1   :  { %7247 = vmatpush.bf16.msra.mxu1 %v12168_v12  ;;  %v12840_v12 = vor.u32 %v14496_v2, %v12839_v1  ;;  %v14526_v1 = vld [vmem:[%s21945_s1 + $0x1fc4] sm:$0xf0]  ;;  %v13151_v2 = vld [vmem:[%s21945_s1 + $0x2130] sm:$0xf] }
  0xa2   :  { %7260 = vmatpush.bf16.msra.mxu2 %v12360_v13  ;;  %v13032_v13 = vor.u32 %v14544_v7, %v13031_v3  ;;  %v14574_v3 = vld [vmem:[%s21945_s1 + $0x2144] sm:$0xf0]  ;;  %v13343_v7 = vld [vmem:[%s21945_s1 + $0x22b0] sm:$0xf]  ;;  %v12960_v15 = vor.u32 %v14526_v1, %v12959_v61 }
  0xa3   :  { %7273 = vmatpush.bf16.msra.mxu3 %v12552_v18  ;;  %7235 = vmatmul.bf16.vlgmr.msra.gmra.mxu0 %v15747_v37  ;;  %v13416_v18 = vor.u32 %v14640_v11, %v13415_v10  ;;  %v12768_v11 = vor.u32 %v14478_v60, %v12767_v59  ;;  %v13152_v16 = vor.u32 %v14574_v3, %v13151_v2  ;;  %v13545_v2 = vld [vmem:[%s21945_s1 + $0x124] sm:$0xf]  ;;  %v9049_v3 = vld [vmem:[%s21945_s1 + $0x138] sm:$0xf0] }
  0xa4   :  { %7279 = vmatpush.bf16.msrb.mxu0 %v12912_v19  ;;  %7248 = vmatmul.bf16.vlgmr.msra.gmra.mxu1 %v15760_v46  ;;  %v14538_v19 = vld [vmem:[%s21945_s1 + $0x2024] sm:$0xf0] }
  0xa5   :  { %7292 = vmatpush.bf16.msrb.mxu1 %v13104_v24  ;;  %7261 = vmatmul.bf16.vlgmr.msra.gmra.mxu2 %v15758_v45  ;;  %v14586_v24 = vld [vmem:[%s21945_s1 + $0x21a4] sm:$0xf0]  ;;  %v13008_v34 = vor.u32 %v14538_v19, %v13007_v17  ;;  %v13127_v17 = vld [vmem:[%s21945_s1 + $0x2100] sm:$0xf]  ;;  %v21_v19 = vld [vmem:[%s21946_s0 + $0x50] sm:$0xff] }
  0xa6   :  { %7305 = vmatpush.bf16.msrb.mxu2 %v13296_v26  ;;  %7274 = vmatmul.bf16.vlgmr.msra.gmra.mxu3 %v15768_v49  ;;  %v13391_v26 = vld [vmem:[%s21945_s1 + $0x2310] sm:$0xf] }
  0xa7   :  { %7318 = vmatpush.bf16.msrb.mxu3 %v13488_v36  ;;  %v13200_v36 = vor.u32 %v14586_v24, %v13199_v22  ;;  %v13392_v47 = vor.u32 %v14634_v27, %v13391_v26  ;;  %v13344_v24 = vor.u32 %v14622_v8, %v13343_v7  ;;  %v13319_v26 = vld [vmem:[%s21945_s1 + $0x2280] sm:$0xf]  ;;  %v14616_v27 = vld [vmem:[%s21945_s1 + $0x2294] sm:$0xf0] }
  0xa8   :  { %7280 = vmatpush.bf16.msrb.mxu0 %v12888_v50  ;;  %v13175_v50 = vld [vmem:[%s21945_s1 + $0x2160] sm:$0xf]  ;;  %v7030_v40 = vpop.f32.mrf.mxu0  ;;  %v13320_v60 = vor.u32 %v14616_v27, %v13319_v26  ;;  %v9025_v26 = vld [vmem:[%s21945_s1 + $0x108] sm:$0xf0]  ;;  %v13587_v27 = vld [vmem:[%s21945_s1 + $0x274] sm:$0xf] }
  0xa9   :  { %7293 = vmatpush.bf16.msrb.mxu1 %v13080_v51  ;;  %v14580_v51 = vld [vmem:[%s21945_s1 + $0x2174] sm:$0xf0]  ;;  %v13683_v40 = vld [vmem:[%s21945_s1 + $0x574] sm:$0xf] }
  0xaa   :  { %7306 = vmatpush.bf16.msrb.mxu2 %v13272_v52  ;;  %v13367_v52 = vld [vmem:[%s21945_s1 + $0x22e0] sm:$0xf]  ;;  %v13176_v58 = vor.u32 %v14580_v51, %v13175_v50  ;;  %v9457_v50 = vld [vmem:[%s21945_s1 + $0x468] sm:$0xf0]  ;;  %v1207_v51 = vunpack.c.l.b16 %v21_v19 }
  0xab   :  { %7319 = vmatpush.bf16.msrb.mxu3 %v13464_v56  ;;  %v7041_v56 = vpop.f32.mrf.mxu1  ;;  %v9460_v1 = vor.u32 %v13647_v48, %v9457_v50 }
  0xac   :  { %7281 = vmatpush.bf16.msrb.mxu0 %v12864_v62  ;;  %v7042_v62 = vadd.f32 %v7041_v56, %v7028_v54  ;;  %v9649_v56 = vld [vmem:[%s21945_s1 + $0x5e8] sm:$0xf0]  ;;  %v15959_v8 = vpack.c.b16 %v1207_v51, %v1207_v51  ;;  %v13533_v51 = vld [vmem:[%s21945_s1 + $0xc4] sm:$0xf] }
  0xad   :  { %7294 = vmatpush.bf16.msrb.mxu1 %v13056_v63  ;;  %v7054_v63 = vpop.f32.mrf.mxu2 }
  0xae   :  { %7307 = vmatpush.bf16.msrb.mxu2 %v13248_v0  ;;  %v13368_v0 = vor.u32 %v14628_v53, %v13367_v52  ;;  %v7055_v10 = vadd.f32 %v7054_v63, %v7042_v62 }
  0xaf   :  { %7320 = vmatpush.bf16.msrb.mxu3 %v13440_v5  ;;  %v7067_v5 = vpop.f32.mrf.mxu3 }
  0xb0   :  { %7282 = vmatpush.bf16.msrb.mxu0 %v12840_v12  ;;  %v14472_v12 = vld [vmem:[%s21945_s1 + $0x1e14] sm:$0xf0]  ;;  %v15915_v22 = vadd.f32 %v7067_v5, %v7055_v10  ;;  %v13593_v5 = vld [vmem:[%s21945_s1 + $0x2a4] sm:$0xf] }
  0xb1   :  { %7295 = vmatpush.bf16.msrb.mxu1 %v13032_v13  ;;  %v12935_v13 = vld [vmem:[%s21945_s1 + $0x1f80] sm:$0xf]  ;;  %v12744_v43 = vor.u32 %v14472_v12, %v12743_v9  ;;  %v9241_v9 = vld [vmem:[%s21945_s1 + $0x2b8] sm:$0xf0]  ;;  %v13641_v10 = vld [vmem:[%s21945_s1 + $0x424] sm:$0xf] }
  0xb2   :  { %7308 = vmatpush.bf16.msrb.mxu2 %v13224_v14  ;;  %v14520_v14 = vld [vmem:[%s21945_s1 + $0x1f94] sm:$0xf0] }
  0xb3   :  { %7321 = vmatpush.bf16.msrb.mxu3 %v13416_v18  ;;  %v14568_v18 = vld [vmem:[%s21945_s1 + $0x2114] sm:$0xf0]  ;;  %v7043_v52 = vpop.f32.mrf.mxu1  ;;  %v12936_v53 = vor.u32 %v14520_v14, %v12935_v13  ;;  %v13689_v14 = vld [vmem:[%s21945_s1 + $0x5a4] sm:$0xf] }
  0xb4   :  { %7283 = vmatpush.bf16.msrb.mxu0 %v12816_v32  ;;  %v22_v32 = vld [vmem:[%s21946_s0 + $0x58] sm:$0xff]  ;;  %v13128_v54 = vor.u32 %v14568_v18, %v13127_v17  ;;  %v9052_v17 = vor.u32 %v13545_v2, %v9049_v3  ;;  %v9244_v18 = vor.u32 %v13593_v5, %v9241_v9  ;;  %v13575_v2 = vld [vmem:[%s21945_s1 + $0x214] sm:$0xf]  ;;  %v9169_v9 = vld [vmem:[%s21945_s1 + $0x228] sm:$0xf0] }
  0xb5   :  { %7296 = vmatpush.bf16.msrb.mxu1 %v13008_v34  ;;  %v13551_v34 = vld [vmem:[%s21945_s1 + $0x154] sm:$0xf]  ;;  %v7056_v59 = vpop.f32.mrf.mxu2  ;;  %v1210_v62 = vunpack.c.h.b16 %v22_v32  ;;  %v9001_v52 = vld [vmem:[%s21945_s1 + $0xd8] sm:$0xf0] }
  0xb6   :  { %7309 = vmatpush.bf16.msrb.mxu2 %v13200_v36  ;;  %v9073_v36 = vld [vmem:[%s21945_s1 + $0x168] sm:$0xf0]  ;;  %v9577_v59 = vld [vmem:[%s21945_s1 + $0x558] sm:$0xf0] }
  0xb7   :  { %7322 = vmatpush.bf16.msrb.mxu3 %v13392_v47  ;;  %v9265_v47 = vld [vmem:[%s21945_s1 + $0x2e8] sm:$0xf0]  ;;  %v9076_v61 = vor.u32 %v13551_v34, %v9073_v36  ;;  %v7069_v63 = vpop.f32.mrf.mxu3  ;;  %v13635_v36 = vld [vmem:[%s21945_s1 + $0x3f4] sm:$0xf] }
  0xb8   :  { %7284 = vmatpush.bf16.msrb.mxu0 %v12792_v55  ;;  %v13695_v55 = vld [vmem:[%s21945_s1 + $0x5d4] sm:$0xf]  ;;  %v9217_v34 = vld [vmem:[%s21945_s1 + $0x288] sm:$0xf0] }
  0xb9   :  { %7297 = vmatpush.bf16.msrb.mxu1 %v12984_v57  ;;  %v1209_v57 = vunpack.c.l.b16 %v22_v32  ;;  %v9652_v7 = vor.u32 %v13695_v55, %v9649_v56  ;;  %v9220_v48 = vor.u32 %v13587_v27, %v9217_v34  ;;  %v9193_v55 = vld [vmem:[%s21945_s1 + $0x258] sm:$0xf0]  ;;  %v13629_v56 = vld [vmem:[%s21945_s1 + $0x3c4] sm:$0xf] }
  0xba   :  { %7310 = vmatpush.bf16.msrb.mxu2 %v13176_v58  ;;  %v1208_v58 = vunpack.c.h.b16 %v21_v19  ;;  %v13569_v27 = vld [vmem:[%s21945_s1 + $0x1e4] sm:$0xf] }
  0xbb   :  { %7323 = vmatpush.bf16.msrb.mxu3 %v13368_v0  ;;  %v9268_v0 = vor.u32 %v13599_v39, %v9265_v47  ;;  %v15970_v12 = vpack.c.b16 %v1209_v57, %v1209_v57  ;;  %v9409_v39 = vld [vmem:[%s21945_s1 + $0x408] sm:$0xf0]  ;;  %v9385_v57 = vld [vmem:[%s21945_s1 + $0x3d8] sm:$0xf0] }
  0xbc   :  { %7285 = vmatpush.bf16.msrb.mxu0 %v12768_v11  ;;  %v9433_v11 = vld [vmem:[%s21945_s1 + $0x438] sm:$0xf0]  ;;  %v15972_v13 = vpack.c.b16 %v1208_v58, %v1208_v58  ;;  %v9412_v50 = vor.u32 %v13635_v36, %v9409_v39  ;;  %v13677_v58 = vld [vmem:[%s21945_s1 + $0x544] sm:$0xf]  ;;  %v9388_v63 = vor.u32 %v13629_v56, %v9385_v57  ;;  %v13515_v56 = vld [vmem:[%s21945_s1 + $0x34] sm:$0xf] }
  0xbd   :  { %7298 = vmatpush.bf16.msrb.mxu1 %v12960_v15  ;;  %v9625_v15 = vld [vmem:[%s21945_s1 + $0x5b8] sm:$0xf0]  ;;  %v9436_v19 = vor.u32 %v13641_v10, %v9433_v11  ;;  %v13623_v10 = vld [vmem:[%s21945_s1 + $0x394] sm:$0xf]  ;;  %v9361_v11 = vld [vmem:[%s21945_s1 + $0x3a8] sm:$0xf0] }
  0xbe   :  { %7311 = vmatpush.bf16.msrb.mxu2 %v13152_v16  ;;  %v15980_v16 = vpack.c.b16 %v1210_v62, %v1210_v62  ;;  %v9628_v32 = vor.u32 %v13689_v14, %v9625_v15  ;;  %v13671_v14 = vld [vmem:[%s21945_s1 + $0x514] sm:$0xf]  ;;  %v9145_v36 = vld [vmem:[%s21945_s1 + $0x1f8] sm:$0xf0]  ;;  %v13617_v39 = vld [vmem:[%s21945_s1 + $0x364] sm:$0xf] }
  0xbf   :  { %7324 = vmatpush.bf16.msrb.mxu3 %v13344_v24  ;;  %v13539_v24 = vld [vmem:[%s21945_s1 + $0xf4] sm:$0xf]  ;;  %v8929_v57 = vld [vmem:[%s21945_s1 + $0x48] sm:$0xf0] }
  0xc0   :  { %7286 = vmatpush.bf16.msrb.mxu0 %v12744_v43  ;;  %v9601_v43 = vld [vmem:[%s21945_s1 + $0x588] sm:$0xf0]  ;;  %v9028_v47 = vor.u32 %v13539_v24, %v9025_v26  ;;  %v13521_v24 = vld [vmem:[%s21945_s1 + $0x64] sm:$0xf]  ;;  %v8953_v26 = vld [vmem:[%s21945_s1 + $0x78] sm:$0xf0] }
  0xc1   :  { %7299 = vmatpush.bf16.msrb.mxu1 %v12936_v53  ;;  %v13581_v53 = vld [vmem:[%s21945_s1 + $0x244] sm:$0xf]  ;;  %v7093_v5 = vpop.f32.mrf.mxu1 }
  0xc2   :  { %7312 = vmatpush.bf16.msrb.mxu2 %v13128_v54  ;;  %v9604_v54 = vor.u32 %v13683_v40, %v9601_v43  ;;  %v9196_v62 = vor.u32 %v13581_v53, %v9193_v55  ;;  %v9337_v40 = vld [vmem:[%s21945_s1 + $0x378] sm:$0xf0] }
  0xc3   :  { %7325 = vmatpush.bf16.msrb.mxu3 %v13320_v60  ;;  %7287 = vmatmul.bf16.vlgmr.msrb.gmra.mxu0 %v15959_v8  ;;  %v9004_v60 = vor.u32 %v13533_v51, %v9001_v52  ;;  %v8956_v51 = vor.u32 %v13521_v24, %v8953_v26  ;;  %v9340_v55 = vor.u32 %v13617_v39, %v9337_v40  ;;  %v13743_v26 = vld [vmem:[%s21945_s1 + $0x754] sm:$0xf]  ;;  %v10225_v40 = vld [vmem:[%s21945_s1 + $0xa68] sm:$0xf0] }
  0xc4   :  { %7331 = vmatpush.bf16.msra.mxu0 %v9076_v61  ;;  %7300 = vmatmul.bf16.vlgmr.msrb.gmra.mxu1 %v15972_v13  ;;  %v7080_v61 = vpop.f32.mrf.mxu0  ;;  %v13839_v39 = vld [vmem:[%s21945_s1 + $0xa54] sm:$0xf] }
  0xc5   :  { %7344 = vmatpush.bf16.msra.mxu1 %v9268_v0  ;;  %7313 = vmatmul.bf16.vlgmr.msrb.gmra.mxu2 %v15970_v12  ;;  %v13527_v0 = vld [vmem:[%s21945_s1 + $0x94] sm:$0xf]  ;;  %v7081_v3 = vadd.f32 %v7080_v61, %v15915_v22  ;;  %v9553_v22 = vld [vmem:[%s21945_s1 + $0x528] sm:$0xf0] }
  0xc6   :  { %7357 = vmatpush.bf16.msra.mxu2 %v9460_v1  ;;  %7326 = vmatmul.bf16.vlgmr.msrb.gmra.mxu3 %v15980_v16  ;;  %v8977_v1 = vld [vmem:[%s21945_s1 + $0xa8] sm:$0xf0]  ;;  %v9556_v34 = vor.u32 %v13671_v14, %v9553_v22  ;;  %v13605_v14 = vld [vmem:[%s21945_s1 + $0x304] sm:$0xf] }
  0xc7   :  { %7370 = vmatpush.bf16.msra.mxu3 %v9652_v7  ;;  %v9580_v7 = vor.u32 %v13677_v58, %v9577_v59  ;;  %v7094_v15 = vadd.f32 %v7093_v5, %v7081_v3  ;;  %v13563_v58 = vld [vmem:[%s21945_s1 + $0x1b4] sm:$0xf]  ;;  %v9121_v61 = vld [vmem:[%s21945_s1 + $0x1c8] sm:$0xf0]  ;;  %v13509_v3 = vld [vmem:[%s21945_s1 + $0x4] sm:$0xf] }
  0xc8   :  { %7332 = vmatpush.bf16.msra.mxu0 %v9052_v17  ;;  %v8980_v17 = vor.u32 %v13527_v0, %v8977_v1  ;;  %v13659_v0 = vld [vmem:[%s21945_s1 + $0x4b4] sm:$0xf]  ;;  %v9505_v1 = vld [vmem:[%s21945_s1 + $0x4c8] sm:$0xf0]  ;;  %v8905_v5 = vld [vmem:[%s21945_s1 + $0x18] sm:$0xf0] }
  0xc9   :  { %7345 = vmatpush.bf16.msra.mxu1 %v9244_v18  ;;  %v9172_v18 = vor.u32 %v13575_v2, %v9169_v9  ;;  %v7095_v59 = vpop.f32.mrf.mxu1  ;;  %v8932_v2 = vor.u32 %v13515_v56, %v8929_v57  ;;  %v13737_v56 = vld [vmem:[%s21945_s1 + $0x724] sm:$0xf]  ;;  %v9817_v57 = vld [vmem:[%s21945_s1 + $0x738] sm:$0xf0] }
  0xca   :  { %7358 = vmatpush.bf16.msra.mxu2 %v9436_v19  ;;  %v9364_v19 = vor.u32 %v13623_v10, %v9361_v11  ;;  %v13557_v10 = vld [vmem:[%s21945_s1 + $0x184] sm:$0xf]  ;;  %v9097_v11 = vld [vmem:[%s21945_s1 + $0x198] sm:$0xf0] }
  0xcb   :  { %7371 = vmatpush.bf16.msra.mxu3 %v9628_v32  ;;  %v7106_v32 = vpop.f32.mrf.mxu2 }
  0xcc   :  { %7333 = vmatpush.bf16.msra.mxu0 %v9028_v47  ;;  %v7107_v43 = vadd.f32 %v7106_v32, %v7094_v15  ;;  %v7119_v47 = vpop.f32.mrf.mxu3  ;;  %v7082_v53 = vpop.f32.mrf.mxu0  ;;  %v9508_v15 = vor.u32 %v13659_v0, %v9505_v1  ;;  %v13791_v32 = vld [vmem:[%s21945_s1 + $0x8d4] sm:$0xf]  ;;  %v10393_v0 = vld [vmem:[%s21945_s1 + $0xbb8] sm:$0xf0]  ;;  %v9820_v1 = vor.u32 %v13737_v56, %v9817_v57  ;;  %v9745_v57 = vld [vmem:[%s21945_s1 + $0x6a8] sm:$0xf0] }
  0xcd   :  { %7346 = vmatpush.bf16.msra.mxu1 %v9220_v48  ;;  %v13665_v48 = vld [vmem:[%s21945_s1 + $0x4e4] sm:$0xf]  ;;  %v13719_v56 = vld [vmem:[%s21945_s1 + $0x694] sm:$0xf] }
  0xce   :  { %7359 = vmatpush.bf16.msra.mxu2 %v9412_v50  ;;  %v9529_v50 = vld [vmem:[%s21945_s1 + $0x4f8] sm:$0xf0]  ;;  %v16083_v52 = vadd.f32 %v7119_v47, %v7107_v43  ;;  %v9100_v43 = vor.u32 %v13557_v10, %v9097_v11  ;;  %v9985_v11 = vld [vmem:[%s21945_s1 + $0x888] sm:$0xf0] }
  0xcf   :  { %7372 = vmatpush.bf16.msra.mxu3 %v9604_v54  ;;  %v9148_v54 = vor.u32 %v13569_v27, %v9145_v36  ;;  %v9841_v27 = vld [vmem:[%s21945_s1 + $0x768] sm:$0xf0] }
  0xd0   :  { %7334 = vmatpush.bf16.msra.mxu0 %v9004_v60  ;;  %v9532_v60 = vor.u32 %v13665_v48, %v9529_v50  ;;  %v10033_v36 = vld [vmem:[%s21945_s1 + $0x8e8] sm:$0xf0]  ;;  %v13887_v48 = vld [vmem:[%s21945_s1 + $0xbd4] sm:$0xf]  ;;  %v9844_v53 = vor.u32 %v13743_v26, %v9841_v27  ;;  %v13725_v26 = vld [vmem:[%s21945_s1 + $0x6c4] sm:$0xf] }
  0xd1   :  { %7347 = vmatpush.bf16.msra.mxu1 %v9196_v62  ;;  %v13611_v62 = vld [vmem:[%s21945_s1 + $0x334] sm:$0xf]  ;;  %v10417_v50 = vld [vmem:[%s21945_s1 + $0xbe8] sm:$0xf0]  ;;  %v9769_v27 = vld [vmem:[%s21945_s1 + $0x6d8] sm:$0xf0] }
  0xd2   :  { %7360 = vmatpush.bf16.msra.mxu2 %v9388_v63  ;;  %v9313_v63 = vld [vmem:[%s21945_s1 + $0x348] sm:$0xf0]  ;;  %v10420_v59 = vor.u32 %v13887_v48, %v10417_v50  ;;  %v10345_v48 = vld [vmem:[%s21945_s1 + $0xb58] sm:$0xf0] }
  0xd3   :  { %7373 = vmatpush.bf16.msra.mxu3 %v9580_v7  ;;  %v9124_v7 = vor.u32 %v13563_v58, %v9121_v61  ;;  %v9316_v9 = vor.u32 %v13611_v62, %v9313_v63  ;;  %v7108_v22 = vpop.f32.mrf.mxu2  ;;  %v13785_v58 = vld [vmem:[%s21945_s1 + $0x8a4] sm:$0xf]  ;;  %v10201_v62 = vld [vmem:[%s21945_s1 + $0xa38] sm:$0xf0] }
  0xd4   :  { %7335 = vmatpush.bf16.msra.mxu0 %v8980_v17  ;;  %v9289_v17 = vld [vmem:[%s21945_s1 + $0x318] sm:$0xf0]  ;;  %v7121_v24 = vpop.f32.mrf.mxu3  ;;  %v13833_v61 = vld [vmem:[%s21945_s1 + $0xa24] sm:$0xf]  ;;  %v10177_v22 = vld [vmem:[%s21945_s1 + $0xa08] sm:$0xf0] }
  0xd5   :  { %7348 = vmatpush.bf16.msra.mxu1 %v9172_v18  ;;  %v13653_v18 = vld [vmem:[%s21945_s1 + $0x484] sm:$0xf]  ;;  %v9292_v47 = vor.u32 %v13605_v14, %v9289_v17  ;;  %v13827_v14 = vld [vmem:[%s21945_s1 + $0x9f4] sm:$0xf]  ;;  %v10369_v17 = vld [vmem:[%s21945_s1 + $0xb88] sm:$0xf0] }
  0xd6   :  { %7361 = vmatpush.bf16.msra.mxu2 %v9364_v19  ;;  %v9481_v19 = vld [vmem:[%s21945_s1 + $0x498] sm:$0xf0]  ;;  %v13881_v63 = vld [vmem:[%s21945_s1 + $0xba4] sm:$0xf]  ;;  %v10180_v24 = vor.u32 %v13827_v14, %v10177_v22 }
  0xd7   :  { %7374 = vmatpush.bf16.msra.mxu3 %v9556_v34  ;;  %v8908_v34 = vor.u32 %v13509_v3, %v8905_v5  ;;  %v10204_v3 = vor.u32 %v13833_v61, %v10201_v62  ;;  %v13731_v5 = vld [vmem:[%s21945_s1 + $0x6f4] sm:$0xf]  ;;  %v10396_v10 = vor.u32 %v13881_v63, %v10393_v0  ;;  %v10129_v62 = vld [vmem:[%s21945_s1 + $0x9a8] sm:$0xf0]  ;;  %v9913_v14 = vld [vmem:[%s21945_s1 + $0x7f8] sm:$0xf0] }
  0xd8   :  { %7336 = vmatpush.bf16.msra.mxu0 %v8956_v51  ;;  %v9484_v51 = vor.u32 %v13653_v18, %v9481_v19  ;;  %v13815_v61 = vld [vmem:[%s21945_s1 + $0x994] sm:$0xf]  ;;  %v10321_v0 = vld [vmem:[%s21945_s1 + $0xb28] sm:$0xf0]  ;;  %v13809_v22 = vld [vmem:[%s21945_s1 + $0x964] sm:$0xf] }
  0xd9   :  { %7349 = vmatpush.bf16.msra.mxu1 %v9148_v54  ;;  %v10036_v54 = vor.u32 %v13791_v32, %v10033_v36  ;;  %v13773_v32 = vld [vmem:[%s21945_s1 + $0x844] sm:$0xf]  ;;  %v9961_v36 = vld [vmem:[%s21945_s1 + $0x858] sm:$0xf0]  ;;  %v13863_v63 = vld [vmem:[%s21945_s1 + $0xb14] sm:$0xf] }
  0xda   :  { %7362 = vmatpush.bf16.msra.mxu2 %v9340_v55  ;;  %v10228_v55 = vor.u32 %v13839_v39, %v10225_v40  ;;  %v13821_v39 = vld [vmem:[%s21945_s1 + $0x9c4] sm:$0xf]  ;;  %v10153_v40 = vld [vmem:[%s21945_s1 + $0x9d8] sm:$0xf0] }
  0xdb   :  { %7375 = vmatpush.bf16.msra.mxu3 %v9532_v60  ;;  %v10009_v60 = vld [vmem:[%s21945_s1 + $0x8b8] sm:$0xf0] }
  0xdc   :  { %7337 = vmatpush.bf16.msra.mxu0 %v8932_v2  ;;  %v10012_v2 = vor.u32 %v13785_v58, %v10009_v60  ;;  %v13767_v58 = vld [vmem:[%s21945_s1 + $0x814] sm:$0xf]  ;;  %v9937_v60 = vld [vmem:[%s21945_s1 + $0x828] sm:$0xf0] }
  0xdd   :  { %7350 = vmatpush.bf16.msra.mxu1 %v9124_v7  ;;  %v9793_v7 = vld [vmem:[%s21945_s1 + $0x708] sm:$0xf0] }
  0xde   :  { %7363 = vmatpush.bf16.msra.mxu2 %v9316_v9  ;;  %v13779_v9 = vld [vmem:[%s21945_s1 + $0x874] sm:$0xf]  ;;  %v9796_v18 = vor.u32 %v13731_v5, %v9793_v7  ;;  %v13713_v5 = vld [vmem:[%s21945_s1 + $0x664] sm:$0xf]  ;;  %v9721_v7 = vld [vmem:[%s21945_s1 + $0x678] sm:$0xf0] }
  0xdf   :  { %7376 = vmatpush.bf16.msra.mxu3 %v9508_v15  ;;  %v13875_v15 = vld [vmem:[%s21945_s1 + $0xb74] sm:$0xf]  ;;  %v9988_v19 = vor.u32 %v13779_v9, %v9985_v11  ;;  %v13761_v9 = vld [vmem:[%s21945_s1 + $0x7e4] sm:$0xf] }
  0xe0   :  { %7338 = vmatpush.bf16.msra.mxu0 %v8908_v34  ;;  %v10372_v34 = vor.u32 %v13875_v15, %v10369_v17  ;;  %v10105_v15 = vld [vmem:[%s21945_s1 + $0x978] sm:$0xf0] }
  0xe1   :  { %7351 = vmatpush.bf16.msra.mxu1 %v9100_v43  ;;  %v7132_v43 = vpop.f32.mrf.mxu0 }
  0xe2   :  { %7364 = vmatpush.bf16.msra.mxu2 %v9292_v47  ;;  %v13869_v47 = vld [vmem:[%s21945_s1 + $0xb44] sm:$0xf]  ;;  %v7133_v50 = vadd.f32 %v7132_v43, %v16083_v52  ;;  %v9697_v43 = vld [vmem:[%s21945_s1 + $0x648] sm:$0xf0] }
  0xe3   :  { %7377 = vmatpush.bf16.msra.mxu3 %v9484_v51  ;;  %7339 = vmatmul.bf16.vlgmr.msra.gmra.mxu0 %v14975_v20  ;;  %v9772_v51 = vor.u32 %v13725_v26, %v9769_v27  ;;  %v10348_v52 = vor.u32 %v13869_v47, %v10345_v48  ;;  %v9724_v27 = vor.u32 %v13713_v5, %v9721_v7  ;;  %v13755_v47 = vld [vmem:[%s21945_s1 + $0x7b4] sm:$0xf]  ;;  %v10609_v7 = vld [vmem:[%s21945_s1 + $0xd68] sm:$0xf0] }
  0xe4   :  { %7383 = vmatpush.bf16.msrb.mxu0 %v9844_v53  ;;  %7352 = vmatmul.bf16.vlgmr.msra.gmra.mxu1 %v14978_v21  ;;  %v7145_v53 = vpop.f32.mrf.mxu1  ;;  %v13935_v5 = vld [vmem:[%s21945_s1 + $0xd54] sm:$0xf] }
  0xe5   :  { %7396 = vmatpush.bf16.msrb.mxu1 %v10036_v54  ;;  %7365 = vmatmul.bf16.vlgmr.msra.gmra.mxu2 %v14943_v4  ;;  %v9964_v54 = vor.u32 %v13773_v32, %v9961_v36  ;;  %v9916_v36 = vor.u32 %v13761_v9, %v9913_v14  ;;  %v13983_v9 = vld [vmem:[%s21945_s1 + $0xed4] sm:$0xf]  ;;  %v10801_v14 = vld [vmem:[%s21945_s1 + $0xee8] sm:$0xf0] }
  0xe6   :  { %7409 = vmatpush.bf16.msrb.mxu2 %v10228_v55  ;;  %7378 = vmatmul.bf16.vlgmr.msra.gmra.mxu3 %v14948_v6  ;;  %v10156_v55 = vor.u32 %v13821_v39, %v10153_v40  ;;  %v10108_v39 = vor.u32 %v13809_v22, %v10105_v15  ;;  %v13707_v40 = vld [vmem:[%s21945_s1 + $0x634] sm:$0xf]  ;;  %v10993_v15 = vld [vmem:[%s21945_s1 + $0x1068] sm:$0xf0] }
  0xe7   :  { %7422 = vmatpush.bf16.msrb.mxu3 %v10420_v59  ;;  %v7146_v59 = vadd.f32 %v7145_v53, %v7133_v50  ;;  %v9889_v50 = vld [vmem:[%s21945_s1 + $0x7c8] sm:$0xf0]  ;;  %v14031_v22 = vld [vmem:[%s21945_s1 + $0x1054] sm:$0xf] }
  0xe8   :  { %7384 = vmatpush.bf16.msrb.mxu0 %v9820_v1  ;;  %v9748_v1 = vor.u32 %v13719_v56, %v9745_v57  ;;  %v7158_v11 = vpop.f32.mrf.mxu2  ;;  %v10081_v53 = vld [vmem:[%s21945_s1 + $0x948] sm:$0xf0]  ;;  %v9700_v56 = vor.u32 %v13707_v40, %v9697_v43  ;;  %v13701_v57 = vld [vmem:[%s21945_s1 + $0x604] sm:$0xf]  ;;  %v10585_v40 = vld [vmem:[%s21945_s1 + $0xd38] sm:$0xf0] }
  0xe9   :  { %7397 = vmatpush.bf16.msrb.mxu1 %v10012_v2  ;;  %v9940_v2 = vor.u32 %v13767_v58, %v9937_v60  ;;  %v7159_v17 = vadd.f32 %v7158_v11, %v7146_v59  ;;  %v7134_v26 = vpop.f32.mrf.mxu0  ;;  %v9673_v58 = vld [vmem:[%s21945_s1 + $0x618] sm:$0xf0]  ;;  %v13749_v60 = vld [vmem:[%s21945_s1 + $0x784] sm:$0xf] }
  0xea   :  { %7410 = vmatpush.bf16.msrb.mxu2 %v10204_v3  ;;  %v10132_v3 = vor.u32 %v13815_v61, %v10129_v62  ;;  %v9865_v61 = vld [vmem:[%s21945_s1 + $0x798] sm:$0xf0]  ;;  %v13797_v62 = vld [vmem:[%s21945_s1 + $0x904] sm:$0xf]  ;;  %v9676_v11 = vor.u32 %v13701_v57, %v9673_v58  ;;  %v13923_v58 = vld [vmem:[%s21945_s1 + $0xcf4] sm:$0xf] }
  0xeb   :  { %7423 = vmatpush.bf16.msrb.mxu3 %v10396_v10  ;;  %v10324_v10 = vor.u32 %v13863_v63, %v10321_v0  ;;  %v10057_v0 = vld [vmem:[%s21945_s1 + $0x918] sm:$0xf0]  ;;  %v13977_v43 = vld [vmem:[%s21945_s1 + $0xea4] sm:$0xf] }
  0xec   :  { %7385 = vmatpush.bf16.msrb.mxu0 %v9796_v18  ;;  %v7171_v18 = vpop.f32.mrf.mxu3  ;;  %v7147_v32 = vpop.f32.mrf.mxu1 }
  0xed   :  { %7398 = vmatpush.bf16.msrb.mxu1 %v9988_v19  ;;  %v13857_v19 = vld [vmem:[%s21945_s1 + $0xae4] sm:$0xf]  ;;  %v10804_v32 = vor.u32 %v13983_v9, %v10801_v14  ;;  %v10537_v9 = vld [vmem:[%s21945_s1 + $0xcd8] sm:$0xf0] }
  0xee   :  { %7411 = vmatpush.bf16.msrb.mxu2 %v10180_v24  ;;  %v10297_v24 = vld [vmem:[%s21945_s1 + $0xaf8] sm:$0xf0] }
  0xef   :  { %7424 = vmatpush.bf16.msrb.mxu3 %v10372_v34  ;;  %v16282_v34 = vadd.f32 %v7171_v18, %v7159_v17  ;;  %v10300_v48 = vor.u32 %v13857_v19, %v10297_v24  ;;  %v9868_v17 = vor.u32 %v13749_v60, %v9865_v61  ;;  %v10060_v18 = vor.u32 %v13797_v62, %v10057_v0  ;;  %v14079_v19 = vld [vmem:[%s21945_s1 + $0x11d4] sm:$0xf]  ;;  %v11185_v24 = vld [vmem:[%s21945_s1 + $0x11e8] sm:$0xf0]  ;;  %v10729_v14 = vld [vmem:[%s21945_s1 + $0xe58] sm:$0xf0] }
  0xf0   :  { %7386 = vmatpush.bf16.msrb.mxu0 %v9772_v51  ;;  %v13803_v51 = vld [vmem:[%s21945_s1 + $0x934] sm:$0xf]  ;;  %v10753_v61 = vld [vmem:[%s21945_s1 + $0xe88] sm:$0xf0] }
  0xf1   :  { %7399 = vmatpush.bf16.msrb.mxu1 %v9964_v54  ;;  %v13851_v54 = vld [vmem:[%s21945_s1 + $0xab4] sm:$0xf]  ;;  %v10084_v59 = vor.u32 %v13803_v51, %v10081_v53  ;;  %v10969_v51 = vld [vmem:[%s21945_s1 + $0x1038] sm:$0xf0]  ;;  %v14073_v53 = vld [vmem:[%s21945_s1 + $0x11a4] sm:$0xf] }
  0xf2   :  { %7412 = vmatpush.bf16.msrb.mxu2 %v10156_v55  ;;  %v10273_v55 = vld [vmem:[%s21945_s1 + $0xac8] sm:$0xf0]  ;;  %v14019_v62 = vld [vmem:[%s21945_s1 + $0xff4] sm:$0xf] }
  0xf3   :  { %7425 = vmatpush.bf16.msrb.mxu3 %v10348_v52  ;;  %v9892_v52 = vor.u32 %v13755_v47, %v9889_v50  ;;  %v10276_v63 = vor.u32 %v13851_v54, %v10273_v55  ;;  %v11188_v47 = vor.u32 %v14079_v19, %v11185_v24  ;;  %v14025_v50 = vld [vmem:[%s21945_s1 + $0x1024] sm:$0xf]  ;;  %v11161_v54 = vld [vmem:[%s21945_s1 + $0x11b8] sm:$0xf0]  ;;  %v14067_v0 = vld [vmem:[%s21945_s1 + $0x1174] sm:$0xf] }
  0xf4   :  { %7387 = vmatpush.bf16.msrb.mxu0 %v9748_v1  ;;  %v13845_v1 = vld [vmem:[%s21945_s1 + $0xa84] sm:$0xf]  ;;  %v10972_v57 = vor.u32 %v14025_v50, %v10969_v51  ;;  %v11164_v60 = vor.u32 %v14073_v53, %v11161_v54  ;;  %v11113_v19 = vld [vmem:[%s21945_s1 + $0x1158] sm:$0xf0]  ;;  %v14007_v50 = vld [vmem:[%s21945_s1 + $0xf94] sm:$0xf] }
  0xf5   :  { %7400 = vmatpush.bf16.msrb.mxu1 %v9940_v2  ;;  %v10249_v2 = vld [vmem:[%s21945_s1 + $0xa98] sm:$0xf0]  ;;  %v10897_v51 = vld [vmem:[%s21945_s1 + $0xfa8] sm:$0xf0]  ;;  %v14055_v53 = vld [vmem:[%s21945_s1 + $0x1114] sm:$0xf] }
  0xf6   :  { %7413 = vmatpush.bf16.msrb.mxu2 %v10132_v3  ;;  %v7160_v3 = vpop.f32.mrf.mxu2  ;;  %v10252_v26 = vor.u32 %v13845_v1, %v10249_v2  ;;  %v11137_v1 = vld [vmem:[%s21945_s1 + $0x1188] sm:$0xf0] }
  0xf7   :  { %7426 = vmatpush.bf16.msrb.mxu3 %v10324_v10  ;;  %v7173_v10 = vpop.f32.mrf.mxu3  ;;  %v11089_v54 = vld [vmem:[%s21945_s1 + $0x1128] sm:$0xf0] }
  0xf8   :  { %7388 = vmatpush.bf16.msrb.mxu0 %v9724_v27  ;;  %v10612_v27 = vor.u32 %v13935_v5, %v10609_v7  ;;  %v13917_v7 = vld [vmem:[%s21945_s1 + $0xcc4] sm:$0xf] }
  0xf9   :  { %7401 = vmatpush.bf16.msrb.mxu1 %v9916_v36  ;;  %v10996_v36 = vor.u32 %v14031_v22, %v10993_v15  ;;  %v13965_v10 = vld [vmem:[%s21945_s1 + $0xe44] sm:$0xf]  ;;  %v10921_v15 = vld [vmem:[%s21945_s1 + $0xfd8] sm:$0xf0] }
  0xfa   :  { %7414 = vmatpush.bf16.msrb.mxu2 %v10108_v39  ;;  %v13929_v39 = vld [vmem:[%s21945_s1 + $0xd24] sm:$0xf] }
  0xfb   :  { %7427 = vmatpush.bf16.msrb.mxu3 %v10300_v48  ;;  %v10777_v48 = vld [vmem:[%s21945_s1 + $0xeb8] sm:$0xf0]  ;;  %v10588_v55 = vor.u32 %v13929_v39, %v10585_v40  ;;  %v14013_v22 = vld [vmem:[%s21945_s1 + $0xfc4] sm:$0xf]  ;;  %v13911_v39 = vld [vmem:[%s21945_s1 + $0xc94] sm:$0xf] }
  0xfc   :  { %7389 = vmatpush.bf16.msrb.mxu0 %v9700_v56  ;;  %v10780_v56 = vor.u32 %v13977_v43, %v10777_v48  ;;  %v10513_v40 = vld [vmem:[%s21945_s1 + $0xca8] sm:$0xf0]  ;;  %v13959_v43 = vld [vmem:[%s21945_s1 + $0xe14] sm:$0xf] }
  0xfd   :  { %7402 = vmatpush.bf16.msrb.mxu1 %v9892_v52  ;;  %v10561_v52 = vld [vmem:[%s21945_s1 + $0xd08] sm:$0xf0] }
  0xfe   :  { %7415 = vmatpush.bf16.msrb.mxu2 %v10084_v59  ;;  %v13971_v59 = vld [vmem:[%s21945_s1 + $0xe74] sm:$0xf]  ;;  %v10564_v2 = vor.u32 %v13923_v58, %v10561_v52  ;;  %v10705_v48 = vld [vmem:[%s21945_s1 + $0xe28] sm:$0xf0]  ;;  %v13905_v58 = vld [vmem:[%s21945_s1 + $0xc64] sm:$0xf] }
  0xff   :  { %7428 = vmatpush.bf16.msrb.mxu3 %v10276_v63  ;;  %v10945_v63 = vld [vmem:[%s21945_s1 + $0x1008] sm:$0xf0]  ;;  %v10756_v3 = vor.u32 %v13971_v59, %v10753_v61  ;;  %v10489_v52 = vld [vmem:[%s21945_s1 + $0xc78] sm:$0xf0]  ;;  %v13953_v59 = vld [vmem:[%s21945_s1 + $0xde4] sm:$0xf] }
 0x100   :  { %7390 = vmatpush.bf16.msrb.mxu0 %v9676_v11  ;;  %v10948_v5 = vor.u32 %v14019_v62, %v10945_v63  ;;  %v11140_v11 = vor.u32 %v14067_v0, %v11137_v1  ;;  %v10681_v62 = vld [vmem:[%s21945_s1 + $0xdf8] sm:$0xf0]  ;;  %v14001_v63 = vld [vmem:[%s21945_s1 + $0xf64] sm:$0xf] }
 0x101   :  { %7403 = vmatpush.bf16.msrb.mxu1 %v9868_v17  ;;  %v7184_v17 = vpop.f32.mrf.mxu0  ;;  %v10873_v0 = vld [vmem:[%s21945_s1 + $0xf78] sm:$0xf0] }
 0x102   :  { %7416 = vmatpush.bf16.msrb.mxu2 %v10060_v18  ;;  %v14061_v18 = vld [vmem:[%s21945_s1 + $0x1144] sm:$0xf]  ;;  %v7185_v24 = vadd.f32 %v7184_v17, %v16282_v34  ;;  %v10465_v17 = vld [vmem:[%s21945_s1 + $0xc48] sm:$0xf0] }
 0x103   :  { %7429 = vmatpush.bf16.msrb.mxu3 %v10252_v26  ;;  %7391 = vmatmul.bf16.vlgmr.msrb.gmra.mxu0 %v15134_v41  ;;  %v10540_v26 = vor.u32 %v13917_v7, %v10537_v9  ;;  %v11116_v34 = vor.u32 %v14061_v18, %v11113_v19  ;;  %v10492_v9 = vor.u32 %v13905_v58, %v10489_v52  ;;  %v13947_v18 = vld [vmem:[%s21945_s1 + $0xdb4] sm:$0xf]  ;;  %v11377_v52 = vld [vmem:[%s21945_s1 + $0x1368] sm:$0xf0] }
 0x104   :  { %7435 = vmatpush.bf16.msra.mxu0 %v10612_v27  ;;  %7404 = vmatmul.bf16.vlgmr.msrb.gmra.mxu1 %v15138_v44  ;;  %v7197_v27 = vpop.f32.mrf.mxu1  ;;  %v14127_v58 = vld [vmem:[%s21945_s1 + $0x1354] sm:$0xf] }
 0x105   :  { %7448 = vmatpush.bf16.msra.mxu1 %v10804_v32  ;;  %7417 = vmatmul.bf16.vlgmr.msrb.gmra.mxu2 %v15126_v38  ;;  %v10732_v32 = vor.u32 %v13965_v10, %v10729_v14  ;;  %v10684_v14 = vor.u32 %v13953_v59, %v10681_v62  ;;  %v14175_v59 = vld [vmem:[%s21945_s1 + $0x14d4] sm:$0xf]  ;;  %v11569_v62 = vld [vmem:[%s21945_s1 + $0x14e8] sm:$0xf0] }
 0x106   :  { %7461 = vmatpush.bf16.msra.mxu2 %v10996_v36  ;;  %7430 = vmatmul.bf16.vlgmr.msrb.gmra.mxu3 %v15136_v42  ;;  %v10924_v36 = vor.u32 %v14013_v22, %v10921_v15  ;;  %v10876_v22 = vor.u32 %v14001_v63, %v10873_v0  ;;  %v13899_v15 = vld [vmem:[%s21945_s1 + $0xc34] sm:$0xf]  ;;  %v11761_v0 = vld [vmem:[%s21945_s1 + $0x1668] sm:$0xf0] }
 0x107   :  { %7474 = vmatpush.bf16.msra.mxu3 %v11188_v47  ;;  %v7198_v47 = vadd.f32 %v7197_v27, %v7185_v24  ;;  %v10657_v24 = vld [vmem:[%s21945_s1 + $0xdc8] sm:$0xf0]  ;;  %v14223_v63 = vld [vmem:[%s21945_s1 + $0x1654] sm:$0xf] }
 0x108   :  { %7436 = vmatpush.bf16.msra.mxu0 %v10588_v55  ;;  %v10516_v55 = vor.u32 %v13911_v39, %v10513_v40  ;;  %v7210_v61 = vpop.f32.mrf.mxu2  ;;  %v10849_v27 = vld [vmem:[%s21945_s1 + $0xf48] sm:$0xf0]  ;;  %v10468_v39 = vor.u32 %v13899_v15, %v10465_v17  ;;  %v13893_v40 = vld [vmem:[%s21945_s1 + $0xc04] sm:$0xf]  ;;  %v11353_v15 = vld [vmem:[%s21945_s1 + $0x1338] sm:$0xf0] }
 0x109   :  { %7449 = vmatpush.bf16.msra.mxu1 %v10780_v56  ;;  %v10708_v56 = vor.u32 %v13959_v43, %v10705_v48  ;;  %v7211_v1 = vadd.f32 %v7210_v61, %v7198_v47  ;;  %v7186_v7 = vpop.f32.mrf.mxu0  ;;  %v10441_v43 = vld [vmem:[%s21945_s1 + $0xc18] sm:$0xf0]  ;;  %v13941_v48 = vld [vmem:[%s21945_s1 + $0xd84] sm:$0xf] }
 0x10a   :  { %7462 = vmatpush.bf16.msra.mxu2 %v10972_v57  ;;  %v10900_v57 = vor.u32 %v14007_v50, %v10897_v51  ;;  %v10633_v50 = vld [vmem:[%s21945_s1 + $0xd98] sm:$0xf0]  ;;  %v13989_v51 = vld [vmem:[%s21945_s1 + $0xf04] sm:$0xf]  ;;  %v10444_v61 = vor.u32 %v13893_v40, %v10441_v43  ;;  %v14115_v43 = vld [vmem:[%s21945_s1 + $0x12f4] sm:$0xf] }
 0x10b   :  { %7475 = vmatpush.bf16.msra.mxu3 %v11164_v60  ;;  %v11092_v60 = vor.u32 %v14055_v53, %v11089_v54  ;;  %v10825_v54 = vld [vmem:[%s21945_s1 + $0xf18] sm:$0xf0]  ;;  %v14169_v17 = vld [vmem:[%s21945_s1 + $0x14a4] sm:$0xf] }
 0x10c   :  { %7437 = vmatpush.bf16.msra.mxu0 %v10564_v2  ;;  %v7223_v2 = vpop.f32.mrf.mxu3  ;;  %v7199_v10 = vpop.f32.mrf.mxu1 }
 0x10d   :  { %7450 = vmatpush.bf16.msra.mxu1 %v10756_v3  ;;  %v14049_v3 = vld [vmem:[%s21945_s1 + $0x10e4] sm:$0xf]  ;;  %v11572_v10 = vor.u32 %v14175_v59, %v11569_v62  ;;  %v11305_v59 = vld [vmem:[%s21945_s1 + $0x12d8] sm:$0xf0] }
 0x10e   :  { %7463 = vmatpush.bf16.msra.mxu2 %v10948_v5  ;;  %v11065_v5 = vld [vmem:[%s21945_s1 + $0x10f8] sm:$0xf0] }
 0x10f   :  { %7476 = vmatpush.bf16.msra.mxu3 %v11140_v11  ;;  %v16481_v11 = vadd.f32 %v7223_v2, %v7211_v1  ;;  %v11068_v19 = vor.u32 %v14049_v3, %v11065_v5  ;;  %v10636_v1 = vor.u32 %v13941_v48, %v10633_v50  ;;  %v10828_v2 = vor.u32 %v13989_v51, %v10825_v54  ;;  %v14271_v3 = vld [vmem:[%s21945_s1 + $0x17d4] sm:$0xf]  ;;  %v11953_v5 = vld [vmem:[%s21945_s1 + $0x17e8] sm:$0xf0]  ;;  %v11497_v62 = vld [vmem:[%s21945_s1 + $0x1458] sm:$0xf0] }
 0x110   :  { %7438 = vmatpush.bf16.msra.mxu0 %v10540_v26  ;;  %v13995_v26 = vld [vmem:[%s21945_s1 + $0xf34] sm:$0xf]  ;;  %v11521_v50 = vld [vmem:[%s21945_s1 + $0x1488] sm:$0xf0] }
 0x111   :  { %7451 = vmatpush.bf16.msra.mxu1 %v10732_v32  ;;  %v14043_v32 = vld [vmem:[%s21945_s1 + $0x10b4] sm:$0xf]  ;;  %v10852_v47 = vor.u32 %v13995_v26, %v10849_v27  ;;  %v11737_v26 = vld [vmem:[%s21945_s1 + $0x1638] sm:$0xf0]  ;;  %v14265_v27 = vld [vmem:[%s21945_s1 + $0x17a4] sm:$0xf] }
 0x112   :  { %7464 = vmatpush.bf16.msra.mxu2 %v10924_v36  ;;  %v11041_v36 = vld [vmem:[%s21945_s1 + $0x10c8] sm:$0xf0]  ;;  %v14211_v51 = vld [vmem:[%s21945_s1 + $0x15f4] sm:$0xf] }
 0x113   :  { %7477 = vmatpush.bf16.msra.mxu3 %v11116_v34  ;;  %v10660_v34 = vor.u32 %v13947_v18, %v10657_v24  ;;  %v11044_v53 = vor.u32 %v14043_v32, %v11041_v36  ;;  %v11956_v18 = vor.u32 %v14271_v3, %v11953_v5  ;;  %v14217_v24 = vld [vmem:[%s21945_s1 + $0x1624] sm:$0xf]  ;;  %v11929_v32 = vld [vmem:[%s21945_s1 + $0x17b8] sm:$0xf0]  ;;  %v14259_v54 = vld [vmem:[%s21945_s1 + $0x1774] sm:$0xf] }
 0x114   :  { %7439 = vmatpush.bf16.msra.mxu0 %v10516_v55  ;;  %v14037_v55 = vld [vmem:[%s21945_s1 + $0x1084] sm:$0xf]  ;;  %v11740_v40 = vor.u32 %v14217_v24, %v11737_v26  ;;  %v11932_v48 = vor.u32 %v14265_v27, %v11929_v32  ;;  %v11881_v3 = vld [vmem:[%s21945_s1 + $0x1758] sm:$0xf0]  ;;  %v14199_v24 = vld [vmem:[%s21945_s1 + $0x1594] sm:$0xf] }
 0x115   :  { %7452 = vmatpush.bf16.msra.mxu1 %v10708_v56  ;;  %v11017_v56 = vld [vmem:[%s21945_s1 + $0x1098] sm:$0xf0]  ;;  %v11665_v26 = vld [vmem:[%s21945_s1 + $0x15a8] sm:$0xf0]  ;;  %v14247_v27 = vld [vmem:[%s21945_s1 + $0x1714] sm:$0xf] }
 0x116   :  { %7465 = vmatpush.bf16.msra.mxu2 %v10900_v57  ;;  %v7212_v57 = vpop.f32.mrf.mxu2  ;;  %v11020_v7 = vor.u32 %v14037_v55, %v11017_v56  ;;  %v11905_v55 = vld [vmem:[%s21945_s1 + $0x1788] sm:$0xf0] }
 0x117   :  { %7478 = vmatpush.bf16.msra.mxu3 %v11092_v60  ;;  %v7225_v60 = vpop.f32.mrf.mxu3  ;;  %v11857_v32 = vld [vmem:[%s21945_s1 + $0x1728] sm:$0xf0] }
 0x118   :  { %7440 = vmatpush.bf16.msra.mxu0 %v10492_v9  ;;  %v11380_v9 = vor.u32 %v14127_v58, %v11377_v52  ;;  %v14109_v52 = vld [vmem:[%s21945_s1 + $0x12c4] sm:$0xf] }
 0x119   :  { %7453 = vmatpush.bf16.msra.mxu1 %v10684_v14  ;;  %v11764_v14 = vor.u32 %v14223_v63, %v11761_v0  ;;  %v14157_v60 = vld [vmem:[%s21945_s1 + $0x1444] sm:$0xf]  ;;  %v11689_v0 = vld [vmem:[%s21945_s1 + $0x15d8] sm:$0xf0] }
 0x11a   :  { %7466 = vmatpush.bf16.msra.mxu2 %v10876_v22  ;;  %v14121_v22 = vld [vmem:[%s21945_s1 + $0x1324] sm:$0xf] }
 0x11b   :  { %7479 = vmatpush.bf16.msra.mxu3 %v11068_v19  ;;  %v11545_v19 = vld [vmem:[%s21945_s1 + $0x14b8] sm:$0xf0]  ;;  %v11356_v36 = vor.u32 %v14121_v22, %v11353_v15  ;;  %v14205_v63 = vld [vmem:[%s21945_s1 + $0x15c4] sm:$0xf]  ;;  %v14103_v22 = vld [vmem:[%s21945_s1 + $0x1294] sm:$0xf] }
 0x11c   :  { %7441 = vmatpush.bf16.msra.mxu0 %v10468_v39  ;;  %v11548_v39 = vor.u32 %v14169_v17, %v11545_v19  ;;  %v11281_v15 = vld [vmem:[%s21945_s1 + $0x12a8] sm:$0xf0]  ;;  %v14151_v17 = vld [vmem:[%s21945_s1 + $0x1414] sm:$0xf] }
 0x11d   :  { %7454 = vmatpush.bf16.msra.mxu1 %v10660_v34  ;;  %v11329_v34 = vld [vmem:[%s21945_s1 + $0x1308] sm:$0xf0] }
 0x11e   :  { %7467 = vmatpush.bf16.msra.mxu2 %v10852_v47  ;;  %v14163_v47 = vld [vmem:[%s21945_s1 + $0x1474] sm:$0xf]  ;;  %v11332_v56 = vor.u32 %v14115_v43, %v11329_v34  ;;  %v11473_v19 = vld [vmem:[%s21945_s1 + $0x1428] sm:$0xf0]  ;;  %v14097_v43 = vld [vmem:[%s21945_s1 + $0x1264] sm:$0xf] }
 0x11f   :  { %7480 = vmatpush.bf16.msra.mxu3 %v11044_v53  ;;  %v11713_v53 = vld [vmem:[%s21945_s1 + $0x1608] sm:$0xf0]  ;;  %v11524_v57 = vor.u32 %v14163_v47, %v11521_v50  ;;  %v11257_v34 = vld [vmem:[%s21945_s1 + $0x1278] sm:$0xf0]  ;;  %v14145_v47 = vld [vmem:[%s21945_s1 + $0x13e4] sm:$0xf] }
 0x120   :  { %7442 = vmatpush.bf16.msra.mxu0 %v10444_v61  ;;  %v11716_v58 = vor.u32 %v14211_v51, %v11713_v53  ;;  %v11908_v61 = vor.u32 %v14259_v54, %v11905_v55  ;;  %v11449_v51 = vld [vmem:[%s21945_s1 + $0x13f8] sm:$0xf0]  ;;  %v14193_v53 = vld [vmem:[%s21945_s1 + $0x1564] sm:$0xf] }
 0x121   :  { %7455 = vmatpush.bf16.msra.mxu1 %v10636_v1  ;;  %v7236_v1 = vpop.f32.mrf.mxu0  ;;  %v11641_v54 = vld [vmem:[%s21945_s1 + $0x1578] sm:$0xf0] }
 0x122   :  { %7468 = vmatpush.bf16.msra.mxu2 %v10828_v2  ;;  %v14253_v2 = vld [vmem:[%s21945_s1 + $0x1744] sm:$0xf]  ;;  %v7237_v5 = vadd.f32 %v7236_v1, %v16481_v11  ;;  %v11233_v1 = vld [vmem:[%s21945_s1 + $0x1248] sm:$0xf0] }
 0x123   :  { %7481 = vmatpush.bf16.msra.mxu3 %v11020_v7  ;;  %7443 = vmatmul.bf16.vlgmr.msra.gmra.mxu0 %v15327_v25  ;;  %v11308_v7 = vor.u32 %v14109_v52, %v11305_v59  ;;  %v11884_v11 = vor.u32 %v14253_v2, %v11881_v3  ;;  %v11260_v59 = vor.u32 %v14097_v43, %v11257_v34  ;;  %v14139_v2 = vld [vmem:[%s21945_s1 + $0x13b4] sm:$0xf]  ;;  %v12145_v34 = vld [vmem:[%s21945_s1 + $0x1968] sm:$0xf0] }
 0x124   :  { %7487 = vmatpush.bf16.msrb.mxu0 %v11380_v9  ;;  %7456 = vmatmul.bf16.vlgmr.msra.gmra.mxu1 %v15340_v30  ;;  %v7249_v9 = vpop.f32.mrf.mxu1  ;;  %v14319_v43 = vld [vmem:[%s21945_s1 + $0x1954] sm:$0xf] }
 0x125   :  { %7500 = vmatpush.bf16.msrb.mxu1 %v11572_v10  ;;  %7469 = vmatmul.bf16.vlgmr.msra.gmra.mxu2 %v15338_v29  ;;  %v11500_v10 = vor.u32 %v14157_v60, %v11497_v62  ;;  %v11452_v62 = vor.u32 %v14145_v47, %v11449_v51  ;;  %v14367_v47 = vld [vmem:[%s21945_s1 + $0x1ad4] sm:$0xf]  ;;  %v12337_v51 = vld [vmem:[%s21945_s1 + $0x1ae8] sm:$0xf0] }
 0x126   :  { %7513 = vmatpush.bf16.msrb.mxu2 %v11764_v14  ;;  %7482 = vmatmul.bf16.vlgmr.msra.gmra.mxu3 %v15348_v33  ;;  %v11692_v14 = vor.u32 %v14205_v63, %v11689_v0  ;;  %v11644_v63 = vor.u32 %v14193_v53, %v11641_v54  ;;  %v14091_v0 = vld [vmem:[%s21945_s1 + $0x1234] sm:$0xf]  ;;  %v12529_v54 = vld [vmem:[%s21945_s1 + $0x1c68] sm:$0xf0] }
 0x127   :  { %7526 = vmatpush.bf16.msrb.mxu3 %v11956_v18  ;;  %v7250_v18 = vadd.f32 %v7249_v9, %v7237_v5  ;;  %v11425_v5 = vld [vmem:[%s21945_s1 + $0x13c8] sm:$0xf0]  ;;  %v14415_v53 = vld [vmem:[%s21945_s1 + $0x1c54] sm:$0xf] }
 0x128   :  { %7488 = vmatpush.bf16.msrb.mxu0 %v11356_v36  ;;  %v11284_v36 = vor.u32 %v14103_v22, %v11281_v15  ;;  %v7262_v50 = vpop.f32.mrf.mxu2  ;;  %v11617_v9 = vld [vmem:[%s21945_s1 + $0x1548] sm:$0xf0]  ;;  %v11236_v22 = vor.u32 %v14091_v0, %v11233_v1  ;;  %v14085_v15 = vld [vmem:[%s21945_s1 + $0x1204] sm:$0xf]  ;;  %v12121_v0 = vld [vmem:[%s21945_s1 + $0x1938] sm:$0xf0] }
 0x129   :  { %7501 = vmatpush.bf16.msrb.mxu1 %v11548_v39  ;;  %v11476_v39 = vor.u32 %v14151_v17, %v11473_v19  ;;  %v7263_v55 = vadd.f32 %v7262_v50, %v7250_v18  ;;  %v7238_v52 = vpop.f32.mrf.mxu0  ;;  %v11209_v17 = vld [vmem:[%s21945_s1 + $0x1218] sm:$0xf0]  ;;  %v14133_v19 = vld [vmem:[%s21945_s1 + $0x1384] sm:$0xf] }
 0x12a   :  { %7514 = vmatpush.bf16.msrb.mxu2 %v11740_v40  ;;  %v11668_v40 = vor.u32 %v14199_v24, %v11665_v26  ;;  %v11401_v24 = vld [vmem:[%s21945_s1 + $0x1398] sm:$0xf0]  ;;  %v14181_v26 = vld [vmem:[%s21945_s1 + $0x1504] sm:$0xf]  ;;  %v11212_v50 = vor.u32 %v14085_v15, %v11209_v17  ;;  %v14307_v17 = vld [vmem:[%s21945_s1 + $0x18f4] sm:$0xf] }
 0x12b   :  { %7527 = vmatpush.bf16.msrb.mxu3 %v11932_v48  ;;  %v11860_v48 = vor.u32 %v14247_v27, %v11857_v32  ;;  %v11593_v32 = vld [vmem:[%s21945_s1 + $0x1518] sm:$0xf0]  ;;  %v14361_v1 = vld [vmem:[%s21945_s1 + $0x1aa4] sm:$0xf] }
 0x12c   :  { %7489 = vmatpush.bf16.msrb.mxu0 %v11332_v56  ;;  %v7275_v56 = vpop.f32.mrf.mxu3  ;;  %v7251_v60 = vpop.f32.mrf.mxu1 }
 0x12d   :  { %7502 = vmatpush.bf16.msrb.mxu1 %v11524_v57  ;;  %v14241_v57 = vld [vmem:[%s21945_s1 + $0x16e4] sm:$0xf]  ;;  %v12340_v60 = vor.u32 %v14367_v47, %v12337_v51  ;;  %v12073_v47 = vld [vmem:[%s21945_s1 + $0x18d8] sm:$0xf0] }
 0x12e   :  { %7515 = vmatpush.bf16.msrb.mxu2 %v11716_v58  ;;  %v11833_v58 = vld [vmem:[%s21945_s1 + $0x16f8] sm:$0xf0] }
 0x12f   :  { %7528 = vmatpush.bf16.msrb.mxu3 %v11908_v61  ;;  %v16680_v61 = vadd.f32 %v7275_v56, %v7263_v55  ;;  %v11836_v3 = vor.u32 %v14241_v57, %v11833_v58  ;;  %v11404_v55 = vor.u32 %v14133_v19, %v11401_v24  ;;  %v11596_v56 = vor.u32 %v14181_v26, %v11593_v32  ;;  %v14463_v57 = vld [vmem:[%s21945_s1 + $0x1dd4] sm:$0xf]  ;;  %v12721_v58 = vld [vmem:[%s21945_s1 + $0x1de8] sm:$0xf0]  ;;  %v12265_v51 = vld [vmem:[%s21945_s1 + $0x1a58] sm:$0xf0] }
 0x130   :  { %7490 = vmatpush.bf16.msrb.mxu0 %v11308_v7  ;;  %v14187_v7 = vld [vmem:[%s21945_s1 + $0x1534] sm:$0xf]  ;;  %v12289_v24 = vld [vmem:[%s21945_s1 + $0x1a88] sm:$0xf0] }
 0x131   :  { %7503 = vmatpush.bf16.msrb.mxu1 %v11500_v10  ;;  %v14235_v10 = vld [vmem:[%s21945_s1 + $0x16b4] sm:$0xf]  ;;  %v11620_v18 = vor.u32 %v14187_v7, %v11617_v9  ;;  %v12505_v7 = vld [vmem:[%s21945_s1 + $0x1c38] sm:$0xf0]  ;;  %v14457_v9 = vld [vmem:[%s21945_s1 + $0x1da4] sm:$0xf] }
 0x132   :  { %7516 = vmatpush.bf16.msrb.mxu2 %v11692_v14  ;;  %v11809_v14 = vld [vmem:[%s21945_s1 + $0x16c8] sm:$0xf0]  ;;  %v14403_v26 = vld [vmem:[%s21945_s1 + $0x1bf4] sm:$0xf] }
 0x133   :  { %7529 = vmatpush.bf16.msrb.mxu3 %v11884_v11  ;;  %v11428_v11 = vor.u32 %v14139_v2, %v11425_v5  ;;  %v11812_v27 = vor.u32 %v14235_v10, %v11809_v14  ;;  %v12724_v2 = vor.u32 %v14463_v57, %v12721_v58  ;;  %v14409_v5 = vld [vmem:[%s21945_s1 + $0x1c24] sm:$0xf]  ;;  %v12697_v10 = vld [vmem:[%s21945_s1 + $0x1db8] sm:$0xf0]  ;;  %v14451_v32 = vld [vmem:[%s21945_s1 + $0x1d74] sm:$0xf] }
 0x134   :  { %7491 = vmatpush.bf16.msrb.mxu0 %v11284_v36  ;;  %v14229_v36 = vld [vmem:[%s21945_s1 + $0x1684] sm:$0xf]  ;;  %v12508_v15 = vor.u32 %v14409_v5, %v12505_v7  ;;  %v12700_v19 = vor.u32 %v14457_v9, %v12697_v10  ;;  %v12649_v57 = vld [vmem:[%s21945_s1 + $0x1d58] sm:$0xf0]  ;;  %v14391_v5 = vld [vmem:[%s21945_s1 + $0x1b94] sm:$0xf] }
 0x135   :  { %7504 = vmatpush.bf16.msrb.mxu1 %v11476_v39  ;;  %v11785_v39 = vld [vmem:[%s21945_s1 + $0x1698] sm:$0xf0]  ;;  %v12433_v7 = vld [vmem:[%s21945_s1 + $0x1ba8] sm:$0xf0]  ;;  %v14439_v9 = vld [vmem:[%s21945_s1 + $0x1d14] sm:$0xf] }
 0x136   :  { %7517 = vmatpush.bf16.msrb.mxu2 %v11668_v40  ;;  %v7264_v40 = vpop.f32.mrf.mxu2  ;;  %v11788_v52 = vor.u32 %v14229_v36, %v11785_v39  ;;  %v12673_v36 = vld [vmem:[%s21945_s1 + $0x1d88] sm:$0xf0] }
 0x137   :  { %7530 = vmatpush.bf16.msrb.mxu3 %v11860_v48  ;;  %v7277_v48 = vpop.f32.mrf.mxu3  ;;  %v12625_v10 = vld [vmem:[%s21945_s1 + $0x1d28] sm:$0xf0] }
 0x138   :  { %7492 = vmatpush.bf16.msrb.mxu0 %v11260_v59  ;;  %v12148_v59 = vor.u32 %v14319_v43, %v12145_v34  ;;  %v14301_v34 = vld [vmem:[%s21945_s1 + $0x18c4] sm:$0xf] }
 0x139   :  { %7505 = vmatpush.bf16.msrb.mxu1 %v11452_v62  ;;  %v12532_v62 = vor.u32 %v14415_v53, %v12529_v54  ;;  %v14349_v48 = vld [vmem:[%s21945_s1 + $0x1a44] sm:$0xf]  ;;  %v12457_v54 = vld [vmem:[%s21945_s1 + $0x1bd8] sm:$0xf0] }
 0x13a   :  { %7518 = vmatpush.bf16.msrb.mxu2 %v11644_v63  ;;  %v14313_v63 = vld [vmem:[%s21945_s1 + $0x1924] sm:$0xf] }
 0x13b   :  { %7531 = vmatpush.bf16.msrb.mxu3 %v11836_v3  ;;  %v12313_v3 = vld [vmem:[%s21945_s1 + $0x1ab8] sm:$0xf0]  ;;  %v12124_v14 = vor.u32 %v14313_v63, %v12121_v0  ;;  %v14397_v53 = vld [vmem:[%s21945_s1 + $0x1bc4] sm:$0xf]  ;;  %v14295_v63 = vld [vmem:[%s21945_s1 + $0x1894] sm:$0xf] }
 0x13c   :  { %7493 = vmatpush.bf16.msrb.mxu0 %v11236_v22  ;;  %v12316_v22 = vor.u32 %v14361_v1, %v12313_v3  ;;  %v12049_v0 = vld [vmem:[%s21945_s1 + $0x18a8] sm:$0xf0]  ;;  %v14343_v1 = vld [vmem:[%s21945_s1 + $0x1a14] sm:$0xf] }
 0x13d   :  { %7506 = vmatpush.bf16.msrb.mxu1 %v11428_v11  ;;  %v12097_v11 = vld [vmem:[%s21945_s1 + $0x1908] sm:$0xf0] }
 0x13e   :  { %7519 = vmatpush.bf16.msrb.mxu2 %v11620_v18  ;;  %v14355_v18 = vld [vmem:[%s21945_s1 + $0x1a74] sm:$0xf]  ;;  %v12100_v39 = vor.u32 %v14307_v17, %v12097_v11  ;;  %v12241_v3 = vld [vmem:[%s21945_s1 + $0x1a28] sm:$0xf0]  ;;  %v14289_v17 = vld [vmem:[%s21945_s1 + $0x1864] sm:$0xf] }
 0x13f   :  { %7532 = vmatpush.bf16.msrb.mxu3 %v11812_v27  ;;  %v12481_v27 = vld [vmem:[%s21945_s1 + $0x1c08] sm:$0xf0]  ;;  %v12292_v40 = vor.u32 %v14355_v18, %v12289_v24  ;;  %v12025_v11 = vld [vmem:[%s21945_s1 + $0x1878] sm:$0xf0]  ;;  %v14337_v18 = vld [vmem:[%s21945_s1 + $0x19e4] sm:$0xf] }
 0x140   :  { %7494 = vmatpush.bf16.msrb.mxu0 %v11212_v50  ;;  %v12484_v43 = vor.u32 %v14403_v26, %v12481_v27  ;;  %v12676_v50 = vor.u32 %v14451_v32, %v12673_v36  ;;  %v12217_v26 = vld [vmem:[%s21945_s1 + $0x19f8] sm:$0xf0]  ;;  %v14385_v27 = vld [vmem:[%s21945_s1 + $0x1b64] sm:$0xf] }
 0x141   :  { %7507 = vmatpush.bf16.msrb.mxu1 %v11404_v55  ;;  %v7288_v55 = vpop.f32.mrf.mxu0  ;;  %v12409_v32 = vld [vmem:[%s21945_s1 + $0x1b78] sm:$0xf0] }
 0x142   :  { %7520 = vmatpush.bf16.msrb.mxu2 %v11596_v56  ;;  %v14445_v56 = vld [vmem:[%s21945_s1 + $0x1d44] sm:$0xf]  ;;  %v7289_v58 = vadd.f32 %v7288_v55, %v16680_v61  ;;  %v12001_v55 = vld [vmem:[%s21945_s1 + $0x1848] sm:$0xf0] }
 0x143   :  { %7533 = vmatpush.bf16.msrb.mxu3 %v11788_v52  ;;  %7495 = vmatmul.bf16.vlgmr.msrb.gmra.mxu0 %v15537_v23  ;;  %v12076_v52 = vor.u32 %v14301_v34, %v12073_v47  ;;  %v12652_v61 = vor.u32 %v14445_v56, %v12649_v57  ;;  %v12028_v47 = vor.u32 %v14289_v17, %v12025_v11  ;;  %v14331_v56 = vld [vmem:[%s21945_s1 + $0x19b4] sm:$0xf]  ;;  %v12913_v11 = vld [vmem:[%s21945_s1 + $0x1f68] sm:$0xf0] }
 0x144   :  { %7539 = vmatpush.bf16.msra.mxu0 %v12148_v59  ;;  %7508 = vmatmul.bf16.vlgmr.msrb.gmra.mxu1 %v15550_v31  ;;  %v7301_v59 = vpop.f32.mrf.mxu1  ;;  %v14511_v17 = vld [vmem:[%s21945_s1 + $0x1f54] sm:$0xf] }
 0x145   :  { %7552 = vmatpush.bf16.msra.mxu1 %v12340_v60  ;;  %7521 = vmatmul.bf16.vlgmr.msrb.gmra.mxu2 %v15548_v28  ;;  %v12268_v60 = vor.u32 %v14349_v48, %v12265_v51  ;;  %v12220_v51 = vor.u32 %v14337_v18, %v12217_v26  ;;  %v14559_v18 = vld [vmem:[%s21945_s1 + $0x20d4] sm:$0xf]  ;;  %v13105_v26 = vld [vmem:[%s21945_s1 + $0x20e8] sm:$0xf0] }
 0x146   :  { %7565 = vmatpush.bf16.msra.mxu2 %v12532_v62  ;;  %7534 = vmatmul.bf16.vlgmr.msrb.gmra.mxu3 %v15558_v35  ;;  %v12460_v62 = vor.u32 %v14397_v53, %v12457_v54  ;;  %v12412_v53 = vor.u32 %v14385_v27, %v12409_v32  ;;  %v14283_v54 = vld [vmem:[%s21945_s1 + $0x1834] sm:$0xf]  ;;  %v13297_v32 = vld [vmem:[%s21945_s1 + $0x2268] sm:$0xf0] }
 0x147   :  { %7578 = vmatpush.bf16.msra.mxu3 %v12724_v2  ;;  %v7302_v2 = vadd.f32 %v7301_v59, %v7289_v58  ;;  %v12193_v58 = vld [vmem:[%s21945_s1 + $0x19c8] sm:$0xf0]  ;;  %v14607_v27 = vld [vmem:[%s21945_s1 + $0x2254] sm:$0xf] }
 0x148   :  { %7540 = vmatpush.bf16.msra.mxu0 %v12124_v14  ;;  %v12052_v14 = vor.u32 %v14295_v63, %v12049_v0  ;;  %v7314_v24 = vpop.f32.mrf.mxu2  ;;  %v12385_v59 = vld [vmem:[%s21945_s1 + $0x1b48] sm:$0xf0]  ;;  %v12004_v63 = vor.u32 %v14283_v54, %v12001_v55  ;;  %v14277_v0 = vld [vmem:[%s21945_s1 + $0x1804] sm:$0xf]  ;;  %v12889_v54 = vld [vmem:[%s21945_s1 + $0x1f38] sm:$0xf0] }
 0x149   :  { %7553 = vmatpush.bf16.msra.mxu1 %v12316_v22  ;;  %v12244_v22 = vor.u32 %v14343_v1, %v12241_v3  ;;  %v7315_v36 = vadd.f32 %v7314_v24, %v7302_v2  ;;  %v7290_v34 = vpop.f32.mrf.mxu0  ;;  %v11977_v1 = vld [vmem:[%s21945_s1 + $0x1818] sm:$0xf0]  ;;  %v14325_v3 = vld [vmem:[%s21945_s1 + $0x1984] sm:$0xf] }
 0x14a   :  { %7566 = vmatpush.bf16.msra.mxu2 %v12508_v15  ;;  %v12436_v15 = vor.u32 %v14391_v5, %v12433_v7  ;;  %v12169_v5 = vld [vmem:[%s21945_s1 + $0x1998] sm:$0xf0]  ;;  %v14373_v7 = vld [vmem:[%s21945_s1 + $0x1b04] sm:$0xf]  ;;  %v11980_v24 = vor.u32 %v14277_v0, %v11977_v1  ;;  %v14499_v1 = vld [vmem:[%s21945_s1 + $0x1ef4] sm:$0xf] }
 0x14b   :  { %7579 = vmatpush.bf16.msra.mxu3 %v12700_v19  ;;  %v12628_v19 = vor.u32 %v14439_v9, %v12625_v10  ;;  %v12361_v10 = vld [vmem:[%s21945_s1 + $0x1b18] sm:$0xf0]  ;;  %v14553_v55 = vld [vmem:[%s21945_s1 + $0x20a4] sm:$0xf] }
 0x14c   :  { %7541 = vmatpush.bf16.msra.mxu0 %v12100_v39  ;;  %v7327_v39 = vpop.f32.mrf.mxu3  ;;  %v7303_v48 = vpop.f32.mrf.mxu1 }
 0x14d   :  { %7554 = vmatpush.bf16.msra.mxu1 %v12292_v40  ;;  %v14433_v40 = vld [vmem:[%s21945_s1 + $0x1ce4] sm:$0xf]  ;;  %v13108_v48 = vor.u32 %v14559_v18, %v13105_v26  ;;  %v12841_v18 = vld [vmem:[%s21945_s1 + $0x1ed8] sm:$0xf0] }
 0x14e   :  { %7567 = vmatpush.bf16.msra.mxu2 %v12484_v43  ;;  %v12601_v43 = vld [vmem:[%s21945_s1 + $0x1cf8] sm:$0xf0] }
 0x14f   :  { %7580 = vmatpush.bf16.msra.mxu3 %v12676_v50  ;;  %v16879_v50 = vadd.f32 %v7327_v39, %v7315_v36  ;;  %v12604_v57 = vor.u32 %v14433_v40, %v12601_v43  ;;  %v12172_v36 = vor.u32 %v14325_v3, %v12169_v5  ;;  %v12364_v39 = vor.u32 %v14373_v7, %v12361_v10  ;;  %v14655_v40 = vld [vmem:[%s21945_s1 + $0x23d4] sm:$0xf]  ;;  %v13489_v43 = vld [vmem:[%s21945_s1 + $0x23e8] sm:$0xf0]  ;;  %v13033_v26 = vld [vmem:[%s21945_s1 + $0x2058] sm:$0xf0] }
 0x150   :  { %7542 = vmatpush.bf16.msra.mxu0 %v12076_v52  ;;  %v14379_v52 = vld [vmem:[%s21945_s1 + $0x1b34] sm:$0xf]  ;;  %v13057_v5 = vld [vmem:[%s21945_s1 + $0x2088] sm:$0xf0] }
 0x151   :  { %7555 = vmatpush.bf16.msra.mxu1 %v12268_v60  ;;  %v14427_v60 = vld [vmem:[%s21945_s1 + $0x1cb4] sm:$0xf]  ;;  %v12388_v2 = vor.u32 %v14379_v52, %v12385_v59  ;;  %v13273_v52 = vld [vmem:[%s21945_s1 + $0x2238] sm:$0xf0]  ;;  %v14649_v59 = vld [vmem:[%s21945_s1 + $0x23a4] sm:$0xf] }
 0x152   :  { %7568 = vmatpush.bf16.msra.mxu2 %v12460_v62  ;;  %v12577_v62 = vld [vmem:[%s21945_s1 + $0x1cc8] sm:$0xf0]  ;;  %v14595_v7 = vld [vmem:[%s21945_s1 + $0x21f4] sm:$0xf] }
 0x153   :  { %7581 = vmatpush.bf16.msra.mxu3 %v12652_v61  ;;  %v12196_v61 = vor.u32 %v14331_v56, %v12193_v58  ;;  %v12580_v9 = vor.u32 %v14427_v60, %v12577_v62  ;;  %v13492_v56 = vor.u32 %v14655_v40, %v13489_v43  ;;  %v14601_v58 = vld [vmem:[%s21945_s1 + $0x2224] sm:$0xf]  ;;  %v13465_v60 = vld [vmem:[%s21945_s1 + $0x23b8] sm:$0xf0]  ;;  %v14643_v10 = vld [vmem:[%s21945_s1 + $0x2374] sm:$0xf] }
 0x154   :  { %7543 = vmatpush.bf16.msra.mxu0 %v12052_v14  ;;  %v14421_v14 = vld [vmem:[%s21945_s1 + $0x1c84] sm:$0xf]  ;;  %v13276_v0 = vor.u32 %v14601_v58, %v13273_v52  ;;  %v13468_v3 = vor.u32 %v14649_v59, %v13465_v60  ;;  %v13201_v58 = vld [vmem:[%s21945_s1 + $0x21a8] sm:$0xf0]  ;;  %v14631_v59 = vld [vmem:[%s21945_s1 + $0x2314] sm:$0xf] }
 0x155   :  { %7556 = vmatpush.bf16.msra.mxu1 %v12244_v22  ;;  %v12553_v22 = vld [vmem:[%s21945_s1 + $0x1c98] sm:$0xf0]  ;;  %v13393_v60 = vld [vmem:[%s21945_s1 + $0x2328] sm:$0xf0] }
 0x156   :  { %7569 = vmatpush.bf16.msra.mxu2 %v12436_v15  ;;  %v7316_v15 = vpop.f32.mrf.mxu2  ;;  %v12556_v34 = vor.u32 %v14421_v14, %v12553_v22  ;;  %v13441_v14 = vld [vmem:[%s21945_s1 + $0x2388] sm:$0xf0] }
 0x157   :  { %7582 = vmatpush.bf16.msra.mxu3 %v12628_v19  ;;  %v7329_v19 = vpop.f32.mrf.mxu3 }
 0x158   :  { %7544 = vmatpush.bf16.msra.mxu0 %v12028_v47  ;;  %v12916_v47 = vor.u32 %v14511_v17, %v12913_v11  ;;  %v14493_v11 = vld [vmem:[%s21945_s1 + $0x1ec4] sm:$0xf] }
 0x159   :  { %7557 = vmatpush.bf16.msra.mxu1 %v12220_v51  ;;  %v13300_v51 = vor.u32 %v14607_v27, %v13297_v32  ;;  %v14541_v19 = vld [vmem:[%s21945_s1 + $0x2044] sm:$0xf]  ;;  %v13225_v32 = vld [vmem:[%s21945_s1 + $0x21d8] sm:$0xf0]  ;;  %v12844_v40 = vor.u32 %v14493_v11, %v12841_v18 }
 0x15a   :  { %7570 = vmatpush.bf16.msra.mxu2 %v12412_v53  ;;  %v14505_v53 = vld [vmem:[%s21945_s1 + $0x1f24] sm:$0xf] }
 0x15b   :  { %7583 = vmatpush.bf16.msra.mxu3 %v12604_v57  ;;  %v13081_v57 = vld [vmem:[%s21945_s1 + $0x20b8] sm:$0xf0]  ;;  %v12892_v62 = vor.u32 %v14505_v53, %v12889_v54  ;;  %v14589_v27 = vld [vmem:[%s21945_s1 + $0x21c4] sm:$0xf]  ;;  %v14535_v53 = vld [vmem:[%s21945_s1 + $0x2014] sm:$0xf] }
 0x15c   :  { %7545 = vmatpush.bf16.msra.mxu0 %v12004_v63  ;;  %v13084_v63 = vor.u32 %v14553_v55, %v13081_v57  ;;  %v14583_v57 = vld [vmem:[%s21945_s1 + $0x2194] sm:$0xf] }
 0x15d   :  { %7558 = vmatpush.bf16.msra.mxu1 %v12196_v61  ;;  %v12865_v61 = vld [vmem:[%s21945_s1 + $0x1f08] sm:$0xf0] }
 0x15e   :  { %7571 = vmatpush.bf16.msra.mxu2 %v12388_v2  ;;  %v14547_v2 = vld [vmem:[%s21945_s1 + $0x2074] sm:$0xf]  ;;  %v12868_v22 = vor.u32 %v14499_v1, %v12865_v61  ;;  %v14481_v1 = vld [vmem:[%s21945_s1 + $0x1e64] sm:$0xf]  ;;  %v12793_v61 = vld [vmem:[%s21945_s1 + $0x1e78] sm:$0xf0] }
 0x15f   :  { %7584 = vmatpush.bf16.msra.mxu3 %v12580_v9  ;;  %v13249_v9 = vld [vmem:[%s21945_s1 + $0x2208] sm:$0xf0]  ;;  %v13060_v15 = vor.u32 %v14547_v2, %v13057_v5  ;;  %v14529_v2 = vld [vmem:[%s21945_s1 + $0x1fe4] sm:$0xf]  ;;  %v13396_v5 = vor.u32 %v14631_v59, %v13393_v60  ;;  %v12796_v11 = vor.u32 %v14481_v1, %v12793_v61  ;;  %v13321_v1 = vld [vmem:[%s21945_s1 + $0x2298] sm:$0xf0] }
 0x160   :  { %7546 = vmatpush.bf16.msra.mxu0 %v11980_v24  ;;  %v13252_v17 = vor.u32 %v14595_v7, %v13249_v9  ;;  %v13444_v24 = vor.u32 %v14643_v10, %v13441_v14  ;;  %v7340_v43 = vpop.f32.mrf.mxu0  ;;  %v12985_v7 = vld [vmem:[%s21945_s1 + $0x1ff8] sm:$0xf0]  ;;  %v14577_v9 = vld [vmem:[%s21945_s1 + $0x2164] sm:$0xf] }
 0x161   :  { %7559 = vmatpush.bf16.msra.mxu1 %v12172_v36  ;;  %v14637_v36 = vld [vmem:[%s21945_s1 + $0x2344] sm:$0xf]  ;;  %v7353_v54 = vpop.f32.mrf.mxu1  ;;  %v13177_v10 = vld [vmem:[%s21945_s1 + $0x2178] sm:$0xf0] }
 0x162   :  { %7572 = vmatpush.bf16.msra.mxu2 %v12364_v39  ;;  %v13417_v39 = vld [vmem:[%s21945_s1 + $0x2358] sm:$0xf0]  ;;  %v7354_v52 = vadd.f32 %v7353_v54, %v7340_v43  ;;  %v12961_v43 = vld [vmem:[%s21945_s1 + $0x1fc8] sm:$0xf0]  ;;  %v14469_v54 = vld [vmem:[%s21945_s1 + $0x1e04] sm:$0xf] }
 0x163   :  { %7585 = vmatpush.bf16.msra.mxu3 %v12556_v34  ;;  %7547 = vmatmul.bf16.vlgmr.msra.gmra.mxu0 %v15747_v37  ;;  %v13036_v34 = vor.u32 %v14541_v19, %v13033_v26  ;;  %v13420_v55 = vor.u32 %v14637_v36, %v13417_v39  ;;  %v13180_v26 = vor.u32 %v14577_v9, %v13177_v10  ;;  %v14523_v36 = vld [vmem:[%s21945_s1 + $0x1fb4] sm:$0xf]  ;;  %v14565_v59 = vld [vmem:[%s21945_s1 + $0x2104] sm:$0xf]  ;;  %v13603_v9 = vld [vmem:[%s21945_s1 + $0x2ec] sm:$0xf0] }
 0x164   :  { %7591 = vmatpush.bf16.msrb.mxu0 %v12916_v47  ;;  %7560 = vmatmul.bf16.vlgmr.msra.gmra.mxu1 %v15760_v46  ;;  %v13228_v47 = vor.u32 %v14589_v27, %v13225_v32  ;;  %v14475_v27 = vld [vmem:[%s21945_s1 + $0x1e34] sm:$0xf]  ;;  %v12769_v32 = vld [vmem:[%s21945_s1 + $0x1e48] sm:$0xf0]  ;;  %v9463_v10 = vld [vmem:[%s21945_s1 + $0x458] sm:$0xf] }
 0x165   :  { %7604 = vmatpush.bf16.msrb.mxu1 %v13108_v48  ;;  %7573 = vmatmul.bf16.vlgmr.msra.gmra.mxu2 %v15758_v45  ;;  %v14487_v48 = vld [vmem:[%s21945_s1 + $0x1e94] sm:$0xf] }
 0x166   :  { %7617 = vmatpush.bf16.msrb.mxu2 %v13300_v51  ;;  %7586 = vmatmul.bf16.vlgmr.msra.gmra.mxu3 %v15768_v49  ;;  %v12817_v51 = vld [vmem:[%s21945_s1 + $0x1ea8] sm:$0xf0] }
 0x167   :  { %7630 = vmatpush.bf16.msrb.mxu3 %v13492_v56  ;;  %v13009_v56 = vld [vmem:[%s21945_s1 + $0x2028] sm:$0xf0] }
 0x168   :  { %7592 = vmatpush.bf16.msrb.mxu0 %v12892_v62  ;;  %v12820_v62 = vor.u32 %v14487_v48, %v12817_v51  ;;  %v7342_v19 = vpop.f32.mrf.mxu0  ;;  %v14619_v48 = vld [vmem:[%s21945_s1 + $0x22b4] sm:$0xf]  ;;  %v13345_v51 = vld [vmem:[%s21945_s1 + $0x22c8] sm:$0xf0] }
 0x169   :  { %7605 = vmatpush.bf16.msrb.mxu1 %v13084_v63  ;;  %v13012_v63 = vor.u32 %v14535_v53, %v13009_v56  ;;  %v7355_v39 = vpop.f32.mrf.mxu1  ;;  %v12772_v53 = vor.u32 %v14475_v27, %v12769_v32  ;;  %v12964_v56 = vor.u32 %v14523_v36, %v12961_v43  ;;  %v9055_v32 = vld [vmem:[%s21945_s1 + $0x128] sm:$0xf]  ;;  %v13549_v36 = vld [vmem:[%s21945_s1 + $0x13c] sm:$0xf0] }
 0x16a   :  { %7618 = vmatpush.bf16.msrb.mxu2 %v13276_v0  ;;  %v13204_v0 = vor.u32 %v14583_v57, %v13201_v58  ;;  %v14517_v58 = vld [vmem:[%s21945_s1 + $0x1f84] sm:$0xf]  ;;  %v9247_v39 = vld [vmem:[%s21945_s1 + $0x2a8] sm:$0xf]  ;;  %v13597_v43 = vld [vmem:[%s21945_s1 + $0x2bc] sm:$0xf0] }
 0x16b   :  { %7631 = vmatpush.bf16.msrb.mxu3 %v13468_v3  ;;  %v7366_v3 = vpop.f32.mrf.mxu2 }
 0x16c   :  { %7593 = vmatpush.bf16.msrb.mxu0 %v12868_v22  ;;  %v7367_v14 = vadd.f32 %v7366_v3, %v7354_v52  ;;  %v7379_v22 = vpop.f32.mrf.mxu3  ;;  %v12937_v52 = vld [vmem:[%s21945_s1 + $0x1f98] sm:$0xf0]  ;;  %v13555_v3 = vld [vmem:[%s21945_s1 + $0x16c] sm:$0xf0] }
 0x16d   :  { %7606 = vmatpush.bf16.msrb.mxu1 %v13060_v15  ;;  %v14625_v15 = vld [vmem:[%s21945_s1 + $0x22e4] sm:$0xf] }
 0x16e   :  { %7619 = vmatpush.bf16.msrb.mxu2 %v13252_v17  ;;  %v13369_v17 = vld [vmem:[%s21945_s1 + $0x22f8] sm:$0xf0]  ;;  %v17077_v18 = vadd.f32 %v7379_v22, %v7367_v14  ;;  %v13651_v14 = vld [vmem:[%s21945_s1 + $0x46c] sm:$0xf0]  ;;  %v12940_v22 = vor.u32 %v14517_v58, %v12937_v52  ;;  %v9223_v58 = vld [vmem:[%s21945_s1 + $0x278] sm:$0xf] }
 0x16f   :  { %7632 = vmatpush.bf16.msrb.mxu3 %v13444_v24  ;;  %v12988_v24 = vor.u32 %v14529_v2, %v12985_v7  ;;  %v9079_v2 = vld [vmem:[%s21945_s1 + $0x158] sm:$0xf]  ;;  %v9464_v27 = vor.u32 %v13651_v14, %v9463_v10  ;;  %v13585_v10 = vld [vmem:[%s21945_s1 + $0x25c] sm:$0xf0]  ;;  %v9391_v14 = vld [vmem:[%s21945_s1 + $0x3c8] sm:$0xf] }
 0x170   :  { %7594 = vmatpush.bf16.msrb.mxu0 %v12844_v40  ;;  %v13372_v40 = vor.u32 %v14625_v15, %v13369_v17  ;;  %v9655_v17 = vld [vmem:[%s21945_s1 + $0x5d8] sm:$0xf] }
 0x171   :  { %7607 = vmatpush.bf16.msrb.mxu1 %v13036_v34  ;;  %v14571_v34 = vld [vmem:[%s21945_s1 + $0x2134] sm:$0xf] }
 0x172   :  { %7620 = vmatpush.bf16.msrb.mxu2 %v13228_v47  ;;  %v13153_v47 = vld [vmem:[%s21945_s1 + $0x2148] sm:$0xf0] }
 0x173   :  { %7633 = vmatpush.bf16.msrb.mxu3 %v13420_v55  ;;  %v12745_v55 = vld [vmem:[%s21945_s1 + $0x1e18] sm:$0xf0]  ;;  %v13156_v57 = vor.u32 %v14571_v34, %v13153_v47  ;;  %v7368_v60 = vpop.f32.mrf.mxu2  ;;  %v9439_v34 = vld [vmem:[%s21945_s1 + $0x428] sm:$0xf]  ;;  %v13645_v47 = vld [vmem:[%s21945_s1 + $0x43c] sm:$0xf0] }
 0x174   :  { %7595 = vmatpush.bf16.msrb.mxu0 %v12820_v62  ;;  %v13348_v62 = vor.u32 %v14619_v48, %v13345_v51  ;;  %v7381_v61 = vpop.f32.mrf.mxu3  ;;  %v12748_v7 = vor.u32 %v14469_v54, %v12745_v55  ;;  %v9631_v48 = vld [vmem:[%s21945_s1 + $0x5a8] sm:$0xf]  ;;  %v13693_v51 = vld [vmem:[%s21945_s1 + $0x5bc] sm:$0xf0]  ;;  %v9248_v54 = vor.u32 %v13597_v43, %v9247_v39  ;;  %v9440_v55 = vor.u32 %v13645_v47, %v9439_v34  ;;  %v9415_v60 = vld [vmem:[%s21945_s1 + $0x3f8] sm:$0xf] }
 0x175   :  { %7608 = vmatpush.bf16.msrb.mxu1 %v13012_v63  ;;  %v13129_v63 = vld [vmem:[%s21945_s1 + $0x2118] sm:$0xf0]  ;;  %v9632_v52 = vor.u32 %v13693_v51, %v9631_v48  ;;  %v13579_v34 = vld [vmem:[%s21945_s1 + $0x22c] sm:$0xf0]  ;;  %v9367_v47 = vld [vmem:[%s21945_s1 + $0x398] sm:$0xf] }
 0x176   :  { %7621 = vmatpush.bf16.msrb.mxu2 %v13204_v0  ;;  %v14613_v0 = vld [vmem:[%s21945_s1 + $0x2284] sm:$0xf]  ;;  %v13132_v15 = vor.u32 %v14565_v59, %v13129_v63  ;;  %v13591_v59 = vld [vmem:[%s21945_s1 + $0x28c] sm:$0xf0]  ;;  %v9607_v63 = vld [vmem:[%s21945_s1 + $0x578] sm:$0xf] }
 0x177   :  { %7634 = vmatpush.bf16.msrb.mxu3 %v13396_v5  ;;  %v9271_v5 = vld [vmem:[%s21945_s1 + $0x2d8] sm:$0xf]  ;;  %v13324_v19 = vor.u32 %v14613_v0, %v13321_v1  ;;  %v13687_v0 = vld [vmem:[%s21945_s1 + $0x58c] sm:$0xf0]  ;;  %v9224_v61 = vor.u32 %v13591_v59, %v9223_v58  ;;  %v13525_v58 = vld [vmem:[%s21945_s1 + $0x7c] sm:$0xf0] }
 0x178   :  { %7596 = vmatpush.bf16.msrb.mxu0 %v12796_v11  ;;  %v13699_v11 = vld [vmem:[%s21945_s1 + $0x5ec] sm:$0xf0]  ;;  %v9559_v51 = vld [vmem:[%s21945_s1 + $0x518] sm:$0xf] }
 0x179   :  { %7609 = vmatpush.bf16.msrb.mxu1 %v12988_v24  ;;  %v9080_v24 = vor.u32 %v13555_v3, %v9079_v2  ;;  %v9007_v3 = vld [vmem:[%s21945_s1 + $0xc8] sm:$0xf]  ;;  %v13627_v48 = vld [vmem:[%s21945_s1 + $0x3ac] sm:$0xf0] }
 0x17a   :  { %7622 = vmatpush.bf16.msrb.mxu2 %v13180_v26  ;;  %v9272_v26 = vor.u32 %v13603_v9, %v9271_v5  ;;  %v13537_v5 = vld [vmem:[%s21945_s1 + $0xdc] sm:$0xf0]  ;;  %v9608_v9 = vor.u32 %v13687_v0, %v9607_v63  ;;  %v9343_v63 = vld [vmem:[%s21945_s1 + $0x368] sm:$0xf] }
 0x17b   :  { %7635 = vmatpush.bf16.msrb.mxu3 %v13372_v40  ;;  %v9656_v40 = vor.u32 %v13699_v11, %v9655_v17  ;;  %v13681_v17 = vld [vmem:[%s21945_s1 + $0x55c] sm:$0xf0]  ;;  %v9008_v11 = vor.u32 %v13537_v5, %v9007_v3 }
 0x17c   :  { %7597 = vmatpush.bf16.msrb.mxu0 %v12772_v53  ;;  %v9056_v53 = vor.u32 %v13549_v36, %v9055_v32  ;;  %v13531_v32 = vld [vmem:[%s21945_s1 + $0xac] sm:$0xf0]  ;;  %v9175_v36 = vld [vmem:[%s21945_s1 + $0x218] sm:$0xf]  ;;  %v13621_v0 = vld [vmem:[%s21945_s1 + $0x37c] sm:$0xf0] }
 0x17d   :  { %7610 = vmatpush.bf16.msrb.mxu1 %v12964_v56  ;;  %v9031_v56 = vld [vmem:[%s21945_s1 + $0xf8] sm:$0xf]  ;;  %v13669_v3 = vld [vmem:[%s21945_s1 + $0x4fc] sm:$0xf0] }
 0x17e   :  { %7623 = vmatpush.bf16.msrb.mxu2 %v13156_v57  ;;  %v13543_v57 = vld [vmem:[%s21945_s1 + $0x10c] sm:$0xf0] }
 0x17f   :  { %7636 = vmatpush.bf16.msrb.mxu3 %v13348_v62  ;;  %v13639_v62 = vld [vmem:[%s21945_s1 + $0x40c] sm:$0xf0]  ;;  %v9032_v1 = vor.u32 %v13543_v57, %v9031_v56  ;;  %v9368_v56 = vor.u32 %v13627_v48, %v9367_v47  ;;  %v8959_v57 = vld [vmem:[%s21945_s1 + $0x68] sm:$0xf] }
 0x180   :  { %7598 = vmatpush.bf16.msrb.mxu0 %v12748_v7  ;;  %v9416_v2 = vor.u32 %v13639_v62, %v9415_v60  ;;  %v9199_v7 = vld [vmem:[%s21945_s1 + $0x248] sm:$0xf]  ;;  %v13573_v62 = vld [vmem:[%s21945_s1 + $0x1fc] sm:$0xf0]  ;;  %v8960_v5 = vor.u32 %v13525_v58, %v8959_v57 }
 0x181   :  { %7611 = vmatpush.bf16.msrb.mxu1 %v12940_v22  ;;  %v13633_v22 = vld [vmem:[%s21945_s1 + $0x3dc] sm:$0xf0]  ;;  %v9103_v48 = vld [vmem:[%s21945_s1 + $0x188] sm:$0xf] }
 0x182   :  { %7624 = vmatpush.bf16.msrb.mxu2 %v13132_v15  ;;  %v9583_v15 = vld [vmem:[%s21945_s1 + $0x548] sm:$0xf]  ;;  %v13657_v57 = vld [vmem:[%s21945_s1 + $0x49c] sm:$0xf0] }
 0x183   :  { %7637 = vmatpush.bf16.msrb.mxu3 %v13324_v19  ;;  %7599 = vmatmul.bf16.vlgmr.msrb.gmra.mxu0 %v15959_v8  ;;  %v7392_v19 = vpop.f32.mrf.mxu0  ;;  %v9584_v43 = vor.u32 %v13681_v17, %v9583_v15  ;;  %v13519_v15 = vld [vmem:[%s21945_s1 + $0x4c] sm:$0xf0]  ;;  %v9127_v17 = vld [vmem:[%s21945_s1 + $0x1b8] sm:$0xf] }
 0x184   :  { %7643 = vmatpush.bf16.msra.mxu0 %v9080_v24  ;;  %7612 = vmatmul.bf16.vlgmr.msrb.gmra.mxu1 %v15972_v13  ;;  %v9200_v24 = vor.u32 %v13585_v10, %v9199_v7  ;;  %v7393_v39 = vadd.f32 %v7392_v19, %v17077_v18  ;;  %v13675_v18 = vld [vmem:[%s21945_s1 + $0x52c] sm:$0xf0] }
 0x185   :  { %7656 = vmatpush.bf16.msra.mxu1 %v9272_v26  ;;  %7625 = vmatmul.bf16.vlgmr.msrb.gmra.mxu2 %v15970_v12  ;;  %v9392_v26 = vor.u32 %v13633_v22, %v9391_v14  ;;  %v9560_v60 = vor.u32 %v13675_v18, %v9559_v51  ;;  %v9344_v14 = vor.u32 %v13621_v0, %v9343_v63  ;;  %v8935_v22 = vld [vmem:[%s21945_s1 + $0x38] sm:$0xf]  ;;  %v13561_v51 = vld [vmem:[%s21945_s1 + $0x19c] sm:$0xf0]  ;;  %v9295_v18 = vld [vmem:[%s21945_s1 + $0x308] sm:$0xf] }
 0x186   :  { %7669 = vmatpush.bf16.msra.mxu2 %v9464_v27  ;;  %7638 = vmatmul.bf16.vlgmr.msrb.gmra.mxu3 %v15980_v16  ;;  %v8983_v27 = vld [vmem:[%s21945_s1 + $0x98] sm:$0xf]  ;;  %v13795_v63 = vld [vmem:[%s21945_s1 + $0x8ec] sm:$0xf0] }
 0x187   :  { %7682 = vmatpush.bf16.msra.mxu3 %v9656_v40  ;;  %v7405_v40 = vpop.f32.mrf.mxu1  ;;  %v10231_v0 = vld [vmem:[%s21945_s1 + $0xa58] sm:$0xf] }
 0x188   :  { %7644 = vmatpush.bf16.msra.mxu0 %v9056_v53  ;;  %v7406_v53 = vadd.f32 %v7405_v40, %v7393_v39  ;;  %v7418_v59 = vpop.f32.mrf.mxu2  ;;  %v8936_v39 = vor.u32 %v13519_v15, %v8935_v22  ;;  %v8911_v40 = vld [vmem:[%s21945_s1 + $0x8] sm:$0xf] }
 0x189   :  { %7657 = vmatpush.bf16.msra.mxu1 %v9248_v54  ;;  %v8984_v54 = vor.u32 %v13531_v32, %v8983_v27  ;;  %v13615_v27 = vld [vmem:[%s21945_s1 + $0x34c] sm:$0xf0]  ;;  %v9511_v32 = vld [vmem:[%s21945_s1 + $0x4b8] sm:$0xf]  ;;  %v9823_v15 = vld [vmem:[%s21945_s1 + $0x728] sm:$0xf] }
 0x18a   :  { %7670 = vmatpush.bf16.msra.mxu2 %v9440_v55  ;;  %v9176_v55 = vor.u32 %v13579_v34, %v9175_v36  ;;  %v13663_v36 = vld [vmem:[%s21945_s1 + $0x4cc] sm:$0xf0] }
 0x18b   :  { %7683 = vmatpush.bf16.msra.mxu3 %v9632_v52  ;;  %v9151_v52 = vld [vmem:[%s21945_s1 + $0x1e8] sm:$0xf] }
 0x18c   :  { %7645 = vmatpush.bf16.msra.mxu0 %v9032_v1  ;;  %v7419_v1 = vadd.f32 %v7418_v59, %v7406_v53  ;;  %v9152_v10 = vor.u32 %v13573_v62, %v9151_v52  ;;  %v9847_v52 = vld [vmem:[%s21945_s1 + $0x758] sm:$0xf]  ;;  %v13747_v59 = vld [vmem:[%s21945_s1 + $0x76c] sm:$0xf0] }
 0x18d   :  { %7658 = vmatpush.bf16.msra.mxu1 %v9224_v61  ;;  %v7431_v61 = vpop.f32.mrf.mxu3 }
 0x18e   :  { %7671 = vmatpush.bf16.msra.mxu2 %v9416_v2  ;;  %v9535_v2 = vld [vmem:[%s21945_s1 + $0x4e8] sm:$0xf]  ;;  %v17276_v7 = vadd.f32 %v7431_v61, %v7419_v1  ;;  %v13843_v1 = vld [vmem:[%s21945_s1 + $0xa6c] sm:$0xf0]  ;;  %v9104_v61 = vor.u32 %v13561_v51, %v9103_v48  ;;  %v9991_v48 = vld [vmem:[%s21945_s1 + $0x878] sm:$0xf] }
 0x18f   :  { %7684 = vmatpush.bf16.msra.mxu3 %v9608_v9  ;;  %v7394_v9 = vpop.f32.mrf.mxu0  ;;  %v9536_v19 = vor.u32 %v13669_v3, %v9535_v2  ;;  %v10423_v3 = vld [vmem:[%s21945_s1 + $0xbd8] sm:$0xf]  ;;  %v10232_v22 = vor.u32 %v13843_v1, %v10231_v0  ;;  %v13777_v0 = vld [vmem:[%s21945_s1 + $0x85c] sm:$0xf0]  ;;  %v10159_v1 = vld [vmem:[%s21945_s1 + $0x9c8] sm:$0xf] }
 0x190   :  { %7646 = vmatpush.bf16.msra.mxu0 %v9008_v11  ;;  %v7407_v11 = vpop.f32.mrf.mxu1  ;;  %v7420_v53 = vpop.f32.mrf.mxu2 }
 0x191   :  { %7659 = vmatpush.bf16.msra.mxu1 %v9200_v24  ;;  %v13567_v24 = vld [vmem:[%s21945_s1 + $0x1cc] sm:$0xf0]  ;;  %v10015_v11 = vld [vmem:[%s21945_s1 + $0x8a8] sm:$0xf]  ;;  %v10183_v53 = vld [vmem:[%s21945_s1 + $0x9f8] sm:$0xf] }
 0x192   :  { %7672 = vmatpush.bf16.msra.mxu2 %v9392_v26  ;;  %v9319_v26 = vld [vmem:[%s21945_s1 + $0x338] sm:$0xf]  ;;  %v9128_v34 = vor.u32 %v13567_v24, %v9127_v17  ;;  %v13741_v17 = vld [vmem:[%s21945_s1 + $0x73c] sm:$0xf0] }
 0x193   :  { %7685 = vmatpush.bf16.msra.mxu3 %v9584_v43  ;;  %v13513_v43 = vld [vmem:[%s21945_s1 + $0x1c] sm:$0xf0]  ;;  %v9320_v47 = vor.u32 %v13615_v27, %v9319_v26  ;;  %v10207_v26 = vld [vmem:[%s21945_s1 + $0xa28] sm:$0xf] }
 0x194   :  { %7647 = vmatpush.bf16.msra.mxu0 %v8984_v54  ;;  %v9512_v54 = vor.u32 %v13663_v36, %v9511_v32  ;;  %v8912_v62 = vor.u32 %v13513_v43, %v8911_v40  ;;  %v13789_v24 = vld [vmem:[%s21945_s1 + $0x8bc] sm:$0xf0]  ;;  %v10399_v32 = vld [vmem:[%s21945_s1 + $0xba8] sm:$0xf] }
 0x195   :  { %7660 = vmatpush.bf16.msra.mxu1 %v9176_v55  ;;  %v13609_v55 = vld [vmem:[%s21945_s1 + $0x31c] sm:$0xf0]  ;;  %v7433_v58 = vpop.f32.mrf.mxu3  ;;  %v10016_v40 = vor.u32 %v13789_v24, %v10015_v11  ;;  %v13723_v11 = vld [vmem:[%s21945_s1 + $0x6ac] sm:$0xf0] }
 0x196   :  { %7673 = vmatpush.bf16.msra.mxu2 %v9368_v56  ;;  %v9487_v56 = vld [vmem:[%s21945_s1 + $0x488] sm:$0xf]  ;;  %v9296_v2 = vor.u32 %v13609_v55, %v9295_v18  ;;  %v13837_v27 = vld [vmem:[%s21945_s1 + $0xa3c] sm:$0xf0]  ;;  %v13783_v18 = vld [vmem:[%s21945_s1 + $0x88c] sm:$0xf0] }
 0x197   :  { %7686 = vmatpush.bf16.msra.mxu3 %v9560_v60  ;;  %v10039_v60 = vld [vmem:[%s21945_s1 + $0x8d8] sm:$0xf]  ;;  %v9488_v9 = vor.u32 %v13657_v57, %v9487_v56  ;;  %v13885_v36 = vld [vmem:[%s21945_s1 + $0xbbc] sm:$0xf0]  ;;  %v10208_v43 = vor.u32 %v13837_v27, %v10207_v26  ;;  %v13879_v56 = vld [vmem:[%s21945_s1 + $0xb8c] sm:$0xf0]  ;;  %v9992_v58 = vor.u32 %v13783_v18, %v9991_v48 }
 0x198   :  { %7648 = vmatpush.bf16.msra.mxu0 %v8960_v5  ;;  %v13891_v5 = vld [vmem:[%s21945_s1 + $0xbec] sm:$0xf0]  ;;  %v10400_v51 = vor.u32 %v13885_v36, %v10399_v32  ;;  %v10375_v55 = vld [vmem:[%s21945_s1 + $0xb78] sm:$0xf]  ;;  %v13717_v48 = vld [vmem:[%s21945_s1 + $0x67c] sm:$0xf0] }
 0x199   :  { %7661 = vmatpush.bf16.msra.mxu1 %v9152_v10  ;;  %v9848_v10 = vor.u32 %v13747_v59, %v9847_v52  ;;  %v9775_v59 = vld [vmem:[%s21945_s1 + $0x6c8] sm:$0xf]  ;;  %v13771_v26 = vld [vmem:[%s21945_s1 + $0x82c] sm:$0xf0]  ;;  %v10135_v27 = vld [vmem:[%s21945_s1 + $0x998] sm:$0xf] }
 0x19a   :  { %7674 = vmatpush.bf16.msra.mxu2 %v9344_v14  ;;  %v10040_v14 = vor.u32 %v13795_v63, %v10039_v60  ;;  %v13729_v60 = vld [vmem:[%s21945_s1 + $0x6dc] sm:$0xf0]  ;;  %v10376_v63 = vor.u32 %v13879_v56, %v10375_v55  ;;  %v13819_v32 = vld [vmem:[%s21945_s1 + $0x9ac] sm:$0xf0]  ;;  %v10327_v36 = vld [vmem:[%s21945_s1 + $0xb18] sm:$0xf] }
 0x19b   :  { %7687 = vmatpush.bf16.msra.mxu3 %v9536_v19  ;;  %v10424_v19 = vor.u32 %v13891_v5, %v10423_v3  ;;  %v10351_v3 = vld [vmem:[%s21945_s1 + $0xb48] sm:$0xf]  ;;  %v13873_v5 = vld [vmem:[%s21945_s1 + $0xb5c] sm:$0xf0] }
 0x19c   :  { %7649 = vmatpush.bf16.msra.mxu0 %v8936_v39  ;;  %v9824_v39 = vor.u32 %v13741_v17, %v9823_v15  ;;  %v9751_v17 = vld [vmem:[%s21945_s1 + $0x698] sm:$0xf]  ;;  %v10111_v55 = vld [vmem:[%s21945_s1 + $0x968] sm:$0xf]  ;;  %v13813_v56 = vld [vmem:[%s21945_s1 + $0x97c] sm:$0xf0] }
 0x19d   :  { %7662 = vmatpush.bf16.msra.mxu1 %v9128_v34  ;;  %v9799_v34 = vld [vmem:[%s21945_s1 + $0x6f8] sm:$0xf] }
 0x19e   :  { %7675 = vmatpush.bf16.msra.mxu2 %v9320_v47  ;;  %v13735_v47 = vld [vmem:[%s21945_s1 + $0x70c] sm:$0xf0] }
 0x19f   :  { %7688 = vmatpush.bf16.msra.mxu3 %v9512_v54  ;;  %v13831_v54 = vld [vmem:[%s21945_s1 + $0xa0c] sm:$0xf0]  ;;  %v9800_v57 = vor.u32 %v13735_v47, %v9799_v34  ;;  %v10136_v34 = vor.u32 %v13819_v32, %v10135_v27  ;;  %v9727_v47 = vld [vmem:[%s21945_s1 + $0x668] sm:$0xf]  ;;  %v13753_v32 = vld [vmem:[%s21945_s1 + $0x79c] sm:$0xf0] }
 0x1a0   :  { %7650 = vmatpush.bf16.msra.mxu0 %v8912_v62  ;;  %v10184_v52 = vor.u32 %v13831_v54, %v10183_v53  ;;  %v9967_v62 = vld [vmem:[%s21945_s1 + $0x848] sm:$0xf]  ;;  %v13765_v54 = vld [vmem:[%s21945_s1 + $0x7fc] sm:$0xf0] }
 0x1a1   :  { %7663 = vmatpush.bf16.msra.mxu1 %v9104_v61  ;;  %v13825_v61 = vld [vmem:[%s21945_s1 + $0x9dc] sm:$0xf0]  ;;  %v9871_v27 = vld [vmem:[%s21945_s1 + $0x788] sm:$0xf] }
 0x1a2   :  { %7676 = vmatpush.bf16.msra.mxu2 %v9296_v2  ;;  %v7444_v2 = vpop.f32.mrf.mxu0  ;;  %v10160_v15 = vor.u32 %v13825_v61, %v10159_v1  ;;  %v10112_v61 = vor.u32 %v13813_v56, %v10111_v55  ;;  %v13987_v55 = vld [vmem:[%s21945_s1 + $0xeec] sm:$0xf0]  ;;  %v10999_v56 = vld [vmem:[%s21945_s1 + $0x1058] sm:$0xf] }
 0x1a3   :  { %7689 = vmatpush.bf16.msra.mxu3 %v9488_v9  ;;  %7651 = vmatmul.bf16.vlgmr.msra.gmra.mxu0 %v14975_v20  ;;  %v7445_v9 = vadd.f32 %v7444_v2, %v17276_v7  ;;  %v10352_v7 = vor.u32 %v13873_v5, %v10351_v3  ;;  %v9703_v2 = vld [vmem:[%s21945_s1 + $0x638] sm:$0xf]  ;;  %v13711_v3 = vld [vmem:[%s21945_s1 + $0x64c] sm:$0xf0] }
 0x1a4   :  { %7695 = vmatpush.bf16.msrb.mxu0 %v9848_v10  ;;  %7664 = vmatmul.bf16.vlgmr.msra.gmra.mxu1 %v14978_v21  ;;  %v9776_v10 = vor.u32 %v13729_v60, %v9775_v59  ;;  %v13861_v59 = vld [vmem:[%s21945_s1 + $0xafc] sm:$0xf0]  ;;  %v9895_v5 = vld [vmem:[%s21945_s1 + $0x7b8] sm:$0xf] }
 0x1a5   :  { %7708 = vmatpush.bf16.msrb.mxu1 %v10040_v14  ;;  %7677 = vmatmul.bf16.vlgmr.msra.gmra.mxu2 %v14943_v4  ;;  %v7457_v14 = vpop.f32.mrf.mxu1 }
 0x1a6   :  { %7721 = vmatpush.bf16.msrb.mxu2 %v10232_v22  ;;  %7690 = vmatmul.bf16.vlgmr.msra.gmra.mxu3 %v14948_v6  ;;  %v9968_v22 = vor.u32 %v13777_v0, %v9967_v62  ;;  %v7458_v24 = vadd.f32 %v7457_v14, %v7445_v9  ;;  %v9728_v62 = vor.u32 %v13717_v48, %v9727_v47  ;;  %v10087_v14 = vld [vmem:[%s21945_s1 + $0x938] sm:$0xf] }
 0x1a7   :  { %7734 = vmatpush.bf16.msrb.mxu3 %v10424_v19  ;;  %v9943_v19 = vld [vmem:[%s21945_s1 + $0x818] sm:$0xf] }
 0x1a8   :  { %7696 = vmatpush.bf16.msrb.mxu0 %v9824_v39  ;;  %v13867_v39 = vld [vmem:[%s21945_s1 + $0xb2c] sm:$0xf0]  ;;  %v7470_v53 = vpop.f32.mrf.mxu2  ;;  %v10615_v48 = vld [vmem:[%s21945_s1 + $0xd58] sm:$0xf] }
 0x1a9   :  { %7709 = vmatpush.bf16.msrb.mxu1 %v10016_v40  ;;  %v9752_v40 = vor.u32 %v13723_v11, %v9751_v17  ;;  %v10328_v18 = vor.u32 %v13867_v39, %v10327_v36  ;;  %v13855_v17 = vld [vmem:[%s21945_s1 + $0xacc] sm:$0xf0]  ;;  %v9704_v11 = vor.u32 %v13711_v3, %v9703_v2  ;;  %v10063_v36 = vld [vmem:[%s21945_s1 + $0x908] sm:$0xf]  ;;  %v13933_v3 = vld [vmem:[%s21945_s1 + $0xd3c] sm:$0xf0] }
 0x1aa   :  { %7722 = vmatpush.bf16.msrb.mxu2 %v10208_v43  ;;  %v9944_v43 = vor.u32 %v13771_v26, %v9943_v19  ;;  %v7446_v60 = vpop.f32.mrf.mxu0  ;;  %v9679_v19 = vld [vmem:[%s21945_s1 + $0x608] sm:$0xf] }
 0x1ab   :  { %7735 = vmatpush.bf16.msrb.mxu3 %v10400_v51  ;;  %v9919_v51 = vld [vmem:[%s21945_s1 + $0x7e8] sm:$0xf]  ;;  %v14083_v60 = vld [vmem:[%s21945_s1 + $0x11ec] sm:$0xf0] }
 0x1ac   :  { %7697 = vmatpush.bf16.msrb.mxu0 %v9800_v57  ;;  %v7471_v57 = vadd.f32 %v7470_v53, %v7458_v24  ;;  %v9920_v1 = vor.u32 %v13765_v54, %v9919_v51  ;;  %v13939_v51 = vld [vmem:[%s21945_s1 + $0xd6c] sm:$0xf0]  ;;  %v10591_v2 = vld [vmem:[%s21945_s1 + $0xd28] sm:$0xf] }
 0x1ad   :  { %7710 = vmatpush.bf16.msrb.mxu1 %v9992_v58  ;;  %v7483_v58 = vpop.f32.mrf.mxu3 }
 0x1ae   :  { %7723 = vmatpush.bf16.msrb.mxu2 %v10184_v52  ;;  %v10303_v52 = vld [vmem:[%s21945_s1 + $0xae8] sm:$0xf]  ;;  %v17475_v0 = vadd.f32 %v7483_v58, %v7471_v57  ;;  %v14035_v57 = vld [vmem:[%s21945_s1 + $0x106c] sm:$0xf0]  ;;  %v9872_v58 = vor.u32 %v13753_v32, %v9871_v27  ;;  %v10759_v27 = vld [vmem:[%s21945_s1 + $0xe78] sm:$0xf] }
 0x1af   :  { %7736 = vmatpush.bf16.msrb.mxu3 %v10376_v63  ;;  %v7459_v63 = vpop.f32.mrf.mxu1  ;;  %v10304_v9 = vor.u32 %v13861_v59, %v10303_v52  ;;  %v11191_v59 = vld [vmem:[%s21945_s1 + $0x11d8] sm:$0xf] }
 0x1b0   :  { %7698 = vmatpush.bf16.msrb.mxu0 %v9776_v10  ;;  %v13759_v10 = vld [vmem:[%s21945_s1 + $0x7cc] sm:$0xf0]  ;;  %v7472_v47 = vpop.f32.mrf.mxu2  ;;  %v10616_v63 = vor.u32 %v13939_v51, %v10615_v48 }
 0x1b1   :  { %7711 = vmatpush.bf16.msrb.mxu1 %v9968_v22  ;;  %v13807_v22 = vld [vmem:[%s21945_s1 + $0x94c] sm:$0xf0]  ;;  %v9896_v24 = vor.u32 %v13759_v10, %v9895_v5  ;;  %v10783_v5 = vld [vmem:[%s21945_s1 + $0xea8] sm:$0xf]  ;;  %v13981_v10 = vld [vmem:[%s21945_s1 + $0xebc] sm:$0xf0] }
 0x1b2   :  { %7724 = vmatpush.bf16.msrb.mxu2 %v10160_v15  ;;  %v10279_v15 = vld [vmem:[%s21945_s1 + $0xab8] sm:$0xf]  ;;  %v10088_v26 = vor.u32 %v13807_v22, %v10087_v14  ;;  %v10975_v14 = vld [vmem:[%s21945_s1 + $0x1028] sm:$0xf]  ;;  %v14029_v22 = vld [vmem:[%s21945_s1 + $0x103c] sm:$0xf0] }
 0x1b3   :  { %7737 = vmatpush.bf16.msrb.mxu3 %v10352_v7  ;;  %v13705_v7 = vld [vmem:[%s21945_s1 + $0x61c] sm:$0xf0]  ;;  %v10280_v39 = vor.u32 %v13855_v17, %v10279_v15  ;;  %v11167_v15 = vld [vmem:[%s21945_s1 + $0x11a8] sm:$0xf] }
 0x1b4   :  { %7699 = vmatpush.bf16.msrb.mxu0 %v9752_v40  ;;  %v13801_v40 = vld [vmem:[%s21945_s1 + $0x91c] sm:$0xf0]  ;;  %v9680_v54 = vor.u32 %v13705_v7, %v9679_v19  ;;  %v10784_v19 = vor.u32 %v13981_v10, %v10783_v5  ;;  %v10976_v7 = vor.u32 %v14029_v22, %v10975_v14  ;;  %v10711_v5 = vld [vmem:[%s21945_s1 + $0xe18] sm:$0xf]  ;;  %v13963_v10 = vld [vmem:[%s21945_s1 + $0xe2c] sm:$0xf0] }
 0x1b5   :  { %7712 = vmatpush.bf16.msrb.mxu1 %v9944_v43  ;;  %v10255_v43 = vld [vmem:[%s21945_s1 + $0xa88] sm:$0xf]  ;;  %v7485_v53 = vpop.f32.mrf.mxu3  ;;  %v10064_v52 = vor.u32 %v13801_v40, %v10063_v36  ;;  %v14077_v17 = vld [vmem:[%s21945_s1 + $0x11bc] sm:$0xf0]  ;;  %v13975_v36 = vld [vmem:[%s21945_s1 + $0xe8c] sm:$0xf0] }
 0x1b6   :  { %7725 = vmatpush.bf16.msrb.mxu2 %v10136_v34  ;;  %v13849_v34 = vld [vmem:[%s21945_s1 + $0xa9c] sm:$0xf0]  ;;  %v11168_v32 = vor.u32 %v14077_v17, %v11167_v15  ;;  %v14023_v40 = vld [vmem:[%s21945_s1 + $0x100c] sm:$0xf0]  ;;  %v10760_v48 = vor.u32 %v13975_v36, %v10759_v27  ;;  %v10903_v14 = vld [vmem:[%s21945_s1 + $0xf98] sm:$0xf] }
 0x1b7   :  { %7738 = vmatpush.bf16.msrb.mxu3 %v10328_v18  ;;  %v10807_v18 = vld [vmem:[%s21945_s1 + $0xed8] sm:$0xf]  ;;  %v13921_v53 = vld [vmem:[%s21945_s1 + $0xcdc] sm:$0xf0]  ;;  %v14011_v22 = vld [vmem:[%s21945_s1 + $0xfac] sm:$0xf0] }
 0x1b8   :  { %7700 = vmatpush.bf16.msrb.mxu0 %v9728_v62  ;;  %v10256_v62 = vor.u32 %v13849_v34, %v10255_v43  ;;  %v11143_v43 = vld [vmem:[%s21945_s1 + $0x1178] sm:$0xf]  ;;  %v14071_v34 = vld [vmem:[%s21945_s1 + $0x118c] sm:$0xf0]  ;;  %v10687_v27 = vld [vmem:[%s21945_s1 + $0xde8] sm:$0xf] }
 0x1b9   :  { %7713 = vmatpush.bf16.msrb.mxu1 %v9920_v1  ;;  %v10808_v1 = vor.u32 %v13987_v55, %v10807_v18  ;;  %v10543_v18 = vld [vmem:[%s21945_s1 + $0xcc8] sm:$0xf]  ;;  %v11144_v55 = vor.u32 %v14071_v34, %v11143_v43  ;;  %v11095_v15 = vld [vmem:[%s21945_s1 + $0x1118] sm:$0xf]  ;;  %v14059_v17 = vld [vmem:[%s21945_s1 + $0x112c] sm:$0xf0] }
 0x1ba   :  { %7726 = vmatpush.bf16.msrb.mxu2 %v10112_v61  ;;  %v11000_v61 = vor.u32 %v14035_v57, %v10999_v56  ;;  %v13969_v56 = vld [vmem:[%s21945_s1 + $0xe5c] sm:$0xf0]  ;;  %v10927_v57 = vld [vmem:[%s21945_s1 + $0xfc8] sm:$0xf] }
 0x1bb   :  { %7739 = vmatpush.bf16.msrb.mxu3 %v10304_v9  ;;  %v11192_v9 = vor.u32 %v14083_v60, %v11191_v59  ;;  %v11119_v59 = vld [vmem:[%s21945_s1 + $0x1148] sm:$0xf]  ;;  %v14065_v60 = vld [vmem:[%s21945_s1 + $0x115c] sm:$0xf0] }
 0x1bc   :  { %7701 = vmatpush.bf16.msrb.mxu0 %v9704_v11  ;;  %v10592_v11 = vor.u32 %v13933_v3, %v10591_v2  ;;  %v10519_v2 = vld [vmem:[%s21945_s1 + $0xc98] sm:$0xf]  ;;  %v13915_v3 = vld [vmem:[%s21945_s1 + $0xcac] sm:$0xf0]  ;;  %v14005_v43 = vld [vmem:[%s21945_s1 + $0xf7c] sm:$0xf0] }
 0x1bd   :  { %7714 = vmatpush.bf16.msrb.mxu1 %v9896_v24  ;;  %v10567_v24 = vld [vmem:[%s21945_s1 + $0xcf8] sm:$0xf] }
 0x1be   :  { %7727 = vmatpush.bf16.msrb.mxu2 %v10088_v26  ;;  %v13927_v26 = vld [vmem:[%s21945_s1 + $0xd0c] sm:$0xf0] }
 0x1bf   :  { %7740 = vmatpush.bf16.msrb.mxu3 %v10280_v39  ;;  %v10951_v39 = vld [vmem:[%s21945_s1 + $0xff8] sm:$0xf]  ;;  %v10568_v47 = vor.u32 %v13927_v26, %v10567_v24  ;;  %v10495_v24 = vld [vmem:[%s21945_s1 + $0xc68] sm:$0xf]  ;;  %v13909_v26 = vld [vmem:[%s21945_s1 + $0xc7c] sm:$0xf0] }
 0x1c0   :  { %7702 = vmatpush.bf16.msrb.mxu0 %v9680_v54  ;;  %v10952_v51 = vor.u32 %v14023_v40, %v10951_v39  ;;  %v10735_v54 = vld [vmem:[%s21945_s1 + $0xe48] sm:$0xf]  ;;  %v13957_v39 = vld [vmem:[%s21945_s1 + $0xdfc] sm:$0xf0] }
 0x1c1   :  { %7715 = vmatpush.bf16.msrb.mxu1 %v9872_v58  ;;  %v14017_v58 = vld [vmem:[%s21945_s1 + $0xfdc] sm:$0xf0]  ;;  %v10879_v40 = vld [vmem:[%s21945_s1 + $0xf68] sm:$0xf] }
 0x1c2   :  { %7728 = vmatpush.bf16.msrb.mxu2 %v10064_v52  ;;  %v17619_v52 = vpop.f32.mrf.mxu0 }
 0x1c3   :  { %7741 = vmatpush.bf16.msrb.mxu3 %v10256_v62  ;;  %7703 = vmatmul.bf16.vlgmr.msrb.gmra.mxu0 %v15134_v41  ;;  %v10544_v62 = vor.u32 %v13921_v53, %v10543_v18  ;;  %v10496_v18 = vor.u32 %v13909_v26, %v10495_v24  ;;  %v14041_v24 = vld [vmem:[%s21945_s1 + $0x109c] sm:$0xf0] }
 0x1c4   :  { %7747 = vmatpush.bf16.msra.mxu0 %v10616_v63  ;;  %7716 = vmatmul.bf16.vlgmr.msrb.gmra.mxu1 %v15138_v44  ;;  %v17627_v63 = vpop.f32.mrf.mxu1 }
 0x1c5   :  { %7760 = vmatpush.bf16.msra.mxu1 %v10808_v1  ;;  %7729 = vmatmul.bf16.vlgmr.msrb.gmra.mxu2 %v15126_v38  ;;  %v10736_v1 = vor.u32 %v13969_v56, %v10735_v54  ;;  %v10688_v54 = vor.u32 %v13957_v39, %v10687_v27  ;;  %v10471_v56 = vld [vmem:[%s21945_s1 + $0xc38] sm:$0xf] }
 0x1c6   :  { %7773 = vmatpush.bf16.msra.mxu2 %v11000_v61  ;;  %7742 = vmatmul.bf16.vlgmr.msrb.gmra.mxu3 %v15136_v42  ;;  %v10928_v61 = vor.u32 %v14017_v58, %v10927_v57  ;;  %v13903_v57 = vld [vmem:[%s21945_s1 + $0xc4c] sm:$0xf0]  ;;  %v10663_v58 = vld [vmem:[%s21945_s1 + $0xdb8] sm:$0xf] }
 0x1c7   :  { %7786 = vmatpush.bf16.msra.mxu3 %v11192_v9  ;;  %v11120_v9 = vor.u32 %v14065_v60, %v11119_v59  ;;  %v13951_v60 = vld [vmem:[%s21945_s1 + $0xdcc] sm:$0xf0]  ;;  %v11383_v27 = vld [vmem:[%s21945_s1 + $0x1358] sm:$0xf] }
 0x1c8   :  { %7748 = vmatpush.bf16.msra.mxu0 %v10592_v11  ;;  %v10520_v11 = vor.u32 %v13915_v3, %v10519_v2  ;;  %v17662_v36 = vpop.f32.mrf.mxu2  ;;  %v14047_v2 = vld [vmem:[%s21945_s1 + $0x10cc] sm:$0xf0]  ;;  %v10472_v3 = vor.u32 %v13903_v57, %v10471_v56  ;;  %v11575_v39 = vld [vmem:[%s21945_s1 + $0x14d8] sm:$0xf] }
 0x1c9   :  { %7761 = vmatpush.bf16.msra.mxu1 %v10784_v19  ;;  %v10712_v19 = vor.u32 %v13963_v10, %v10711_v5  ;;  %v17673_v34 = vpop.f32.mrf.mxu3  ;;  %v10447_v5 = vld [vmem:[%s21945_s1 + $0xc08] sm:$0xf]  ;;  %v10664_v10 = vor.u32 %v13951_v60, %v10663_v58 }
 0x1ca   :  { %7774 = vmatpush.bf16.msra.mxu2 %v10976_v7  ;;  %v10904_v7 = vor.u32 %v14011_v22, %v10903_v14  ;;  %v10639_v22 = vld [vmem:[%s21945_s1 + $0xd88] sm:$0xf] }
 0x1cb   :  { %7787 = vmatpush.bf16.msra.mxu3 %v11168_v32  ;;  %v11096_v32 = vor.u32 %v14059_v17, %v11095_v15  ;;  %v13945_v15 = vld [vmem:[%s21945_s1 + $0xd9c] sm:$0xf0]  ;;  %v10831_v17 = vld [vmem:[%s21945_s1 + $0xf08] sm:$0xf] }
 0x1cc   :  { %7749 = vmatpush.bf16.msra.mxu0 %v10568_v47  ;;  %v11071_v47 = vld [vmem:[%s21945_s1 + $0x10e8] sm:$0xf]  ;;  %v7511_v53 = vpop.f32.mrf.mxu1 }
 0x1cd   :  { %7762 = vmatpush.bf16.msra.mxu1 %v10760_v48  ;;  %v14053_v48 = vld [vmem:[%s21945_s1 + $0x10fc] sm:$0xf0]  ;;  %v11359_v60 = vld [vmem:[%s21945_s1 + $0x1328] sm:$0xf] }
 0x1ce   :  { %7775 = vmatpush.bf16.msra.mxu2 %v10952_v51  ;;  %v7498_v51 = vpop.f32.mrf.mxu0  ;;  %v11072_v59 = vor.u32 %v14053_v48, %v11071_v47  ;;  %v14179_v47 = vld [vmem:[%s21945_s1 + $0x14ec] sm:$0xf0]  ;;  %v11767_v48 = vld [vmem:[%s21945_s1 + $0x1658] sm:$0xf] }
 0x1cf   :  { %7788 = vmatpush.bf16.msra.mxu3 %v11144_v55  ;;  %v10880_v55 = vor.u32 %v14005_v43, %v10879_v40  ;;  %v14227_v51 = vld [vmem:[%s21945_s1 + $0x166c] sm:$0xf0]  ;;  %v11576_v58 = vor.u32 %v14179_v47, %v11575_v39 }
 0x1d0   :  { %7750 = vmatpush.bf16.msra.mxu0 %v10544_v62  ;;  %v10855_v62 = vld [vmem:[%s21945_s1 + $0xf38] sm:$0xf]  ;;  %v7524_v26 = vpop.f32.mrf.mxu2  ;;  %v14263_v39 = vld [vmem:[%s21945_s1 + $0x178c] sm:$0xf0] }
 0x1d1   :  { %7763 = vmatpush.bf16.msra.mxu1 %v10736_v1  ;;  %v13999_v1 = vld [vmem:[%s21945_s1 + $0xf4c] sm:$0xf0]  ;;  %v7537_v40 = vpop.f32.mrf.mxu3  ;;  %v11719_v26 = vld [vmem:[%s21945_s1 + $0x15f8] sm:$0xf] }
 0x1d2   :  { %7776 = vmatpush.bf16.msra.mxu2 %v10928_v61  ;;  %v11047_v61 = vld [vmem:[%s21945_s1 + $0x10b8] sm:$0xf]  ;;  %v10856_v14 = vor.u32 %v13999_v1, %v10855_v62  ;;  %v14125_v62 = vld [vmem:[%s21945_s1 + $0x133c] sm:$0xf0]  ;;  %v11551_v1 = vld [vmem:[%s21945_s1 + $0x14a8] sm:$0xf] }
 0x1d3   :  { %7789 = vmatpush.bf16.msra.mxu3 %v11120_v9  ;;  %v13897_v9 = vld [vmem:[%s21945_s1 + $0xc1c] sm:$0xf0] }
 0x1d4   :  { %7751 = vmatpush.bf16.msra.mxu0 %v10520_v11  ;;  %v11048_v11 = vor.u32 %v14047_v2, %v11047_v61  ;;  %v10448_v43 = vor.u32 %v13897_v9, %v10447_v5  ;;  %v14173_v2 = vld [vmem:[%s21945_s1 + $0x14bc] sm:$0xf0]  ;;  %v11935_v9 = vld [vmem:[%s21945_s1 + $0x17a8] sm:$0xf] }
 0x1d5   :  { %7764 = vmatpush.bf16.msra.mxu1 %v10712_v19  ;;  %v13993_v19 = vld [vmem:[%s21945_s1 + $0xf1c] sm:$0xf0] }
 0x1d6   :  { %7777 = vmatpush.bf16.msra.mxu2 %v10904_v7  ;;  %v11023_v7 = vld [vmem:[%s21945_s1 + $0x1088] sm:$0xf]  ;;  %v10832_v53 = vor.u32 %v13993_v19, %v10831_v17  ;;  %v14221_v5 = vld [vmem:[%s21945_s1 + $0x163c] sm:$0xf0]  ;;  %v11335_v17 = vld [vmem:[%s21945_s1 + $0x12f8] sm:$0xf] }
 0x1d7   :  { %7790 = vmatpush.bf16.msra.mxu3 %v11096_v32  ;;  %v14131_v32 = vld [vmem:[%s21945_s1 + $0x136c] sm:$0xf0]  ;;  %v11024_v56 = vor.u32 %v14041_v24, %v11023_v7  ;;  %v11527_v19 = vld [vmem:[%s21945_s1 + $0x1478] sm:$0xf] }
 0x1d8   :  { %7752 = vmatpush.bf16.msra.mxu0 %v10496_v18  ;;  %v10640_v18 = vor.u32 %v13945_v15, %v10639_v22  ;;  %v11384_v57 = vor.u32 %v14131_v32, %v11383_v27  ;;  %v11552_v22 = vor.u32 %v14173_v2, %v11551_v1  ;;  %v14167_v24 = vld [vmem:[%s21945_s1 + $0x148c] sm:$0xf0]  ;;  %v11911_v32 = vld [vmem:[%s21945_s1 + $0x1778] sm:$0xf] }
 0x1d9   :  { %7765 = vmatpush.bf16.msra.mxu1 %v10688_v54  ;;  %v11959_v54 = vld [vmem:[%s21945_s1 + $0x17d8] sm:$0xf]  ;;  %v14215_v27 = vld [vmem:[%s21945_s1 + $0x160c] sm:$0xf0] }
 0x1da   :  { %7778 = vmatpush.bf16.msra.mxu2 %v10880_v55  ;;  %v14275_v55 = vld [vmem:[%s21945_s1 + $0x17ec] sm:$0xf0]  ;;  %v11720_v47 = vor.u32 %v14215_v27, %v11719_v26  ;;  %v11287_v2 = vld [vmem:[%s21945_s1 + $0x1298] sm:$0xf]  ;;  %v14101_v26 = vld [vmem:[%s21945_s1 + $0x127c] sm:$0xf0] }
 0x1db   :  { %7791 = vmatpush.bf16.msra.mxu3 %v11072_v59  ;;  %v11768_v59 = vor.u32 %v14227_v51, %v11767_v48  ;;  %v11960_v61 = vor.u32 %v14275_v55, %v11959_v54  ;;  %v11311_v48 = vld [vmem:[%s21945_s1 + $0x12c8] sm:$0xf]  ;;  %v14113_v51 = vld [vmem:[%s21945_s1 + $0x12dc] sm:$0xf0] }
 0x1dc   :  { %7753 = vmatpush.bf16.msra.mxu0 %v10472_v3  ;;  %v11743_v3 = vld [vmem:[%s21945_s1 + $0x1628] sm:$0xf]  ;;  %v14161_v54 = vld [vmem:[%s21945_s1 + $0x145c] sm:$0xf0] }
 0x1dd   :  { %7766 = vmatpush.bf16.msra.mxu1 %v10664_v10  ;;  %v14269_v10 = vld [vmem:[%s21945_s1 + $0x17bc] sm:$0xf0]  ;;  %v11744_v15 = vor.u32 %v14221_v5, %v11743_v3  ;;  %v11695_v55 = vld [vmem:[%s21945_s1 + $0x15c8] sm:$0xf]  ;;  %v14107_v3 = vld [vmem:[%s21945_s1 + $0x12ac] sm:$0xf0] }
 0x1de   :  { %7779 = vmatpush.bf16.msra.mxu2 %v10856_v14  ;;  %v11360_v14 = vor.u32 %v14125_v62, %v11359_v60  ;;  %v11936_v7 = vor.u32 %v14269_v10, %v11935_v9  ;;  %v11312_v60 = vor.u32 %v14113_v51, %v11311_v48  ;;  %v11479_v5 = vld [vmem:[%s21945_s1 + $0x1418] sm:$0xf]  ;;  %v14155_v10 = vld [vmem:[%s21945_s1 + $0x142c] sm:$0xf0]  ;;  %v11455_v27 = vld [vmem:[%s21945_s1 + $0x13e8] sm:$0xf]  ;;  %v7497_v48 = vadd.f32 %v17619_v52, %v17475_v0 }
 0x1df   :  { %7792 = vmatpush.bf16.msra.mxu3 %v11048_v11  ;;  %v14119_v11 = vld [vmem:[%s21945_s1 + $0x130c] sm:$0xf0]  ;;  %v11239_v0 = vld [vmem:[%s21945_s1 + $0x1238] sm:$0xf] }
 0x1e0   :  { %7754 = vmatpush.bf16.msra.mxu0 %v10448_v43  ;;  %v11336_v40 = vor.u32 %v14119_v11, %v11335_v17  ;;  %v11528_v43 = vor.u32 %v14167_v24, %v11527_v19  ;;  %v14251_v17 = vld [vmem:[%s21945_s1 + $0x172c] sm:$0xf0]  ;;  %v11288_v11 = vor.u32 %v14107_v3, %v11287_v2  ;;  %v11480_v19 = vor.u32 %v14155_v10, %v11479_v5  ;;  %v11263_v24 = vld [vmem:[%s21945_s1 + $0x1268] sm:$0xf]  ;;  %v11623_v2 = vld [vmem:[%s21945_s1 + $0x1538] sm:$0xf] }
 0x1e1   :  { %7767 = vmatpush.bf16.msra.mxu1 %v10640_v18  ;;  %v11503_v18 = vld [vmem:[%s21945_s1 + $0x1448] sm:$0xf]  ;;  %v17831_v62 = vpop.f32.mrf.mxu1  ;;  %v14095_v52 = vld [vmem:[%s21945_s1 + $0x124c] sm:$0xf0]  ;;  %v7510_v5 = vadd.f32 %v17627_v63, %v7497_v48  ;;  %v12343_v48 = vld [vmem:[%s21945_s1 + $0x1ad8] sm:$0xf] }
 0x1e2   :  { %7780 = vmatpush.bf16.msra.mxu2 %v10832_v53  ;;  %v11912_v53 = vor.u32 %v14263_v39, %v11911_v32  ;;  %v11504_v1 = vor.u32 %v14161_v54, %v11503_v18  ;;  %v11839_v18 = vld [vmem:[%s21945_s1 + $0x16e8] sm:$0xf]  ;;  %v14191_v3 = vld [vmem:[%s21945_s1 + $0x154c] sm:$0xf0] }
 0x1e3   :  { %7793 = vmatpush.bf16.msra.mxu3 %v11024_v56  ;;  %7755 = vmatmul.bf16.vlgmr.msra.gmra.mxu0 %v15327_v25  ;;  %v14209_v56 = vld [vmem:[%s21945_s1 + $0x15dc] sm:$0xf0]  ;;  %v14239_v10 = vld [vmem:[%s21945_s1 + $0x16cc] sm:$0xf0]  ;;  %v7523_v63 = vadd.f32 %v17662_v36, %v7510_v5 }
 0x1e4   :  { %7799 = vmatpush.bf16.msrb.mxu0 %v11384_v57  ;;  %7768 = vmatmul.bf16.vlgmr.msra.gmra.mxu1 %v15340_v30  ;;  %v17823_v57 = vpop.f32.mrf.mxu0  ;;  %v14185_v36 = vld [vmem:[%s21945_s1 + $0x151c] sm:$0xf0] }
 0x1e5   :  { %7812 = vmatpush.bf16.msrb.mxu1 %v11576_v58  ;;  %7781 = vmatmul.bf16.vlgmr.msra.gmra.mxu2 %v15338_v29  ;;  %v11887_v58 = vld [vmem:[%s21945_s1 + $0x1748] sm:$0xf] }
 0x1e6   :  { %7825 = vmatpush.bf16.msrb.mxu2 %v11768_v59  ;;  %7794 = vmatmul.bf16.vlgmr.msra.gmra.mxu3 %v15348_v33  ;;  %v14257_v59 = vld [vmem:[%s21945_s1 + $0x175c] sm:$0xf0] }
 0x1e7   :  { %7838 = vmatpush.bf16.msrb.mxu3 %v11960_v61  ;;  %v11696_v61 = vor.u32 %v14209_v56, %v11695_v55  ;;  %v11888_v9 = vor.u32 %v14257_v59, %v11887_v58  ;;  %v11264_v55 = vor.u32 %v14101_v26, %v11263_v24  ;;  %v11599_v24 = vld [vmem:[%s21945_s1 + $0x1508] sm:$0xf] }
 0x1e8   :  { %7800 = vmatpush.bf16.msrb.mxu0 %v11360_v14  ;;  %v11671_v14 = vld [vmem:[%s21945_s1 + $0x1598] sm:$0xf]  ;;  %v17866_v39 = vpop.f32.mrf.mxu2 }
 0x1e9   :  { %7813 = vmatpush.bf16.msrb.mxu1 %v11552_v22  ;;  %v14203_v22 = vld [vmem:[%s21945_s1 + $0x15ac] sm:$0xf0]  ;;  %v17879_v51 = vpop.f32.mrf.mxu3  ;;  %v7563_v56 = vpop.f32.mrf.mxu1 }
 0x1ea   :  { %7826 = vmatpush.bf16.msrb.mxu2 %v11744_v15  ;;  %v11863_v15 = vld [vmem:[%s21945_s1 + $0x1718] sm:$0xf]  ;;  %v14419_v56 = vld [vmem:[%s21945_s1 + $0x1c6c] sm:$0xf0] }
 0x1eb   :  { %7839 = vmatpush.bf16.msrb.mxu3 %v11936_v7  ;;  %v11672_v7 = vor.u32 %v14203_v22, %v11671_v14  ;;  %v11864_v32 = vor.u32 %v14251_v17, %v11863_v15  ;;  %v11240_v14 = vor.u32 %v14095_v52, %v11239_v0  ;;  %v11215_v22 = vld [vmem:[%s21945_s1 + $0x1208] sm:$0xf]  ;;  %v14089_v15 = vld [vmem:[%s21945_s1 + $0x121c] sm:$0xf0]  ;;  %v11600_v0 = vor.u32 %v14185_v36, %v11599_v24  ;;  %v12727_v52 = vld [vmem:[%s21945_s1 + $0x1dd8] sm:$0xf] }
 0x1ec   :  { %7801 = vmatpush.bf16.msrb.mxu0 %v11336_v40  ;;  %v14149_v40 = vld [vmem:[%s21945_s1 + $0x13fc] sm:$0xf0]  ;;  %v7550_v54 = vpop.f32.mrf.mxu0  ;;  %v14311_v36 = vld [vmem:[%s21945_s1 + $0x190c] sm:$0xf0] }
 0x1ed   :  { %7814 = vmatpush.bf16.msrb.mxu1 %v11528_v43  ;;  %v11647_v43 = vld [vmem:[%s21945_s1 + $0x1568] sm:$0xf]  ;;  %v11456_v58 = vor.u32 %v14149_v40, %v11455_v27  ;;  %v14371_v54 = vld [vmem:[%s21945_s1 + $0x1aec] sm:$0xf0] }
 0x1ee   :  { %7827 = vmatpush.bf16.msrb.mxu2 %v11720_v47  ;;  %v14197_v47 = vld [vmem:[%s21945_s1 + $0x157c] sm:$0xf0]  ;;  %v11791_v27 = vld [vmem:[%s21945_s1 + $0x1688] sm:$0xf] }
 0x1ef   :  { %7840 = vmatpush.bf16.msrb.mxu3 %v11912_v53  ;;  %v14245_v53 = vld [vmem:[%s21945_s1 + $0x16fc] sm:$0xf0]  ;;  %v11648_v59 = vor.u32 %v14197_v47, %v11647_v43  ;;  %v12151_v43 = vld [vmem:[%s21945_s1 + $0x1958] sm:$0xf]  ;;  %v14323_v47 = vld [vmem:[%s21945_s1 + $0x196c] sm:$0xf0] }
 0x1f0   :  { %7802 = vmatpush.bf16.msrb.mxu0 %v11312_v60  ;;  %v11431_v60 = vld [vmem:[%s21945_s1 + $0x13b8] sm:$0xf]  ;;  %v7576_v40 = vpop.f32.mrf.mxu2 }
 0x1f1   :  { %7815 = vmatpush.bf16.msrb.mxu1 %v11504_v1  ;;  %v11840_v1 = vor.u32 %v14245_v53, %v11839_v18  ;;  %v7589_v18 = vpop.f32.mrf.mxu3  ;;  %v11216_v53 = vor.u32 %v14089_v15, %v11215_v22  ;;  %v12511_v22 = vld [vmem:[%s21945_s1 + $0x1c28] sm:$0xf]  ;;  %v14413_v15 = vld [vmem:[%s21945_s1 + $0x1c3c] sm:$0xf0]  ;;  %v12487_v40 = vld [vmem:[%s21945_s1 + $0x1bf8] sm:$0xf] }
 0x1f2   :  { %7828 = vmatpush.bf16.msrb.mxu2 %v11696_v61  ;;  %v14143_v61 = vld [vmem:[%s21945_s1 + $0x13cc] sm:$0xf0]  ;;  %v12512_v24 = vor.u32 %v14413_v15, %v12511_v22  ;;  %v12247_v22 = vld [vmem:[%s21945_s1 + $0x1a18] sm:$0xf] }
 0x1f3   :  { %7841 = vmatpush.bf16.msrb.mxu3 %v11888_v9  ;;  %v11815_v9 = vld [vmem:[%s21945_s1 + $0x16b8] sm:$0xf]  ;;  %v11432_v17 = vor.u32 %v14143_v61, %v11431_v60  ;;  %v14467_v60 = vld [vmem:[%s21945_s1 + $0x1dec] sm:$0xf0]  ;;  %v12152_v61 = vor.u32 %v14323_v47, %v12151_v43 }
 0x1f4   :  { %7803 = vmatpush.bf16.msrb.mxu0 %v11288_v11  ;;  %v11624_v11 = vor.u32 %v14191_v3, %v11623_v2  ;;  %v11816_v26 = vor.u32 %v14239_v10, %v11815_v9  ;;  %v12344_v3 = vor.u32 %v14371_v54, %v12343_v48  ;;  %v14317_v9 = vld [vmem:[%s21945_s1 + $0x193c] sm:$0xf0]  ;;  %v12319_v10 = vld [vmem:[%s21945_s1 + $0x1aa8] sm:$0xf]  ;;  %v14407_v43 = vld [vmem:[%s21945_s1 + $0x1c0c] sm:$0xf0] }
 0x1f5   :  { %7816 = vmatpush.bf16.msrb.mxu1 %v11480_v19  ;;  %v11407_v19 = vld [vmem:[%s21945_s1 + $0x1388] sm:$0xf]  ;;  %v12679_v48 = vld [vmem:[%s21945_s1 + $0x1d78] sm:$0xf]  ;;  %v14455_v18 = vld [vmem:[%s21945_s1 + $0x1d8c] sm:$0xf0] }
 0x1f6   :  { %7829 = vmatpush.bf16.msrb.mxu2 %v11672_v7  ;;  %v14137_v7 = vld [vmem:[%s21945_s1 + $0x139c] sm:$0xf0] }
 0x1f7   :  { %7842 = vmatpush.bf16.msrb.mxu3 %v11864_v32  ;;  %v14233_v32 = vld [vmem:[%s21945_s1 + $0x169c] sm:$0xf0] }
 0x1f8   :  { %7804 = vmatpush.bf16.msrb.mxu0 %v11264_v55  ;;  %v12535_v55 = vld [vmem:[%s21945_s1 + $0x1c58] sm:$0xf] }
 0x1f9   :  { %7817 = vmatpush.bf16.msrb.mxu1 %v11456_v58  ;;  %v7536_v58 = vadd.f32 %v17673_v34, %v7523_v63  ;;  %v12536_v5 = vor.u32 %v14419_v56, %v12535_v55  ;;  %v12127_v34 = vld [vmem:[%s21945_s1 + $0x1928] sm:$0xf]  ;;  %v14305_v56 = vld [vmem:[%s21945_s1 + $0x18dc] sm:$0xf0] }
 0x1fa   :  { %7830 = vmatpush.bf16.msrb.mxu2 %v11648_v59  ;;  %v11408_v59 = vor.u32 %v14137_v7, %v11407_v19  ;;  %v12703_v63 = vld [vmem:[%s21945_s1 + $0x1da8] sm:$0xf] }
 0x1fb   :  { %7843 = vmatpush.bf16.msrb.mxu3 %v11840_v1  ;;  %v11792_v1 = vor.u32 %v14233_v32, %v11791_v27  ;;  %v7549_v2 = vadd.f32 %v17823_v57, %v7536_v58  ;;  %v14365_v57 = vld [vmem:[%s21945_s1 + $0x1abc] sm:$0xf0]  ;;  %v12295_v27 = vld [vmem:[%s21945_s1 + $0x1a78] sm:$0xf]  ;;  %v14359_v32 = vld [vmem:[%s21945_s1 + $0x1a8c] sm:$0xf0] }
 0x1fc   :  { %7805 = vmatpush.bf16.msrb.mxu0 %v11240_v14  ;;  %v12728_v14 = vor.u32 %v14467_v60, %v12727_v52  ;;  %v12320_v7 = vor.u32 %v14365_v57, %v12319_v10  ;;  %v12296_v54 = vor.u32 %v14359_v32, %v12295_v27  ;;  %v12079_v55 = vld [vmem:[%s21945_s1 + $0x18c8] sm:$0xf]  ;;  %v14401_v60 = vld [vmem:[%s21945_s1 + $0x1bdc] sm:$0xf0]  ;;  %v14299_v57 = vld [vmem:[%s21945_s1 + $0x18ac] sm:$0xf0] }
 0x1fd   :  { %7818 = vmatpush.bf16.msrb.mxu1 %v11432_v17  ;;  %v14461_v17 = vld [vmem:[%s21945_s1 + $0x1dbc] sm:$0xf0]  ;;  %v7562_v19 = vadd.f32 %v17831_v62, %v7549_v2  ;;  %v12271_v58 = vld [vmem:[%s21945_s1 + $0x1a48] sm:$0xf] }
 0x1fe   :  { %7831 = vmatpush.bf16.msrb.mxu2 %v11624_v11  ;;  %v12128_v11 = vor.u32 %v14317_v9, %v12127_v34  ;;  %v12704_v62 = vor.u32 %v14461_v17, %v12703_v63  ;;  %v12463_v52 = vld [vmem:[%s21945_s1 + $0x1bc8] sm:$0xf]  ;;  %v14347_v63 = vld [vmem:[%s21945_s1 + $0x1a2c] sm:$0xf0]  ;;  %v12439_v17 = vld [vmem:[%s21945_s1 + $0x1b98] sm:$0xf] }
 0x1ff   :  { %7844 = vmatpush.bf16.msrb.mxu3 %v11816_v26  ;;  %v12103_v26 = vld [vmem:[%s21945_s1 + $0x18f8] sm:$0xf]  ;;  %v7575_v47 = vadd.f32 %v17866_v39, %v7562_v19  ;;  %v12488_v39 = vor.u32 %v14407_v43, %v12487_v40  ;;  %v12655_v2 = vld [vmem:[%s21945_s1 + $0x1d48] sm:$0xf]  ;;  %v14293_v32 = vld [vmem:[%s21945_s1 + $0x187c] sm:$0xf0] }
 0x200   :  { %7806 = vmatpush.bf16.msrb.mxu0 %v11216_v53  ;;  %v12104_v53 = vor.u32 %v14311_v36, %v12103_v26  ;;  %v12631_v19 = vld [vmem:[%s21945_s1 + $0x1d18] sm:$0xf]  ;;  %v12248_v36 = vor.u32 %v14347_v63, %v12247_v22  ;;  %v12223_v40 = vld [vmem:[%s21945_s1 + $0x19e8] sm:$0xf]  ;;  %v14281_v63 = vld [vmem:[%s21945_s1 + $0x181c] sm:$0xf0] }
 0x201   :  { %7819 = vmatpush.bf16.msrb.mxu1 %v11408_v59  ;;  %v12680_v59 = vor.u32 %v14455_v18, %v12679_v48  ;;  %v7613_v34 = vpop.f32.mrf.mxu1  ;;  %v14341_v48 = vld [vmem:[%s21945_s1 + $0x19fc] sm:$0xf0]  ;;  %v12415_v18 = vld [vmem:[%s21945_s1 + $0x1b68] sm:$0xf] }
 0x202   :  { %7832 = vmatpush.bf16.msrb.mxu2 %v11600_v0  ;;  %v14353_v0 = vld [vmem:[%s21945_s1 + $0x1a5c] sm:$0xf0] }
 0x203   :  { %7845 = vmatpush.bf16.msrb.mxu3 %v11792_v1  ;;  %7807 = vmatmul.bf16.vlgmr.msrb.gmra.mxu0 %v15537_v23  ;;  %v7588_v1 = vadd.f32 %v17879_v51, %v7575_v47  ;;  %v12272_v10 = vor.u32 %v14353_v0, %v12271_v58  ;;  %v12055_v51 = vld [vmem:[%s21945_s1 + $0x1898] sm:$0xf] }
 0x204   :  { %7851 = vmatpush.bf16.msra.mxu0 %v12152_v61  ;;  %7820 = vmatmul.bf16.vlgmr.msrb.gmra.mxu1 %v15550_v31  ;;  %v7600_v61 = vpop.f32.mrf.mxu0 }
 0x205   :  { %7864 = vmatpush.bf16.msra.mxu1 %v12344_v3  ;;  %7833 = vmatmul.bf16.vlgmr.msrb.gmra.mxu2 %v15548_v28  ;;  %v14449_v3 = vld [vmem:[%s21945_s1 + $0x1d5c] sm:$0xf0]  ;;  %v7601_v9 = vadd.f32 %v7600_v61, %v7588_v1  ;;  %v12007_v61 = vld [vmem:[%s21945_s1 + $0x1838] sm:$0xf] }
 0x206   :  { %7877 = vmatpush.bf16.msra.mxu2 %v12536_v5  ;;  %7846 = vmatmul.bf16.vlgmr.msrb.gmra.mxu3 %v15558_v35  ;;  %v12080_v5 = vor.u32 %v14305_v56, %v12079_v55  ;;  %v12656_v15 = vor.u32 %v14449_v3, %v12655_v2  ;;  %v12607_v55 = vld [vmem:[%s21945_s1 + $0x1ce8] sm:$0xf]  ;;  %v14437_v56 = vld [vmem:[%s21945_s1 + $0x1cfc] sm:$0xf0]  ;;  %v14287_v2 = vld [vmem:[%s21945_s1 + $0x184c] sm:$0xf0] }
 0x207   :  { %7890 = vmatpush.bf16.msra.mxu3 %v12728_v14  ;;  %v12464_v14 = vor.u32 %v14401_v60, %v12463_v52  ;;  %v7614_v26 = vadd.f32 %v7613_v34, %v7601_v9  ;;  %v12224_v60 = vor.u32 %v14341_v48, %v12223_v40  ;;  %v12199_v3 = vld [vmem:[%s21945_s1 + $0x19b8] sm:$0xf]  ;;  %v14335_v34 = vld [vmem:[%s21945_s1 + $0x19cc] sm:$0xf0]  ;;  %v12008_v22 = vor.u32 %v14287_v2, %v12007_v61  ;;  %v14509_v61 = vld [vmem:[%s21945_s1 + $0x1f3c] sm:$0xf0] }
 0x208   :  { %7852 = vmatpush.bf16.msra.mxu0 %v12128_v11  ;;  %v14395_v11 = vld [vmem:[%s21945_s1 + $0x1bac] sm:$0xf0]  ;;  %v7626_v47 = vpop.f32.mrf.mxu2  ;;  %v12391_v9 = vld [vmem:[%s21945_s1 + $0x1b38] sm:$0xf]  ;;  %v13087_v2 = vld [vmem:[%s21945_s1 + $0x20a8] sm:$0xf] }
 0x209   :  { %7865 = vmatpush.bf16.msra.mxu1 %v12320_v7  ;;  %v14443_v7 = vld [vmem:[%s21945_s1 + $0x1d2c] sm:$0xf0]  ;;  %v12440_v27 = vor.u32 %v14395_v11, %v12439_v17  ;;  %v7615_v0 = vpop.f32.mrf.mxu1  ;;  %v12175_v11 = vld [vmem:[%s21945_s1 + $0x1988] sm:$0xf] }
 0x20a   :  { %7878 = vmatpush.bf16.msra.mxu2 %v12512_v24  ;;  %v12056_v24 = vor.u32 %v14299_v57, %v12055_v51  ;;  %v12632_v43 = vor.u32 %v14443_v7, %v12631_v19  ;;  %v12583_v51 = vld [vmem:[%s21945_s1 + $0x1cb8] sm:$0xf]  ;;  %v14431_v57 = vld [vmem:[%s21945_s1 + $0x1ccc] sm:$0xf0]  ;;  %v14329_v19 = vld [vmem:[%s21945_s1 + $0x199c] sm:$0xf0] }
 0x20b   :  { %7891 = vmatpush.bf16.msra.mxu3 %v12704_v62  ;;  %v12031_v62 = vld [vmem:[%s21945_s1 + $0x1868] sm:$0xf]  ;;  %v14515_v40 = vld [vmem:[%s21945_s1 + $0x1f6c] sm:$0xf0] }
 0x20c   :  { %7853 = vmatpush.bf16.msra.mxu0 %v12104_v53  ;;  %v14389_v53 = vld [vmem:[%s21945_s1 + $0x1b7c] sm:$0xf0]  ;;  %v7602_v58 = vpop.f32.mrf.mxu0  ;;  %v12367_v7 = vld [vmem:[%s21945_s1 + $0x1b08] sm:$0xf] }
 0x20d   :  { %7866 = vmatpush.bf16.msra.mxu1 %v12296_v54  ;;  %v7627_v54 = vadd.f32 %v7626_v47, %v7614_v26  ;;  %v12416_v1 = vor.u32 %v14389_v53, %v12415_v18  ;;  %v14377_v26 = vld [vmem:[%s21945_s1 + $0x1b1c] sm:$0xf0]  ;;  %v14563_v18 = vld [vmem:[%s21945_s1 + $0x20ec] sm:$0xf0]  ;;  %v13303_v53 = vld [vmem:[%s21945_s1 + $0x2258] sm:$0xf] }
 0x20e   :  { %7879 = vmatpush.bf16.msra.mxu2 %v12488_v39  ;;  %v7639_v39 = vpop.f32.mrf.mxu3  ;;  %v14659_v58 = vld [vmem:[%s21945_s1 + $0x23ec] sm:$0xf0] }
 0x20f   :  { %7892 = vmatpush.bf16.msra.mxu3 %v12680_v59  ;;  %v12032_v59 = vor.u32 %v14293_v32, %v12031_v62  ;;  %v7640_v52 = vadd.f32 %v7639_v39, %v7627_v54  ;;  %v12919_v32 = vld [vmem:[%s21945_s1 + $0x1f58] sm:$0xf]  ;;  %v14611_v54 = vld [vmem:[%s21945_s1 + $0x226c] sm:$0xf0]  ;;  %v12176_v39 = vor.u32 %v14329_v19, %v12175_v11 }
 0x210   :  { %7854 = vmatpush.bf16.msra.mxu0 %v12080_v5  ;;  %v12608_v5 = vor.u32 %v14437_v56, %v12607_v55  ;;  %v7628_v62 = vpop.f32.mrf.mxu2  ;;  %v12368_v55 = vor.u32 %v14377_v26, %v12367_v7  ;;  %v13495_v56 = vld [vmem:[%s21945_s1 + $0x23d8] sm:$0xf]  ;;  %v12920_v0 = vor.u32 %v14515_v40, %v12919_v32  ;;  %v14551_v11 = vld [vmem:[%s21945_s1 + $0x208c] sm:$0xf0]  ;;  %v12847_v32 = vld [vmem:[%s21945_s1 + $0x1ec8] sm:$0xf] }
 0x211   :  { %7867 = vmatpush.bf16.msra.mxu1 %v12272_v10  ;;  %v14383_v10 = vld [vmem:[%s21945_s1 + $0x1b4c] sm:$0xf0]  ;;  %v13255_v19 = vld [vmem:[%s21945_s1 + $0x21f8] sm:$0xf]  ;;  %v14497_v40 = vld [vmem:[%s21945_s1 + $0x1edc] sm:$0xf0] }
 0x212   :  { %7880 = vmatpush.bf16.msra.mxu2 %v12464_v14  ;;  %v8891_v14 = vpack.c.bf16 %v7640_v52, %v16879_v50  ;;  %v12200_v50 = vor.u32 %v14335_v34, %v12199_v3  ;;  %v12392_v17 = vor.u32 %v14383_v10, %v12391_v9  ;;  %v13496_v3 = vor.u32 %v14659_v58, %v13495_v56  ;;  %v13279_v34 = vld [vmem:[%s21945_s1 + $0x2228] sm:$0xf]  ;;  %v14605_v9 = vld [vmem:[%s21945_s1 + $0x223c] sm:$0xf0]  ;;  %v14599_v7 = vld [vmem:[%s21945_s1 + $0x220c] sm:$0xf0] }
 0x213   :  { %7893 = vmatpush.bf16.msra.mxu3 %v12656_v15  ;;  %v11983_v15 = vld [vmem:[%s21945_s1 + $0x1808] sm:$0xf]  ;;  %v14647_v26 = vld [vmem:[%s21945_s1 + $0x238c] sm:$0xf0]  ;;  %v13256_v62 = vor.u32 %v14599_v7, %v13255_v19  ;;  %v14581_v7 = vld [vmem:[%s21945_s1 + $0x217c] sm:$0xf0] }
 0x214   :  { %7855 = vmatpush.bf16.msra.mxu0 %v12056_v24  ;;  %8894 = vst [vmem:[%s21947_s2] sm:$0xff] %v8891_v14  ;;  %v12584_v24 = vor.u32 %v14431_v57, %v12583_v51  ;;  %v11984_v48 = vor.u32 %v14281_v63, %v11983_v15  ;;  %v13471_v10 = vld [vmem:[%s21945_s1 + $0x23a8] sm:$0xf]  ;;  %v14653_v14 = vld [vmem:[%s21945_s1 + $0x23bc] sm:$0xf0]  ;;  %v12871_v15 = vld [vmem:[%s21945_s1 + $0x1ef8] sm:$0xf] }
 0x215   :  { %7868 = vmatpush.bf16.msra.mxu1 %v12248_v36  ;;  %v12559_v36 = vld [vmem:[%s21945_s1 + $0x1c88] sm:$0xf]  ;;  %v14503_v63 = vld [vmem:[%s21945_s1 + $0x1f0c] sm:$0xf0] }
 0x216   :  { %7881 = vmatpush.bf16.msra.mxu2 %v12440_v27  ;;  %v14425_v27 = vld [vmem:[%s21945_s1 + $0x1c9c] sm:$0xf0]  ;;  %v7641_v47 = vpop.f32.mrf.mxu3  ;;  %v13183_v19 = vld [vmem:[%s21945_s1 + $0x2168] sm:$0xf] }
 0x217   :  { %7894 = vmatpush.bf16.msra.mxu3 %v12632_v43  ;;  %v13111_v43 = vld [vmem:[%s21945_s1 + $0x20d8] sm:$0xf] }
 0x218   :  { %7856 = vmatpush.bf16.msra.mxu0 %v12032_v59  ;;  %v12560_v59 = vor.u32 %v14425_v27, %v12559_v36  ;;  %v13112_v52 = vor.u32 %v14563_v18, %v13111_v43  ;;  %v12872_v36 = vor.u32 %v14503_v63, %v12871_v15  ;;  %v13039_v43 = vld [vmem:[%s21945_s1 + $0x2048] sm:$0xf]  ;;  %v14485_v15 = vld [vmem:[%s21945_s1 + $0x1e7c] sm:$0xf0] }
 0x219   :  { %7869 = vmatpush.bf16.msra.mxu1 %v12224_v60  ;;  %v13304_v60 = vor.u32 %v14611_v54, %v13303_v53  ;;  %v13231_v18 = vld [vmem:[%s21945_s1 + $0x21c8] sm:$0xf]  ;;  %v14593_v53 = vld [vmem:[%s21945_s1 + $0x21dc] sm:$0xf0] }
 0x21a   :  { %7882 = vmatpush.bf16.msra.mxu2 %v12416_v1  ;;  %v12895_v1 = vld [vmem:[%s21945_s1 + $0x1f28] sm:$0xf] }
 0x21b   :  { %7895 = vmatpush.bf16.msra.mxu3 %v12608_v5  ;;  %v14557_v5 = vld [vmem:[%s21945_s1 + $0x20bc] sm:$0xf0]  ;;  %v12896_v51 = vor.u32 %v14509_v61, %v12895_v1  ;;  %v13423_v54 = vld [vmem:[%s21945_s1 + $0x2348] sm:$0xf] }
 0x21c   :  { %7857 = vmatpush.bf16.msra.mxu0 %v12008_v22  ;;  %v13088_v57 = vor.u32 %v14557_v5, %v13087_v2  ;;  %v13280_v22 = vor.u32 %v14605_v9, %v13279_v34  ;;  %v14539_v2 = vld [vmem:[%s21945_s1 + $0x202c] sm:$0xf0]  ;;  %v13399_v9 = vld [vmem:[%s21945_s1 + $0x2318] sm:$0xf]  ;;  %v12991_v63 = vld [vmem:[%s21945_s1 + $0x1fe8] sm:$0xf] }
 0x21d   :  { %7870 = vmatpush.bf16.msra.mxu1 %v12200_v50  ;;  %v13063_v50 = vld [vmem:[%s21945_s1 + $0x2078] sm:$0xf]  ;;  %v14587_v5 = vld [vmem:[%s21945_s1 + $0x21ac] sm:$0xf0] }
 0x21e   :  { %7883 = vmatpush.bf16.msra.mxu2 %v12392_v17  ;;  %v13472_v17 = vor.u32 %v14653_v14, %v13471_v10  ;;  %v13064_v27 = vor.u32 %v14551_v11, %v13063_v50  ;;  %v14635_v10 = vld [vmem:[%s21945_s1 + $0x232c] sm:$0xf0]  ;;  %v14533_v11 = vld [vmem:[%s21945_s1 + $0x1ffc] sm:$0xf0] }
 0x21f   :  { %7896 = vmatpush.bf16.msra.mxu3 %v12584_v24  ;;  %v13447_v24 = vld [vmem:[%s21945_s1 + $0x2378] sm:$0xf] }
 0x220   :  { %7858 = vmatpush.bf16.msra.mxu0 %v11984_v48  ;;  %v13448_v47 = vor.u32 %v14647_v26, %v13447_v24  ;;  %v14545_v48 = vld [vmem:[%s21945_s1 + $0x205c] sm:$0xf0]  ;;  %v7652_v56 = vpop.f32.mrf.mxu0 }
 0x221   :  { %7871 = vmatpush.bf16.msra.mxu1 %v12176_v39  ;;  %v14641_v39 = vld [vmem:[%s21945_s1 + $0x235c] sm:$0xf0]  ;;  %v13040_v58 = vor.u32 %v14545_v48, %v13039_v43  ;;  %v7665_v1 = vpop.f32.mrf.mxu1  ;;  %v12992_v43 = vor.u32 %v14533_v11, %v12991_v63  ;;  %v12775_v48 = vld [vmem:[%s21945_s1 + $0x1e38] sm:$0xf]  ;;  %v9081_v63 = vld [vmem:[%s21945_s1 + $0x170] sm:$0xf0] }
 0x222   :  { %7884 = vmatpush.bf16.msra.mxu2 %v12368_v55  ;;  %v12848_v55 = vor.u32 %v14497_v40, %v12847_v32  ;;  %v13424_v61 = vor.u32 %v14641_v39, %v13423_v54  ;;  %v7666_v34 = vadd.f32 %v7665_v1, %v7652_v56  ;;  %v13159_v56 = vld [vmem:[%s21945_s1 + $0x2138] sm:$0xf]  ;;  %v14473_v1 = vld [vmem:[%s21945_s1 + $0x1e1c] sm:$0xf0]  ;;  %v9273_v11 = vld [vmem:[%s21945_s1 + $0x2f0] sm:$0xf0] }
 0x223   :  { %7897 = vmatpush.bf16.msra.mxu3 %v12560_v59  ;;  %7859 = vmatmul.bf16.vlgmr.msra.gmra.mxu0 %v15747_v37  ;;  %v13232_v59 = vor.u32 %v14593_v53, %v13231_v18  ;;  %v14479_v18 = vld [vmem:[%s21945_s1 + $0x1e4c] sm:$0xf0]  ;;  %v12967_v53 = vld [vmem:[%s21945_s1 + $0x1fb8] sm:$0xf] }
 0x224   :  { %7903 = vmatpush.bf16.msrb.mxu0 %v12920_v0  ;;  %7872 = vmatmul.bf16.vlgmr.msra.gmra.mxu1 %v15760_v46  ;;  %v12823_v0 = vld [vmem:[%s21945_s1 + $0x1e98] sm:$0xf] }
 0x225   :  { %7916 = vmatpush.bf16.msrb.mxu1 %v13112_v52  ;;  %7885 = vmatmul.bf16.vlgmr.msra.gmra.mxu2 %v15758_v45  ;;  %v14491_v52 = vld [vmem:[%s21945_s1 + $0x1eac] sm:$0xf0] }
 0x226   :  { %7929 = vmatpush.bf16.msrb.mxu2 %v13304_v60  ;;  %7898 = vmatmul.bf16.vlgmr.msra.gmra.mxu3 %v15768_v49  ;;  %v13015_v60 = vld [vmem:[%s21945_s1 + $0x2018] sm:$0xf]  ;;  %v12824_v14 = vor.u32 %v14491_v52, %v12823_v0  ;;  %v14623_v0 = vld [vmem:[%s21945_s1 + $0x22cc] sm:$0xf0]  ;;  %v12776_v52 = vor.u32 %v14479_v18, %v12775_v48  ;;  %v13546_v48 = vld [vmem:[%s21945_s1 + $0x12c] sm:$0xf] }
 0x227   :  { %7942 = vmatpush.bf16.msrb.mxu3 %v13496_v3  ;;  %v13207_v3 = vld [vmem:[%s21945_s1 + $0x2198] sm:$0xf]  ;;  %v9057_v18 = vld [vmem:[%s21945_s1 + $0x140] sm:$0xf0] }
 0x228   :  { %7904 = vmatpush.bf16.msrb.mxu0 %v12896_v51  ;;  %v13016_v51 = vor.u32 %v14539_v2, %v13015_v60  ;;  %v7678_v50 = vpop.f32.mrf.mxu2  ;;  %v7654_v40 = vpop.f32.mrf.mxu0  ;;  %v12751_v60 = vld [vmem:[%s21945_s1 + $0x1e08] sm:$0xf] }
 0x229   :  { %7917 = vmatpush.bf16.msrb.mxu1 %v13088_v57  ;;  %v13208_v57 = vor.u32 %v14587_v5, %v13207_v3  ;;  %v7679_v24 = vadd.f32 %v7678_v50, %v7666_v34  ;;  %v7691_v26 = vpop.f32.mrf.mxu3  ;;  %v7667_v54 = vpop.f32.mrf.mxu1  ;;  %v12943_v3 = vld [vmem:[%s21945_s1 + $0x1f88] sm:$0xf]  ;;  %v14521_v5 = vld [vmem:[%s21945_s1 + $0x1f9c] sm:$0xf0]  ;;  %v13600_v50 = vld [vmem:[%s21945_s1 + $0x2dc] sm:$0xf] }
 0x22a   :  { %7930 = vmatpush.bf16.msrb.mxu2 %v13280_v22  ;;  %v12799_v22 = vld [vmem:[%s21945_s1 + $0x1e68] sm:$0xf] }
 0x22b   :  { %7943 = vmatpush.bf16.msrb.mxu3 %v13472_v17  ;;  %v13400_v17 = vor.u32 %v14635_v10, %v13399_v9  ;;  %v18290_v32 = vadd.f32 %v7691_v26, %v7679_v24  ;;  %v13135_v34 = vld [vmem:[%s21945_s1 + $0x2108] sm:$0xf]  ;;  %v12944_v24 = vor.u32 %v14521_v5, %v12943_v3  ;;  %v9225_v5 = vld [vmem:[%s21945_s1 + $0x290] sm:$0xf0] }
 0x22c   :  { %7905 = vmatpush.bf16.msrb.mxu0 %v12872_v36  ;;  %v13375_v36 = vld [vmem:[%s21945_s1 + $0x22e8] sm:$0xf] }
 0x22d   :  { %7918 = vmatpush.bf16.msrb.mxu1 %v13064_v27  ;;  %v14629_v27 = vld [vmem:[%s21945_s1 + $0x22fc] sm:$0xf0] }
 0x22e   :  { %7931 = vmatpush.bf16.msrb.mxu2 %v13256_v62  ;;  %v12800_v62 = vor.u32 %v14485_v15, %v12799_v22  ;;  %v13376_v39 = vor.u32 %v14629_v27, %v13375_v36  ;;  %v13552_v15 = vld [vmem:[%s21945_s1 + $0x15c] sm:$0xf]  ;;  %v9657_v27 = vld [vmem:[%s21945_s1 + $0x5f0] sm:$0xf0] }
 0x22f   :  { %7944 = vmatpush.bf16.msrb.mxu3 %v13448_v47  ;;  %v13184_v47 = vor.u32 %v14581_v7, %v13183_v19  ;;  %v13648_v19 = vld [vmem:[%s21945_s1 + $0x45c] sm:$0xf]  ;;  %v9465_v7 = vld [vmem:[%s21945_s1 + $0x470] sm:$0xf0]  ;;  %v9084_v40 = vor.u32 %v13552_v15, %v9081_v63  ;;  %v13534_v15 = vld [vmem:[%s21945_s1 + $0xcc] sm:$0xf] }
 0x230   :  { %7906 = vmatpush.bf16.msrb.mxu0 %v12848_v55  ;;  %v14527_v55 = vld [vmem:[%s21945_s1 + $0x1fcc] sm:$0xf0]  ;;  %v7680_v9 = vpop.f32.mrf.mxu2  ;;  %v13696_v36 = vld [vmem:[%s21945_s1 + $0x5dc] sm:$0xf]  ;;  %v9009_v63 = vld [vmem:[%s21945_s1 + $0xe0] sm:$0xf0] }
 0x231   :  { %7919 = vmatpush.bf16.msrb.mxu1 %v13040_v58  ;;  %v14575_v58 = vld [vmem:[%s21945_s1 + $0x214c] sm:$0xf0]  ;;  %v7693_v22 = vpop.f32.mrf.mxu3  ;;  %v9660_v54 = vor.u32 %v13696_v36, %v9657_v27  ;;  %v9417_v9 = vld [vmem:[%s21945_s1 + $0x410] sm:$0xf0]  ;;  %v9012_v36 = vor.u32 %v13534_v15, %v9009_v63 }
 0x232   :  { %7932 = vmatpush.bf16.msrb.mxu2 %v13232_v59  ;;  %v13351_v59 = vld [vmem:[%s21945_s1 + $0x22b8] sm:$0xf]  ;;  %v13160_v2 = vor.u32 %v14575_v58, %v13159_v56  ;;  %v9441_v56 = vld [vmem:[%s21945_s1 + $0x440] sm:$0xf0]  ;;  %v13690_v58 = vld [vmem:[%s21945_s1 + $0x5ac] sm:$0xf] }
 0x233   :  { %7945 = vmatpush.bf16.msrb.mxu3 %v13424_v61  ;;  %v12968_v61 = vor.u32 %v14527_v55, %v12967_v53  ;;  %v13352_v10 = vor.u32 %v14623_v0, %v13351_v59  ;;  %v13594_v53 = vld [vmem:[%s21945_s1 + $0x2ac] sm:$0xf]  ;;  %v9633_v59 = vld [vmem:[%s21945_s1 + $0x5c0] sm:$0xf0]  ;;  %v9060_v0 = vor.u32 %v13546_v48, %v9057_v18  ;;  %v13576_v48 = vld [vmem:[%s21945_s1 + $0x21c] sm:$0xf] }
 0x234   :  { %7907 = vmatpush.bf16.msrb.mxu0 %v12824_v14  ;;  %v14569_v14 = vld [vmem:[%s21945_s1 + $0x211c] sm:$0xf0]  ;;  %v13642_v55 = vld [vmem:[%s21945_s1 + $0x42c] sm:$0xf]  ;;  %v9636_v3 = vor.u32 %v13690_v58, %v9633_v59  ;;  %v13672_v58 = vld [vmem:[%s21945_s1 + $0x51c] sm:$0xf] }
 0x235   :  { %7920 = vmatpush.bf16.msrb.mxu1 %v13016_v51  ;;  %v13327_v51 = vld [vmem:[%s21945_s1 + $0x2288] sm:$0xf]  ;;  %v13136_v26 = vor.u32 %v14569_v14, %v13135_v34  ;;  %v13636_v34 = vld [vmem:[%s21945_s1 + $0x3fc] sm:$0xf]  ;;  %v9609_v14 = vld [vmem:[%s21945_s1 + $0x590] sm:$0xf0] }
 0x236   :  { %7933 = vmatpush.bf16.msrb.mxu2 %v13208_v57  ;;  %v14617_v57 = vld [vmem:[%s21945_s1 + $0x229c] sm:$0xf0]  ;;  %v9420_v22 = vor.u32 %v13636_v34, %v9417_v9  ;;  %v9153_v34 = vld [vmem:[%s21945_s1 + $0x200] sm:$0xf0]  ;;  %v13618_v9 = vld [vmem:[%s21945_s1 + $0x36c] sm:$0xf] }
 0x237   :  { %7946 = vmatpush.bf16.msrb.mxu3 %v13400_v17  ;;  %v12752_v17 = vor.u32 %v14473_v1, %v12751_v60  ;;  %v9444_v60 = vor.u32 %v13642_v55, %v9441_v56  ;;  %v13540_v1 = vld [vmem:[%s21945_s1 + $0xfc] sm:$0xf]  ;;  %v9369_v56 = vld [vmem:[%s21945_s1 + $0x3b0] sm:$0xf0] }
 0x238   :  { %7908 = vmatpush.bf16.msrb.mxu0 %v12800_v62  ;;  %v13328_v62 = vor.u32 %v14617_v57, %v13327_v51  ;;  %v13624_v55 = vld [vmem:[%s21945_s1 + $0x39c] sm:$0xf] }
 0x239   :  { %7921 = vmatpush.bf16.msrb.mxu1 %v12992_v43  ;;  %v9276_v43 = vor.u32 %v13600_v50, %v9273_v11  ;;  %v13582_v50 = vld [vmem:[%s21945_s1 + $0x24c] sm:$0xf]  ;;  %v9201_v11 = vld [vmem:[%s21945_s1 + $0x260] sm:$0xf0] }
 0x23a   :  { %7934 = vmatpush.bf16.msrb.mxu2 %v13184_v47  ;;  %v9468_v47 = vor.u32 %v13648_v19, %v9465_v7  ;;  %v13630_v19 = vld [vmem:[%s21945_s1 + $0x3cc] sm:$0xf]  ;;  %v9393_v7 = vld [vmem:[%s21945_s1 + $0x3e0] sm:$0xf0] }
 0x23b   :  { %7947 = vmatpush.bf16.msrb.mxu3 %v13376_v39  ;;  %v9249_v39 = vld [vmem:[%s21945_s1 + $0x2c0] sm:$0xf0] }
 0x23c   :  { %7909 = vmatpush.bf16.msrb.mxu0 %v12776_v52  ;;  %v9252_v52 = vor.u32 %v13594_v53, %v9249_v39  ;;  %v9177_v39 = vld [vmem:[%s21945_s1 + $0x230] sm:$0xf0] }
 0x23d   :  { %7922 = vmatpush.bf16.msrb.mxu1 %v12968_v61  ;;  %v9033_v61 = vld [vmem:[%s21945_s1 + $0x110] sm:$0xf0] }
 0x23e   :  { %7935 = vmatpush.bf16.msrb.mxu2 %v13160_v2  ;;  %v13588_v2 = vld [vmem:[%s21945_s1 + $0x27c] sm:$0xf]  ;;  %v9036_v51 = vor.u32 %v13540_v1, %v9033_v61  ;;  %v13522_v1 = vld [vmem:[%s21945_s1 + $0x6c] sm:$0xf]  ;;  %v8961_v61 = vld [vmem:[%s21945_s1 + $0x80] sm:$0xf0] }
 0x23f   :  { %7948 = vmatpush.bf16.msrb.mxu3 %v13352_v10  ;;  %v13684_v10 = vld [vmem:[%s21945_s1 + $0x57c] sm:$0xf]  ;;  %v9228_v57 = vor.u32 %v13588_v2, %v9225_v5  ;;  %v13570_v2 = vld [vmem:[%s21945_s1 + $0x1ec] sm:$0xf]  ;;  %v8964_v15 = vor.u32 %v13522_v1, %v8961_v61 }
 0x240   :  { %7910 = vmatpush.bf16.msrb.mxu0 %v12752_v17  ;;  %v9612_v17 = vor.u32 %v13684_v10, %v9609_v14  ;;  %v7704_v27 = vpop.f32.mrf.mxu0  ;;  %v9345_v10 = vld [vmem:[%s21945_s1 + $0x380] sm:$0xf0]  ;;  %v13744_v61 = vld [vmem:[%s21945_s1 + $0x75c] sm:$0xf] }
 0x241   :  { %7923 = vmatpush.bf16.msrb.mxu1 %v12944_v24  ;;  %v13678_v24 = vld [vmem:[%s21945_s1 + $0x54c] sm:$0xf]  ;;  %v7705_v18 = vadd.f32 %v7704_v27, %v18290_v32  ;;  %v7717_v53 = vpop.f32.mrf.mxu1  ;;  %v9561_v32 = vld [vmem:[%s21945_s1 + $0x530] sm:$0xf0] }
 0x242   :  { %7936 = vmatpush.bf16.msrb.mxu2 %v13136_v26  ;;  %v9585_v26 = vld [vmem:[%s21945_s1 + $0x560] sm:$0xf0]  ;;  %v9564_v5 = vor.u32 %v13672_v58, %v9561_v32  ;;  %v9129_v27 = vld [vmem:[%s21945_s1 + $0x1d0] sm:$0xf0]  ;;  %v13606_v58 = vld [vmem:[%s21945_s1 + $0x30c] sm:$0xf] }
 0x243   :  { %7949 = vmatpush.bf16.msrb.mxu3 %v13328_v62  ;;  %7911 = vmatmul.bf16.vlgmr.msrb.gmra.mxu0 %v15959_v8  ;;  %v9204_v62 = vor.u32 %v13582_v50, %v9201_v11  ;;  %v7718_v59 = vadd.f32 %v7717_v53, %v7705_v18  ;;  %v9348_v11 = vor.u32 %v13618_v9, %v9345_v10  ;;  %v13510_v18 = vld [vmem:[%s21945_s1 + $0xc] sm:$0xf]  ;;  %v8913_v53 = vld [vmem:[%s21945_s1 + $0x20] sm:$0xf0]  ;;  %v13840_v9 = vld [vmem:[%s21945_s1 + $0xa5c] sm:$0xf] }
 0x244   :  { %7955 = vmatpush.bf16.msra.mxu0 %v9084_v40  ;;  %7924 = vmatmul.bf16.vlgmr.msrb.gmra.mxu1 %v15972_v13  ;;  %v9396_v40 = vor.u32 %v13630_v19, %v9393_v7  ;;  %v13516_v19 = vld [vmem:[%s21945_s1 + $0x3c] sm:$0xf]  ;;  %v8937_v7 = vld [vmem:[%s21945_s1 + $0x50] sm:$0xf0] }
 0x245   :  { %7968 = vmatpush.bf16.msra.mxu1 %v9276_v43  ;;  %7937 = vmatmul.bf16.vlgmr.msrb.gmra.mxu2 %v15970_v12  ;;  %v13528_v43 = vld [vmem:[%s21945_s1 + $0x9c] sm:$0xf]  ;;  %v10233_v10 = vld [vmem:[%s21945_s1 + $0xa70] sm:$0xf0] }
 0x246   :  { %7981 = vmatpush.bf16.msra.mxu2 %v9468_v47  ;;  %7950 = vmatmul.bf16.vlgmr.msrb.gmra.mxu3 %v15980_v16  ;;  %v8985_v47 = vld [vmem:[%s21945_s1 + $0xb0] sm:$0xf0] }
 0x247   :  { %7994 = vmatpush.bf16.msra.mxu3 %v9660_v54  ;;  %v9588_v54 = vor.u32 %v13678_v24, %v9585_v26  ;;  %v13564_v24 = vld [vmem:[%s21945_s1 + $0x1bc] sm:$0xf] }
 0x248   :  { %7956 = vmatpush.bf16.msra.mxu0 %v9060_v0  ;;  %v8988_v0 = vor.u32 %v13528_v43, %v8985_v47  ;;  %v7706_v50 = vpop.f32.mrf.mxu0  ;;  %v13660_v43 = vld [vmem:[%s21945_s1 + $0x4bc] sm:$0xf]  ;;  %v9513_v47 = vld [vmem:[%s21945_s1 + $0x4d0] sm:$0xf0] }
 0x249   :  { %7969 = vmatpush.bf16.msra.mxu1 %v9252_v52  ;;  %v9180_v52 = vor.u32 %v13576_v48, %v9177_v39  ;;  %v7719_v26 = vpop.f32.mrf.mxu1  ;;  %v8940_v48 = vor.u32 %v13516_v19, %v8937_v7  ;;  %v13738_v19 = vld [vmem:[%s21945_s1 + $0x72c] sm:$0xf]  ;;  %v9825_v7 = vld [vmem:[%s21945_s1 + $0x740] sm:$0xf0] }
 0x24a   :  { %7982 = vmatpush.bf16.msra.mxu2 %v9444_v60  ;;  %v9372_v60 = vor.u32 %v13624_v55, %v9369_v56  ;;  %v13558_v55 = vld [vmem:[%s21945_s1 + $0x18c] sm:$0xf]  ;;  %v9105_v56 = vld [vmem:[%s21945_s1 + $0x1a0] sm:$0xf0] }
 0x24b   :  { %7995 = vmatpush.bf16.msra.mxu3 %v9636_v3  ;;  %v7730_v3 = vpop.f32.mrf.mxu2 }
 0x24c   :  { %7957 = vmatpush.bf16.msra.mxu0 %v9036_v51  ;;  %v7731_v14 = vadd.f32 %v7730_v3, %v7718_v59  ;;  %v7743_v51 = vpop.f32.mrf.mxu3  ;;  %v9516_v59 = vor.u32 %v13660_v43, %v9513_v47  ;;  %v13792_v3 = vld [vmem:[%s21945_s1 + $0x8dc] sm:$0xf]  ;;  %v10401_v43 = vld [vmem:[%s21945_s1 + $0xbc0] sm:$0xf0]  ;;  %v9828_v47 = vor.u32 %v13738_v19, %v9825_v7  ;;  %v9753_v7 = vld [vmem:[%s21945_s1 + $0x6b0] sm:$0xf0] }
 0x24d   :  { %7970 = vmatpush.bf16.msra.mxu1 %v9228_v57  ;;  %v13666_v57 = vld [vmem:[%s21945_s1 + $0x4ec] sm:$0xf]  ;;  %v13720_v19 = vld [vmem:[%s21945_s1 + $0x69c] sm:$0xf] }
 0x24e   :  { %7983 = vmatpush.bf16.msra.mxu2 %v9420_v22  ;;  %v9537_v22 = vld [vmem:[%s21945_s1 + $0x500] sm:$0xf0]  ;;  %v18489_v63 = vadd.f32 %v7743_v51, %v7731_v14  ;;  %v9108_v14 = vor.u32 %v13558_v55, %v9105_v56  ;;  %v9993_v56 = vld [vmem:[%s21945_s1 + $0x890] sm:$0xf0] }
 0x24f   :  { %7996 = vmatpush.bf16.msra.mxu3 %v9612_v17  ;;  %v9156_v17 = vor.u32 %v13570_v2, %v9153_v34  ;;  %v9849_v2 = vld [vmem:[%s21945_s1 + $0x770] sm:$0xf0] }
 0x250   :  { %7958 = vmatpush.bf16.msra.mxu0 %v9012_v36  ;;  %v9540_v36 = vor.u32 %v13666_v57, %v9537_v22  ;;  %v10041_v34 = vld [vmem:[%s21945_s1 + $0x8f0] sm:$0xf0]  ;;  %v13888_v57 = vld [vmem:[%s21945_s1 + $0xbdc] sm:$0xf]  ;;  %v9852_v50 = vor.u32 %v13744_v61, %v9849_v2  ;;  %v13726_v61 = vld [vmem:[%s21945_s1 + $0x6cc] sm:$0xf] }
 0x251   :  { %7971 = vmatpush.bf16.msra.mxu1 %v9204_v62  ;;  %v13612_v62 = vld [vmem:[%s21945_s1 + $0x33c] sm:$0xf]  ;;  %v10425_v22 = vld [vmem:[%s21945_s1 + $0xbf0] sm:$0xf0]  ;;  %v9777_v2 = vld [vmem:[%s21945_s1 + $0x6e0] sm:$0xf0] }
 0x252   :  { %7984 = vmatpush.bf16.msra.mxu2 %v9396_v40  ;;  %v9321_v40 = vld [vmem:[%s21945_s1 + $0x350] sm:$0xf0]  ;;  %v10428_v26 = vor.u32 %v13888_v57, %v10425_v22  ;;  %v10353_v57 = vld [vmem:[%s21945_s1 + $0xb60] sm:$0xf0] }
 0x253   :  { %7997 = vmatpush.bf16.msra.mxu3 %v9588_v54  ;;  %v9132_v54 = vor.u32 %v13564_v24, %v9129_v27  ;;  %v9324_v39 = vor.u32 %v13612_v62, %v9321_v40  ;;  %v7732_v32 = vpop.f32.mrf.mxu2  ;;  %v13786_v24 = vld [vmem:[%s21945_s1 + $0x8ac] sm:$0xf]  ;;  %v10209_v62 = vld [vmem:[%s21945_s1 + $0xa40] sm:$0xf0] }
 0x254   :  { %7959 = vmatpush.bf16.msra.mxu0 %v8988_v0  ;;  %v9297_v0 = vld [vmem:[%s21945_s1 + $0x320] sm:$0xf0]  ;;  %v7745_v1 = vpop.f32.mrf.mxu3  ;;  %v13834_v27 = vld [vmem:[%s21945_s1 + $0xa2c] sm:$0xf]  ;;  %v10185_v32 = vld [vmem:[%s21945_s1 + $0xa10] sm:$0xf0] }
 0x255   :  { %7972 = vmatpush.bf16.msra.mxu1 %v9180_v52  ;;  %v13654_v52 = vld [vmem:[%s21945_s1 + $0x48c] sm:$0xf]  ;;  %v9300_v51 = vor.u32 %v13606_v58, %v9297_v0  ;;  %v13828_v58 = vld [vmem:[%s21945_s1 + $0x9fc] sm:$0xf]  ;;  %v10377_v0 = vld [vmem:[%s21945_s1 + $0xb90] sm:$0xf0] }
 0x256   :  { %7985 = vmatpush.bf16.msra.mxu2 %v9372_v60  ;;  %v9489_v60 = vld [vmem:[%s21945_s1 + $0x4a0] sm:$0xf0]  ;;  %v13882_v40 = vld [vmem:[%s21945_s1 + $0xbac] sm:$0xf]  ;;  %v10188_v1 = vor.u32 %v13828_v58, %v10185_v32 }
 0x257   :  { %7998 = vmatpush.bf16.msra.mxu3 %v9564_v5  ;;  %v8916_v5 = vor.u32 %v13510_v18, %v8913_v53  ;;  %v10212_v18 = vor.u32 %v13834_v27, %v10209_v62  ;;  %v13732_v53 = vld [vmem:[%s21945_s1 + $0x6fc] sm:$0xf]  ;;  %v10404_v55 = vor.u32 %v13882_v40, %v10401_v43  ;;  %v10137_v62 = vld [vmem:[%s21945_s1 + $0x9b0] sm:$0xf0]  ;;  %v9921_v58 = vld [vmem:[%s21945_s1 + $0x800] sm:$0xf0] }
 0x258   :  { %7960 = vmatpush.bf16.msra.mxu0 %v8964_v15  ;;  %v9492_v15 = vor.u32 %v13654_v52, %v9489_v60  ;;  %v13816_v27 = vld [vmem:[%s21945_s1 + $0x99c] sm:$0xf]  ;;  %v10329_v43 = vld [vmem:[%s21945_s1 + $0xb30] sm:$0xf0]  ;;  %v13810_v32 = vld [vmem:[%s21945_s1 + $0x96c] sm:$0xf] }
 0x259   :  { %7973 = vmatpush.bf16.msra.mxu1 %v9156_v17  ;;  %v10044_v17 = vor.u32 %v13792_v3, %v10041_v34  ;;  %v13774_v3 = vld [vmem:[%s21945_s1 + $0x84c] sm:$0xf]  ;;  %v9969_v34 = vld [vmem:[%s21945_s1 + $0x860] sm:$0xf0]  ;;  %v13864_v40 = vld [vmem:[%s21945_s1 + $0xb1c] sm:$0xf] }
 0x25a   :  { %7986 = vmatpush.bf16.msra.mxu2 %v9348_v11  ;;  %v10236_v11 = vor.u32 %v13840_v9, %v10233_v10  ;;  %v13822_v9 = vld [vmem:[%s21945_s1 + $0x9cc] sm:$0xf]  ;;  %v10161_v10 = vld [vmem:[%s21945_s1 + $0x9e0] sm:$0xf0] }
 0x25b   :  { %7999 = vmatpush.bf16.msra.mxu3 %v9540_v36  ;;  %v10017_v36 = vld [vmem:[%s21945_s1 + $0x8c0] sm:$0xf0] }
 0x25c   :  { %7961 = vmatpush.bf16.msra.mxu0 %v8940_v48  ;;  %v10020_v48 = vor.u32 %v13786_v24, %v10017_v36  ;;  %v13768_v24 = vld [vmem:[%s21945_s1 + $0x81c] sm:$0xf]  ;;  %v9945_v36 = vld [vmem:[%s21945_s1 + $0x830] sm:$0xf0] }
 0x25d   :  { %7974 = vmatpush.bf16.msra.mxu1 %v9132_v54  ;;  %v9801_v54 = vld [vmem:[%s21945_s1 + $0x710] sm:$0xf0] }
 0x25e   :  { %7987 = vmatpush.bf16.msra.mxu2 %v9324_v39  ;;  %v13780_v39 = vld [vmem:[%s21945_s1 + $0x87c] sm:$0xf]  ;;  %v9804_v52 = vor.u32 %v13732_v53, %v9801_v54  ;;  %v13714_v53 = vld [vmem:[%s21945_s1 + $0x66c] sm:$0xf]  ;;  %v9729_v54 = vld [vmem:[%s21945_s1 + $0x680] sm:$0xf0] }
 0x25f   :  { %8000 = vmatpush.bf16.msra.mxu3 %v9516_v59  ;;  %v13876_v59 = vld [vmem:[%s21945_s1 + $0xb7c] sm:$0xf]  ;;  %v9996_v60 = vor.u32 %v13780_v39, %v9993_v56  ;;  %v13762_v39 = vld [vmem:[%s21945_s1 + $0x7ec] sm:$0xf] }
 0x260   :  { %7962 = vmatpush.bf16.msra.mxu0 %v8916_v5  ;;  %v10380_v5 = vor.u32 %v13876_v59, %v10377_v0  ;;  %v10113_v59 = vld [vmem:[%s21945_s1 + $0x980] sm:$0xf0] }
 0x261   :  { %7975 = vmatpush.bf16.msra.mxu1 %v9108_v14  ;;  %v7756_v14 = vpop.f32.mrf.mxu0 }
 0x262   :  { %7988 = vmatpush.bf16.msra.mxu2 %v9300_v51  ;;  %v13870_v51 = vld [vmem:[%s21945_s1 + $0xb4c] sm:$0xf]  ;;  %v7757_v22 = vadd.f32 %v7756_v14, %v18489_v63  ;;  %v9705_v14 = vld [vmem:[%s21945_s1 + $0x650] sm:$0xf0] }
 0x263   :  { %8001 = vmatpush.bf16.msra.mxu3 %v9492_v15  ;;  %7963 = vmatmul.bf16.vlgmr.msra.gmra.mxu0 %v14975_v20  ;;  %v9780_v15 = vor.u32 %v13726_v61, %v9777_v2  ;;  %v10356_v63 = vor.u32 %v13870_v51, %v10353_v57  ;;  %v9732_v2 = vor.u32 %v13714_v53, %v9729_v54  ;;  %v13756_v51 = vld [vmem:[%s21945_s1 + $0x7bc] sm:$0xf]  ;;  %v10617_v54 = vld [vmem:[%s21945_s1 + $0xd70] sm:$0xf0] }
 0x264   :  { %8007 = vmatpush.bf16.msrb.mxu0 %v9852_v50  ;;  %7976 = vmatmul.bf16.vlgmr.msra.gmra.mxu1 %v14978_v21  ;;  %v7769_v50 = vpop.f32.mrf.mxu1  ;;  %v13936_v53 = vld [vmem:[%s21945_s1 + $0xd5c] sm:$0xf] }
 0x265   :  { %8020 = vmatpush.bf16.msrb.mxu1 %v10044_v17  ;;  %7989 = vmatmul.bf16.vlgmr.msra.gmra.mxu2 %v14943_v4  ;;  %v9972_v17 = vor.u32 %v13774_v3, %v9969_v34  ;;  %v9924_v34 = vor.u32 %v13762_v39, %v9921_v58  ;;  %v13984_v39 = vld [vmem:[%s21945_s1 + $0xedc] sm:$0xf]  ;;  %v10809_v58 = vld [vmem:[%s21945_s1 + $0xef0] sm:$0xf0] }
 0x266   :  { %8033 = vmatpush.bf16.msrb.mxu2 %v10236_v11  ;;  %8002 = vmatmul.bf16.vlgmr.msra.gmra.mxu3 %v14948_v6  ;;  %v10164_v11 = vor.u32 %v13822_v9, %v10161_v10  ;;  %v10116_v9 = vor.u32 %v13810_v32, %v10113_v59  ;;  %v13708_v10 = vld [vmem:[%s21945_s1 + $0x63c] sm:$0xf]  ;;  %v11001_v59 = vld [vmem:[%s21945_s1 + $0x1070] sm:$0xf0] }
 0x267   :  { %8046 = vmatpush.bf16.msrb.mxu3 %v10428_v26  ;;  %v7770_v26 = vadd.f32 %v7769_v50, %v7757_v22  ;;  %v9897_v22 = vld [vmem:[%s21945_s1 + $0x7d0] sm:$0xf0]  ;;  %v14032_v32 = vld [vmem:[%s21945_s1 + $0x105c] sm:$0xf] }
 0x268   :  { %8008 = vmatpush.bf16.msrb.mxu0 %v9828_v47  ;;  %v9756_v47 = vor.u32 %v13720_v19, %v9753_v7  ;;  %v7782_v56 = vpop.f32.mrf.mxu2  ;;  %v10089_v50 = vld [vmem:[%s21945_s1 + $0x950] sm:$0xf0]  ;;  %v9708_v19 = vor.u32 %v13708_v10, %v9705_v14  ;;  %v13702_v7 = vld [vmem:[%s21945_s1 + $0x60c] sm:$0xf]  ;;  %v10593_v10 = vld [vmem:[%s21945_s1 + $0xd40] sm:$0xf0] }
 0x269   :  { %8021 = vmatpush.bf16.msrb.mxu1 %v10020_v48  ;;  %v9948_v48 = vor.u32 %v13768_v24, %v9945_v36  ;;  %v7783_v0 = vadd.f32 %v7782_v56, %v7770_v26  ;;  %v7758_v61 = vpop.f32.mrf.mxu0  ;;  %v9681_v24 = vld [vmem:[%s21945_s1 + $0x620] sm:$0xf0]  ;;  %v13750_v36 = vld [vmem:[%s21945_s1 + $0x78c] sm:$0xf] }
 0x26a   :  { %8034 = vmatpush.bf16.msrb.mxu2 %v10212_v18  ;;  %v10140_v18 = vor.u32 %v13816_v27, %v10137_v62  ;;  %v9873_v27 = vld [vmem:[%s21945_s1 + $0x7a0] sm:$0xf0]  ;;  %v13798_v62 = vld [vmem:[%s21945_s1 + $0x90c] sm:$0xf]  ;;  %v9684_v56 = vor.u32 %v13702_v7, %v9681_v24  ;;  %v13924_v24 = vld [vmem:[%s21945_s1 + $0xcfc] sm:$0xf] }
 0x26b   :  { %8047 = vmatpush.bf16.msrb.mxu3 %v10404_v55  ;;  %v10332_v55 = vor.u32 %v13864_v40, %v10329_v43  ;;  %v10065_v43 = vld [vmem:[%s21945_s1 + $0x920] sm:$0xf0]  ;;  %v13978_v14 = vld [vmem:[%s21945_s1 + $0xeac] sm:$0xf] }
 0x26c   :  { %8009 = vmatpush.bf16.msrb.mxu0 %v9804_v52  ;;  %v7795_v52 = vpop.f32.mrf.mxu3  ;;  %v7771_v3 = vpop.f32.mrf.mxu1 }
 0x26d   :  { %8022 = vmatpush.bf16.msrb.mxu1 %v9996_v60  ;;  %v13858_v60 = vld [vmem:[%s21945_s1 + $0xaec] sm:$0xf]  ;;  %v10812_v3 = vor.u32 %v13984_v39, %v10809_v58  ;;  %v10545_v39 = vld [vmem:[%s21945_s1 + $0xce0] sm:$0xf0] }
 0x26e   :  { %8035 = vmatpush.bf16.msrb.mxu2 %v10188_v1  ;;  %v10305_v1 = vld [vmem:[%s21945_s1 + $0xb00] sm:$0xf0] }
 0x26f   :  { %8048 = vmatpush.bf16.msrb.mxu3 %v10380_v5  ;;  %v18688_v5 = vadd.f32 %v7795_v52, %v7783_v0  ;;  %v10308_v57 = vor.u32 %v13858_v60, %v10305_v1  ;;  %v9876_v0 = vor.u32 %v13750_v36, %v9873_v27  ;;  %v10068_v52 = vor.u32 %v13798_v62, %v10065_v43  ;;  %v14080_v60 = vld [vmem:[%s21945_s1 + $0x11dc] sm:$0xf]  ;;  %v11193_v1 = vld [vmem:[%s21945_s1 + $0x11f0] sm:$0xf0]  ;;  %v10737_v58 = vld [vmem:[%s21945_s1 + $0xe60] sm:$0xf0] }
 0x270   :  { %8010 = vmatpush.bf16.msrb.mxu0 %v9780_v15  ;;  %v13804_v15 = vld [vmem:[%s21945_s1 + $0x93c] sm:$0xf]  ;;  %v10761_v27 = vld [vmem:[%s21945_s1 + $0xe90] sm:$0xf0] }
 0x271   :  { %8023 = vmatpush.bf16.msrb.mxu1 %v9972_v17  ;;  %v13852_v17 = vld [vmem:[%s21945_s1 + $0xabc] sm:$0xf]  ;;  %v10092_v26 = vor.u32 %v13804_v15, %v10089_v50  ;;  %v10977_v15 = vld [vmem:[%s21945_s1 + $0x1040] sm:$0xf0]  ;;  %v14074_v50 = vld [vmem:[%s21945_s1 + $0x11ac] sm:$0xf] }
 0x272   :  { %8036 = vmatpush.bf16.msrb.mxu2 %v10164_v11  ;;  %v10281_v11 = vld [vmem:[%s21945_s1 + $0xad0] sm:$0xf0]  ;;  %v14020_v62 = vld [vmem:[%s21945_s1 + $0xffc] sm:$0xf] }
 0x273   :  { %8049 = vmatpush.bf16.msrb.mxu3 %v10356_v63  ;;  %v9900_v63 = vor.u32 %v13756_v51, %v9897_v22  ;;  %v10284_v40 = vor.u32 %v13852_v17, %v10281_v11  ;;  %v11196_v51 = vor.u32 %v14080_v60, %v11193_v1  ;;  %v14026_v22 = vld [vmem:[%s21945_s1 + $0x102c] sm:$0xf]  ;;  %v11169_v17 = vld [vmem:[%s21945_s1 + $0x11c0] sm:$0xf0]  ;;  %v14068_v43 = vld [vmem:[%s21945_s1 + $0x117c] sm:$0xf] }
 0x274   :  { %8011 = vmatpush.bf16.msrb.mxu0 %v9756_v47  ;;  %v13846_v47 = vld [vmem:[%s21945_s1 + $0xa8c] sm:$0xf]  ;;  %v10980_v7 = vor.u32 %v14026_v22, %v10977_v15  ;;  %v11172_v36 = vor.u32 %v14074_v50, %v11169_v17  ;;  %v11121_v60 = vld [vmem:[%s21945_s1 + $0x1160] sm:$0xf0]  ;;  %v14008_v22 = vld [vmem:[%s21945_s1 + $0xf9c] sm:$0xf] }
 0x275   :  { %8024 = vmatpush.bf16.msrb.mxu1 %v9948_v48  ;;  %v10257_v48 = vld [vmem:[%s21945_s1 + $0xaa0] sm:$0xf0]  ;;  %v10905_v15 = vld [vmem:[%s21945_s1 + $0xfb0] sm:$0xf0]  ;;  %v14056_v50 = vld [vmem:[%s21945_s1 + $0x111c] sm:$0xf] }
 0x276   :  { %8037 = vmatpush.bf16.msrb.mxu2 %v10140_v18  ;;  %v7784_v18 = vpop.f32.mrf.mxu2  ;;  %v10260_v61 = vor.u32 %v13846_v47, %v10257_v48  ;;  %v11145_v47 = vld [vmem:[%s21945_s1 + $0x1190] sm:$0xf0] }
 0x277   :  { %8050 = vmatpush.bf16.msrb.mxu3 %v10332_v55  ;;  %v7797_v55 = vpop.f32.mrf.mxu3  ;;  %v11097_v17 = vld [vmem:[%s21945_s1 + $0x1130] sm:$0xf0] }
 0x278   :  { %8012 = vmatpush.bf16.msrb.mxu0 %v9732_v2  ;;  %v10620_v2 = vor.u32 %v13936_v53, %v10617_v54  ;;  %v13918_v54 = vld [vmem:[%s21945_s1 + $0xccc] sm:$0xf] }
 0x279   :  { %8025 = vmatpush.bf16.msrb.mxu1 %v9924_v34  ;;  %v11004_v34 = vor.u32 %v14032_v32, %v11001_v59  ;;  %v13966_v55 = vld [vmem:[%s21945_s1 + $0xe4c] sm:$0xf]  ;;  %v10929_v59 = vld [vmem:[%s21945_s1 + $0xfe0] sm:$0xf0] }
 0x27a   :  { %8038 = vmatpush.bf16.msrb.mxu2 %v10116_v9  ;;  %v13930_v9 = vld [vmem:[%s21945_s1 + $0xd2c] sm:$0xf] }
 0x27b   :  { %8051 = vmatpush.bf16.msrb.mxu3 %v10308_v57  ;;  %v10785_v57 = vld [vmem:[%s21945_s1 + $0xec0] sm:$0xf0]  ;;  %v10596_v11 = vor.u32 %v13930_v9, %v10593_v10  ;;  %v14014_v32 = vld [vmem:[%s21945_s1 + $0xfcc] sm:$0xf]  ;;  %v13912_v9 = vld [vmem:[%s21945_s1 + $0xc9c] sm:$0xf] }
 0x27c   :  { %8013 = vmatpush.bf16.msrb.mxu0 %v9708_v19  ;;  %v10788_v19 = vor.u32 %v13978_v14, %v10785_v57  ;;  %v10521_v10 = vld [vmem:[%s21945_s1 + $0xcb0] sm:$0xf0]  ;;  %v13960_v14 = vld [vmem:[%s21945_s1 + $0xe1c] sm:$0xf] }
 0x27d   :  { %8026 = vmatpush.bf16.msrb.mxu1 %v9900_v63  ;;  %v10569_v63 = vld [vmem:[%s21945_s1 + $0xd10] sm:$0xf0] }
 0x27e   :  { %8039 = vmatpush.bf16.msrb.mxu2 %v10092_v26  ;;  %v13972_v26 = vld [vmem:[%s21945_s1 + $0xe7c] sm:$0xf]  ;;  %v10572_v48 = vor.u32 %v13924_v24, %v10569_v63  ;;  %v10713_v57 = vld [vmem:[%s21945_s1 + $0xe30] sm:$0xf0]  ;;  %v13906_v24 = vld [vmem:[%s21945_s1 + $0xc6c] sm:$0xf] }
 0x27f   :  { %8052 = vmatpush.bf16.msrb.mxu3 %v10284_v40  ;;  %v10953_v40 = vld [vmem:[%s21945_s1 + $0x1010] sm:$0xf0]  ;;  %v10764_v18 = vor.u32 %v13972_v26, %v10761_v27  ;;  %v10497_v63 = vld [vmem:[%s21945_s1 + $0xc80] sm:$0xf0]  ;;  %v13954_v26 = vld [vmem:[%s21945_s1 + $0xdec] sm:$0xf] }
 0x280   :  { %8014 = vmatpush.bf16.msrb.mxu0 %v9684_v56  ;;  %v10956_v53 = vor.u32 %v14020_v62, %v10953_v40  ;;  %v11148_v56 = vor.u32 %v14068_v43, %v11145_v47  ;;  %v10689_v62 = vld [vmem:[%s21945_s1 + $0xe00] sm:$0xf0]  ;;  %v14002_v40 = vld [vmem:[%s21945_s1 + $0xf6c] sm:$0xf] }
 0x281   :  { %8027 = vmatpush.bf16.msrb.mxu1 %v9876_v0  ;;  %v7808_v0 = vpop.f32.mrf.mxu0  ;;  %v10881_v43 = vld [vmem:[%s21945_s1 + $0xf80] sm:$0xf0] }
 0x282   :  { %8040 = vmatpush.bf16.msrb.mxu2 %v10068_v52  ;;  %v14062_v52 = vld [vmem:[%s21945_s1 + $0x114c] sm:$0xf]  ;;  %v7809_v1 = vadd.f32 %v7808_v0, %v18688_v5  ;;  %v10473_v0 = vld [vmem:[%s21945_s1 + $0xc50] sm:$0xf0] }
 0x283   :  { %8053 = vmatpush.bf16.msrb.mxu3 %v10260_v61  ;;  %8015 = vmatmul.bf16.vlgmr.msrb.gmra.mxu0 %v15134_v41  ;;  %v10548_v61 = vor.u32 %v13918_v54, %v10545_v39  ;;  %v11124_v5 = vor.u32 %v14062_v52, %v11121_v60  ;;  %v10500_v39 = vor.u32 %v13906_v24, %v10497_v63  ;;  %v13948_v52 = vld [vmem:[%s21945_s1 + $0xdbc] sm:$0xf]  ;;  %v11385_v63 = vld [vmem:[%s21945_s1 + $0x1370] sm:$0xf0] }
 0x284   :  { %8059 = vmatpush.bf16.msra.mxu0 %v10620_v2  ;;  %8028 = vmatmul.bf16.vlgmr.msrb.gmra.mxu1 %v15138_v44  ;;  %v7821_v2 = vpop.f32.mrf.mxu1  ;;  %v14128_v24 = vld [vmem:[%s21945_s1 + $0x135c] sm:$0xf] }
 0x285   :  { %8072 = vmatpush.bf16.msra.mxu1 %v10812_v3  ;;  %8041 = vmatmul.bf16.vlgmr.msrb.gmra.mxu2 %v15126_v38  ;;  %v10740_v3 = vor.u32 %v13966_v55, %v10737_v58  ;;  %v10692_v58 = vor.u32 %v13954_v26, %v10689_v62  ;;  %v14176_v26 = vld [vmem:[%s21945_s1 + $0x14dc] sm:$0xf]  ;;  %v11577_v62 = vld [vmem:[%s21945_s1 + $0x14f0] sm:$0xf0] }
 0x286   :  { %8085 = vmatpush.bf16.msra.mxu2 %v11004_v34  ;;  %8054 = vmatmul.bf16.vlgmr.msrb.gmra.mxu3 %v15136_v42  ;;  %v10932_v34 = vor.u32 %v14014_v32, %v10929_v59  ;;  %v10884_v32 = vor.u32 %v14002_v40, %v10881_v43  ;;  %v13900_v59 = vld [vmem:[%s21945_s1 + $0xc3c] sm:$0xf]  ;;  %v11769_v43 = vld [vmem:[%s21945_s1 + $0x1670] sm:$0xf0] }
 0x287   :  { %8098 = vmatpush.bf16.msra.mxu3 %v11196_v51  ;;  %v7822_v51 = vadd.f32 %v7821_v2, %v7809_v1  ;;  %v10665_v1 = vld [vmem:[%s21945_s1 + $0xdd0] sm:$0xf0]  ;;  %v14224_v40 = vld [vmem:[%s21945_s1 + $0x165c] sm:$0xf] }
 0x288   :  { %8060 = vmatpush.bf16.msra.mxu0 %v10596_v11  ;;  %v10524_v11 = vor.u32 %v13912_v9, %v10521_v10  ;;  %v7834_v27 = vpop.f32.mrf.mxu2  ;;  %v10857_v2 = vld [vmem:[%s21945_s1 + $0xf50] sm:$0xf0]  ;;  %v10476_v9 = vor.u32 %v13900_v59, %v10473_v0  ;;  %v13894_v10 = vld [vmem:[%s21945_s1 + $0xc0c] sm:$0xf]  ;;  %v11361_v59 = vld [vmem:[%s21945_s1 + $0x1340] sm:$0xf0] }
 0x289   :  { %8073 = vmatpush.bf16.msra.mxu1 %v10788_v19  ;;  %v10716_v19 = vor.u32 %v13960_v14, %v10713_v57  ;;  %v7835_v47 = vadd.f32 %v7834_v27, %v7822_v51  ;;  %v7810_v54 = vpop.f32.mrf.mxu0  ;;  %v10449_v14 = vld [vmem:[%s21945_s1 + $0xc20] sm:$0xf0]  ;;  %v13942_v57 = vld [vmem:[%s21945_s1 + $0xd8c] sm:$0xf] }
 0x28a   :  { %8086 = vmatpush.bf16.msra.mxu2 %v10980_v7  ;;  %v10908_v7 = vor.u32 %v14008_v22, %v10905_v15  ;;  %v10641_v22 = vld [vmem:[%s21945_s1 + $0xda0] sm:$0xf0]  ;;  %v13990_v15 = vld [vmem:[%s21945_s1 + $0xf0c] sm:$0xf]  ;;  %v10452_v27 = vor.u32 %v13894_v10, %v10449_v14  ;;  %v14116_v14 = vld [vmem:[%s21945_s1 + $0x12fc] sm:$0xf] }
 0x28b   :  { %8099 = vmatpush.bf16.msra.mxu3 %v11172_v36  ;;  %v11100_v36 = vor.u32 %v14056_v50, %v11097_v17  ;;  %v10833_v17 = vld [vmem:[%s21945_s1 + $0xf20] sm:$0xf0]  ;;  %v14170_v0 = vld [vmem:[%s21945_s1 + $0x14ac] sm:$0xf] }
 0x28c   :  { %8061 = vmatpush.bf16.msra.mxu0 %v10572_v48  ;;  %v7847_v48 = vpop.f32.mrf.mxu3  ;;  %v7823_v55 = vpop.f32.mrf.mxu1 }
 0x28d   :  { %8074 = vmatpush.bf16.msra.mxu1 %v10764_v18  ;;  %v14050_v18 = vld [vmem:[%s21945_s1 + $0x10ec] sm:$0xf]  ;;  %v11580_v55 = vor.u32 %v14176_v26, %v11577_v62  ;;  %v11313_v26 = vld [vmem:[%s21945_s1 + $0x12e0] sm:$0xf0] }
 0x28e   :  { %8087 = vmatpush.bf16.msra.mxu2 %v10956_v53  ;;  %v11073_v53 = vld [vmem:[%s21945_s1 + $0x1100] sm:$0xf0] }
 0x28f   :  { %8100 = vmatpush.bf16.msra.mxu3 %v11148_v56  ;;  %v18887_v56 = vadd.f32 %v7847_v48, %v7835_v47  ;;  %v11076_v60 = vor.u32 %v14050_v18, %v11073_v53  ;;  %v10644_v47 = vor.u32 %v13942_v57, %v10641_v22  ;;  %v10836_v48 = vor.u32 %v13990_v15, %v10833_v17  ;;  %v14272_v18 = vld [vmem:[%s21945_s1 + $0x17dc] sm:$0xf]  ;;  %v11961_v53 = vld [vmem:[%s21945_s1 + $0x17f0] sm:$0xf0]  ;;  %v11505_v62 = vld [vmem:[%s21945_s1 + $0x1460] sm:$0xf0] }
 0x290   :  { %8062 = vmatpush.bf16.msra.mxu0 %v10548_v61  ;;  %v13996_v61 = vld [vmem:[%s21945_s1 + $0xf3c] sm:$0xf]  ;;  %v11529_v22 = vld [vmem:[%s21945_s1 + $0x1490] sm:$0xf0] }
 0x291   :  { %8075 = vmatpush.bf16.msra.mxu1 %v10740_v3  ;;  %v14044_v3 = vld [vmem:[%s21945_s1 + $0x10bc] sm:$0xf]  ;;  %v10860_v51 = vor.u32 %v13996_v61, %v10857_v2  ;;  %v11745_v61 = vld [vmem:[%s21945_s1 + $0x1640] sm:$0xf0]  ;;  %v14266_v2 = vld [vmem:[%s21945_s1 + $0x17ac] sm:$0xf] }
 0x292   :  { %8088 = vmatpush.bf16.msra.mxu2 %v10932_v34  ;;  %v11049_v34 = vld [vmem:[%s21945_s1 + $0x10d0] sm:$0xf0]  ;;  %v14212_v15 = vld [vmem:[%s21945_s1 + $0x15fc] sm:$0xf] }
 0x293   :  { %8101 = vmatpush.bf16.msra.mxu3 %v11124_v5  ;;  %v10668_v5 = vor.u32 %v13948_v52, %v10665_v1  ;;  %v11052_v50 = vor.u32 %v14044_v3, %v11049_v34  ;;  %v11964_v52 = vor.u32 %v14272_v18, %v11961_v53  ;;  %v14218_v1 = vld [vmem:[%s21945_s1 + $0x162c] sm:$0xf]  ;;  %v11937_v3 = vld [vmem:[%s21945_s1 + $0x17c0] sm:$0xf0]  ;;  %v14260_v17 = vld [vmem:[%s21945_s1 + $0x177c] sm:$0xf] }
 0x294   :  { %8063 = vmatpush.bf16.msra.mxu0 %v10524_v11  ;;  %v14038_v11 = vld [vmem:[%s21945_s1 + $0x108c] sm:$0xf]  ;;  %v11748_v10 = vor.u32 %v14218_v1, %v11745_v61  ;;  %v11940_v57 = vor.u32 %v14266_v2, %v11937_v3  ;;  %v11889_v18 = vld [vmem:[%s21945_s1 + $0x1760] sm:$0xf0]  ;;  %v14200_v1 = vld [vmem:[%s21945_s1 + $0x159c] sm:$0xf] }
 0x295   :  { %8076 = vmatpush.bf16.msra.mxu1 %v10716_v19  ;;  %v11025_v19 = vld [vmem:[%s21945_s1 + $0x10a0] sm:$0xf0]  ;;  %v11673_v61 = vld [vmem:[%s21945_s1 + $0x15b0] sm:$0xf0]  ;;  %v14248_v2 = vld [vmem:[%s21945_s1 + $0x171c] sm:$0xf] }
 0x296   :  { %8089 = vmatpush.bf16.msra.mxu2 %v10908_v7  ;;  %v7836_v7 = vpop.f32.mrf.mxu2  ;;  %v11028_v54 = vor.u32 %v14038_v11, %v11025_v19  ;;  %v11913_v11 = vld [vmem:[%s21945_s1 + $0x1790] sm:$0xf0] }
 0x297   :  { %8102 = vmatpush.bf16.msra.mxu3 %v11100_v36  ;;  %v7849_v36 = vpop.f32.mrf.mxu3  ;;  %v11865_v3 = vld [vmem:[%s21945_s1 + $0x1730] sm:$0xf0] }
 0x298   :  { %8064 = vmatpush.bf16.msra.mxu0 %v10500_v39  ;;  %v11388_v39 = vor.u32 %v14128_v24, %v11385_v63  ;;  %v14110_v63 = vld [vmem:[%s21945_s1 + $0x12cc] sm:$0xf] }
 0x299   :  { %8077 = vmatpush.bf16.msra.mxu1 %v10692_v58  ;;  %v11772_v58 = vor.u32 %v14224_v40, %v11769_v43  ;;  %v14158_v36 = vld [vmem:[%s21945_s1 + $0x144c] sm:$0xf]  ;;  %v11697_v43 = vld [vmem:[%s21945_s1 + $0x15e0] sm:$0xf0] }
 0x29a   :  { %8090 = vmatpush.bf16.msra.mxu2 %v10884_v32  ;;  %v14122_v32 = vld [vmem:[%s21945_s1 + $0x132c] sm:$0xf] }
 0x29b   :  { %8103 = vmatpush.bf16.msra.mxu3 %v11076_v60  ;;  %v11553_v60 = vld [vmem:[%s21945_s1 + $0x14c0] sm:$0xf0]  ;;  %v11364_v34 = vor.u32 %v14122_v32, %v11361_v59  ;;  %v14206_v40 = vld [vmem:[%s21945_s1 + $0x15cc] sm:$0xf]  ;;  %v14104_v32 = vld [vmem:[%s21945_s1 + $0x129c] sm:$0xf] }
 0x29c   :  { %8065 = vmatpush.bf16.msra.mxu0 %v10476_v9  ;;  %v11556_v9 = vor.u32 %v14170_v0, %v11553_v60  ;;  %v11289_v59 = vld [vmem:[%s21945_s1 + $0x12b0] sm:$0xf0]  ;;  %v14152_v0 = vld [vmem:[%s21945_s1 + $0x141c] sm:$0xf] }
 0x29d   :  { %8078 = vmatpush.bf16.msra.mxu1 %v10668_v5  ;;  %v11337_v5 = vld [vmem:[%s21945_s1 + $0x1310] sm:$0xf0] }
 0x29e   :  { %8091 = vmatpush.bf16.msra.mxu2 %v10860_v51  ;;  %v14164_v51 = vld [vmem:[%s21945_s1 + $0x147c] sm:$0xf]  ;;  %v11340_v19 = vor.u32 %v14116_v14, %v11337_v5  ;;  %v11481_v60 = vld [vmem:[%s21945_s1 + $0x1430] sm:$0xf0]  ;;  %v14098_v14 = vld [vmem:[%s21945_s1 + $0x126c] sm:$0xf] }
 0x29f   :  { %8104 = vmatpush.bf16.msra.mxu3 %v11052_v50  ;;  %v11721_v50 = vld [vmem:[%s21945_s1 + $0x1610] sm:$0xf0]  ;;  %v11532_v7 = vor.u32 %v14164_v51, %v11529_v22  ;;  %v11265_v5 = vld [vmem:[%s21945_s1 + $0x1280] sm:$0xf0]  ;;  %v14146_v51 = vld [vmem:[%s21945_s1 + $0x13ec] sm:$0xf] }
 0x2a0   :  { %8066 = vmatpush.bf16.msra.mxu0 %v10452_v27  ;;  %v11724_v24 = vor.u32 %v14212_v15, %v11721_v50  ;;  %v11916_v27 = vor.u32 %v14260_v17, %v11913_v11  ;;  %v11457_v15 = vld [vmem:[%s21945_s1 + $0x1400] sm:$0xf0]  ;;  %v14194_v50 = vld [vmem:[%s21945_s1 + $0x156c] sm:$0xf] }
 0x2a1   :  { %8079 = vmatpush.bf16.msra.mxu1 %v10644_v47  ;;  %v7860_v47 = vpop.f32.mrf.mxu0  ;;  %v11649_v17 = vld [vmem:[%s21945_s1 + $0x1580] sm:$0xf0] }
 0x2a2   :  { %8092 = vmatpush.bf16.msra.mxu2 %v10836_v48  ;;  %v14254_v48 = vld [vmem:[%s21945_s1 + $0x174c] sm:$0xf]  ;;  %v7861_v53 = vadd.f32 %v7860_v47, %v18887_v56  ;;  %v11241_v47 = vld [vmem:[%s21945_s1 + $0x1250] sm:$0xf0] }
 0x2a3   :  { %8105 = vmatpush.bf16.msra.mxu3 %v11028_v54  ;;  %8067 = vmatmul.bf16.vlgmr.msra.gmra.mxu0 %v15327_v25  ;;  %v11316_v54 = vor.u32 %v14110_v63, %v11313_v26  ;;  %v11892_v56 = vor.u32 %v14254_v48, %v11889_v18  ;;  %v11268_v26 = vor.u32 %v14098_v14, %v11265_v5  ;;  %v14140_v48 = vld [vmem:[%s21945_s1 + $0x13bc] sm:$0xf]  ;;  %v12153_v5 = vld [vmem:[%s21945_s1 + $0x1970] sm:$0xf0] }
 0x2a4   :  { %8111 = vmatpush.bf16.msrb.mxu0 %v11388_v39  ;;  %8080 = vmatmul.bf16.vlgmr.msra.gmra.mxu1 %v15340_v30  ;;  %v7873_v39 = vpop.f32.mrf.mxu1  ;;  %v14320_v14 = vld [vmem:[%s21945_s1 + $0x195c] sm:$0xf] }
 0x2a5   :  { %8124 = vmatpush.bf16.msrb.mxu1 %v11580_v55  ;;  %8093 = vmatmul.bf16.vlgmr.msra.gmra.mxu2 %v15338_v29  ;;  %v11508_v55 = vor.u32 %v14158_v36, %v11505_v62  ;;  %v11460_v62 = vor.u32 %v14146_v51, %v11457_v15  ;;  %v14368_v51 = vld [vmem:[%s21945_s1 + $0x1adc] sm:$0xf]  ;;  %v12345_v15 = vld [vmem:[%s21945_s1 + $0x1af0] sm:$0xf0] }
 0x2a6   :  { %8137 = vmatpush.bf16.msrb.mxu2 %v11772_v58  ;;  %8106 = vmatmul.bf16.vlgmr.msra.gmra.mxu3 %v15348_v33  ;;  %v11700_v58 = vor.u32 %v14206_v40, %v11697_v43  ;;  %v11652_v40 = vor.u32 %v14194_v50, %v11649_v17  ;;  %v14092_v43 = vld [vmem:[%s21945_s1 + $0x123c] sm:$0xf]  ;;  %v12537_v17 = vld [vmem:[%s21945_s1 + $0x1c70] sm:$0xf0] }
 0x2a7   :  { %8150 = vmatpush.bf16.msrb.mxu3 %v11964_v52  ;;  %v7874_v52 = vadd.f32 %v7873_v39, %v7861_v53  ;;  %v11433_v53 = vld [vmem:[%s21945_s1 + $0x13d0] sm:$0xf0]  ;;  %v14416_v50 = vld [vmem:[%s21945_s1 + $0x1c5c] sm:$0xf] }
 0x2a8   :  { %8112 = vmatpush.bf16.msrb.mxu0 %v11364_v34  ;;  %v11292_v34 = vor.u32 %v14104_v32, %v11289_v59  ;;  %v7886_v22 = vpop.f32.mrf.mxu2  ;;  %v11625_v39 = vld [vmem:[%s21945_s1 + $0x1550] sm:$0xf0]  ;;  %v11244_v32 = vor.u32 %v14092_v43, %v11241_v47  ;;  %v14086_v59 = vld [vmem:[%s21945_s1 + $0x120c] sm:$0xf]  ;;  %v12129_v43 = vld [vmem:[%s21945_s1 + $0x1940] sm:$0xf0] }
 0x2a9   :  { %8125 = vmatpush.bf16.msrb.mxu1 %v11556_v9  ;;  %v11484_v9 = vor.u32 %v14152_v0, %v11481_v60  ;;  %v7887_v11 = vadd.f32 %v7886_v22, %v7874_v52  ;;  %v7862_v63 = vpop.f32.mrf.mxu0  ;;  %v11217_v0 = vld [vmem:[%s21945_s1 + $0x1220] sm:$0xf0]  ;;  %v14134_v60 = vld [vmem:[%s21945_s1 + $0x138c] sm:$0xf] }
 0x2aa   :  { %8138 = vmatpush.bf16.msrb.mxu2 %v11748_v10  ;;  %v11676_v10 = vor.u32 %v14200_v1, %v11673_v61  ;;  %v11409_v1 = vld [vmem:[%s21945_s1 + $0x13a0] sm:$0xf0]  ;;  %v14182_v61 = vld [vmem:[%s21945_s1 + $0x150c] sm:$0xf]  ;;  %v11220_v22 = vor.u32 %v14086_v59, %v11217_v0  ;;  %v14308_v0 = vld [vmem:[%s21945_s1 + $0x18fc] sm:$0xf] }
 0x2ab   :  { %8151 = vmatpush.bf16.msrb.mxu3 %v11940_v57  ;;  %v11868_v57 = vor.u32 %v14248_v2, %v11865_v3  ;;  %v11601_v3 = vld [vmem:[%s21945_s1 + $0x1520] sm:$0xf0]  ;;  %v14362_v47 = vld [vmem:[%s21945_s1 + $0x1aac] sm:$0xf] }
 0x2ac   :  { %8113 = vmatpush.bf16.msrb.mxu0 %v11340_v19  ;;  %v7899_v19 = vpop.f32.mrf.mxu3  ;;  %v7875_v36 = vpop.f32.mrf.mxu1 }
 0x2ad   :  { %8126 = vmatpush.bf16.msrb.mxu1 %v11532_v7  ;;  %v14242_v7 = vld [vmem:[%s21945_s1 + $0x16ec] sm:$0xf]  ;;  %v12348_v36 = vor.u32 %v14368_v51, %v12345_v15  ;;  %v12081_v51 = vld [vmem:[%s21945_s1 + $0x18e0] sm:$0xf0] }
 0x2ae   :  { %8139 = vmatpush.bf16.msrb.mxu2 %v11724_v24  ;;  %v11841_v24 = vld [vmem:[%s21945_s1 + $0x1700] sm:$0xf0] }
 0x2af   :  { %8152 = vmatpush.bf16.msrb.mxu3 %v11916_v27  ;;  %v19086_v27 = vadd.f32 %v7899_v19, %v7887_v11  ;;  %v11844_v18 = vor.u32 %v14242_v7, %v11841_v24  ;;  %v11412_v11 = vor.u32 %v14134_v60, %v11409_v1  ;;  %v11604_v19 = vor.u32 %v14182_v61, %v11601_v3  ;;  %v14464_v7 = vld [vmem:[%s21945_s1 + $0x1ddc] sm:$0xf]  ;;  %v12729_v24 = vld [vmem:[%s21945_s1 + $0x1df0] sm:$0xf0]  ;;  %v12273_v15 = vld [vmem:[%s21945_s1 + $0x1a60] sm:$0xf0] }
 0x2b0   :  { %8114 = vmatpush.bf16.msrb.mxu0 %v11316_v54  ;;  %v14188_v54 = vld [vmem:[%s21945_s1 + $0x153c] sm:$0xf]  ;;  %v12297_v1 = vld [vmem:[%s21945_s1 + $0x1a90] sm:$0xf0] }
 0x2b1   :  { %8127 = vmatpush.bf16.msrb.mxu1 %v11508_v55  ;;  %v14236_v55 = vld [vmem:[%s21945_s1 + $0x16bc] sm:$0xf]  ;;  %v11628_v52 = vor.u32 %v14188_v54, %v11625_v39  ;;  %v12513_v54 = vld [vmem:[%s21945_s1 + $0x1c40] sm:$0xf0]  ;;  %v14458_v39 = vld [vmem:[%s21945_s1 + $0x1dac] sm:$0xf] }
 0x2b2   :  { %8140 = vmatpush.bf16.msrb.mxu2 %v11700_v58  ;;  %v11817_v58 = vld [vmem:[%s21945_s1 + $0x16d0] sm:$0xf0]  ;;  %v14404_v61 = vld [vmem:[%s21945_s1 + $0x1bfc] sm:$0xf] }
 0x2b3   :  { %8153 = vmatpush.bf16.msrb.mxu3 %v11892_v56  ;;  %v11436_v56 = vor.u32 %v14140_v48, %v11433_v53  ;;  %v11820_v2 = vor.u32 %v14236_v55, %v11817_v58  ;;  %v12732_v48 = vor.u32 %v14464_v7, %v12729_v24  ;;  %v14410_v53 = vld [vmem:[%s21945_s1 + $0x1c2c] sm:$0xf]  ;;  %v12705_v55 = vld [vmem:[%s21945_s1 + $0x1dc0] sm:$0xf0]  ;;  %v14452_v3 = vld [vmem:[%s21945_s1 + $0x1d7c] sm:$0xf] }
 0x2b4   :  { %8115 = vmatpush.bf16.msrb.mxu0 %v11292_v34  ;;  %v14230_v34 = vld [vmem:[%s21945_s1 + $0x168c] sm:$0xf]  ;;  %v12516_v59 = vor.u32 %v14410_v53, %v12513_v54  ;;  %v12708_v60 = vor.u32 %v14458_v39, %v12705_v55  ;;  %v12657_v7 = vld [vmem:[%s21945_s1 + $0x1d60] sm:$0xf0]  ;;  %v14392_v53 = vld [vmem:[%s21945_s1 + $0x1b9c] sm:$0xf] }
 0x2b5   :  { %8128 = vmatpush.bf16.msrb.mxu1 %v11484_v9  ;;  %v11793_v9 = vld [vmem:[%s21945_s1 + $0x16a0] sm:$0xf0]  ;;  %v12441_v54 = vld [vmem:[%s21945_s1 + $0x1bb0] sm:$0xf0]  ;;  %v14440_v39 = vld [vmem:[%s21945_s1 + $0x1d1c] sm:$0xf] }
 0x2b6   :  { %8141 = vmatpush.bf16.msrb.mxu2 %v11676_v10  ;;  %v7888_v10 = vpop.f32.mrf.mxu2  ;;  %v11796_v63 = vor.u32 %v14230_v34, %v11793_v9  ;;  %v12681_v34 = vld [vmem:[%s21945_s1 + $0x1d90] sm:$0xf0] }
 0x2b7   :  { %8154 = vmatpush.bf16.msrb.mxu3 %v11868_v57  ;;  %v7901_v57 = vpop.f32.mrf.mxu3  ;;  %v12633_v55 = vld [vmem:[%s21945_s1 + $0x1d30] sm:$0xf0] }
 0x2b8   :  { %8116 = vmatpush.bf16.msrb.mxu0 %v11268_v26  ;;  %v12156_v26 = vor.u32 %v14320_v14, %v12153_v5  ;;  %v14302_v5 = vld [vmem:[%s21945_s1 + $0x18cc] sm:$0xf] }
 0x2b9   :  { %8129 = vmatpush.bf16.msrb.mxu1 %v11460_v62  ;;  %v12540_v62 = vor.u32 %v14416_v50, %v12537_v17  ;;  %v14350_v57 = vld [vmem:[%s21945_s1 + $0x1a4c] sm:$0xf]  ;;  %v12465_v17 = vld [vmem:[%s21945_s1 + $0x1be0] sm:$0xf0] }
 0x2ba   :  { %8142 = vmatpush.bf16.msrb.mxu2 %v11652_v40  ;;  %v14314_v40 = vld [vmem:[%s21945_s1 + $0x192c] sm:$0xf] }
 0x2bb   :  { %8155 = vmatpush.bf16.msrb.mxu3 %v11844_v18  ;;  %v12321_v18 = vld [vmem:[%s21945_s1 + $0x1ac0] sm:$0xf0]  ;;  %v12132_v58 = vor.u32 %v14314_v40, %v12129_v43  ;;  %v14398_v50 = vld [vmem:[%s21945_s1 + $0x1bcc] sm:$0xf]  ;;  %v14296_v40 = vld [vmem:[%s21945_s1 + $0x189c] sm:$0xf] }
 0x2bc   :  { %8117 = vmatpush.bf16.msrb.mxu0 %v11244_v32  ;;  %v12324_v32 = vor.u32 %v14362_v47, %v12321_v18  ;;  %v12057_v43 = vld [vmem:[%s21945_s1 + $0x18b0] sm:$0xf0]  ;;  %v14344_v47 = vld [vmem:[%s21945_s1 + $0x1a1c] sm:$0xf] }
 0x2bd   :  { %8130 = vmatpush.bf16.msrb.mxu1 %v11436_v56  ;;  %v12105_v56 = vld [vmem:[%s21945_s1 + $0x1910] sm:$0xf0] }
 0x2be   :  { %8143 = vmatpush.bf16.msrb.mxu2 %v11628_v52  ;;  %v14356_v52 = vld [vmem:[%s21945_s1 + $0x1a7c] sm:$0xf]  ;;  %v12108_v9 = vor.u32 %v14308_v0, %v12105_v56  ;;  %v12249_v18 = vld [vmem:[%s21945_s1 + $0x1a30] sm:$0xf0]  ;;  %v14290_v0 = vld [vmem:[%s21945_s1 + $0x186c] sm:$0xf] }
 0x2bf   :  { %8156 = vmatpush.bf16.msrb.mxu3 %v11820_v2  ;;  %v12489_v2 = vld [vmem:[%s21945_s1 + $0x1c10] sm:$0xf0]  ;;  %v12300_v10 = vor.u32 %v14356_v52, %v12297_v1  ;;  %v12033_v56 = vld [vmem:[%s21945_s1 + $0x1880] sm:$0xf0]  ;;  %v14338_v52 = vld [vmem:[%s21945_s1 + $0x19ec] sm:$0xf] }
 0x2c0   :  { %8118 = vmatpush.bf16.msrb.mxu0 %v11220_v22  ;;  %v12492_v14 = vor.u32 %v14404_v61, %v12489_v2  ;;  %v12684_v22 = vor.u32 %v14452_v3, %v12681_v34  ;;  %v12225_v61 = vld [vmem:[%s21945_s1 + $0x1a00] sm:$0xf0]  ;;  %v14386_v2 = vld [vmem:[%s21945_s1 + $0x1b6c] sm:$0xf] }
 0x2c1   :  { %8131 = vmatpush.bf16.msrb.mxu1 %v11412_v11  ;;  %v7912_v11 = vpop.f32.mrf.mxu0  ;;  %v12417_v3 = vld [vmem:[%s21945_s1 + $0x1b80] sm:$0xf0] }
 0x2c2   :  { %8144 = vmatpush.bf16.msrb.mxu2 %v11604_v19  ;;  %v14446_v19 = vld [vmem:[%s21945_s1 + $0x1d4c] sm:$0xf]  ;;  %v7913_v24 = vadd.f32 %v7912_v11, %v19086_v27  ;;  %v12009_v11 = vld [vmem:[%s21945_s1 + $0x1850] sm:$0xf0] }
 0x2c3   :  { %8157 = vmatpush.bf16.msrb.mxu3 %v11796_v63  ;;  %8119 = vmatmul.bf16.vlgmr.msrb.gmra.mxu0 %v15537_v23  ;;  %v12084_v63 = vor.u32 %v14302_v5, %v12081_v51  ;;  %v12660_v27 = vor.u32 %v14446_v19, %v12657_v7  ;;  %v12036_v51 = vor.u32 %v14290_v0, %v12033_v56  ;;  %v14332_v19 = vld [vmem:[%s21945_s1 + $0x19bc] sm:$0xf]  ;;  %v12921_v56 = vld [vmem:[%s21945_s1 + $0x1f70] sm:$0xf0] }
 0x2c4   :  { %8163 = vmatpush.bf16.msra.mxu0 %v12156_v26  ;;  %8132 = vmatmul.bf16.vlgmr.msrb.gmra.mxu1 %v15550_v31  ;;  %v7925_v26 = vpop.f32.mrf.mxu1  ;;  %v14512_v0 = vld [vmem:[%s21945_s1 + $0x1f5c] sm:$0xf] }
 0x2c5   :  { %8176 = vmatpush.bf16.msra.mxu1 %v12348_v36  ;;  %8145 = vmatmul.bf16.vlgmr.msrb.gmra.mxu2 %v15548_v28  ;;  %v12276_v36 = vor.u32 %v14350_v57, %v12273_v15  ;;  %v12228_v15 = vor.u32 %v14338_v52, %v12225_v61  ;;  %v14560_v52 = vld [vmem:[%s21945_s1 + $0x20dc] sm:$0xf]  ;;  %v13113_v61 = vld [vmem:[%s21945_s1 + $0x20f0] sm:$0xf0] }
 0x2c6   :  { %8189 = vmatpush.bf16.msra.mxu2 %v12540_v62  ;;  %8158 = vmatmul.bf16.vlgmr.msrb.gmra.mxu3 %v15558_v35  ;;  %v12468_v62 = vor.u32 %v14398_v50, %v12465_v17  ;;  %v12420_v50 = vor.u32 %v14386_v2, %v12417_v3  ;;  %v14284_v17 = vld [vmem:[%s21945_s1 + $0x183c] sm:$0xf]  ;;  %v13305_v3 = vld [vmem:[%s21945_s1 + $0x2270] sm:$0xf0] }
 0x2c7   :  { %8202 = vmatpush.bf16.msra.mxu3 %v12732_v48  ;;  %v7926_v48 = vadd.f32 %v7925_v26, %v7913_v24  ;;  %v12201_v24 = vld [vmem:[%s21945_s1 + $0x19d0] sm:$0xf0]  ;;  %v14608_v2 = vld [vmem:[%s21945_s1 + $0x225c] sm:$0xf] }
 0x2c8   :  { %8164 = vmatpush.bf16.msra.mxu0 %v12132_v58  ;;  %v12060_v58 = vor.u32 %v14296_v40, %v12057_v43  ;;  %v7938_v1 = vpop.f32.mrf.mxu2  ;;  %v12393_v26 = vld [vmem:[%s21945_s1 + $0x1b50] sm:$0xf0]  ;;  %v12012_v40 = vor.u32 %v14284_v17, %v12009_v11  ;;  %v14278_v43 = vld [vmem:[%s21945_s1 + $0x180c] sm:$0xf]  ;;  %v12897_v17 = vld [vmem:[%s21945_s1 + $0x1f40] sm:$0xf0] }
 0x2c9   :  { %8177 = vmatpush.bf16.msra.mxu1 %v12324_v32  ;;  %v12252_v32 = vor.u32 %v14344_v47, %v12249_v18  ;;  %v7939_v34 = vadd.f32 %v7938_v1, %v7926_v48  ;;  %v7914_v5 = vpop.f32.mrf.mxu0  ;;  %v11985_v47 = vld [vmem:[%s21945_s1 + $0x1820] sm:$0xf0]  ;;  %v14326_v18 = vld [vmem:[%s21945_s1 + $0x198c] sm:$0xf] }
 0x2ca   :  { %8190 = vmatpush.bf16.msra.mxu2 %v12516_v59  ;;  %v12444_v59 = vor.u32 %v14392_v53, %v12441_v54  ;;  %v12177_v53 = vld [vmem:[%s21945_s1 + $0x19a0] sm:$0xf0]  ;;  %v14374_v54 = vld [vmem:[%s21945_s1 + $0x1b0c] sm:$0xf]  ;;  %v11988_v1 = vor.u32 %v14278_v43, %v11985_v47  ;;  %v14500_v47 = vld [vmem:[%s21945_s1 + $0x1efc] sm:$0xf] }
 0x2cb   :  { %8203 = vmatpush.bf16.msra.mxu3 %v12708_v60  ;;  %v12636_v60 = vor.u32 %v14440_v39, %v12633_v55  ;;  %v12369_v55 = vld [vmem:[%s21945_s1 + $0x1b20] sm:$0xf0]  ;;  %v14554_v11 = vld [vmem:[%s21945_s1 + $0x20ac] sm:$0xf] }
 0x2cc   :  { %8165 = vmatpush.bf16.msra.mxu0 %v12108_v9  ;;  %v7951_v9 = vpop.f32.mrf.mxu3  ;;  %v7927_v57 = vpop.f32.mrf.mxu1 }
 0x2cd   :  { %8178 = vmatpush.bf16.msra.mxu1 %v12300_v10  ;;  %v14434_v10 = vld [vmem:[%s21945_s1 + $0x1cec] sm:$0xf]  ;;  %v13116_v57 = vor.u32 %v14560_v52, %v13113_v61  ;;  %v12849_v52 = vld [vmem:[%s21945_s1 + $0x1ee0] sm:$0xf0] }
 0x2ce   :  { %8191 = vmatpush.bf16.msra.mxu2 %v12492_v14  ;;  %v12609_v14 = vld [vmem:[%s21945_s1 + $0x1d00] sm:$0xf0] }
 0x2cf   :  { %8204 = vmatpush.bf16.msra.mxu3 %v12684_v22  ;;  %v19285_v22 = vadd.f32 %v7951_v9, %v7939_v34  ;;  %v12612_v7 = vor.u32 %v14434_v10, %v12609_v14  ;;  %v12180_v34 = vor.u32 %v14326_v18, %v12177_v53  ;;  %v12372_v9 = vor.u32 %v14374_v54, %v12369_v55  ;;  %v14656_v10 = vld [vmem:[%s21945_s1 + $0x23dc] sm:$0xf]  ;;  %v13497_v14 = vld [vmem:[%s21945_s1 + $0x23f0] sm:$0xf0]  ;;  %v13041_v61 = vld [vmem:[%s21945_s1 + $0x2060] sm:$0xf0] }
 0x2d0   :  { %8166 = vmatpush.bf16.msra.mxu0 %v12084_v63  ;;  %v14380_v63 = vld [vmem:[%s21945_s1 + $0x1b3c] sm:$0xf]  ;;  %v13065_v53 = vld [vmem:[%s21945_s1 + $0x2090] sm:$0xf0] }
 0x2d1   :  { %8179 = vmatpush.bf16.msra.mxu1 %v12276_v36  ;;  %v14428_v36 = vld [vmem:[%s21945_s1 + $0x1cbc] sm:$0xf]  ;;  %v12396_v48 = vor.u32 %v14380_v63, %v12393_v26  ;;  %v13281_v63 = vld [vmem:[%s21945_s1 + $0x2240] sm:$0xf0]  ;;  %v14650_v26 = vld [vmem:[%s21945_s1 + $0x23ac] sm:$0xf] }
 0x2d2   :  { %8192 = vmatpush.bf16.msra.mxu2 %v12468_v62  ;;  %v12585_v62 = vld [vmem:[%s21945_s1 + $0x1cd0] sm:$0xf0]  ;;  %v14596_v54 = vld [vmem:[%s21945_s1 + $0x21fc] sm:$0xf] }
 0x2d3   :  { %8205 = vmatpush.bf16.msra.mxu3 %v12660_v27  ;;  %v12204_v27 = vor.u32 %v14332_v19, %v12201_v24  ;;  %v12588_v39 = vor.u32 %v14428_v36, %v12585_v62  ;;  %v13500_v19 = vor.u32 %v14656_v10, %v13497_v14  ;;  %v14602_v24 = vld [vmem:[%s21945_s1 + $0x222c] sm:$0xf]  ;;  %v13473_v36 = vld [vmem:[%s21945_s1 + $0x23c0] sm:$0xf0]  ;;  %v14644_v55 = vld [vmem:[%s21945_s1 + $0x237c] sm:$0xf] }
 0x2d4   :  { %8167 = vmatpush.bf16.msra.mxu0 %v12060_v58  ;;  %v14422_v58 = vld [vmem:[%s21945_s1 + $0x1c8c] sm:$0xf]  ;;  %v13284_v43 = vor.u32 %v14602_v24, %v13281_v63  ;;  %v13476_v18 = vor.u32 %v14650_v26, %v13473_v36  ;;  %v13209_v24 = vld [vmem:[%s21945_s1 + $0x21b0] sm:$0xf0]  ;;  %v14632_v26 = vld [vmem:[%s21945_s1 + $0x231c] sm:$0xf] }
 0x2d5   :  { %8180 = vmatpush.bf16.msra.mxu1 %v12252_v32  ;;  %v12561_v32 = vld [vmem:[%s21945_s1 + $0x1ca0] sm:$0xf0]  ;;  %v13401_v36 = vld [vmem:[%s21945_s1 + $0x2330] sm:$0xf0] }
 0x2d6   :  { %8193 = vmatpush.bf16.msra.mxu2 %v12444_v59  ;;  %v7940_v59 = vpop.f32.mrf.mxu2  ;;  %v12564_v5 = vor.u32 %v14422_v58, %v12561_v32  ;;  %v13449_v58 = vld [vmem:[%s21945_s1 + $0x2390] sm:$0xf0] }
 0x2d7   :  { %8206 = vmatpush.bf16.msra.mxu3 %v12636_v60  ;;  %v7953_v60 = vpop.f32.mrf.mxu3 }
 0x2d8   :  { %8168 = vmatpush.bf16.msra.mxu0 %v12036_v51  ;;  %v12924_v51 = vor.u32 %v14512_v0, %v12921_v56  ;;  %v14494_v56 = vld [vmem:[%s21945_s1 + $0x1ecc] sm:$0xf] }
 0x2d9   :  { %8181 = vmatpush.bf16.msra.mxu1 %v12228_v15  ;;  %v13308_v15 = vor.u32 %v14608_v2, %v13305_v3  ;;  %v14542_v60 = vld [vmem:[%s21945_s1 + $0x204c] sm:$0xf]  ;;  %v13233_v3 = vld [vmem:[%s21945_s1 + $0x21e0] sm:$0xf0]  ;;  %v12852_v10 = vor.u32 %v14494_v56, %v12849_v52 }
 0x2da   :  { %8194 = vmatpush.bf16.msra.mxu2 %v12420_v50  ;;  %v14506_v50 = vld [vmem:[%s21945_s1 + $0x1f2c] sm:$0xf] }
 0x2db   :  { %8207 = vmatpush.bf16.msra.mxu3 %v12612_v7  ;;  %v13089_v7 = vld [vmem:[%s21945_s1 + $0x20c0] sm:$0xf0]  ;;  %v12900_v62 = vor.u32 %v14506_v50, %v12897_v17  ;;  %v14590_v2 = vld [vmem:[%s21945_s1 + $0x21cc] sm:$0xf]  ;;  %v14536_v50 = vld [vmem:[%s21945_s1 + $0x201c] sm:$0xf] }
 0x2dc   :  { %8169 = vmatpush.bf16.msra.mxu0 %v12012_v40  ;;  %v13092_v40 = vor.u32 %v14554_v11, %v13089_v7  ;;  %v14584_v7 = vld [vmem:[%s21945_s1 + $0x219c] sm:$0xf] }
 0x2dd   :  { %8182 = vmatpush.bf16.msra.mxu1 %v12204_v27  ;;  %v12873_v27 = vld [vmem:[%s21945_s1 + $0x1f10] sm:$0xf0] }
 0x2de   :  { %8195 = vmatpush.bf16.msra.mxu2 %v12396_v48  ;;  %v14548_v48 = vld [vmem:[%s21945_s1 + $0x207c] sm:$0xf]  ;;  %v12876_v32 = vor.u32 %v14500_v47, %v12873_v27  ;;  %v14482_v47 = vld [vmem:[%s21945_s1 + $0x1e6c] sm:$0xf]  ;;  %v12801_v27 = vld [vmem:[%s21945_s1 + $0x1e80] sm:$0xf0] }
 0x2df   :  { %8208 = vmatpush.bf16.msra.mxu3 %v12588_v39  ;;  %v13257_v39 = vld [vmem:[%s21945_s1 + $0x2210] sm:$0xf0]  ;;  %v13068_v59 = vor.u32 %v14548_v48, %v13065_v53  ;;  %v14530_v48 = vld [vmem:[%s21945_s1 + $0x1fec] sm:$0xf]  ;;  %v13404_v53 = vor.u32 %v14632_v26, %v13401_v36  ;;  %v12804_v56 = vor.u32 %v14482_v47, %v12801_v27  ;;  %v13329_v47 = vld [vmem:[%s21945_s1 + $0x22a0] sm:$0xf0] }
 0x2e0   :  { %8170 = vmatpush.bf16.msra.mxu0 %v11988_v1  ;;  %v13260_v0 = vor.u32 %v14596_v54, %v13257_v39  ;;  %v13452_v1 = vor.u32 %v14644_v55, %v13449_v58  ;;  %v7964_v14 = vpop.f32.mrf.mxu0  ;;  %v12993_v54 = vld [vmem:[%s21945_s1 + $0x2000] sm:$0xf0]  ;;  %v14578_v39 = vld [vmem:[%s21945_s1 + $0x216c] sm:$0xf] }
 0x2e1   :  { %8183 = vmatpush.bf16.msra.mxu1 %v12180_v34  ;;  %v14638_v34 = vld [vmem:[%s21945_s1 + $0x234c] sm:$0xf]  ;;  %v7977_v17 = vpop.f32.mrf.mxu1  ;;  %v13185_v55 = vld [vmem:[%s21945_s1 + $0x2180] sm:$0xf0] }
 0x2e2   :  { %8196 = vmatpush.bf16.msra.mxu2 %v12372_v9  ;;  %v13425_v9 = vld [vmem:[%s21945_s1 + $0x2360] sm:$0xf0]  ;;  %v7978_v63 = vadd.f32 %v7977_v17, %v7964_v14  ;;  %v12969_v14 = vld [vmem:[%s21945_s1 + $0x1fd0] sm:$0xf0]  ;;  %v14470_v17 = vld [vmem:[%s21945_s1 + $0x1e0c] sm:$0xf] }
 0x2e3   :  { %8209 = vmatpush.bf16.msra.mxu3 %v12564_v5  ;;  %8171 = vmatmul.bf16.vlgmr.msra.gmra.mxu0 %v15747_v37  ;;  %v13044_v5 = vor.u32 %v14542_v60, %v13041_v61  ;;  %v13428_v11 = vor.u32 %v14638_v34, %v13425_v9  ;;  %v13188_v61 = vor.u32 %v14578_v39, %v13185_v55  ;;  %v14524_v34 = vld [vmem:[%s21945_s1 + $0x1fbc] sm:$0xf]  ;;  %v14566_v26 = vld [vmem:[%s21945_s1 + $0x210c] sm:$0xf]  ;;  %v13604_v39 = vld [vmem:[%s21945_s1 + $0x2f4] sm:$0xf0] }
 0x2e4   :  { %8215 = vmatpush.bf16.msrb.mxu0 %v12924_v51  ;;  %8184 = vmatmul.bf16.vlgmr.msra.gmra.mxu1 %v15760_v46  ;;  %v13236_v51 = vor.u32 %v14590_v2, %v13233_v3  ;;  %v14476_v2 = vld [vmem:[%s21945_s1 + $0x1e3c] sm:$0xf]  ;;  %v12777_v3 = vld [vmem:[%s21945_s1 + $0x1e50] sm:$0xf0]  ;;  %v9471_v55 = vld [vmem:[%s21945_s1 + $0x460] sm:$0xf] }
 0x2e5   :  { %8228 = vmatpush.bf16.msrb.mxu1 %v13116_v57  ;;  %8197 = vmatmul.bf16.vlgmr.msra.gmra.mxu2 %v15758_v45  ;;  %v14488_v57 = vld [vmem:[%s21945_s1 + $0x1e9c] sm:$0xf] }
 0x2e6   :  { %8241 = vmatpush.bf16.msrb.mxu2 %v13308_v15  ;;  %8210 = vmatmul.bf16.vlgmr.msra.gmra.mxu3 %v15768_v49  ;;  %v12825_v15 = vld [vmem:[%s21945_s1 + $0x1eb0] sm:$0xf0] }
 0x2e7   :  { %8254 = vmatpush.bf16.msrb.mxu3 %v13500_v19  ;;  %v13017_v19 = vld [vmem:[%s21945_s1 + $0x2030] sm:$0xf0] }
 0x2e8   :  { %8216 = vmatpush.bf16.msrb.mxu0 %v12900_v62  ;;  %v12828_v62 = vor.u32 %v14488_v57, %v12825_v15  ;;  %v7966_v60 = vpop.f32.mrf.mxu0  ;;  %v14620_v57 = vld [vmem:[%s21945_s1 + $0x22bc] sm:$0xf]  ;;  %v13353_v15 = vld [vmem:[%s21945_s1 + $0x22d0] sm:$0xf0] }
 0x2e9   :  { %8229 = vmatpush.bf16.msrb.mxu1 %v13092_v40  ;;  %v13020_v40 = vor.u32 %v14536_v50, %v13017_v19  ;;  %v7979_v9 = vpop.f32.mrf.mxu1  ;;  %v12780_v50 = vor.u32 %v14476_v2, %v12777_v3  ;;  %v12972_v19 = vor.u32 %v14524_v34, %v12969_v14  ;;  %v9063_v3 = vld [vmem:[%s21945_s1 + $0x130] sm:$0xf]  ;;  %v13550_v34 = vld [vmem:[%s21945_s1 + $0x144] sm:$0xf0] }
 0x2ea   :  { %8242 = vmatpush.bf16.msrb.mxu2 %v13284_v43  ;;  %v13212_v43 = vor.u32 %v14584_v7, %v13209_v24  ;;  %v14518_v24 = vld [vmem:[%s21945_s1 + $0x1f8c] sm:$0xf]  ;;  %v9255_v9 = vld [vmem:[%s21945_s1 + $0x2b0] sm:$0xf]  ;;  %v13598_v14 = vld [vmem:[%s21945_s1 + $0x2c4] sm:$0xf0] }
 0x2eb   :  { %8255 = vmatpush.bf16.msrb.mxu3 %v13476_v18  ;;  %v7990_v18 = vpop.f32.mrf.mxu2 }
 0x2ec   :  { %8217 = vmatpush.bf16.msrb.mxu0 %v12876_v32  ;;  %v7991_v58 = vadd.f32 %v7990_v18, %v7978_v63  ;;  %v8003_v32 = vpop.f32.mrf.mxu3  ;;  %v12945_v63 = vld [vmem:[%s21945_s1 + $0x1fa0] sm:$0xf0]  ;;  %v13556_v18 = vld [vmem:[%s21945_s1 + $0x174] sm:$0xf0] }
 0x2ed   :  { %8230 = vmatpush.bf16.msrb.mxu1 %v13068_v59  ;;  %v14626_v59 = vld [vmem:[%s21945_s1 + $0x22ec] sm:$0xf] }
 0x2ee   :  { %8243 = vmatpush.bf16.msrb.mxu2 %v13260_v0  ;;  %v13377_v0 = vld [vmem:[%s21945_s1 + $0x2300] sm:$0xf0]  ;;  %v19483_v52 = vadd.f32 %v8003_v32, %v7991_v58  ;;  %v13652_v58 = vld [vmem:[%s21945_s1 + $0x474] sm:$0xf0]  ;;  %v12948_v32 = vor.u32 %v14518_v24, %v12945_v63  ;;  %v9231_v24 = vld [vmem:[%s21945_s1 + $0x280] sm:$0xf] }
 0x2ef   :  { %8256 = vmatpush.bf16.msrb.mxu3 %v13452_v1  ;;  %v12996_v1 = vor.u32 %v14530_v48, %v12993_v54  ;;  %v9087_v48 = vld [vmem:[%s21945_s1 + $0x160] sm:$0xf]  ;;  %v9472_v2 = vor.u32 %v13652_v58, %v9471_v55  ;;  %v13586_v55 = vld [vmem:[%s21945_s1 + $0x264] sm:$0xf0]  ;;  %v9399_v58 = vld [vmem:[%s21945_s1 + $0x3d0] sm:$0xf] }
 0x2f0   :  { %8218 = vmatpush.bf16.msrb.mxu0 %v12852_v10  ;;  %v13380_v10 = vor.u32 %v14626_v59, %v13377_v0  ;;  %v9663_v0 = vld [vmem:[%s21945_s1 + $0x5e0] sm:$0xf] }
 0x2f1   :  { %8231 = vmatpush.bf16.msrb.mxu1 %v13044_v5  ;;  %v14572_v5 = vld [vmem:[%s21945_s1 + $0x213c] sm:$0xf] }
 0x2f2   :  { %8244 = vmatpush.bf16.msrb.mxu2 %v13236_v51  ;;  %v13161_v51 = vld [vmem:[%s21945_s1 + $0x2150] sm:$0xf0] }
 0x2f3   :  { %8257 = vmatpush.bf16.msrb.mxu3 %v13428_v11  ;;  %v12753_v11 = vld [vmem:[%s21945_s1 + $0x1e20] sm:$0xf0]  ;;  %v13164_v7 = vor.u32 %v14572_v5, %v13161_v51  ;;  %v7992_v36 = vpop.f32.mrf.mxu2  ;;  %v9447_v5 = vld [vmem:[%s21945_s1 + $0x430] sm:$0xf]  ;;  %v13646_v51 = vld [vmem:[%s21945_s1 + $0x444] sm:$0xf0] }
 0x2f4   :  { %8219 = vmatpush.bf16.msrb.mxu0 %v12828_v62  ;;  %v13356_v62 = vor.u32 %v14620_v57, %v13353_v15  ;;  %v8005_v27 = vpop.f32.mrf.mxu3  ;;  %v12756_v54 = vor.u32 %v14470_v17, %v12753_v11  ;;  %v9639_v57 = vld [vmem:[%s21945_s1 + $0x5b0] sm:$0xf]  ;;  %v13694_v15 = vld [vmem:[%s21945_s1 + $0x5c4] sm:$0xf0]  ;;  %v9256_v17 = vor.u32 %v13598_v14, %v9255_v9  ;;  %v9448_v11 = vor.u32 %v13646_v51, %v9447_v5  ;;  %v9423_v36 = vld [vmem:[%s21945_s1 + $0x400] sm:$0xf] }
 0x2f5   :  { %8232 = vmatpush.bf16.msrb.mxu1 %v13020_v40  ;;  %v13137_v40 = vld [vmem:[%s21945_s1 + $0x2120] sm:$0xf0]  ;;  %v9640_v63 = vor.u32 %v13694_v15, %v9639_v57  ;;  %v13580_v5 = vld [vmem:[%s21945_s1 + $0x234] sm:$0xf0]  ;;  %v9375_v51 = vld [vmem:[%s21945_s1 + $0x3a0] sm:$0xf] }
 0x2f6   :  { %8245 = vmatpush.bf16.msrb.mxu2 %v13212_v43  ;;  %v14614_v43 = vld [vmem:[%s21945_s1 + $0x228c] sm:$0xf]  ;;  %v13140_v59 = vor.u32 %v14566_v26, %v13137_v40  ;;  %v13592_v26 = vld [vmem:[%s21945_s1 + $0x294] sm:$0xf0]  ;;  %v9615_v40 = vld [vmem:[%s21945_s1 + $0x580] sm:$0xf] }
 0x2f7   :  { %8258 = vmatpush.bf16.msrb.mxu3 %v13404_v53  ;;  %v9279_v53 = vld [vmem:[%s21945_s1 + $0x2e0] sm:$0xf]  ;;  %v13332_v60 = vor.u32 %v14614_v43, %v13329_v47  ;;  %v13688_v43 = vld [vmem:[%s21945_s1 + $0x594] sm:$0xf0]  ;;  %v9232_v27 = vor.u32 %v13592_v26, %v9231_v24  ;;  %v13526_v24 = vld [vmem:[%s21945_s1 + $0x84] sm:$0xf0] }
 0x2f8   :  { %8220 = vmatpush.bf16.msrb.mxu0 %v12804_v56  ;;  %v13700_v56 = vld [vmem:[%s21945_s1 + $0x5f4] sm:$0xf0]  ;;  %v9567_v15 = vld [vmem:[%s21945_s1 + $0x520] sm:$0xf] }
 0x2f9   :  { %8233 = vmatpush.bf16.msrb.mxu1 %v12996_v1  ;;  %v9088_v1 = vor.u32 %v13556_v18, %v9087_v48  ;;  %v9015_v18 = vld [vmem:[%s21945_s1 + $0xd0] sm:$0xf]  ;;  %v13628_v57 = vld [vmem:[%s21945_s1 + $0x3b4] sm:$0xf0] }
 0x2fa   :  { %8246 = vmatpush.bf16.msrb.mxu2 %v13188_v61  ;;  %v9280_v61 = vor.u32 %v13604_v39, %v9279_v53  ;;  %v13538_v53 = vld [vmem:[%s21945_s1 + $0xe4] sm:$0xf0]  ;;  %v9616_v39 = vor.u32 %v13688_v43, %v9615_v40  ;;  %v9351_v40 = vld [vmem:[%s21945_s1 + $0x370] sm:$0xf] }
 0x2fb   :  { %8259 = vmatpush.bf16.msrb.mxu3 %v13380_v10  ;;  %v9664_v10 = vor.u32 %v13700_v56, %v9663_v0  ;;  %v13682_v0 = vld [vmem:[%s21945_s1 + $0x564] sm:$0xf0]  ;;  %v9016_v56 = vor.u32 %v13538_v53, %v9015_v18 }
 0x2fc   :  { %8221 = vmatpush.bf16.msrb.mxu0 %v12780_v50  ;;  %v9064_v50 = vor.u32 %v13550_v34, %v9063_v3  ;;  %v13532_v3 = vld [vmem:[%s21945_s1 + $0xb4] sm:$0xf0]  ;;  %v9183_v34 = vld [vmem:[%s21945_s1 + $0x220] sm:$0xf]  ;;  %v13622_v43 = vld [vmem:[%s21945_s1 + $0x384] sm:$0xf0] }
 0x2fd   :  { %8234 = vmatpush.bf16.msrb.mxu1 %v12972_v19  ;;  %v9039_v19 = vld [vmem:[%s21945_s1 + $0x100] sm:$0xf]  ;;  %v13670_v18 = vld [vmem:[%s21945_s1 + $0x504] sm:$0xf0] }
 0x2fe   :  { %8247 = vmatpush.bf16.msrb.mxu2 %v13164_v7  ;;  %v13544_v7 = vld [vmem:[%s21945_s1 + $0x114] sm:$0xf0] }
 0x2ff   :  { %8260 = vmatpush.bf16.msrb.mxu3 %v13356_v62  ;;  %v13640_v62 = vld [vmem:[%s21945_s1 + $0x414] sm:$0xf0]  ;;  %v9040_v47 = vor.u32 %v13544_v7, %v9039_v19  ;;  %v9376_v19 = vor.u32 %v13628_v57, %v9375_v51  ;;  %v8967_v7 = vld [vmem:[%s21945_s1 + $0x70] sm:$0xf] }
 0x300   :  { %8222 = vmatpush.bf16.msrb.mxu0 %v12756_v54  ;;  %v9424_v48 = vor.u32 %v13640_v62, %v9423_v36  ;;  %v9207_v54 = vld [vmem:[%s21945_s1 + $0x250] sm:$0xf]  ;;  %v13574_v62 = vld [vmem:[%s21945_s1 + $0x204] sm:$0xf0]  ;;  %v8968_v53 = vor.u32 %v13526_v24, %v8967_v7 }
 0x301   :  { %8235 = vmatpush.bf16.msrb.mxu1 %v12948_v32  ;;  %v13634_v32 = vld [vmem:[%s21945_s1 + $0x3e4] sm:$0xf0]  ;;  %v9111_v57 = vld [vmem:[%s21945_s1 + $0x190] sm:$0xf] }
 0x302   :  { %8248 = vmatpush.bf16.msrb.mxu2 %v13140_v59  ;;  %v9591_v59 = vld [vmem:[%s21945_s1 + $0x550] sm:$0xf]  ;;  %v13658_v7 = vld [vmem:[%s21945_s1 + $0x4a4] sm:$0xf0] }
 0x303   :  { %8261 = vmatpush.bf16.msrb.mxu3 %v13332_v60  ;;  %8223 = vmatmul.bf16.vlgmr.msrb.gmra.mxu0 %v15959_v8  ;;  %v8016_v60 = vpop.f32.mrf.mxu0  ;;  %v9592_v14 = vor.u32 %v13682_v0, %v9591_v59  ;;  %v13520_v59 = vld [vmem:[%s21945_s1 + $0x54] sm:$0xf0]  ;;  %v9135_v0 = vld [vmem:[%s21945_s1 + $0x1c0] sm:$0xf] }
 0x304   :  { %8267 = vmatpush.bf16.msra.mxu0 %v9088_v1  ;;  %8236 = vmatmul.bf16.vlgmr.msrb.gmra.mxu1 %v15972_v13  ;;  %v9208_v1 = vor.u32 %v13586_v55, %v9207_v54  ;;  %v8017_v9 = vadd.f32 %v8016_v60, %v19483_v52  ;;  %v13676_v52 = vld [vmem:[%s21945_s1 + $0x534] sm:$0xf0] }
 0x305   :  { %8280 = vmatpush.bf16.msra.mxu1 %v9280_v61  ;;  %8249 = vmatmul.bf16.vlgmr.msrb.gmra.mxu2 %v15970_v12  ;;  %v9400_v61 = vor.u32 %v13634_v32, %v9399_v58  ;;  %v9568_v36 = vor.u32 %v13676_v52, %v9567_v15  ;;  %v9352_v58 = vor.u32 %v13622_v43, %v9351_v40  ;;  %v8943_v32 = vld [vmem:[%s21945_s1 + $0x40] sm:$0xf]  ;;  %v13562_v15 = vld [vmem:[%s21945_s1 + $0x1a4] sm:$0xf0]  ;;  %v9303_v52 = vld [vmem:[%s21945_s1 + $0x310] sm:$0xf] }
 0x306   :  { %8293 = vmatpush.bf16.msra.mxu2 %v9472_v2  ;;  %8262 = vmatmul.bf16.vlgmr.msrb.gmra.mxu3 %v15980_v16  ;;  %v8991_v2 = vld [vmem:[%s21945_s1 + $0xa0] sm:$0xf]  ;;  %v13796_v40 = vld [vmem:[%s21945_s1 + $0x8f4] sm:$0xf0] }
 0x307   :  { %8306 = vmatpush.bf16.msra.mxu3 %v9664_v10  ;;  %v8029_v10 = vpop.f32.mrf.mxu1  ;;  %v10239_v43 = vld [vmem:[%s21945_s1 + $0xa60] sm:$0xf] }
 0x308   :  { %8268 = vmatpush.bf16.msra.mxu0 %v9064_v50  ;;  %v8030_v50 = vadd.f32 %v8029_v10, %v8017_v9  ;;  %v8042_v26 = vpop.f32.mrf.mxu2  ;;  %v8944_v9 = vor.u32 %v13520_v59, %v8943_v32  ;;  %v8919_v10 = vld [vmem:[%s21945_s1 + $0x10] sm:$0xf] }
 0x309   :  { %8281 = vmatpush.bf16.msra.mxu1 %v9256_v17  ;;  %v8992_v17 = vor.u32 %v13532_v3, %v8991_v2  ;;  %v13616_v2 = vld [vmem:[%s21945_s1 + $0x354] sm:$0xf0]  ;;  %v9519_v3 = vld [vmem:[%s21945_s1 + $0x4c0] sm:$0xf]  ;;  %v9831_v59 = vld [vmem:[%s21945_s1 + $0x730] sm:$0xf] }
 0x30a   :  { %8294 = vmatpush.bf16.msra.mxu2 %v9448_v11  ;;  %v9184_v11 = vor.u32 %v13580_v5, %v9183_v34  ;;  %v13664_v34 = vld [vmem:[%s21945_s1 + $0x4d4] sm:$0xf0] }
 0x30b   :  { %8307 = vmatpush.bf16.msra.mxu3 %v9640_v63  ;;  %v9159_v63 = vld [vmem:[%s21945_s1 + $0x1f0] sm:$0xf] }
 0x30c   :  { %8269 = vmatpush.bf16.msra.mxu0 %v9040_v47  ;;  %v8043_v47 = vadd.f32 %v8042_v26, %v8030_v50  ;;  %v9160_v55 = vor.u32 %v13574_v62, %v9159_v63  ;;  %v9855_v63 = vld [vmem:[%s21945_s1 + $0x760] sm:$0xf]  ;;  %v13748_v26 = vld [vmem:[%s21945_s1 + $0x774] sm:$0xf0] }
 0x30d   :  { %8282 = vmatpush.bf16.msra.mxu1 %v9232_v27  ;;  %v8055_v27 = vpop.f32.mrf.mxu3 }
 0x30e   :  { %8295 = vmatpush.bf16.msra.mxu2 %v9424_v48  ;;  %v9543_v48 = vld [vmem:[%s21945_s1 + $0x4f0] sm:$0xf]  ;;  %v19682_v54 = vadd.f32 %v8055_v27, %v8043_v47  ;;  %v13844_v47 = vld [vmem:[%s21945_s1 + $0xa74] sm:$0xf0]  ;;  %v9112_v27 = vor.u32 %v13562_v15, %v9111_v57  ;;  %v9999_v57 = vld [vmem:[%s21945_s1 + $0x880] sm:$0xf] }
 0x30f   :  { %8308 = vmatpush.bf16.msra.mxu3 %v9616_v39  ;;  %v8018_v39 = vpop.f32.mrf.mxu0  ;;  %v9544_v60 = vor.u32 %v13670_v18, %v9543_v48  ;;  %v10431_v18 = vld [vmem:[%s21945_s1 + $0xbe0] sm:$0xf]  ;;  %v10240_v32 = vor.u32 %v13844_v47, %v10239_v43  ;;  %v13778_v43 = vld [vmem:[%s21945_s1 + $0x864] sm:$0xf0]  ;;  %v10167_v47 = vld [vmem:[%s21945_s1 + $0x9d0] sm:$0xf] }
 0x310   :  { %8270 = vmatpush.bf16.msra.mxu0 %v9016_v56  ;;  %v8031_v56 = vpop.f32.mrf.mxu1  ;;  %v8044_v50 = vpop.f32.mrf.mxu2 }
 0x311   :  { %8283 = vmatpush.bf16.msra.mxu1 %v9208_v1  ;;  %v13568_v1 = vld [vmem:[%s21945_s1 + $0x1d4] sm:$0xf0]  ;;  %v10023_v56 = vld [vmem:[%s21945_s1 + $0x8b0] sm:$0xf]  ;;  %v10191_v50 = vld [vmem:[%s21945_s1 + $0xa00] sm:$0xf] }
 0x312   :  { %8296 = vmatpush.bf16.msra.mxu2 %v9400_v61  ;;  %v9327_v61 = vld [vmem:[%s21945_s1 + $0x340] sm:$0xf]  ;;  %v9136_v5 = vor.u32 %v13568_v1, %v9135_v0  ;;  %v13742_v0 = vld [vmem:[%s21945_s1 + $0x744] sm:$0xf0] }
 0x313   :  { %8309 = vmatpush.bf16.msra.mxu3 %v9592_v14  ;;  %v13514_v14 = vld [vmem:[%s21945_s1 + $0x24] sm:$0xf0]  ;;  %v9328_v51 = vor.u32 %v13616_v2, %v9327_v61  ;;  %v10215_v61 = vld [vmem:[%s21945_s1 + $0xa30] sm:$0xf] }
 0x314   :  { %8271 = vmatpush.bf16.msra.mxu0 %v8992_v17  ;;  %v9520_v17 = vor.u32 %v13664_v34, %v9519_v3  ;;  %v8920_v62 = vor.u32 %v13514_v14, %v8919_v10  ;;  %v13790_v1 = vld [vmem:[%s21945_s1 + $0x8c4] sm:$0xf0]  ;;  %v10407_v3 = vld [vmem:[%s21945_s1 + $0xbb0] sm:$0xf] }
 0x315   :  { %8284 = vmatpush.bf16.msra.mxu1 %v9184_v11  ;;  %v13610_v11 = vld [vmem:[%s21945_s1 + $0x324] sm:$0xf0]  ;;  %v8057_v24 = vpop.f32.mrf.mxu3  ;;  %v10024_v10 = vor.u32 %v13790_v1, %v10023_v56  ;;  %v13724_v56 = vld [vmem:[%s21945_s1 + $0x6b4] sm:$0xf0] }
 0x316   :  { %8297 = vmatpush.bf16.msra.mxu2 %v9376_v19  ;;  %v9495_v19 = vld [vmem:[%s21945_s1 + $0x490] sm:$0xf]  ;;  %v9304_v48 = vor.u32 %v13610_v11, %v9303_v52  ;;  %v13838_v2 = vld [vmem:[%s21945_s1 + $0xa44] sm:$0xf0]  ;;  %v13784_v52 = vld [vmem:[%s21945_s1 + $0x894] sm:$0xf0] }
 0x317   :  { %8310 = vmatpush.bf16.msra.mxu3 %v9568_v36  ;;  %v10047_v36 = vld [vmem:[%s21945_s1 + $0x8e0] sm:$0xf]  ;;  %v9496_v39 = vor.u32 %v13658_v7, %v9495_v19  ;;  %v13886_v34 = vld [vmem:[%s21945_s1 + $0xbc4] sm:$0xf0]  ;;  %v10216_v14 = vor.u32 %v13838_v2, %v10215_v61  ;;  %v13880_v19 = vld [vmem:[%s21945_s1 + $0xb94] sm:$0xf0]  ;;  %v10000_v24 = vor.u32 %v13784_v52, %v9999_v57 }
 0x318   :  { %8272 = vmatpush.bf16.msra.mxu0 %v8968_v53  ;;  %v13892_v53 = vld [vmem:[%s21945_s1 + $0xbf4] sm:$0xf0]  ;;  %v10408_v15 = vor.u32 %v13886_v34, %v10407_v3  ;;  %v10383_v11 = vld [vmem:[%s21945_s1 + $0xb80] sm:$0xf]  ;;  %v13718_v57 = vld [vmem:[%s21945_s1 + $0x684] sm:$0xf0] }
 0x319   :  { %8285 = vmatpush.bf16.msra.mxu1 %v9160_v55  ;;  %v9856_v55 = vor.u32 %v13748_v26, %v9855_v63  ;;  %v9783_v26 = vld [vmem:[%s21945_s1 + $0x6d0] sm:$0xf]  ;;  %v13772_v61 = vld [vmem:[%s21945_s1 + $0x834] sm:$0xf0]  ;;  %v10143_v2 = vld [vmem:[%s21945_s1 + $0x9a0] sm:$0xf] }
 0x31a   :  { %8298 = vmatpush.bf16.msra.mxu2 %v9352_v58  ;;  %v10048_v58 = vor.u32 %v13796_v40, %v10047_v36  ;;  %v13730_v36 = vld [vmem:[%s21945_s1 + $0x6e4] sm:$0xf0]  ;;  %v10384_v40 = vor.u32 %v13880_v19, %v10383_v11  ;;  %v13820_v3 = vld [vmem:[%s21945_s1 + $0x9b4] sm:$0xf0]  ;;  %v10335_v34 = vld [vmem:[%s21945_s1 + $0xb20] sm:$0xf] }
 0x31b   :  { %8311 = vmatpush.bf16.msra.mxu3 %v9544_v60  ;;  %v10432_v60 = vor.u32 %v13892_v53, %v10431_v18  ;;  %v10359_v18 = vld [vmem:[%s21945_s1 + $0xb50] sm:$0xf]  ;;  %v13874_v53 = vld [vmem:[%s21945_s1 + $0xb64] sm:$0xf0] }
 0x31c   :  { %8273 = vmatpush.bf16.msra.mxu0 %v8944_v9  ;;  %v9832_v9 = vor.u32 %v13742_v0, %v9831_v59  ;;  %v9759_v0 = vld [vmem:[%s21945_s1 + $0x6a0] sm:$0xf]  ;;  %v10119_v11 = vld [vmem:[%s21945_s1 + $0x970] sm:$0xf]  ;;  %v13814_v19 = vld [vmem:[%s21945_s1 + $0x984] sm:$0xf0] }
 0x31d   :  { %8286 = vmatpush.bf16.msra.mxu1 %v9136_v5  ;;  %v9807_v5 = vld [vmem:[%s21945_s1 + $0x700] sm:$0xf] }
 0x31e   :  { %8299 = vmatpush.bf16.msra.mxu2 %v9328_v51  ;;  %v13736_v51 = vld [vmem:[%s21945_s1 + $0x714] sm:$0xf0] }
 0x31f   :  { %8312 = vmatpush.bf16.msra.mxu3 %v9520_v17  ;;  %v13832_v17 = vld [vmem:[%s21945_s1 + $0xa14] sm:$0xf0]  ;;  %v9808_v7 = vor.u32 %v13736_v51, %v9807_v5  ;;  %v10144_v5 = vor.u32 %v13820_v3, %v10143_v2  ;;  %v9735_v51 = vld [vmem:[%s21945_s1 + $0x670] sm:$0xf]  ;;  %v13754_v3 = vld [vmem:[%s21945_s1 + $0x7a4] sm:$0xf0] }
 0x320   :  { %8274 = vmatpush.bf16.msra.mxu0 %v8920_v62  ;;  %v10192_v63 = vor.u32 %v13832_v17, %v10191_v50  ;;  %v9975_v62 = vld [vmem:[%s21945_s1 + $0x850] sm:$0xf]  ;;  %v13766_v17 = vld [vmem:[%s21945_s1 + $0x804] sm:$0xf0] }
 0x321   :  { %8287 = vmatpush.bf16.msra.mxu1 %v9112_v27  ;;  %v13826_v27 = vld [vmem:[%s21945_s1 + $0x9e4] sm:$0xf0]  ;;  %v9879_v2 = vld [vmem:[%s21945_s1 + $0x790] sm:$0xf] }
 0x322   :  { %8300 = vmatpush.bf16.msra.mxu2 %v9304_v48  ;;  %v8068_v48 = vpop.f32.mrf.mxu0  ;;  %v10168_v59 = vor.u32 %v13826_v27, %v10167_v47  ;;  %v10120_v27 = vor.u32 %v13814_v19, %v10119_v11  ;;  %v13988_v11 = vld [vmem:[%s21945_s1 + $0xef4] sm:$0xf0]  ;;  %v11007_v19 = vld [vmem:[%s21945_s1 + $0x1060] sm:$0xf] }
 0x323   :  { %8313 = vmatpush.bf16.msra.mxu3 %v9496_v39  ;;  %8275 = vmatmul.bf16.vlgmr.msra.gmra.mxu0 %v14975_v20  ;;  %v8069_v39 = vadd.f32 %v8068_v48, %v19682_v54  ;;  %v10360_v54 = vor.u32 %v13874_v53, %v10359_v18  ;;  %v9711_v48 = vld [vmem:[%s21945_s1 + $0x640] sm:$0xf]  ;;  %v13712_v18 = vld [vmem:[%s21945_s1 + $0x654] sm:$0xf0] }
 0x324   :  { %8319 = vmatpush.bf16.msrb.mxu0 %v9856_v55  ;;  %8288 = vmatmul.bf16.vlgmr.msra.gmra.mxu1 %v14978_v21  ;;  %v9784_v55 = vor.u32 %v13730_v36, %v9783_v26  ;;  %v13862_v26 = vld [vmem:[%s21945_s1 + $0xb04] sm:$0xf0]  ;;  %v9903_v53 = vld [vmem:[%s21945_s1 + $0x7c0] sm:$0xf] }
 0x325   :  { %8332 = vmatpush.bf16.msrb.mxu1 %v10048_v58  ;;  %8301 = vmatmul.bf16.vlgmr.msra.gmra.mxu2 %v14943_v4  ;;  %v8081_v58 = vpop.f32.mrf.mxu1 }
 0x326   :  { %8345 = vmatpush.bf16.msrb.mxu2 %v10240_v32  ;;  %8314 = vmatmul.bf16.vlgmr.msra.gmra.mxu3 %v14948_v6  ;;  %v9976_v32 = vor.u32 %v13778_v43, %v9975_v62  ;;  %v8082_v1 = vadd.f32 %v8081_v58, %v8069_v39  ;;  %v9736_v62 = vor.u32 %v13718_v57, %v9735_v51  ;;  %v10095_v58 = vld [vmem:[%s21945_s1 + $0x940] sm:$0xf] }
 0x327   :  { %8358 = vmatpush.bf16.msrb.mxu3 %v10432_v60  ;;  %v9951_v60 = vld [vmem:[%s21945_s1 + $0x820] sm:$0xf] }
 0x328   :  { %8320 = vmatpush.bf16.msrb.mxu0 %v9832_v9  ;;  %v13868_v9 = vld [vmem:[%s21945_s1 + $0xb34] sm:$0xf0]  ;;  %v8094_v50 = vpop.f32.mrf.mxu2  ;;  %v10623_v57 = vld [vmem:[%s21945_s1 + $0xd60] sm:$0xf] }
 0x329   :  { %8333 = vmatpush.bf16.msrb.mxu1 %v10024_v10  ;;  %v9760_v10 = vor.u32 %v13724_v56, %v9759_v0  ;;  %v10336_v52 = vor.u32 %v13868_v9, %v10335_v34  ;;  %v13856_v0 = vld [vmem:[%s21945_s1 + $0xad4] sm:$0xf0]  ;;  %v9712_v56 = vor.u32 %v13712_v18, %v9711_v48  ;;  %v10071_v34 = vld [vmem:[%s21945_s1 + $0x910] sm:$0xf]  ;;  %v13934_v18 = vld [vmem:[%s21945_s1 + $0xd44] sm:$0xf0] }
 0x32a   :  { %8346 = vmatpush.bf16.msrb.mxu2 %v10216_v14  ;;  %v9952_v14 = vor.u32 %v13772_v61, %v9951_v60  ;;  %v8070_v36 = vpop.f32.mrf.mxu0  ;;  %v9687_v60 = vld [vmem:[%s21945_s1 + $0x610] sm:$0xf] }
 0x32b   :  { %8359 = vmatpush.bf16.msrb.mxu3 %v10408_v15  ;;  %v9927_v15 = vld [vmem:[%s21945_s1 + $0x7f0] sm:$0xf]  ;;  %v14084_v36 = vld [vmem:[%s21945_s1 + $0x11f4] sm:$0xf0] }
 0x32c   :  { %8321 = vmatpush.bf16.msrb.mxu0 %v9808_v7  ;;  %v8095_v7 = vadd.f32 %v8094_v50, %v8082_v1  ;;  %v9928_v47 = vor.u32 %v13766_v17, %v9927_v15  ;;  %v13940_v15 = vld [vmem:[%s21945_s1 + $0xd74] sm:$0xf0]  ;;  %v10599_v48 = vld [vmem:[%s21945_s1 + $0xd30] sm:$0xf] }
 0x32d   :  { %8334 = vmatpush.bf16.msrb.mxu1 %v10000_v24  ;;  %v8107_v24 = vpop.f32.mrf.mxu3 }
 0x32e   :  { %8347 = vmatpush.bf16.msrb.mxu2 %v10192_v63  ;;  %v10311_v63 = vld [vmem:[%s21945_s1 + $0xaf0] sm:$0xf]  ;;  %v19881_v43 = vadd.f32 %v8107_v24, %v8095_v7  ;;  %v14036_v7 = vld [vmem:[%s21945_s1 + $0x1074] sm:$0xf0]  ;;  %v9880_v24 = vor.u32 %v13754_v3, %v9879_v2  ;;  %v10767_v2 = vld [vmem:[%s21945_s1 + $0xe80] sm:$0xf] }
 0x32f   :  { %8360 = vmatpush.bf16.msrb.mxu3 %v10384_v40  ;;  %v8083_v40 = vpop.f32.mrf.mxu1  ;;  %v10312_v39 = vor.u32 %v13862_v26, %v10311_v63  ;;  %v11199_v26 = vld [vmem:[%s21945_s1 + $0x11e0] sm:$0xf] }
 0x330   :  { %8322 = vmatpush.bf16.msrb.mxu0 %v9784_v55  ;;  %v13760_v55 = vld [vmem:[%s21945_s1 + $0x7d4] sm:$0xf0]  ;;  %v8096_v51 = vpop.f32.mrf.mxu2  ;;  %v10624_v40 = vor.u32 %v13940_v15, %v10623_v57 }
 0x331   :  { %8335 = vmatpush.bf16.msrb.mxu1 %v9976_v32  ;;  %v13808_v32 = vld [vmem:[%s21945_s1 + $0x954] sm:$0xf0]  ;;  %v9904_v1 = vor.u32 %v13760_v55, %v9903_v53  ;;  %v10791_v53 = vld [vmem:[%s21945_s1 + $0xeb0] sm:$0xf]  ;;  %v13982_v55 = vld [vmem:[%s21945_s1 + $0xec4] sm:$0xf0] }
 0x332   :  { %8348 = vmatpush.bf16.msrb.mxu2 %v10168_v59  ;;  %v10287_v59 = vld [vmem:[%s21945_s1 + $0xac0] sm:$0xf]  ;;  %v10096_v61 = vor.u32 %v13808_v32, %v10095_v58  ;;  %v10983_v58 = vld [vmem:[%s21945_s1 + $0x1030] sm:$0xf]  ;;  %v14030_v32 = vld [vmem:[%s21945_s1 + $0x1044] sm:$0xf0] }
 0x333   :  { %8361 = vmatpush.bf16.msrb.mxu3 %v10360_v54  ;;  %v13706_v54 = vld [vmem:[%s21945_s1 + $0x624] sm:$0xf0]  ;;  %v10288_v9 = vor.u32 %v13856_v0, %v10287_v59  ;;  %v11175_v59 = vld [vmem:[%s21945_s1 + $0x11b0] sm:$0xf] }
 0x334   :  { %8323 = vmatpush.bf16.msrb.mxu0 %v9760_v10  ;;  %v13802_v10 = vld [vmem:[%s21945_s1 + $0x924] sm:$0xf0]  ;;  %v9688_v17 = vor.u32 %v13706_v54, %v9687_v60  ;;  %v10792_v60 = vor.u32 %v13982_v55, %v10791_v53  ;;  %v10984_v54 = vor.u32 %v14030_v32, %v10983_v58  ;;  %v10719_v53 = vld [vmem:[%s21945_s1 + $0xe20] sm:$0xf]  ;;  %v13964_v55 = vld [vmem:[%s21945_s1 + $0xe34] sm:$0xf0] }
 0x335   :  { %8336 = vmatpush.bf16.msrb.mxu1 %v9952_v14  ;;  %v10263_v14 = vld [vmem:[%s21945_s1 + $0xa90] sm:$0xf]  ;;  %v8109_v50 = vpop.f32.mrf.mxu3  ;;  %v10072_v63 = vor.u32 %v13802_v10, %v10071_v34  ;;  %v14078_v0 = vld [vmem:[%s21945_s1 + $0x11c4] sm:$0xf0]  ;;  %v13976_v34 = vld [vmem:[%s21945_s1 + $0xe94] sm:$0xf0] }
 0x336   :  { %8349 = vmatpush.bf16.msrb.mxu2 %v10144_v5  ;;  %v13850_v5 = vld [vmem:[%s21945_s1 + $0xaa4] sm:$0xf0]  ;;  %v11176_v3 = vor.u32 %v14078_v0, %v11175_v59  ;;  %v14024_v10 = vld [vmem:[%s21945_s1 + $0x1014] sm:$0xf0]  ;;  %v10768_v57 = vor.u32 %v13976_v34, %v10767_v2  ;;  %v10911_v58 = vld [vmem:[%s21945_s1 + $0xfa0] sm:$0xf] }
 0x337   :  { %8362 = vmatpush.bf16.msrb.mxu3 %v10336_v52  ;;  %v10815_v52 = vld [vmem:[%s21945_s1 + $0xee0] sm:$0xf]  ;;  %v13922_v50 = vld [vmem:[%s21945_s1 + $0xce4] sm:$0xf0]  ;;  %v14012_v32 = vld [vmem:[%s21945_s1 + $0xfb4] sm:$0xf0] }
 0x338   :  { %8324 = vmatpush.bf16.msrb.mxu0 %v9736_v62  ;;  %v10264_v62 = vor.u32 %v13850_v5, %v10263_v14  ;;  %v11151_v14 = vld [vmem:[%s21945_s1 + $0x1180] sm:$0xf]  ;;  %v14072_v5 = vld [vmem:[%s21945_s1 + $0x1194] sm:$0xf0]  ;;  %v10695_v2 = vld [vmem:[%s21945_s1 + $0xdf0] sm:$0xf] }
 0x339   :  { %8337 = vmatpush.bf16.msrb.mxu1 %v9928_v47  ;;  %v10816_v47 = vor.u32 %v13988_v11, %v10815_v52  ;;  %v10551_v52 = vld [vmem:[%s21945_s1 + $0xcd0] sm:$0xf]  ;;  %v11152_v11 = vor.u32 %v14072_v5, %v11151_v14  ;;  %v11103_v59 = vld [vmem:[%s21945_s1 + $0x1120] sm:$0xf]  ;;  %v14060_v0 = vld [vmem:[%s21945_s1 + $0x1134] sm:$0xf0] }
 0x33a   :  { %8350 = vmatpush.bf16.msrb.mxu2 %v10120_v27  ;;  %v11008_v27 = vor.u32 %v14036_v7, %v11007_v19  ;;  %v13970_v19 = vld [vmem:[%s21945_s1 + $0xe64] sm:$0xf0]  ;;  %v10935_v7 = vld [vmem:[%s21945_s1 + $0xfd0] sm:$0xf] }
 0x33b   :  { %8363 = vmatpush.bf16.msrb.mxu3 %v10312_v39  ;;  %v11200_v39 = vor.u32 %v14084_v36, %v11199_v26  ;;  %v11127_v26 = vld [vmem:[%s21945_s1 + $0x1150] sm:$0xf]  ;;  %v14066_v36 = vld [vmem:[%s21945_s1 + $0x1164] sm:$0xf0] }
 0x33c   :  { %8325 = vmatpush.bf16.msrb.mxu0 %v9712_v56  ;;  %v10600_v56 = vor.u32 %v13934_v18, %v10599_v48  ;;  %v10527_v48 = vld [vmem:[%s21945_s1 + $0xca0] sm:$0xf]  ;;  %v13916_v18 = vld [vmem:[%s21945_s1 + $0xcb4] sm:$0xf0]  ;;  %v14006_v14 = vld [vmem:[%s21945_s1 + $0xf84] sm:$0xf0] }
 0x33d   :  { %8338 = vmatpush.bf16.msrb.mxu1 %v9904_v1  ;;  %v10575_v1 = vld [vmem:[%s21945_s1 + $0xd00] sm:$0xf] }
 0x33e   :  { %8351 = vmatpush.bf16.msrb.mxu2 %v10096_v61  ;;  %v13928_v61 = vld [vmem:[%s21945_s1 + $0xd14] sm:$0xf0] }
 0x33f   :  { %8364 = vmatpush.bf16.msrb.mxu3 %v10288_v9  ;;  %v10959_v9 = vld [vmem:[%s21945_s1 + $0x1000] sm:$0xf]  ;;  %v10576_v51 = vor.u32 %v13928_v61, %v10575_v1  ;;  %v10503_v1 = vld [vmem:[%s21945_s1 + $0xc70] sm:$0xf]  ;;  %v13910_v61 = vld [vmem:[%s21945_s1 + $0xc84] sm:$0xf0] }
 0x340   :  { %8326 = vmatpush.bf16.msrb.mxu0 %v9688_v17  ;;  %v10960_v15 = vor.u32 %v14024_v10, %v10959_v9  ;;  %v10743_v17 = vld [vmem:[%s21945_s1 + $0xe50] sm:$0xf]  ;;  %v13958_v9 = vld [vmem:[%s21945_s1 + $0xe04] sm:$0xf0] }
 0x341   :  { %8339 = vmatpush.bf16.msrb.mxu1 %v9880_v24  ;;  %v14018_v24 = vld [vmem:[%s21945_s1 + $0xfe4] sm:$0xf0]  ;;  %v10887_v10 = vld [vmem:[%s21945_s1 + $0xf70] sm:$0xf] }
 0x342   :  { %8352 = vmatpush.bf16.msrb.mxu2 %v10072_v63  ;;  %v20025_v63 = vpop.f32.mrf.mxu0 }
 0x343   :  { %8365 = vmatpush.bf16.msrb.mxu3 %v10264_v62  ;;  %8327 = vmatmul.bf16.vlgmr.msrb.gmra.mxu0 %v15134_v41  ;;  %v10552_v62 = vor.u32 %v13922_v50, %v10551_v52  ;;  %v10504_v52 = vor.u32 %v13910_v61, %v10503_v1  ;;  %v14042_v1 = vld [vmem:[%s21945_s1 + $0x10a4] sm:$0xf0] }
 0x344   :  { %8371 = vmatpush.bf16.msra.mxu0 %v10624_v40  ;;  %8340 = vmatmul.bf16.vlgmr.msrb.gmra.mxu1 %v15138_v44  ;;  %v20033_v40 = vpop.f32.mrf.mxu1 }
 0x345   :  { %8384 = vmatpush.bf16.msra.mxu1 %v10816_v47  ;;  %8353 = vmatmul.bf16.vlgmr.msrb.gmra.mxu2 %v15126_v38  ;;  %v10744_v47 = vor.u32 %v13970_v19, %v10743_v17  ;;  %v10696_v17 = vor.u32 %v13958_v9, %v10695_v2  ;;  %v10479_v19 = vld [vmem:[%s21945_s1 + $0xc40] sm:$0xf] }
 0x346   :  { %8397 = vmatpush.bf16.msra.mxu2 %v11008_v27  ;;  %8366 = vmatmul.bf16.vlgmr.msrb.gmra.mxu3 %v15136_v42  ;;  %v10936_v27 = vor.u32 %v14018_v24, %v10935_v7  ;;  %v13904_v7 = vld [vmem:[%s21945_s1 + $0xc54] sm:$0xf0]  ;;  %v10671_v24 = vld [vmem:[%s21945_s1 + $0xdc0] sm:$0xf] }
 0x347   :  { %8410 = vmatpush.bf16.msra.mxu3 %v11200_v39  ;;  %v11128_v39 = vor.u32 %v14066_v36, %v11127_v26  ;;  %v13952_v36 = vld [vmem:[%s21945_s1 + $0xdd4] sm:$0xf0]  ;;  %v11391_v2 = vld [vmem:[%s21945_s1 + $0x1360] sm:$0xf] }
 0x348   :  { %8372 = vmatpush.bf16.msra.mxu0 %v10600_v56  ;;  %v10528_v56 = vor.u32 %v13916_v18, %v10527_v48  ;;  %v20068_v34 = vpop.f32.mrf.mxu2  ;;  %v14048_v48 = vld [vmem:[%s21945_s1 + $0x10d4] sm:$0xf0]  ;;  %v10480_v18 = vor.u32 %v13904_v7, %v10479_v19  ;;  %v11583_v9 = vld [vmem:[%s21945_s1 + $0x14e0] sm:$0xf] }
 0x349   :  { %8385 = vmatpush.bf16.msra.mxu1 %v10792_v60  ;;  %v10720_v60 = vor.u32 %v13964_v55, %v10719_v53  ;;  %v20079_v5 = vpop.f32.mrf.mxu3  ;;  %v10455_v53 = vld [vmem:[%s21945_s1 + $0xc10] sm:$0xf]  ;;  %v10672_v55 = vor.u32 %v13952_v36, %v10671_v24 }
 0x34a   :  { %8398 = vmatpush.bf16.msra.mxu2 %v10984_v54  ;;  %v10912_v54 = vor.u32 %v14012_v32, %v10911_v58  ;;  %v10647_v32 = vld [vmem:[%s21945_s1 + $0xd90] sm:$0xf] }
 0x34b   :  { %8411 = vmatpush.bf16.msra.mxu3 %v11176_v3  ;;  %v11104_v3 = vor.u32 %v14060_v0, %v11103_v59  ;;  %v13946_v59 = vld [vmem:[%s21945_s1 + $0xda4] sm:$0xf0]  ;;  %v10839_v0 = vld [vmem:[%s21945_s1 + $0xf10] sm:$0xf] }
 0x34c   :  { %8373 = vmatpush.bf16.msra.mxu0 %v10576_v51  ;;  %v11079_v51 = vld [vmem:[%s21945_s1 + $0x10f0] sm:$0xf]  ;;  %v8135_v50 = vpop.f32.mrf.mxu1 }
 0x34d   :  { %8386 = vmatpush.bf16.msra.mxu1 %v10768_v57  ;;  %v14054_v57 = vld [vmem:[%s21945_s1 + $0x1104] sm:$0xf0]  ;;  %v11367_v36 = vld [vmem:[%s21945_s1 + $0x1330] sm:$0xf] }
 0x34e   :  { %8399 = vmatpush.bf16.msra.mxu2 %v10960_v15  ;;  %v8122_v15 = vpop.f32.mrf.mxu0  ;;  %v11080_v26 = vor.u32 %v14054_v57, %v11079_v51  ;;  %v14180_v51 = vld [vmem:[%s21945_s1 + $0x14f4] sm:$0xf0]  ;;  %v11775_v57 = vld [vmem:[%s21945_s1 + $0x1660] sm:$0xf] }
 0x34f   :  { %8412 = vmatpush.bf16.msra.mxu3 %v11152_v11  ;;  %v10888_v11 = vor.u32 %v14006_v14, %v10887_v10  ;;  %v14228_v15 = vld [vmem:[%s21945_s1 + $0x1674] sm:$0xf0]  ;;  %v11584_v24 = vor.u32 %v14180_v51, %v11583_v9 }
 0x350   :  { %8374 = vmatpush.bf16.msra.mxu0 %v10552_v62  ;;  %v10863_v62 = vld [vmem:[%s21945_s1 + $0xf40] sm:$0xf]  ;;  %v8148_v61 = vpop.f32.mrf.mxu2  ;;  %v14264_v9 = vld [vmem:[%s21945_s1 + $0x1794] sm:$0xf0] }
 0x351   :  { %8387 = vmatpush.bf16.msra.mxu1 %v10744_v47  ;;  %v14000_v47 = vld [vmem:[%s21945_s1 + $0xf54] sm:$0xf0]  ;;  %v8161_v10 = vpop.f32.mrf.mxu3  ;;  %v11727_v61 = vld [vmem:[%s21945_s1 + $0x1600] sm:$0xf] }
 0x352   :  { %8400 = vmatpush.bf16.msra.mxu2 %v10936_v27  ;;  %v11055_v27 = vld [vmem:[%s21945_s1 + $0x10c0] sm:$0xf]  ;;  %v10864_v58 = vor.u32 %v14000_v47, %v10863_v62  ;;  %v14126_v62 = vld [vmem:[%s21945_s1 + $0x1344] sm:$0xf0]  ;;  %v11559_v47 = vld [vmem:[%s21945_s1 + $0x14b0] sm:$0xf] }
 0x353   :  { %8413 = vmatpush.bf16.msra.mxu3 %v11128_v39  ;;  %v13898_v39 = vld [vmem:[%s21945_s1 + $0xc24] sm:$0xf0] }
 0x354   :  { %8375 = vmatpush.bf16.msra.mxu0 %v10528_v56  ;;  %v11056_v56 = vor.u32 %v14048_v48, %v11055_v27  ;;  %v10456_v14 = vor.u32 %v13898_v39, %v10455_v53  ;;  %v14174_v48 = vld [vmem:[%s21945_s1 + $0x14c4] sm:$0xf0]  ;;  %v11943_v39 = vld [vmem:[%s21945_s1 + $0x17b0] sm:$0xf] }
 0x355   :  { %8388 = vmatpush.bf16.msra.mxu1 %v10720_v60  ;;  %v13994_v60 = vld [vmem:[%s21945_s1 + $0xf24] sm:$0xf0] }
 0x356   :  { %8401 = vmatpush.bf16.msra.mxu2 %v10912_v54  ;;  %v11031_v54 = vld [vmem:[%s21945_s1 + $0x1090] sm:$0xf]  ;;  %v10840_v50 = vor.u32 %v13994_v60, %v10839_v0  ;;  %v14222_v53 = vld [vmem:[%s21945_s1 + $0x1644] sm:$0xf0]  ;;  %v11343_v0 = vld [vmem:[%s21945_s1 + $0x1300] sm:$0xf] }
 0x357   :  { %8414 = vmatpush.bf16.msra.mxu3 %v11104_v3  ;;  %v14132_v3 = vld [vmem:[%s21945_s1 + $0x1374] sm:$0xf0]  ;;  %v11032_v19 = vor.u32 %v14042_v1, %v11031_v54  ;;  %v11535_v60 = vld [vmem:[%s21945_s1 + $0x1480] sm:$0xf] }
 0x358   :  { %8376 = vmatpush.bf16.msra.mxu0 %v10504_v52  ;;  %v10648_v52 = vor.u32 %v13946_v59, %v10647_v32  ;;  %v11392_v7 = vor.u32 %v14132_v3, %v11391_v2  ;;  %v11560_v32 = vor.u32 %v14174_v48, %v11559_v47  ;;  %v14168_v1 = vld [vmem:[%s21945_s1 + $0x1494] sm:$0xf0]  ;;  %v11919_v3 = vld [vmem:[%s21945_s1 + $0x1780] sm:$0xf] }
 0x359   :  { %8389 = vmatpush.bf16.msra.mxu1 %v10696_v17  ;;  %v11967_v17 = vld [vmem:[%s21945_s1 + $0x17e0] sm:$0xf]  ;;  %v14216_v2 = vld [vmem:[%s21945_s1 + $0x1614] sm:$0xf0] }
 0x35a   :  { %8402 = vmatpush.bf16.msra.mxu2 %v10888_v11  ;;  %v14276_v11 = vld [vmem:[%s21945_s1 + $0x17f4] sm:$0xf0]  ;;  %v11728_v51 = vor.u32 %v14216_v2, %v11727_v61  ;;  %v11295_v48 = vld [vmem:[%s21945_s1 + $0x12a0] sm:$0xf]  ;;  %v14102_v61 = vld [vmem:[%s21945_s1 + $0x1284] sm:$0xf0] }
 0x35b   :  { %8415 = vmatpush.bf16.msra.mxu3 %v11080_v26  ;;  %v11776_v26 = vor.u32 %v14228_v15, %v11775_v57  ;;  %v11968_v27 = vor.u32 %v14276_v11, %v11967_v17  ;;  %v11319_v57 = vld [vmem:[%s21945_s1 + $0x12d0] sm:$0xf]  ;;  %v14114_v15 = vld [vmem:[%s21945_s1 + $0x12e4] sm:$0xf0] }
 0x35c   :  { %8377 = vmatpush.bf16.msra.mxu0 %v10480_v18  ;;  %v11751_v18 = vld [vmem:[%s21945_s1 + $0x1630] sm:$0xf]  ;;  %v14162_v17 = vld [vmem:[%s21945_s1 + $0x1464] sm:$0xf0] }
 0x35d   :  { %8390 = vmatpush.bf16.msra.mxu1 %v10672_v55  ;;  %v14270_v55 = vld [vmem:[%s21945_s1 + $0x17c4] sm:$0xf0]  ;;  %v11752_v59 = vor.u32 %v14222_v53, %v11751_v18  ;;  %v11703_v11 = vld [vmem:[%s21945_s1 + $0x15d0] sm:$0xf]  ;;  %v14108_v18 = vld [vmem:[%s21945_s1 + $0x12b4] sm:$0xf0] }
 0x35e   :  { %8403 = vmatpush.bf16.msra.mxu2 %v10864_v58  ;;  %v11368_v58 = vor.u32 %v14126_v62, %v11367_v36  ;;  %v11944_v54 = vor.u32 %v14270_v55, %v11943_v39  ;;  %v11320_v36 = vor.u32 %v14114_v15, %v11319_v57  ;;  %v11487_v53 = vld [vmem:[%s21945_s1 + $0x1420] sm:$0xf]  ;;  %v14156_v55 = vld [vmem:[%s21945_s1 + $0x1434] sm:$0xf0]  ;;  %v11463_v2 = vld [vmem:[%s21945_s1 + $0x13f0] sm:$0xf]  ;;  %v8121_v57 = vadd.f32 %v20025_v63, %v19881_v43 }
 0x35f   :  { %8416 = vmatpush.bf16.msra.mxu3 %v11056_v56  ;;  %v14120_v56 = vld [vmem:[%s21945_s1 + $0x1314] sm:$0xf0]  ;;  %v11247_v43 = vld [vmem:[%s21945_s1 + $0x1240] sm:$0xf] }
 0x360   :  { %8378 = vmatpush.bf16.msra.mxu0 %v10456_v14  ;;  %v11344_v10 = vor.u32 %v14120_v56, %v11343_v0  ;;  %v11536_v14 = vor.u32 %v14168_v1, %v11535_v60  ;;  %v14252_v0 = vld [vmem:[%s21945_s1 + $0x1734] sm:$0xf0]  ;;  %v11296_v56 = vor.u32 %v14108_v18, %v11295_v48  ;;  %v11488_v60 = vor.u32 %v14156_v55, %v11487_v53  ;;  %v11271_v1 = vld [vmem:[%s21945_s1 + $0x1270] sm:$0xf]  ;;  %v11631_v48 = vld [vmem:[%s21945_s1 + $0x1540] sm:$0xf] }
 0x361   :  { %8391 = vmatpush.bf16.msra.mxu1 %v10648_v52  ;;  %v11511_v52 = vld [vmem:[%s21945_s1 + $0x1450] sm:$0xf]  ;;  %v20237_v62 = vpop.f32.mrf.mxu1  ;;  %v14096_v63 = vld [vmem:[%s21945_s1 + $0x1254] sm:$0xf0]  ;;  %v8134_v53 = vadd.f32 %v20033_v40, %v8121_v57  ;;  %v12351_v57 = vld [vmem:[%s21945_s1 + $0x1ae0] sm:$0xf] }
 0x362   :  { %8404 = vmatpush.bf16.msra.mxu2 %v10840_v50  ;;  %v11920_v50 = vor.u32 %v14264_v9, %v11919_v3  ;;  %v11512_v47 = vor.u32 %v14162_v17, %v11511_v52  ;;  %v11847_v52 = vld [vmem:[%s21945_s1 + $0x16f0] sm:$0xf]  ;;  %v14192_v18 = vld [vmem:[%s21945_s1 + $0x1554] sm:$0xf0] }
 0x363   :  { %8417 = vmatpush.bf16.msra.mxu3 %v11032_v19  ;;  %8379 = vmatmul.bf16.vlgmr.msra.gmra.mxu0 %v15327_v25  ;;  %v14210_v19 = vld [vmem:[%s21945_s1 + $0x15e4] sm:$0xf0]  ;;  %v14240_v55 = vld [vmem:[%s21945_s1 + $0x16d4] sm:$0xf0]  ;;  %v8147_v40 = vadd.f32 %v20068_v34, %v8134_v53 }
 0x364   :  { %8423 = vmatpush.bf16.msrb.mxu0 %v11392_v7  ;;  %8392 = vmatmul.bf16.vlgmr.msra.gmra.mxu1 %v15340_v30  ;;  %v20229_v7 = vpop.f32.mrf.mxu0  ;;  %v14186_v34 = vld [vmem:[%s21945_s1 + $0x1524] sm:$0xf0] }
 0x365   :  { %8436 = vmatpush.bf16.msrb.mxu1 %v11584_v24  ;;  %8405 = vmatmul.bf16.vlgmr.msra.gmra.mxu2 %v15338_v29  ;;  %v11895_v24 = vld [vmem:[%s21945_s1 + $0x1750] sm:$0xf] }
 0x366   :  { %8449 = vmatpush.bf16.msrb.mxu2 %v11776_v26  ;;  %8418 = vmatmul.bf16.vlgmr.msra.gmra.mxu3 %v15348_v33  ;;  %v14258_v26 = vld [vmem:[%s21945_s1 + $0x1764] sm:$0xf0] }
 0x367   :  { %8462 = vmatpush.bf16.msrb.mxu3 %v11968_v27  ;;  %v11704_v27 = vor.u32 %v14210_v19, %v11703_v11  ;;  %v11896_v39 = vor.u32 %v14258_v26, %v11895_v24  ;;  %v11272_v11 = vor.u32 %v14102_v61, %v11271_v1  ;;  %v11607_v1 = vld [vmem:[%s21945_s1 + $0x1510] sm:$0xf] }
 0x368   :  { %8424 = vmatpush.bf16.msrb.mxu0 %v11368_v58  ;;  %v11679_v58 = vld [vmem:[%s21945_s1 + $0x15a0] sm:$0xf]  ;;  %v20272_v9 = vpop.f32.mrf.mxu2 }
 0x369   :  { %8437 = vmatpush.bf16.msrb.mxu1 %v11560_v32  ;;  %v14204_v32 = vld [vmem:[%s21945_s1 + $0x15b4] sm:$0xf0]  ;;  %v20285_v15 = vpop.f32.mrf.mxu3  ;;  %v8187_v19 = vpop.f32.mrf.mxu1 }
 0x36a   :  { %8450 = vmatpush.bf16.msrb.mxu2 %v11752_v59  ;;  %v11871_v59 = vld [vmem:[%s21945_s1 + $0x1720] sm:$0xf]  ;;  %v14420_v19 = vld [vmem:[%s21945_s1 + $0x1c74] sm:$0xf0] }
 0x36b   :  { %8463 = vmatpush.bf16.msrb.mxu3 %v11944_v54  ;;  %v11680_v54 = vor.u32 %v14204_v32, %v11679_v58  ;;  %v11872_v3 = vor.u32 %v14252_v0, %v11871_v59  ;;  %v11248_v58 = vor.u32 %v14096_v63, %v11247_v43  ;;  %v11223_v32 = vld [vmem:[%s21945_s1 + $0x1210] sm:$0xf]  ;;  %v14090_v59 = vld [vmem:[%s21945_s1 + $0x1224] sm:$0xf0]  ;;  %v11608_v43 = vor.u32 %v14186_v34, %v11607_v1  ;;  %v12735_v63 = vld [vmem:[%s21945_s1 + $0x1de0] sm:$0xf] }
 0x36c   :  { %8425 = vmatpush.bf16.msrb.mxu0 %v11344_v10  ;;  %v14150_v10 = vld [vmem:[%s21945_s1 + $0x1404] sm:$0xf0]  ;;  %v8174_v17 = vpop.f32.mrf.mxu0  ;;  %v14312_v34 = vld [vmem:[%s21945_s1 + $0x1914] sm:$0xf0] }
 0x36d   :  { %8438 = vmatpush.bf16.msrb.mxu1 %v11536_v14  ;;  %v11655_v14 = vld [vmem:[%s21945_s1 + $0x1570] sm:$0xf]  ;;  %v11464_v24 = vor.u32 %v14150_v10, %v11463_v2  ;;  %v14372_v17 = vld [vmem:[%s21945_s1 + $0x1af4] sm:$0xf0] }
 0x36e   :  { %8451 = vmatpush.bf16.msrb.mxu2 %v11728_v51  ;;  %v14198_v51 = vld [vmem:[%s21945_s1 + $0x1584] sm:$0xf0]  ;;  %v11799_v2 = vld [vmem:[%s21945_s1 + $0x1690] sm:$0xf] }
 0x36f   :  { %8464 = vmatpush.bf16.msrb.mxu3 %v11920_v50  ;;  %v14246_v50 = vld [vmem:[%s21945_s1 + $0x1704] sm:$0xf0]  ;;  %v11656_v26 = vor.u32 %v14198_v51, %v11655_v14  ;;  %v12159_v14 = vld [vmem:[%s21945_s1 + $0x1960] sm:$0xf]  ;;  %v14324_v51 = vld [vmem:[%s21945_s1 + $0x1974] sm:$0xf0] }
 0x370   :  { %8426 = vmatpush.bf16.msrb.mxu0 %v11320_v36  ;;  %v11439_v36 = vld [vmem:[%s21945_s1 + $0x13c0] sm:$0xf]  ;;  %v8200_v10 = vpop.f32.mrf.mxu2 }
 0x371   :  { %8439 = vmatpush.bf16.msrb.mxu1 %v11512_v47  ;;  %v11848_v47 = vor.u32 %v14246_v50, %v11847_v52  ;;  %v8213_v52 = vpop.f32.mrf.mxu3  ;;  %v11224_v50 = vor.u32 %v14090_v59, %v11223_v32  ;;  %v12519_v32 = vld [vmem:[%s21945_s1 + $0x1c30] sm:$0xf]  ;;  %v14414_v59 = vld [vmem:[%s21945_s1 + $0x1c44] sm:$0xf0]  ;;  %v12495_v10 = vld [vmem:[%s21945_s1 + $0x1c00] sm:$0xf] }
 0x372   :  { %8452 = vmatpush.bf16.msrb.mxu2 %v11704_v27  ;;  %v14144_v27 = vld [vmem:[%s21945_s1 + $0x13d4] sm:$0xf0]  ;;  %v12520_v1 = vor.u32 %v14414_v59, %v12519_v32  ;;  %v12255_v32 = vld [vmem:[%s21945_s1 + $0x1a20] sm:$0xf] }
 0x373   :  { %8465 = vmatpush.bf16.msrb.mxu3 %v11896_v39  ;;  %v11823_v39 = vld [vmem:[%s21945_s1 + $0x16c0] sm:$0xf]  ;;  %v11440_v0 = vor.u32 %v14144_v27, %v11439_v36  ;;  %v14468_v36 = vld [vmem:[%s21945_s1 + $0x1df4] sm:$0xf0]  ;;  %v12160_v27 = vor.u32 %v14324_v51, %v12159_v14 }
 0x374   :  { %8427 = vmatpush.bf16.msrb.mxu0 %v11296_v56  ;;  %v11632_v56 = vor.u32 %v14192_v18, %v11631_v48  ;;  %v11824_v61 = vor.u32 %v14240_v55, %v11823_v39  ;;  %v12352_v18 = vor.u32 %v14372_v17, %v12351_v57  ;;  %v14318_v39 = vld [vmem:[%s21945_s1 + $0x1944] sm:$0xf0]  ;;  %v12327_v55 = vld [vmem:[%s21945_s1 + $0x1ab0] sm:$0xf]  ;;  %v14408_v14 = vld [vmem:[%s21945_s1 + $0x1c14] sm:$0xf0] }
 0x375   :  { %8440 = vmatpush.bf16.msrb.mxu1 %v11488_v60  ;;  %v11415_v60 = vld [vmem:[%s21945_s1 + $0x1390] sm:$0xf]  ;;  %v12687_v57 = vld [vmem:[%s21945_s1 + $0x1d80] sm:$0xf]  ;;  %v14456_v52 = vld [vmem:[%s21945_s1 + $0x1d94] sm:$0xf0] }
 0x376   :  { %8453 = vmatpush.bf16.msrb.mxu2 %v11680_v54  ;;  %v14138_v54 = vld [vmem:[%s21945_s1 + $0x13a4] sm:$0xf0] }
 0x377   :  { %8466 = vmatpush.bf16.msrb.mxu3 %v11872_v3  ;;  %v14234_v3 = vld [vmem:[%s21945_s1 + $0x16a4] sm:$0xf0] }
 0x378   :  { %8428 = vmatpush.bf16.msrb.mxu0 %v11272_v11  ;;  %v12543_v11 = vld [vmem:[%s21945_s1 + $0x1c60] sm:$0xf] }
 0x379   :  { %8441 = vmatpush.bf16.msrb.mxu1 %v11464_v24  ;;  %v8160_v24 = vadd.f32 %v20079_v5, %v8147_v40  ;;  %v12544_v53 = vor.u32 %v14420_v19, %v12543_v11  ;;  %v12135_v5 = vld [vmem:[%s21945_s1 + $0x1930] sm:$0xf]  ;;  %v14306_v19 = vld [vmem:[%s21945_s1 + $0x18e4] sm:$0xf0] }
 0x37a   :  { %8454 = vmatpush.bf16.msrb.mxu2 %v11656_v26  ;;  %v11416_v26 = vor.u32 %v14138_v54, %v11415_v60  ;;  %v12711_v40 = vld [vmem:[%s21945_s1 + $0x1db0] sm:$0xf] }
 0x37b   :  { %8467 = vmatpush.bf16.msrb.mxu3 %v11848_v47  ;;  %v11800_v47 = vor.u32 %v14234_v3, %v11799_v2  ;;  %v8173_v48 = vadd.f32 %v20229_v7, %v8160_v24  ;;  %v14366_v7 = vld [vmem:[%s21945_s1 + $0x1ac4] sm:$0xf0]  ;;  %v12303_v2 = vld [vmem:[%s21945_s1 + $0x1a80] sm:$0xf]  ;;  %v14360_v3 = vld [vmem:[%s21945_s1 + $0x1a94] sm:$0xf0] }
 0x37c   :  { %8429 = vmatpush.bf16.msrb.mxu0 %v11248_v58  ;;  %v12736_v58 = vor.u32 %v14468_v36, %v12735_v63  ;;  %v12328_v54 = vor.u32 %v14366_v7, %v12327_v55  ;;  %v12304_v17 = vor.u32 %v14360_v3, %v12303_v2  ;;  %v12087_v11 = vld [vmem:[%s21945_s1 + $0x18d0] sm:$0xf]  ;;  %v14402_v36 = vld [vmem:[%s21945_s1 + $0x1be4] sm:$0xf0]  ;;  %v14300_v7 = vld [vmem:[%s21945_s1 + $0x18b4] sm:$0xf0] }
 0x37d   :  { %8442 = vmatpush.bf16.msrb.mxu1 %v11440_v0  ;;  %v14462_v0 = vld [vmem:[%s21945_s1 + $0x1dc4] sm:$0xf0]  ;;  %v8186_v60 = vadd.f32 %v20237_v62, %v8173_v48  ;;  %v12279_v24 = vld [vmem:[%s21945_s1 + $0x1a50] sm:$0xf] }
 0x37e   :  { %8455 = vmatpush.bf16.msrb.mxu2 %v11632_v56  ;;  %v12136_v56 = vor.u32 %v14318_v39, %v12135_v5  ;;  %v12712_v62 = vor.u32 %v14462_v0, %v12711_v40  ;;  %v12471_v63 = vld [vmem:[%s21945_s1 + $0x1bd0] sm:$0xf]  ;;  %v14348_v40 = vld [vmem:[%s21945_s1 + $0x1a34] sm:$0xf0]  ;;  %v12447_v0 = vld [vmem:[%s21945_s1 + $0x1ba0] sm:$0xf] }
 0x37f   :  { %8468 = vmatpush.bf16.msrb.mxu3 %v11824_v61  ;;  %v12111_v61 = vld [vmem:[%s21945_s1 + $0x1900] sm:$0xf]  ;;  %v8199_v51 = vadd.f32 %v20272_v9, %v8186_v60  ;;  %v12496_v9 = vor.u32 %v14408_v14, %v12495_v10  ;;  %v12663_v48 = vld [vmem:[%s21945_s1 + $0x1d50] sm:$0xf]  ;;  %v14294_v3 = vld [vmem:[%s21945_s1 + $0x1884] sm:$0xf0] }
 0x380   :  { %8430 = vmatpush.bf16.msrb.mxu0 %v11224_v50  ;;  %v12112_v50 = vor.u32 %v14312_v34, %v12111_v61  ;;  %v12639_v60 = vld [vmem:[%s21945_s1 + $0x1d20] sm:$0xf]  ;;  %v12256_v34 = vor.u32 %v14348_v40, %v12255_v32  ;;  %v12231_v10 = vld [vmem:[%s21945_s1 + $0x19f0] sm:$0xf]  ;;  %v14282_v40 = vld [vmem:[%s21945_s1 + $0x1824] sm:$0xf0] }
 0x381   :  { %8443 = vmatpush.bf16.msrb.mxu1 %v11416_v26  ;;  %v12688_v26 = vor.u32 %v14456_v52, %v12687_v57  ;;  %v8237_v5 = vpop.f32.mrf.mxu1  ;;  %v14342_v57 = vld [vmem:[%s21945_s1 + $0x1a04] sm:$0xf0]  ;;  %v12423_v52 = vld [vmem:[%s21945_s1 + $0x1b70] sm:$0xf] }
 0x382   :  { %8456 = vmatpush.bf16.msrb.mxu2 %v11608_v43  ;;  %v14354_v43 = vld [vmem:[%s21945_s1 + $0x1a64] sm:$0xf0] }
 0x383   :  { %8469 = vmatpush.bf16.msrb.mxu3 %v11800_v47  ;;  %8431 = vmatmul.bf16.vlgmr.msrb.gmra.mxu0 %v15537_v23  ;;  %v8212_v47 = vadd.f32 %v20285_v15, %v8199_v51  ;;  %v12280_v55 = vor.u32 %v14354_v43, %v12279_v24  ;;  %v12063_v15 = vld [vmem:[%s21945_s1 + $0x18a0] sm:$0xf] }
 0x384   :  { %8475 = vmatpush.bf16.msra.mxu0 %v12160_v27  ;;  %8444 = vmatmul.bf16.vlgmr.msrb.gmra.mxu1 %v15550_v31  ;;  %v8224_v27 = vpop.f32.mrf.mxu0 }
 0x385   :  { %8488 = vmatpush.bf16.msra.mxu1 %v12352_v18  ;;  %8457 = vmatmul.bf16.vlgmr.msrb.gmra.mxu2 %v15548_v28  ;;  %v14450_v18 = vld [vmem:[%s21945_s1 + $0x1d64] sm:$0xf0]  ;;  %v8225_v39 = vadd.f32 %v8224_v27, %v8212_v47  ;;  %v12015_v27 = vld [vmem:[%s21945_s1 + $0x1840] sm:$0xf] }
 0x386   :  { %8501 = vmatpush.bf16.msra.mxu2 %v12544_v53  ;;  %8470 = vmatmul.bf16.vlgmr.msrb.gmra.mxu3 %v15558_v35  ;;  %v12088_v53 = vor.u32 %v14306_v19, %v12087_v11  ;;  %v12664_v59 = vor.u32 %v14450_v18, %v12663_v48  ;;  %v12615_v11 = vld [vmem:[%s21945_s1 + $0x1cf0] sm:$0xf]  ;;  %v14438_v19 = vld [vmem:[%s21945_s1 + $0x1d04] sm:$0xf0]  ;;  %v14288_v48 = vld [vmem:[%s21945_s1 + $0x1854] sm:$0xf0] }
 0x387   :  { %8514 = vmatpush.bf16.msra.mxu3 %v12736_v58  ;;  %v12472_v58 = vor.u32 %v14402_v36, %v12471_v63  ;;  %v8238_v61 = vadd.f32 %v8237_v5, %v8225_v39  ;;  %v12232_v36 = vor.u32 %v14342_v57, %v12231_v10  ;;  %v12207_v18 = vld [vmem:[%s21945_s1 + $0x19c0] sm:$0xf]  ;;  %v14336_v5 = vld [vmem:[%s21945_s1 + $0x19d4] sm:$0xf0]  ;;  %v12016_v32 = vor.u32 %v14288_v48, %v12015_v27  ;;  %v14510_v27 = vld [vmem:[%s21945_s1 + $0x1f44] sm:$0xf0] }
 0x388   :  { %8476 = vmatpush.bf16.msra.mxu0 %v12136_v56  ;;  %v14396_v56 = vld [vmem:[%s21945_s1 + $0x1bb4] sm:$0xf0]  ;;  %v8250_v51 = vpop.f32.mrf.mxu2  ;;  %v12399_v39 = vld [vmem:[%s21945_s1 + $0x1b40] sm:$0xf]  ;;  %v13095_v48 = vld [vmem:[%s21945_s1 + $0x20b0] sm:$0xf] }
 0x389   :  { %8489 = vmatpush.bf16.msra.mxu1 %v12328_v54  ;;  %v14444_v54 = vld [vmem:[%s21945_s1 + $0x1d34] sm:$0xf0]  ;;  %v12448_v2 = vor.u32 %v14396_v56, %v12447_v0  ;;  %v8239_v43 = vpop.f32.mrf.mxu1  ;;  %v12208_v0 = vor.u32 %v14336_v5, %v12207_v18  ;;  %v13287_v5 = vld [vmem:[%s21945_s1 + $0x2230] sm:$0xf] }
 0x38a   :  { %8502 = vmatpush.bf16.msra.mxu2 %v12520_v1  ;;  %v12064_v1 = vor.u32 %v14300_v7, %v12063_v15  ;;  %v12640_v14 = vor.u32 %v14444_v54, %v12639_v60  ;;  %v12591_v15 = vld [vmem:[%s21945_s1 + $0x1cc0] sm:$0xf]  ;;  %v14432_v7 = vld [vmem:[%s21945_s1 + $0x1cd4] sm:$0xf0]  ;;  %v14330_v60 = vld [vmem:[%s21945_s1 + $0x19a4] sm:$0xf0] }
 0x38b   :  { %8515 = vmatpush.bf16.msra.mxu3 %v12712_v62  ;;  %v12039_v62 = vld [vmem:[%s21945_s1 + $0x1870] sm:$0xf]  ;;  %v14516_v10 = vld [vmem:[%s21945_s1 + $0x1f74] sm:$0xf0] }
 0x38c   :  { %8477 = vmatpush.bf16.msra.mxu0 %v12112_v50  ;;  %v14390_v50 = vld [vmem:[%s21945_s1 + $0x1b84] sm:$0xf0]  ;;  %v8226_v24 = vpop.f32.mrf.mxu0  ;;  %v12375_v54 = vld [vmem:[%s21945_s1 + $0x1b10] sm:$0xf] }
 0x38d   :  { %8490 = vmatpush.bf16.msra.mxu1 %v12304_v17  ;;  %v8251_v17 = vadd.f32 %v8250_v51, %v8238_v61  ;;  %v12424_v47 = vor.u32 %v14390_v50, %v12423_v52  ;;  %v14378_v61 = vld [vmem:[%s21945_s1 + $0x1b24] sm:$0xf0]  ;;  %v14564_v52 = vld [vmem:[%s21945_s1 + $0x20f4] sm:$0xf0]  ;;  %v13311_v50 = vld [vmem:[%s21945_s1 + $0x2260] sm:$0xf] }
 0x38e   :  { %8503 = vmatpush.bf16.msra.mxu2 %v12496_v9  ;;  %v8263_v9 = vpop.f32.mrf.mxu3  ;;  %v14660_v24 = vld [vmem:[%s21945_s1 + $0x23f4] sm:$0xf0] }
 0x38f   :  { %8516 = vmatpush.bf16.msra.mxu3 %v12688_v26  ;;  %v12040_v26 = vor.u32 %v14294_v3, %v12039_v62  ;;  %v8264_v63 = vadd.f32 %v8263_v9, %v8251_v17  ;;  %v12927_v3 = vld [vmem:[%s21945_s1 + $0x1f60] sm:$0xf]  ;;  %v14612_v17 = vld [vmem:[%s21945_s1 + $0x2274] sm:$0xf0] }
 0x390   :  { %8478 = vmatpush.bf16.msra.mxu0 %v12088_v53  ;;  %v12616_v53 = vor.u32 %v14438_v19, %v12615_v11  ;;  %v8252_v62 = vpop.f32.mrf.mxu2  ;;  %v12376_v11 = vor.u32 %v14378_v61, %v12375_v54  ;;  %v13503_v19 = vld [vmem:[%s21945_s1 + $0x23e0] sm:$0xf]  ;;  %v12928_v43 = vor.u32 %v14516_v10, %v12927_v3  ;;  %v14600_v54 = vld [vmem:[%s21945_s1 + $0x2214] sm:$0xf0]  ;;  %v12855_v3 = vld [vmem:[%s21945_s1 + $0x1ed0] sm:$0xf] }
 0x391   :  { %8491 = vmatpush.bf16.msra.mxu1 %v12280_v55  ;;  %v14384_v55 = vld [vmem:[%s21945_s1 + $0x1b54] sm:$0xf0]  ;;  %v13504_v18 = vor.u32 %v14660_v24, %v13503_v19  ;;  %v14498_v10 = vld [vmem:[%s21945_s1 + $0x1ee4] sm:$0xf0] }
 0x392   :  { %8504 = vmatpush.bf16.msra.mxu2 %v12472_v58  ;;  %v8892_v58 = vpack.c.bf16 %v8264_v63, %v19285_v22  ;;  %v12183_v22 = vld [vmem:[%s21945_s1 + $0x1990] sm:$0xf]  ;;  %v12400_v56 = vor.u32 %v14384_v55, %v12399_v39  ;;  %v14606_v39 = vld [vmem:[%s21945_s1 + $0x2244] sm:$0xf0]  ;;  %v14648_v61 = vld [vmem:[%s21945_s1 + $0x2394] sm:$0xf0] }
 0x393   :  { %8517 = vmatpush.bf16.msra.mxu3 %v12664_v59  ;;  %v11991_v59 = vld [vmem:[%s21945_s1 + $0x1810] sm:$0xf]  ;;  %v12184_v9 = vor.u32 %v14330_v60, %v12183_v22  ;;  %v13071_v22 = vld [vmem:[%s21945_s1 + $0x2080] sm:$0xf] }
 0x394   :  { %8479 = vmatpush.bf16.msra.mxu0 %v12064_v1  ;;  %8895 = vst [vmem:[%s21947_s2 + $0x8] sm:$0xff] %v8892_v58  ;;  %v12592_v1 = vor.u32 %v14432_v7, %v12591_v15  ;;  %v11992_v57 = vor.u32 %v14282_v40, %v11991_v59  ;;  %v13479_v55 = vld [vmem:[%s21945_s1 + $0x23b0] sm:$0xf]  ;;  %v14654_v58 = vld [vmem:[%s21945_s1 + $0x23c4] sm:$0xf0] }
 0x395   :  { %8492 = vmatpush.bf16.msra.mxu1 %v12256_v34  ;;  %v12567_v34 = vld [vmem:[%s21945_s1 + $0x1c90] sm:$0xf]  ;;  %v12879_v59 = vld [vmem:[%s21945_s1 + $0x1f00] sm:$0xf]  ;;  %v14504_v40 = vld [vmem:[%s21945_s1 + $0x1f14] sm:$0xf0] }
 0x396   :  { %8505 = vmatpush.bf16.msra.mxu2 %v12448_v2  ;;  %v14426_v2 = vld [vmem:[%s21945_s1 + $0x1ca4] sm:$0xf0]  ;;  %v8265_v51 = vpop.f32.mrf.mxu3  ;;  %v13263_v60 = vld [vmem:[%s21945_s1 + $0x2200] sm:$0xf] }
 0x397   :  { %8518 = vmatpush.bf16.msra.mxu3 %v12640_v14  ;;  %v13119_v14 = vld [vmem:[%s21945_s1 + $0x20e0] sm:$0xf]  ;;  %v13264_v62 = vor.u32 %v14600_v54, %v13263_v60  ;;  %v13191_v60 = vld [vmem:[%s21945_s1 + $0x2170] sm:$0xf]  ;;  %v14582_v54 = vld [vmem:[%s21945_s1 + $0x2184] sm:$0xf0] }
 0x398   :  { %8480 = vmatpush.bf16.msra.mxu0 %v12040_v26  ;;  %v12568_v26 = vor.u32 %v14426_v2, %v12567_v34  ;;  %v13120_v63 = vor.u32 %v14564_v52, %v13119_v14  ;;  %v12880_v34 = vor.u32 %v14504_v40, %v12879_v59  ;;  %v13047_v14 = vld [vmem:[%s21945_s1 + $0x2050] sm:$0xf]  ;;  %v14486_v59 = vld [vmem:[%s21945_s1 + $0x1e84] sm:$0xf0] }
 0x399   :  { %8493 = vmatpush.bf16.msra.mxu1 %v12232_v36  ;;  %v13312_v36 = vor.u32 %v14612_v17, %v13311_v50  ;;  %v13239_v52 = vld [vmem:[%s21945_s1 + $0x21d0] sm:$0xf]  ;;  %v14594_v50 = vld [vmem:[%s21945_s1 + $0x21e4] sm:$0xf0] }
 0x39a   :  { %8506 = vmatpush.bf16.msra.mxu2 %v12424_v47  ;;  %v12903_v47 = vld [vmem:[%s21945_s1 + $0x1f30] sm:$0xf] }
 0x39b   :  { %8519 = vmatpush.bf16.msra.mxu3 %v12616_v53  ;;  %v14558_v53 = vld [vmem:[%s21945_s1 + $0x20c4] sm:$0xf0]  ;;  %v12904_v15 = vor.u32 %v14510_v27, %v12903_v47  ;;  %v13431_v17 = vld [vmem:[%s21945_s1 + $0x2350] sm:$0xf] }
 0x39c   :  { %8481 = vmatpush.bf16.msra.mxu0 %v12016_v32  ;;  %v13096_v7 = vor.u32 %v14558_v53, %v13095_v48  ;;  %v13288_v32 = vor.u32 %v14606_v39, %v13287_v5  ;;  %v14540_v48 = vld [vmem:[%s21945_s1 + $0x2034] sm:$0xf0]  ;;  %v13407_v39 = vld [vmem:[%s21945_s1 + $0x2320] sm:$0xf]  ;;  %v12999_v40 = vld [vmem:[%s21945_s1 + $0x1ff0] sm:$0xf] }
 0x39d   :  { %8494 = vmatpush.bf16.msra.mxu1 %v12208_v0  ;;  %v13480_v0 = vor.u32 %v14654_v58, %v13479_v55  ;;  %v14588_v53 = vld [vmem:[%s21945_s1 + $0x21b4] sm:$0xf0] }
 0x39e   :  { %8507 = vmatpush.bf16.msra.mxu2 %v12400_v56  ;;  %v14552_v56 = vld [vmem:[%s21945_s1 + $0x2094] sm:$0xf0] }
 0x39f   :  { %8520 = vmatpush.bf16.msra.mxu3 %v12592_v1  ;;  %v13455_v1 = vld [vmem:[%s21945_s1 + $0x2380] sm:$0xf]  ;;  %v13072_v2 = vor.u32 %v14552_v56, %v13071_v22  ;;  %v14636_v55 = vld [vmem:[%s21945_s1 + $0x2334] sm:$0xf0]  ;;  %v14534_v56 = vld [vmem:[%s21945_s1 + $0x2004] sm:$0xf0] }
 0x3a0   :  { %8482 = vmatpush.bf16.msra.mxu0 %v11992_v57  ;;  %v13456_v51 = vor.u32 %v14648_v61, %v13455_v1  ;;  %v14546_v57 = vld [vmem:[%s21945_s1 + $0x2064] sm:$0xf0]  ;;  %v8276_v19 = vpop.f32.mrf.mxu0 }
 0x3a1   :  { %8495 = vmatpush.bf16.msra.mxu1 %v12184_v9  ;;  %v14642_v9 = vld [vmem:[%s21945_s1 + $0x2364] sm:$0xf0]  ;;  %v13048_v24 = vor.u32 %v14546_v57, %v13047_v14  ;;  %v8289_v47 = vpop.f32.mrf.mxu1  ;;  %v13000_v14 = vor.u32 %v14534_v56, %v12999_v40  ;;  %v12783_v57 = vld [vmem:[%s21945_s1 + $0x1e40] sm:$0xf]  ;;  %v9089_v40 = vld [vmem:[%s21945_s1 + $0x178] sm:$0xf0] }
 0x3a2   :  { %8508 = vmatpush.bf16.msra.mxu2 %v12376_v11  ;;  %v12856_v11 = vor.u32 %v14498_v10, %v12855_v3  ;;  %v13432_v27 = vor.u32 %v14642_v9, %v13431_v17  ;;  %v8290_v5 = vadd.f32 %v8289_v47, %v8276_v19  ;;  %v13167_v19 = vld [vmem:[%s21945_s1 + $0x2140] sm:$0xf]  ;;  %v14474_v47 = vld [vmem:[%s21945_s1 + $0x1e24] sm:$0xf0]  ;;  %v9281_v56 = vld [vmem:[%s21945_s1 + $0x2f8] sm:$0xf0] }
 0x3a3   :  { %8521 = vmatpush.bf16.msra.mxu3 %v12568_v26  ;;  %8483 = vmatmul.bf16.vlgmr.msra.gmra.mxu0 %v15747_v37  ;;  %v13240_v26 = vor.u32 %v14594_v50, %v13239_v52  ;;  %v14480_v52 = vld [vmem:[%s21945_s1 + $0x1e54] sm:$0xf0]  ;;  %v12975_v50 = vld [vmem:[%s21945_s1 + $0x1fc0] sm:$0xf] }
 0x3a4   :  { %8527 = vmatpush.bf16.msrb.mxu0 %v12928_v43  ;;  %8496 = vmatmul.bf16.vlgmr.msra.gmra.mxu1 %v15760_v46  ;;  %v12831_v43 = vld [vmem:[%s21945_s1 + $0x1ea0] sm:$0xf] }
 0x3a5   :  { %8540 = vmatpush.bf16.msrb.mxu1 %v13120_v63  ;;  %8509 = vmatmul.bf16.vlgmr.msra.gmra.mxu2 %v15758_v45  ;;  %v14492_v63 = vld [vmem:[%s21945_s1 + $0x1eb4] sm:$0xf0] }
 0x3a6   :  { %8553 = vmatpush.bf16.msrb.mxu2 %v13312_v36  ;;  %8522 = vmatmul.bf16.vlgmr.msra.gmra.mxu3 %v15768_v49  ;;  %v13023_v36 = vld [vmem:[%s21945_s1 + $0x2020] sm:$0xf]  ;;  %v12832_v58 = vor.u32 %v14492_v63, %v12831_v43  ;;  %v14624_v43 = vld [vmem:[%s21945_s1 + $0x22d4] sm:$0xf0]  ;;  %v12784_v63 = vor.u32 %v14480_v52, %v12783_v57  ;;  %v13547_v57 = vld [vmem:[%s21945_s1 + $0x134] sm:$0xf] }
 0x3a7   :  { %8566 = vmatpush.bf16.msrb.mxu3 %v13504_v18  ;;  %v13215_v18 = vld [vmem:[%s21945_s1 + $0x21a0] sm:$0xf]  ;;  %v9065_v52 = vld [vmem:[%s21945_s1 + $0x148] sm:$0xf0] }
 0x3a8   :  { %8528 = vmatpush.bf16.msrb.mxu0 %v12904_v15  ;;  %v13024_v15 = vor.u32 %v14540_v48, %v13023_v36  ;;  %v8302_v22 = vpop.f32.mrf.mxu2  ;;  %v8278_v10 = vpop.f32.mrf.mxu0  ;;  %v12759_v36 = vld [vmem:[%s21945_s1 + $0x1e10] sm:$0xf] }
 0x3a9   :  { %8541 = vmatpush.bf16.msrb.mxu1 %v13096_v7  ;;  %v13216_v7 = vor.u32 %v14588_v53, %v13215_v18  ;;  %v8303_v1 = vadd.f32 %v8302_v22, %v8290_v5  ;;  %v8315_v61 = vpop.f32.mrf.mxu3  ;;  %v8291_v17 = vpop.f32.mrf.mxu1  ;;  %v12951_v18 = vld [vmem:[%s21945_s1 + $0x1f90] sm:$0xf]  ;;  %v14522_v53 = vld [vmem:[%s21945_s1 + $0x1fa4] sm:$0xf0]  ;;  %v13601_v22 = vld [vmem:[%s21945_s1 + $0x2e4] sm:$0xf] }
 0x3aa   :  { %8554 = vmatpush.bf16.msrb.mxu2 %v13288_v32  ;;  %v12807_v32 = vld [vmem:[%s21945_s1 + $0x1e70] sm:$0xf] }
 0x3ab   :  { %8567 = vmatpush.bf16.msrb.mxu3 %v13480_v0  ;;  %v13408_v0 = vor.u32 %v14636_v55, %v13407_v39  ;;  %v20696_v3 = vadd.f32 %v8315_v61, %v8303_v1  ;;  %v13143_v5 = vld [vmem:[%s21945_s1 + $0x2110] sm:$0xf]  ;;  %v12952_v1 = vor.u32 %v14522_v53, %v12951_v18  ;;  %v9233_v53 = vld [vmem:[%s21945_s1 + $0x298] sm:$0xf0] }
 0x3ac   :  { %8529 = vmatpush.bf16.msrb.mxu0 %v12880_v34  ;;  %v13383_v34 = vld [vmem:[%s21945_s1 + $0x22f0] sm:$0xf] }
 0x3ad   :  { %8542 = vmatpush.bf16.msrb.mxu1 %v13072_v2  ;;  %v14630_v2 = vld [vmem:[%s21945_s1 + $0x2304] sm:$0xf0] }
 0x3ae   :  { %8555 = vmatpush.bf16.msrb.mxu2 %v13264_v62  ;;  %v12808_v62 = vor.u32 %v14486_v59, %v12807_v32  ;;  %v13384_v9 = vor.u32 %v14630_v2, %v13383_v34  ;;  %v13553_v59 = vld [vmem:[%s21945_s1 + $0x164] sm:$0xf]  ;;  %v9665_v2 = vld [vmem:[%s21945_s1 + $0x5f8] sm:$0xf0] }
 0x3af   :  { %8568 = vmatpush.bf16.msrb.mxu3 %v13456_v51  ;;  %v13192_v51 = vor.u32 %v14582_v54, %v13191_v60  ;;  %v13649_v60 = vld [vmem:[%s21945_s1 + $0x464] sm:$0xf]  ;;  %v9473_v54 = vld [vmem:[%s21945_s1 + $0x478] sm:$0xf0]  ;;  %v9092_v10 = vor.u32 %v13553_v59, %v9089_v40  ;;  %v13535_v59 = vld [vmem:[%s21945_s1 + $0xd4] sm:$0xf] }
 0x3b0   :  { %8530 = vmatpush.bf16.msrb.mxu0 %v12856_v11  ;;  %v14528_v11 = vld [vmem:[%s21945_s1 + $0x1fd4] sm:$0xf0]  ;;  %v8304_v39 = vpop.f32.mrf.mxu2  ;;  %v13697_v34 = vld [vmem:[%s21945_s1 + $0x5e4] sm:$0xf]  ;;  %v9017_v40 = vld [vmem:[%s21945_s1 + $0xe8] sm:$0xf0] }
 0x3b1   :  { %8543 = vmatpush.bf16.msrb.mxu1 %v13048_v24  ;;  %v14576_v24 = vld [vmem:[%s21945_s1 + $0x2154] sm:$0xf0]  ;;  %v8317_v32 = vpop.f32.mrf.mxu3  ;;  %v9668_v17 = vor.u32 %v13697_v34, %v9665_v2  ;;  %v9425_v39 = vld [vmem:[%s21945_s1 + $0x418] sm:$0xf0]  ;;  %v9020_v34 = vor.u32 %v13535_v59, %v9017_v40 }
 0x3b2   :  { %8556 = vmatpush.bf16.msrb.mxu2 %v13240_v26  ;;  %v13359_v26 = vld [vmem:[%s21945_s1 + $0x22c0] sm:$0xf]  ;;  %v13168_v48 = vor.u32 %v14576_v24, %v13167_v19  ;;  %v9449_v19 = vld [vmem:[%s21945_s1 + $0x448] sm:$0xf0]  ;;  %v13691_v24 = vld [vmem:[%s21945_s1 + $0x5b4] sm:$0xf] }
 0x3b3   :  { %8569 = vmatpush.bf16.msrb.mxu3 %v13432_v27  ;;  %v12976_v27 = vor.u32 %v14528_v11, %v12975_v50  ;;  %v13360_v55 = vor.u32 %v14624_v43, %v13359_v26  ;;  %v13595_v50 = vld [vmem:[%s21945_s1 + $0x2b4] sm:$0xf]  ;;  %v9641_v26 = vld [vmem:[%s21945_s1 + $0x5c8] sm:$0xf0]  ;;  %v9068_v43 = vor.u32 %v13547_v57, %v9065_v52  ;;  %v13577_v57 = vld [vmem:[%s21945_s1 + $0x224] sm:$0xf] }
 0x3b4   :  { %8531 = vmatpush.bf16.msrb.mxu0 %v12832_v58  ;;  %v14570_v58 = vld [vmem:[%s21945_s1 + $0x2124] sm:$0xf0]  ;;  %v13643_v11 = vld [vmem:[%s21945_s1 + $0x434] sm:$0xf]  ;;  %v9644_v18 = vor.u32 %v13691_v24, %v9641_v26  ;;  %v13673_v24 = vld [vmem:[%s21945_s1 + $0x524] sm:$0xf] }
 0x3b5   :  { %8544 = vmatpush.bf16.msrb.mxu1 %v13024_v15  ;;  %v13335_v15 = vld [vmem:[%s21945_s1 + $0x2290] sm:$0xf]  ;;  %v13144_v61 = vor.u32 %v14570_v58, %v13143_v5  ;;  %v13637_v5 = vld [vmem:[%s21945_s1 + $0x404] sm:$0xf]  ;;  %v9617_v58 = vld [vmem:[%s21945_s1 + $0x598] sm:$0xf0] }
 0x3b6   :  { %8557 = vmatpush.bf16.msrb.mxu2 %v13216_v7  ;;  %v14618_v7 = vld [vmem:[%s21945_s1 + $0x22a4] sm:$0xf0]  ;;  %v9428_v32 = vor.u32 %v13637_v5, %v9425_v39  ;;  %v9161_v5 = vld [vmem:[%s21945_s1 + $0x208] sm:$0xf0]  ;;  %v13619_v39 = vld [vmem:[%s21945_s1 + $0x374] sm:$0xf] }
 0x3b7   :  { %8570 = vmatpush.bf16.msrb.mxu3 %v13408_v0  ;;  %v12760_v0 = vor.u32 %v14474_v47, %v12759_v36  ;;  %v9452_v36 = vor.u32 %v13643_v11, %v9449_v19  ;;  %v13541_v47 = vld [vmem:[%s21945_s1 + $0x104] sm:$0xf]  ;;  %v9377_v19 = vld [vmem:[%s21945_s1 + $0x3b8] sm:$0xf0] }
 0x3b8   :  { %8532 = vmatpush.bf16.msrb.mxu0 %v12808_v62  ;;  %v13336_v62 = vor.u32 %v14618_v7, %v13335_v15  ;;  %v13625_v11 = vld [vmem:[%s21945_s1 + $0x3a4] sm:$0xf] }
 0x3b9   :  { %8545 = vmatpush.bf16.msrb.mxu1 %v13000_v14  ;;  %v9284_v14 = vor.u32 %v13601_v22, %v9281_v56  ;;  %v13583_v22 = vld [vmem:[%s21945_s1 + $0x254] sm:$0xf]  ;;  %v9209_v56 = vld [vmem:[%s21945_s1 + $0x268] sm:$0xf0] }
 0x3ba   :  { %8558 = vmatpush.bf16.msrb.mxu2 %v13192_v51  ;;  %v9476_v51 = vor.u32 %v13649_v60, %v9473_v54  ;;  %v13631_v60 = vld [vmem:[%s21945_s1 + $0x3d4] sm:$0xf]  ;;  %v9401_v54 = vld [vmem:[%s21945_s1 + $0x3e8] sm:$0xf0] }
 0x3bb   :  { %8571 = vmatpush.bf16.msrb.mxu3 %v13384_v9  ;;  %v9257_v9 = vld [vmem:[%s21945_s1 + $0x2c8] sm:$0xf0] }
 0x3bc   :  { %8533 = vmatpush.bf16.msrb.mxu0 %v12784_v63  ;;  %v9260_v63 = vor.u32 %v13595_v50, %v9257_v9  ;;  %v9185_v9 = vld [vmem:[%s21945_s1 + $0x238] sm:$0xf0] }
 0x3bd   :  { %8546 = vmatpush.bf16.msrb.mxu1 %v12976_v27  ;;  %v9041_v27 = vld [vmem:[%s21945_s1 + $0x118] sm:$0xf0] }
 0x3be   :  { %8559 = vmatpush.bf16.msrb.mxu2 %v13168_v48  ;;  %v13589_v48 = vld [vmem:[%s21945_s1 + $0x284] sm:$0xf]  ;;  %v9044_v15 = vor.u32 %v13541_v47, %v9041_v27  ;;  %v13523_v47 = vld [vmem:[%s21945_s1 + $0x74] sm:$0xf]  ;;  %v8969_v27 = vld [vmem:[%s21945_s1 + $0x88] sm:$0xf0] }
 0x3bf   :  { %8572 = vmatpush.bf16.msrb.mxu3 %v13360_v55  ;;  %v13685_v55 = vld [vmem:[%s21945_s1 + $0x584] sm:$0xf]  ;;  %v9236_v7 = vor.u32 %v13589_v48, %v9233_v53  ;;  %v13571_v48 = vld [vmem:[%s21945_s1 + $0x1f4] sm:$0xf]  ;;  %v8972_v59 = vor.u32 %v13523_v47, %v8969_v27 }
 0x3c0   :  { %8534 = vmatpush.bf16.msrb.mxu0 %v12760_v0  ;;  %v9620_v0 = vor.u32 %v13685_v55, %v9617_v58  ;;  %v8328_v2 = vpop.f32.mrf.mxu0  ;;  %v9353_v55 = vld [vmem:[%s21945_s1 + $0x388] sm:$0xf0]  ;;  %v13745_v27 = vld [vmem:[%s21945_s1 + $0x764] sm:$0xf] }
 0x3c1   :  { %8547 = vmatpush.bf16.msrb.mxu1 %v12952_v1  ;;  %v13679_v1 = vld [vmem:[%s21945_s1 + $0x554] sm:$0xf]  ;;  %v8329_v52 = vadd.f32 %v8328_v2, %v20696_v3  ;;  %v8341_v50 = vpop.f32.mrf.mxu1  ;;  %v9569_v3 = vld [vmem:[%s21945_s1 + $0x538] sm:$0xf0] }
 0x3c2   :  { %8560 = vmatpush.bf16.msrb.mxu2 %v13144_v61  ;;  %v9593_v61 = vld [vmem:[%s21945_s1 + $0x568] sm:$0xf0]  ;;  %v9572_v53 = vor.u32 %v13673_v24, %v9569_v3  ;;  %v9137_v2 = vld [vmem:[%s21945_s1 + $0x1d8] sm:$0xf0]  ;;  %v13607_v24 = vld [vmem:[%s21945_s1 + $0x314] sm:$0xf] }
 0x3c3   :  { %8573 = vmatpush.bf16.msrb.mxu3 %v13336_v62  ;;  %8535 = vmatmul.bf16.vlgmr.msrb.gmra.mxu0 %v15959_v8  ;;  %v9212_v62 = vor.u32 %v13583_v22, %v9209_v56  ;;  %v8342_v26 = vadd.f32 %v8341_v50, %v8329_v52  ;;  %v9356_v56 = vor.u32 %v13619_v39, %v9353_v55  ;;  %v13511_v52 = vld [vmem:[%s21945_s1 + $0x14] sm:$0xf]  ;;  %v8921_v50 = vld [vmem:[%s21945_s1 + $0x28] sm:$0xf0]  ;;  %v13841_v39 = vld [vmem:[%s21945_s1 + $0xa64] sm:$0xf] }
 0x3c4   :  { %8579 = vmatpush.bf16.msra.mxu0 %v9092_v10  ;;  %8548 = vmatmul.bf16.vlgmr.msrb.gmra.mxu1 %v15972_v13  ;;  %v9404_v10 = vor.u32 %v13631_v60, %v9401_v54  ;;  %v13517_v60 = vld [vmem:[%s21945_s1 + $0x44] sm:$0xf]  ;;  %v8945_v54 = vld [vmem:[%s21945_s1 + $0x58] sm:$0xf0] }
 0x3c5   :  { %8592 = vmatpush.bf16.msra.mxu1 %v9284_v14  ;;  %8561 = vmatmul.bf16.vlgmr.msrb.gmra.mxu2 %v15970_v12  ;;  %v13529_v14 = vld [vmem:[%s21945_s1 + $0xa4] sm:$0xf]  ;;  %v10241_v55 = vld [vmem:[%s21945_s1 + $0xa78] sm:$0xf0] }
 0x3c6   :  { %8605 = vmatpush.bf16.msra.mxu2 %v9476_v51  ;;  %8574 = vmatmul.bf16.vlgmr.msrb.gmra.mxu3 %v15980_v16  ;;  %v8993_v51 = vld [vmem:[%s21945_s1 + $0xb8] sm:$0xf0] }
 0x3c7   :  { %8618 = vmatpush.bf16.msra.mxu3 %v9668_v17  ;;  %v9596_v17 = vor.u32 %v13679_v1, %v9593_v61  ;;  %v13565_v1 = vld [vmem:[%s21945_s1 + $0x1c4] sm:$0xf] }
 0x3c8   :  { %8580 = vmatpush.bf16.msra.mxu0 %v9068_v43  ;;  %v8996_v43 = vor.u32 %v13529_v14, %v8993_v51  ;;  %v8330_v22 = vpop.f32.mrf.mxu0  ;;  %v13661_v14 = vld [vmem:[%s21945_s1 + $0x4c4] sm:$0xf]  ;;  %v9521_v51 = vld [vmem:[%s21945_s1 + $0x4d8] sm:$0xf0] }
 0x3c9   :  { %8593 = vmatpush.bf16.msra.mxu1 %v9260_v63  ;;  %v9188_v63 = vor.u32 %v13577_v57, %v9185_v9  ;;  %v8343_v61 = vpop.f32.mrf.mxu1  ;;  %v8948_v57 = vor.u32 %v13517_v60, %v8945_v54  ;;  %v13739_v60 = vld [vmem:[%s21945_s1 + $0x734] sm:$0xf]  ;;  %v9833_v54 = vld [vmem:[%s21945_s1 + $0x748] sm:$0xf0] }
 0x3ca   :  { %8606 = vmatpush.bf16.msra.mxu2 %v9452_v36  ;;  %v9380_v36 = vor.u32 %v13625_v11, %v9377_v19  ;;  %v13559_v11 = vld [vmem:[%s21945_s1 + $0x194] sm:$0xf]  ;;  %v9113_v19 = vld [vmem:[%s21945_s1 + $0x1a8] sm:$0xf0] }
 0x3cb   :  { %8619 = vmatpush.bf16.msra.mxu3 %v9644_v18  ;;  %v8354_v18 = vpop.f32.mrf.mxu2 }
 0x3cc   :  { %8581 = vmatpush.bf16.msra.mxu0 %v9044_v15  ;;  %v8355_v58 = vadd.f32 %v8354_v18, %v8342_v26  ;;  %v8367_v15 = vpop.f32.mrf.mxu3  ;;  %v9524_v26 = vor.u32 %v13661_v14, %v9521_v51  ;;  %v13793_v18 = vld [vmem:[%s21945_s1 + $0x8e4] sm:$0xf]  ;;  %v10409_v14 = vld [vmem:[%s21945_s1 + $0xbc8] sm:$0xf0]  ;;  %v9836_v51 = vor.u32 %v13739_v60, %v9833_v54  ;;  %v9953_v60 = vld [vmem:[%s21945_s1 + $0x838] sm:$0xf0] }
 0x3cd   :  { %8594 = vmatpush.bf16.msra.mxu1 %v9236_v7  ;;  %v13667_v7 = vld [vmem:[%s21945_s1 + $0x4f4] sm:$0xf]  ;;  %v13817_v54 = vld [vmem:[%s21945_s1 + $0x9a4] sm:$0xf] }
 0x3ce   :  { %8607 = vmatpush.bf16.msra.mxu2 %v9428_v32  ;;  %v9545_v32 = vld [vmem:[%s21945_s1 + $0x508] sm:$0xf0]  ;;  %v20895_v40 = vadd.f32 %v8367_v15, %v8355_v58  ;;  %v9116_v58 = vor.u32 %v13559_v11, %v9113_v19  ;;  %v10001_v19 = vld [vmem:[%s21945_s1 + $0x898] sm:$0xf0] }
 0x3cf   :  { %8620 = vmatpush.bf16.msra.mxu3 %v9620_v0  ;;  %v9164_v0 = vor.u32 %v13571_v48, %v9161_v5  ;;  %v9857_v48 = vld [vmem:[%s21945_s1 + $0x778] sm:$0xf0] }
 0x3d0   :  { %8582 = vmatpush.bf16.msra.mxu0 %v9020_v34  ;;  %v9548_v34 = vor.u32 %v13667_v7, %v9545_v32  ;;  %v10049_v5 = vld [vmem:[%s21945_s1 + $0x8f8] sm:$0xf0]  ;;  %v13889_v7 = vld [vmem:[%s21945_s1 + $0xbe4] sm:$0xf]  ;;  %v9860_v22 = vor.u32 %v13745_v27, %v9857_v48  ;;  %v9785_v27 = vld [vmem:[%s21945_s1 + $0x6e8] sm:$0xf0] }
 0x3d1   :  { %8595 = vmatpush.bf16.msra.mxu1 %v9212_v62  ;;  %v13613_v62 = vld [vmem:[%s21945_s1 + $0x344] sm:$0xf]  ;;  %v10433_v32 = vld [vmem:[%s21945_s1 + $0xbf8] sm:$0xf0]  ;;  %v13823_v48 = vld [vmem:[%s21945_s1 + $0x9d4] sm:$0xf] }
 0x3d2   :  { %8608 = vmatpush.bf16.msra.mxu2 %v9404_v10  ;;  %v9329_v10 = vld [vmem:[%s21945_s1 + $0x358] sm:$0xf0]  ;;  %v10436_v61 = vor.u32 %v13889_v7, %v10433_v32 }
 0x3d3   :  { %8621 = vmatpush.bf16.msra.mxu3 %v9596_v17  ;;  %v9140_v17 = vor.u32 %v13565_v1, %v9137_v2  ;;  %v9332_v9 = vor.u32 %v13613_v62, %v9329_v10  ;;  %v8356_v3 = vpop.f32.mrf.mxu2  ;;  %v13787_v1 = vld [vmem:[%s21945_s1 + $0x8b4] sm:$0xf]  ;;  %v10217_v62 = vld [vmem:[%s21945_s1 + $0xa48] sm:$0xf0] }
 0x3d4   :  { %8583 = vmatpush.bf16.msra.mxu0 %v8996_v43  ;;  %v9305_v43 = vld [vmem:[%s21945_s1 + $0x328] sm:$0xf0]  ;;  %v8369_v47 = vpop.f32.mrf.mxu3  ;;  %v13835_v2 = vld [vmem:[%s21945_s1 + $0xa34] sm:$0xf]  ;;  %v10193_v3 = vld [vmem:[%s21945_s1 + $0xa18] sm:$0xf0] }
 0x3d5   :  { %8596 = vmatpush.bf16.msra.mxu1 %v9188_v63  ;;  %v13655_v63 = vld [vmem:[%s21945_s1 + $0x494] sm:$0xf]  ;;  %v9308_v15 = vor.u32 %v13607_v24, %v9305_v43  ;;  %v13829_v24 = vld [vmem:[%s21945_s1 + $0xa04] sm:$0xf]  ;;  %v10385_v43 = vld [vmem:[%s21945_s1 + $0xb98] sm:$0xf0] }
 0x3d6   :  { %8609 = vmatpush.bf16.msra.mxu2 %v9380_v36  ;;  %v9497_v36 = vld [vmem:[%s21945_s1 + $0x4a8] sm:$0xf0]  ;;  %v13883_v10 = vld [vmem:[%s21945_s1 + $0xbb4] sm:$0xf] }
 0x3d7   :  { %8622 = vmatpush.bf16.msra.mxu3 %v9572_v53  ;;  %v8924_v53 = vor.u32 %v13511_v52, %v8921_v50  ;;  %v10220_v52 = vor.u32 %v13835_v2, %v10217_v62  ;;  %v13733_v50 = vld [vmem:[%s21945_s1 + $0x704] sm:$0xf]  ;;  %v10412_v11 = vor.u32 %v13883_v10, %v10409_v14  ;;  %v13727_v47 = vld [vmem:[%s21945_s1 + $0x6d4] sm:$0xf] }
 0x3d8   :  { %8584 = vmatpush.bf16.msra.mxu0 %v8972_v59  ;;  %v9500_v59 = vor.u32 %v13655_v63, %v9497_v36  ;;  %v13715_v14 = vld [vmem:[%s21945_s1 + $0x674] sm:$0xf] }
 0x3d9   :  { %8597 = vmatpush.bf16.msra.mxu1 %v9164_v0  ;;  %v10052_v0 = vor.u32 %v13793_v18, %v10049_v5  ;;  %v10169_v18 = vld [vmem:[%s21945_s1 + $0x9e8] sm:$0xf0]  ;;  %v13871_v5 = vld [vmem:[%s21945_s1 + $0xb54] sm:$0xf] }
 0x3da   :  { %8610 = vmatpush.bf16.msra.mxu2 %v9356_v56  ;;  %v10244_v56 = vor.u32 %v13841_v39, %v10241_v55  ;;  %v10361_v39 = vld [vmem:[%s21945_s1 + $0xb68] sm:$0xf0]  ;;  %v10172_v32 = vor.u32 %v13823_v48, %v10169_v18  ;;  %v9905_v18 = vld [vmem:[%s21945_s1 + $0x7d8] sm:$0xf0] }
 0x3db   :  { %8623 = vmatpush.bf16.msra.mxu3 %v9548_v34  ;;  %v10025_v34 = vld [vmem:[%s21945_s1 + $0x8c8] sm:$0xf0] }
 0x3dc   :  { %8585 = vmatpush.bf16.msra.mxu0 %v8948_v57  ;;  %v10028_v57 = vor.u32 %v13787_v1, %v10025_v34  ;;  %v10145_v1 = vld [vmem:[%s21945_s1 + $0x9b8] sm:$0xf0] }
 0x3dd   :  { %8598 = vmatpush.bf16.msra.mxu1 %v9140_v17  ;;  %v9809_v17 = vld [vmem:[%s21945_s1 + $0x718] sm:$0xf0]  ;;  %v10148_v10 = vor.u32 %v13817_v54, %v10145_v1  ;;  %v13847_v54 = vld [vmem:[%s21945_s1 + $0xa94] sm:$0xf]  ;;  %v10265_v1 = vld [vmem:[%s21945_s1 + $0xaa8] sm:$0xf0] }
 0x3de   :  { %8611 = vmatpush.bf16.msra.mxu2 %v9332_v9  ;;  %v13781_v9 = vld [vmem:[%s21945_s1 + $0x884] sm:$0xf]  ;;  %v9812_v63 = vor.u32 %v13733_v50, %v9809_v17  ;;  %v10337_v34 = vld [vmem:[%s21945_s1 + $0xb38] sm:$0xf0]  ;;  %v9929_v17 = vld [vmem:[%s21945_s1 + $0x808] sm:$0xf0] }
 0x3df   :  { %8624 = vmatpush.bf16.msra.mxu3 %v9524_v26  ;;  %v13877_v26 = vld [vmem:[%s21945_s1 + $0xb84] sm:$0xf]  ;;  %v10004_v36 = vor.u32 %v13781_v9, %v10001_v19  ;;  %v13811_v9 = vld [vmem:[%s21945_s1 + $0x974] sm:$0xf] }
 0x3e0   :  { %8586 = vmatpush.bf16.msra.mxu0 %v8924_v53  ;;  %v8380_v53 = vpop.f32.mrf.mxu0 }
 0x3e1   :  { %8599 = vmatpush.bf16.msra.mxu1 %v9116_v58  ;;  %v8381_v55 = vadd.f32 %v8380_v53, %v20895_v40  ;;  %v9788_v58 = vor.u32 %v13727_v47, %v9785_v27  ;;  %v10364_v40 = vor.u32 %v13871_v5, %v10361_v39  ;;  %v13805_v53 = vld [vmem:[%s21945_s1 + $0x944] sm:$0xf]  ;;  %v10097_v5 = vld [vmem:[%s21945_s1 + $0x958] sm:$0xf0] }
 0x3e2   :  { %8612 = vmatpush.bf16.msra.mxu2 %v9308_v15  ;;  %v8393_v15 = vpop.f32.mrf.mxu1  ;;  %v13853_v39 = vld [vmem:[%s21945_s1 + $0xac4] sm:$0xf] }
 0x3e3   :  { %8625 = vmatpush.bf16.msra.mxu3 %v9500_v59  ;;  %8587 = vmatmul.bf16.vlgmr.msra.gmra.mxu0 %v14975_v20  ;;  %v10388_v20 = vor.u32 %v13877_v26, %v10385_v43  ;;  %v13721_v59 = vld [vmem:[%s21945_s1 + $0x6a4] sm:$0xf]  ;;  %v10313_v26 = vld [vmem:[%s21945_s1 + $0xb08] sm:$0xf0] }
 0x3e4   :  { %8631 = vmatpush.bf16.msrb.mxu0 %v9860_v22  ;;  %8600 = vmatmul.bf16.vlgmr.msra.gmra.mxu1 %v14978_v21  ;;  %v9977_v21 = vld [vmem:[%s21945_s1 + $0x868] sm:$0xf0]  ;;  %v9761_v22 = vld [vmem:[%s21945_s1 + $0x6b8] sm:$0xf0] }
 0x3e5   :  { %8644 = vmatpush.bf16.msrb.mxu1 %v10052_v0  ;;  %8613 = vmatmul.bf16.vlgmr.msra.gmra.mxu2 %v14943_v4  ;;  %v10196_v4 = vor.u32 %v13829_v24, %v10193_v3  ;;  %v13769_v0 = vld [vmem:[%s21945_s1 + $0x824] sm:$0xf]  ;;  %v9764_v2 = vor.u32 %v13721_v59, %v9761_v22  ;;  %v13859_v3 = vld [vmem:[%s21945_s1 + $0xaf4] sm:$0xf]  ;;  %v10100_v59 = vor.u32 %v13805_v53, %v10097_v5 }
 0x3e6   :  { %8657 = vmatpush.bf16.msrb.mxu2 %v10244_v56  ;;  %8626 = vmatmul.bf16.vlgmr.msra.gmra.mxu3 %v14948_v6  ;;  %v13775_v6 = vld [vmem:[%s21945_s1 + $0x854] sm:$0xf]  ;;  %v8394_v56 = vadd.f32 %v8393_v15, %v8381_v55  ;;  %v9956_v62 = vor.u32 %v13769_v0, %v9953_v60  ;;  %v10316_v48 = vor.u32 %v13859_v3, %v10313_v26  ;;  %v10289_v55 = vld [vmem:[%s21945_s1 + $0xad8] sm:$0xf0]  ;;  %v9881_v0 = vld [vmem:[%s21945_s1 + $0x7a8] sm:$0xf0] }
 0x3e7   :  { %8670 = vmatpush.bf16.msrb.mxu3 %v10436_v61  ;;  %v9980_v7 = vor.u32 %v13775_v6, %v9977_v21  ;;  %v13865_v61 = vld [vmem:[%s21945_s1 + $0xb24] sm:$0xf]  ;;  %v13703_v15 = vld [vmem:[%s21945_s1 + $0x614] sm:$0xf]  ;;  %v10073_v60 = vld [vmem:[%s21945_s1 + $0x928] sm:$0xf0] }
 0x3e8   :  { %8632 = vmatpush.bf16.msrb.mxu0 %v9836_v51  ;;  %v9737_v51 = vld [vmem:[%s21945_s1 + $0x688] sm:$0xf0]  ;;  %v8406_v50 = vpop.f32.mrf.mxu2  ;;  %v8382_v43 = vpop.f32.mrf.mxu0  ;;  %v13709_v6 = vld [vmem:[%s21945_s1 + $0x644] sm:$0xf]  ;;  %v13751_v22 = vld [vmem:[%s21945_s1 + $0x794] sm:$0xf] }
 0x3e9   :  { %8645 = vmatpush.bf16.msrb.mxu1 %v10028_v57  ;;  %v13763_v57 = vld [vmem:[%s21945_s1 + $0x7f4] sm:$0xf]  ;;  %v8407_v19 = vadd.f32 %v8406_v50, %v8394_v56  ;;  %v8419_v24 = vpop.f32.mrf.mxu3  ;;  %v13757_v21 = vld [vmem:[%s21945_s1 + $0x7c4] sm:$0xf]  ;;  %v10292_v56 = vor.u32 %v13853_v39, %v10289_v55  ;;  %v9884_v50 = vor.u32 %v13751_v22, %v9881_v0  ;;  %v10577_v55 = vld [vmem:[%s21945_s1 + $0xd18] sm:$0xf0] }
 0x3ea   :  { %8658 = vmatpush.bf16.msrb.mxu2 %v10220_v52  ;;  %v10340_v52 = vor.u32 %v13865_v61, %v10337_v34  ;;  %v9932_v47 = vor.u32 %v13763_v57, %v9929_v17  ;;  %v13937_v34 = vld [vmem:[%s21945_s1 + $0xd64] sm:$0xf]  ;;  %v13931_v43 = vld [vmem:[%s21945_s1 + $0xd34] sm:$0xf]  ;;  %v11153_v22 = vld [vmem:[%s21945_s1 + $0x1198] sm:$0xf0] }
 0x3eb   :  { %8671 = vmatpush.bf16.msrb.mxu3 %v10412_v11  ;;  %v10121_v11 = vld [vmem:[%s21945_s1 + $0x988] sm:$0xf0]  ;;  %v14033_v57 = vld [vmem:[%s21945_s1 + $0x1064] sm:$0xf] }
 0x3ec   :  { %8633 = vmatpush.bf16.msrb.mxu0 %v9812_v63  ;;  %v9740_v63 = vor.u32 %v13715_v14, %v9737_v51  ;;  %v10124_v27 = vor.u32 %v13811_v9, %v10121_v11  ;;  %v10817_v51 = vld [vmem:[%s21945_s1 + $0xef8] sm:$0xf0]  ;;  %v14081_v9 = vld [vmem:[%s21945_s1 + $0x11e4] sm:$0xf] }
 0x3ed   :  { %8646 = vmatpush.bf16.msrb.mxu1 %v10004_v36  ;;  %v8395_v36 = vpop.f32.mrf.mxu1  ;;  %v11201_v11 = vld [vmem:[%s21945_s1 + $0x11f8] sm:$0xf0]  ;;  %v13925_v39 = vld [vmem:[%s21945_s1 + $0xd04] sm:$0xf] }
 0x3ee   :  { %8659 = vmatpush.bf16.msrb.mxu2 %v10196_v4  ;;  %v21094_v4 = vadd.f32 %v8419_v24, %v8407_v19  ;;  %v10268_v19 = vor.u32 %v13847_v54, %v10265_v1  ;;  %v13979_v36 = vld [vmem:[%s21945_s1 + $0xeb4] sm:$0xf]  ;;  %v10580_v0 = vor.u32 %v13925_v39, %v10577_v55 }
 0x3ef   :  { %8672 = vmatpush.bf16.msrb.mxu3 %v10388_v20  ;;  %v9713_v20 = vld [vmem:[%s21945_s1 + $0x658] sm:$0xf0]  ;;  %v14015_v1 = vld [vmem:[%s21945_s1 + $0xfd4] sm:$0xf] }
 0x3f0   :  { %8634 = vmatpush.bf16.msrb.mxu0 %v9788_v58  ;;  %v9716_v58 = vor.u32 %v13709_v6, %v9713_v20  ;;  %v8408_v61 = vpop.f32.mrf.mxu2  ;;  %v14027_v6 = vld [vmem:[%s21945_s1 + $0x1034] sm:$0xf]  ;;  %v10985_v20 = vld [vmem:[%s21945_s1 + $0x1048] sm:$0xf0] }
 0x3f1   :  { %8647 = vmatpush.bf16.msrb.mxu1 %v9980_v7  ;;  %v9689_v7 = vld [vmem:[%s21945_s1 + $0x628] sm:$0xf0]  ;;  %v10988_v5 = vor.u32 %v14027_v6, %v10985_v20  ;;  %v13955_v20 = vld [vmem:[%s21945_s1 + $0xdf4] sm:$0xf] }
 0x3f2   :  { %8660 = vmatpush.bf16.msrb.mxu2 %v10172_v32  ;;  %v9908_v32 = vor.u32 %v13757_v21, %v9905_v18  ;;  %v9692_v14 = vor.u32 %v13703_v15, %v9689_v7  ;;  %v14075_v21 = vld [vmem:[%s21945_s1 + $0x11b4] sm:$0xf]  ;;  %v10769_v7 = vld [vmem:[%s21945_s1 + $0xe98] sm:$0xf0]  ;;  %v10937_v61 = vld [vmem:[%s21945_s1 + $0xfe8] sm:$0xf0] }
 0x3f3   :  { %8673 = vmatpush.bf16.msrb.mxu3 %v10364_v40  ;;  %v13799_v40 = vld [vmem:[%s21945_s1 + $0x914] sm:$0xf]  ;;  %v10505_v6 = vld [vmem:[%s21945_s1 + $0xc88] sm:$0xf0] }
 0x3f4   :  { %8635 = vmatpush.bf16.msrb.mxu0 %v9764_v2  ;;  %v10625_v2 = vld [vmem:[%s21945_s1 + $0xd78] sm:$0xf0]  ;;  %v10076_v17 = vor.u32 %v13799_v40, %v10073_v60  ;;  %v13967_v60 = vld [vmem:[%s21945_s1 + $0xe54] sm:$0xf] }
 0x3f5   :  { %8648 = vmatpush.bf16.msrb.mxu1 %v9956_v62  ;;  %v13985_v62 = vld [vmem:[%s21945_s1 + $0xee4] sm:$0xf]  ;;  %v10628_v24 = vor.u32 %v13937_v34, %v10625_v2  ;;  %v14063_v2 = vld [vmem:[%s21945_s1 + $0x1154] sm:$0xf] }
 0x3f6   :  { %8661 = vmatpush.bf16.msrb.mxu2 %v10148_v10  ;;  %v8421_v10 = vpop.f32.mrf.mxu3  ;;  %v10820_v3 = vor.u32 %v13985_v62, %v10817_v51  ;;  %v11129_v62 = vld [vmem:[%s21945_s1 + $0x1168] sm:$0xf0] }
 0x3f7   :  { %8674 = vmatpush.bf16.msrb.mxu3 %v10340_v52  ;;  %v11009_v52 = vld [vmem:[%s21945_s1 + $0x1078] sm:$0xf0] }
 0x3f8   :  { %8636 = vmatpush.bf16.msrb.mxu0 %v9740_v63  ;;  %v11012_v26 = vor.u32 %v14033_v57, %v11009_v52  ;;  %v10601_v63 = vld [vmem:[%s21945_s1 + $0xd48] sm:$0xf0]  ;;  %v10940_v52 = vor.u32 %v14015_v1, %v10937_v61  ;;  %v14045_v1 = vld [vmem:[%s21945_s1 + $0x10c4] sm:$0xf]  ;;  %v11057_v61 = vld [vmem:[%s21945_s1 + $0x10d8] sm:$0xf0] }
 0x3f9   :  { %8649 = vmatpush.bf16.msrb.mxu1 %v9932_v47  ;;  %v11204_v47 = vor.u32 %v14081_v9, %v11201_v11  ;;  %v10604_v18 = vor.u32 %v13931_v43, %v10601_v63  ;;  %v13961_v9 = vld [vmem:[%s21945_s1 + $0xe24] sm:$0xf]  ;;  %v11105_v43 = vld [vmem:[%s21945_s1 + $0x1138] sm:$0xf0] }
 0x3fa   :  { %8662 = vmatpush.bf16.msrb.mxu2 %v10124_v27  ;;  %v10793_v27 = vld [vmem:[%s21945_s1 + $0xec8] sm:$0xf0] }
 0x3fb   :  { %8675 = vmatpush.bf16.msrb.mxu3 %v10316_v48  ;;  %v11177_v48 = vld [vmem:[%s21945_s1 + $0x11c8] sm:$0xf0]  ;;  %v10796_v53 = vor.u32 %v13979_v36, %v10793_v27  ;;  %v13907_v27 = vld [vmem:[%s21945_s1 + $0xc74] sm:$0xf] }
 0x3fc   :  { %8637 = vmatpush.bf16.msrb.mxu0 %v9716_v58  ;;  %v13973_v58 = vld [vmem:[%s21945_s1 + $0xe84] sm:$0xf]  ;;  %v11180_v15 = vor.u32 %v14075_v21, %v11177_v48 }
 0x3fd   :  { %8650 = vmatpush.bf16.msrb.mxu1 %v9908_v32  ;;  %v14021_v32 = vld [vmem:[%s21945_s1 + $0x1004] sm:$0xf]  ;;  %v10772_v40 = vor.u32 %v13973_v58, %v10769_v7  ;;  %v14051_v58 = vld [vmem:[%s21945_s1 + $0x10f4] sm:$0xf] }
 0x3fe   :  { %8663 = vmatpush.bf16.msrb.mxu2 %v10100_v59  ;;  %v10961_v59 = vld [vmem:[%s21945_s1 + $0x1018] sm:$0xf0] }
 0x3ff   :  { %8676 = vmatpush.bf16.msrb.mxu3 %v10292_v56  ;;  %v10964_v56 = vor.u32 %v14021_v32, %v10961_v59  ;;  %v10508_v32 = vor.u32 %v13907_v27, %v10505_v6 }
 0x400   :  { %8638 = vmatpush.bf16.msrb.mxu0 %v9692_v14  ;;  %v8432_v34 = vpop.f32.mrf.mxu0 }
 0x401   :  { %8651 = vmatpush.bf16.msrb.mxu1 %v9884_v50  ;;  %v8433_v10 = vadd.f32 %v8432_v34, %v21094_v4  ;;  %v8445_v51 = vpop.f32.mrf.mxu1  ;;  %v13913_v50 = vld [vmem:[%s21945_s1 + $0xca4] sm:$0xf]  ;;  %v11132_v4 = vor.u32 %v14063_v2, %v11129_v62  ;;  %v13895_v2 = vld [vmem:[%s21945_s1 + $0xc14] sm:$0xf]  ;;  %v10457_v62 = vld [vmem:[%s21945_s1 + $0xc28] sm:$0xf0] }
 0x402   :  { %8664 = vmatpush.bf16.msrb.mxu2 %v10076_v17  ;;  %v10529_v17 = vld [vmem:[%s21945_s1 + $0xcb8] sm:$0xf0] }
 0x403   :  { %8677 = vmatpush.bf16.msrb.mxu3 %v10268_v19  ;;  %8639 = vmatmul.bf16.vlgmr.msrb.gmra.mxu0 %v15134_v41  ;;  %v13919_v41 = vld [vmem:[%s21945_s1 + $0xcd4] sm:$0xf]  ;;  %v8446_v11 = vadd.f32 %v8445_v51, %v8433_v10  ;;  %v10721_v19 = vld [vmem:[%s21945_s1 + $0xe38] sm:$0xf0]  ;;  %v10532_v63 = vor.u32 %v13913_v50, %v10529_v17  ;;  %v11060_v50 = vor.u32 %v14045_v1, %v11057_v61  ;;  %v10841_v17 = vld [vmem:[%s21945_s1 + $0xf28] sm:$0xf0] }
 0x404   :  { %8683 = vmatpush.bf16.msra.mxu0 %v10628_v24  ;;  %8652 = vmatmul.bf16.vlgmr.msrb.gmra.mxu1 %v15138_v44  ;;  %v10745_v44 = vld [vmem:[%s21945_s1 + $0xe68] sm:$0xf0]  ;;  %v14009_v24 = vld [vmem:[%s21945_s1 + $0xfa4] sm:$0xf]  ;;  %v10724_v36 = vor.u32 %v13961_v9, %v10721_v19  ;;  %v13943_v51 = vld [vmem:[%s21945_s1 + $0xd94] sm:$0xf] }
 0x405   :  { %8696 = vmatpush.bf16.msra.mxu1 %v10820_v3  ;;  %8665 = vmatmul.bf16.vlgmr.msrb.gmra.mxu2 %v15126_v38  ;;  %v14069_v38 = vld [vmem:[%s21945_s1 + $0x1184] sm:$0xf]  ;;  %v10748_v57 = vor.u32 %v13967_v60, %v10745_v44  ;;  %v10913_v3 = vld [vmem:[%s21945_s1 + $0xfb8] sm:$0xf0]  ;;  %v14039_v9 = vld [vmem:[%s21945_s1 + $0x1094] sm:$0xf] }
 0x406   :  { %8709 = vmatpush.bf16.msra.mxu2 %v11012_v26  ;;  %8678 = vmatmul.bf16.vlgmr.msrb.gmra.mxu3 %v15136_v42  ;;  %v10553_v42 = vld [vmem:[%s21945_s1 + $0xce8] sm:$0xf0]  ;;  %v11156_v54 = vor.u32 %v14069_v38, %v11153_v22  ;;  %v14057_v26 = vld [vmem:[%s21945_s1 + $0x1124] sm:$0xf]  ;;  %v10673_v60 = vld [vmem:[%s21945_s1 + $0xdd8] sm:$0xf0] }
 0x407   :  { %8722 = vmatpush.bf16.msra.mxu3 %v11204_v47  ;;  %v10556_v14 = vor.u32 %v13919_v41, %v10553_v42  ;;  %v10916_v47 = vor.u32 %v14009_v24, %v10913_v3  ;;  %v11108_v21 = vor.u32 %v14057_v26, %v11105_v43  ;;  %v13949_v41 = vld [vmem:[%s21945_s1 + $0xdc4] sm:$0xf]  ;;  %v10865_v44 = vld [vmem:[%s21945_s1 + $0xf58] sm:$0xf0]  ;;  %v10460_v43 = vor.u32 %v13895_v2, %v10457_v62 }
 0x408   :  { %8684 = vmatpush.bf16.msra.mxu0 %v10604_v18  ;;  %v8458_v48 = vpop.f32.mrf.mxu2  ;;  %v10697_v18 = vld [vmem:[%s21945_s1 + $0xe08] sm:$0xf0]  ;;  %v8434_v7 = vpop.f32.mrf.mxu0  ;;  %v10676_v10 = vor.u32 %v13949_v41, %v10673_v60  ;;  %v14129_v19 = vld [vmem:[%s21945_s1 + $0x1364] sm:$0xf]  ;;  %v11393_v24 = vld [vmem:[%s21945_s1 + $0x1378] sm:$0xf0] }
 0x409   :  { %8697 = vmatpush.bf16.msra.mxu1 %v10796_v53  ;;  %v14003_v53 = vld [vmem:[%s21945_s1 + $0xf74] sm:$0xf]  ;;  %v8459_v39 = vadd.f32 %v8458_v48, %v8446_v11  ;;  %v8471_v55 = vpop.f32.mrf.mxu3  ;;  %v8447_v59 = vpop.f32.mrf.mxu1  ;;  %v10700_v22 = vor.u32 %v13955_v20, %v10697_v18  ;;  %v14177_v3 = vld [vmem:[%s21945_s1 + $0x14e4] sm:$0xf]  ;;  %v11396_v18 = vor.u32 %v14129_v19, %v11393_v24  ;;  %v11561_v7 = vld [vmem:[%s21945_s1 + $0x14c8] sm:$0xf0] }
 0x40a   :  { %8710 = vmatpush.bf16.msra.mxu2 %v10988_v5  ;;  %v10889_v5 = vld [vmem:[%s21945_s1 + $0xf88] sm:$0xf0]  ;;  %v14273_v20 = vld [vmem:[%s21945_s1 + $0x17e4] sm:$0xf]  ;;  %v11345_v60 = vld [vmem:[%s21945_s1 + $0x1318] sm:$0xf0] }
 0x40b   :  { %8723 = vmatpush.bf16.msra.mxu3 %v11180_v15  ;;  %v11081_v15 = vld [vmem:[%s21945_s1 + $0x1108] sm:$0xf0]  ;;  %v21293_v38 = vadd.f32 %v8471_v55, %v8459_v39  ;;  %v14123_v39 = vld [vmem:[%s21945_s1 + $0x1334] sm:$0xf]  ;;  %v11537_v1 = vld [vmem:[%s21945_s1 + $0x1498] sm:$0xf0] }
 0x40c   :  { %8685 = vmatpush.bf16.msra.mxu0 %v10580_v0  ;;  %v10892_v0 = vor.u32 %v14003_v53, %v10889_v5  ;;  %v11084_v42 = vor.u32 %v14051_v58, %v11081_v15  ;;  %v11369_v55 = vld [vmem:[%s21945_s1 + $0x1348] sm:$0xf0]  ;;  %v14171_v58 = vld [vmem:[%s21945_s1 + $0x14b4] sm:$0xf]  ;;  %v14213_v61 = vld [vmem:[%s21945_s1 + $0x1604] sm:$0xf] }
 0x40d   :  { %8698 = vmatpush.bf16.msra.mxu1 %v10772_v40  ;;  %v13901_v40 = vld [vmem:[%s21945_s1 + $0xc44] sm:$0xf]  ;;  %v11753_v59 = vld [vmem:[%s21945_s1 + $0x1648] sm:$0xf0]  ;;  %v11921_v2 = vld [vmem:[%s21945_s1 + $0x1798] sm:$0xf0] }
 0x40e   :  { %8711 = vmatpush.bf16.msra.mxu2 %v10964_v56  ;;  %v10481_v56 = vld [vmem:[%s21945_s1 + $0xc58] sm:$0xf0] }
 0x40f   :  { %8724 = vmatpush.bf16.msra.mxu3 %v11156_v54  ;;  %v13997_v54 = vld [vmem:[%s21945_s1 + $0xf44] sm:$0xf]  ;;  %v10484_v34 = vor.u32 %v13901_v40, %v10481_v56  ;;  %v11372_v40 = vor.u32 %v14123_v39, %v11369_v55  ;;  %v11564_v56 = vor.u32 %v14171_v58, %v11561_v7  ;;  %v14099_v39 = vld [vmem:[%s21945_s1 + $0x1274] sm:$0xf]  ;;  %v11273_v55 = vld [vmem:[%s21945_s1 + $0x1288] sm:$0xf0] }
 0x410   :  { %8686 = vmatpush.bf16.msra.mxu0 %v10556_v14  ;;  %v10868_v14 = vor.u32 %v13997_v54, %v10865_v44  ;;  %v8460_v11 = vpop.f32.mrf.mxu2  ;;  %v14165_v54 = vld [vmem:[%s21945_s1 + $0x1484] sm:$0xf]  ;;  %v14147_v58 = vld [vmem:[%s21945_s1 + $0x13f4] sm:$0xf] }
 0x411   :  { %8699 = vmatpush.bf16.msra.mxu1 %v10748_v57  ;;  %v10649_v57 = vld [vmem:[%s21945_s1 + $0xda8] sm:$0xf0]  ;;  %v8473_v26 = vpop.f32.mrf.mxu3 }
 0x412   :  { %8712 = vmatpush.bf16.msra.mxu2 %v10940_v52  ;;  %v13991_v52 = vld [vmem:[%s21945_s1 + $0xf14] sm:$0xf]  ;;  %v10652_v27 = vor.u32 %v13943_v51, %v10649_v57  ;;  %v11513_v57 = vld [vmem:[%s21945_s1 + $0x1468] sm:$0xf0] }
 0x413   :  { %8725 = vmatpush.bf16.msra.mxu3 %v11132_v4  ;;  %v11033_v4 = vld [vmem:[%s21945_s1 + $0x10a8] sm:$0xf0]  ;;  %v10844_v6 = vor.u32 %v13991_v52, %v10841_v17  ;;  %v14159_v51 = vld [vmem:[%s21945_s1 + $0x1454] sm:$0xf] }
 0x414   :  { %8687 = vmatpush.bf16.msra.mxu0 %v10532_v63  ;;  %v11585_v63 = vld [vmem:[%s21945_s1 + $0x14f8] sm:$0xf0]  ;;  %v11036_v48 = vor.u32 %v14039_v9, %v11033_v4  ;;  %v14207_v52 = vld [vmem:[%s21945_s1 + $0x15d4] sm:$0xf]  ;;  %v11897_v4 = vld [vmem:[%s21945_s1 + $0x1768] sm:$0xf0] }
 0x415   :  { %8700 = vmatpush.bf16.msra.mxu1 %v10724_v36  ;;  %v14225_v36 = vld [vmem:[%s21945_s1 + $0x1664] sm:$0xf]  ;;  %v11588_v53 = vor.u32 %v14177_v3, %v11585_v63  ;;  %v14255_v9 = vld [vmem:[%s21945_s1 + $0x1754] sm:$0xf]  ;;  %v11516_v3 = vor.u32 %v14159_v51, %v11513_v57  ;;  %v11297_v63 = vld [vmem:[%s21945_s1 + $0x12b8] sm:$0xf0] }
 0x416   :  { %8713 = vmatpush.bf16.msra.mxu2 %v10916_v47  ;;  %v11777_v47 = vld [vmem:[%s21945_s1 + $0x1678] sm:$0xf0]  ;;  %v14087_v57 = vld [vmem:[%s21945_s1 + $0x1214] sm:$0xf] }
 0x417   :  { %8726 = vmatpush.bf16.msra.mxu3 %v11108_v21  ;;  %v11969_v21 = vld [vmem:[%s21945_s1 + $0x17f8] sm:$0xf0]  ;;  %v11780_v5 = vor.u32 %v14225_v36, %v11777_v47  ;;  %v14153_v36 = vld [vmem:[%s21945_s1 + $0x1424] sm:$0xf] }
 0x418   :  { %8688 = vmatpush.bf16.msra.mxu0 %v10508_v32  ;;  %v11972_v15 = vor.u32 %v14273_v20, %v11969_v21  ;;  %v14219_v32 = vld [vmem:[%s21945_s1 + $0x1634] sm:$0xf]  ;;  %v11681_v20 = vld [vmem:[%s21945_s1 + $0x15b8] sm:$0xf0]  ;;  %v14249_v21 = vld [vmem:[%s21945_s1 + $0x1724] sm:$0xf] }
 0x419   :  { %8701 = vmatpush.bf16.msra.mxu1 %v10700_v22  ;;  %v14267_v22 = vld [vmem:[%s21945_s1 + $0x17b4] sm:$0xf]  ;;  %v11756_v41 = vor.u32 %v14219_v32, %v11753_v59  ;;  %v11465_v32 = vld [vmem:[%s21945_s1 + $0x1408] sm:$0xf0]  ;;  %v11825_v51 = vld [vmem:[%s21945_s1 + $0x16d8] sm:$0xf0] }
 0x41a   :  { %8714 = vmatpush.bf16.msra.mxu2 %v10892_v0  ;;  %v11945_v0 = vld [vmem:[%s21945_s1 + $0x17c8] sm:$0xf0]  ;;  %v14195_v59 = vld [vmem:[%s21945_s1 + $0x1574] sm:$0xf] }
 0x41b   :  { %8727 = vmatpush.bf16.msra.mxu3 %v11084_v42  ;;  %v14117_v42 = vld [vmem:[%s21945_s1 + $0x1304] sm:$0xf]  ;;  %v11948_v44 = vor.u32 %v14267_v22, %v11945_v0  ;;  %v11657_v22 = vld [vmem:[%s21945_s1 + $0x1588] sm:$0xf0] }
 0x41c   :  { %8689 = vmatpush.bf16.msra.mxu0 %v10484_v34  ;;  %v11729_v34 = vld [vmem:[%s21945_s1 + $0x1618] sm:$0xf0]  ;;  %v11348_v62 = vor.u32 %v14117_v42, %v11345_v60  ;;  %v11276_v60 = vor.u32 %v14099_v39, %v11273_v55 }
 0x41d   :  { %8702 = vmatpush.bf16.msra.mxu1 %v10676_v10  ;;  %v11540_v10 = vor.u32 %v14165_v54, %v11537_v1  ;;  %v11468_v1 = vor.u32 %v14147_v58, %v11465_v32  ;;  %v12137_v32 = vld [vmem:[%s21945_s1 + $0x1948] sm:$0xf0] }
 0x41e   :  { %8715 = vmatpush.bf16.msra.mxu2 %v10868_v14  ;;  %v11732_v14 = vor.u32 %v14213_v61, %v11729_v34  ;;  %v11660_v61 = vor.u32 %v14195_v59, %v11657_v22  ;;  %v14093_v34 = vld [vmem:[%s21945_s1 + $0x1244] sm:$0xf]  ;;  %v14363_v59 = vld [vmem:[%s21945_s1 + $0x1ab4] sm:$0xf] }
 0x41f   :  { %8728 = vmatpush.bf16.msra.mxu3 %v11060_v50  ;;  %v11705_v50 = vld [vmem:[%s21945_s1 + $0x15e8] sm:$0xf0] }
 0x420   :  { %8690 = vmatpush.bf16.msra.mxu0 %v10460_v43  ;;  %v8484_v17 = vpop.f32.mrf.mxu0  ;;  %v11708_v26 = vor.u32 %v14207_v52, %v11705_v50  ;;  %v14105_v43 = vld [vmem:[%s21945_s1 + $0x12a4] sm:$0xf]  ;;  %v11225_v52 = vld [vmem:[%s21945_s1 + $0x1228] sm:$0xf0] }
 0x421   :  { %8703 = vmatpush.bf16.msra.mxu1 %v10652_v27  ;;  %v8485_v11 = vadd.f32 %v8484_v17, %v21293_v38  ;;  %v8497_v24 = vpop.f32.mrf.mxu1  ;;  %v11900_v38 = vor.u32 %v14255_v9, %v11897_v4  ;;  %v11489_v27 = vld [vmem:[%s21945_s1 + $0x1438] sm:$0xf0]  ;;  %v14135_v9 = vld [vmem:[%s21945_s1 + $0x1394] sm:$0xf]  ;;  %v11417_v4 = vld [vmem:[%s21945_s1 + $0x13a8] sm:$0xf0] }
 0x422   :  { %8716 = vmatpush.bf16.msra.mxu2 %v10844_v6  ;;  %v14201_v6 = vld [vmem:[%s21945_s1 + $0x15a4] sm:$0xf] }
 0x423   :  { %8729 = vmatpush.bf16.msra.mxu3 %v11036_v48  ;;  %8691 = vmatmul.bf16.vlgmr.msra.gmra.mxu0 %v15327_v25  ;;  %v14261_v25 = vld [vmem:[%s21945_s1 + $0x1784] sm:$0xf]  ;;  %v8498_v47 = vadd.f32 %v8497_v24, %v8485_v11  ;;  %v11873_v48 = vld [vmem:[%s21945_s1 + $0x1738] sm:$0xf0]  ;;  %v14183_v11 = vld [vmem:[%s21945_s1 + $0x1514] sm:$0xf] }
 0x424   :  { %8735 = vmatpush.bf16.msrb.mxu0 %v11396_v18  ;;  %8704 = vmatmul.bf16.vlgmr.msra.gmra.mxu1 %v15340_v30  ;;  %v11321_v30 = vld [vmem:[%s21945_s1 + $0x12e8] sm:$0xf0]  ;;  %v11300_v18 = vor.u32 %v14105_v43, %v11297_v63  ;;  %v14321_v63 = vld [vmem:[%s21945_s1 + $0x1964] sm:$0xf] }
 0x425   :  { %8748 = vmatpush.bf16.msrb.mxu1 %v11588_v53  ;;  %8717 = vmatmul.bf16.vlgmr.msra.gmra.mxu2 %v15338_v29  ;;  %v14111_v29 = vld [vmem:[%s21945_s1 + $0x12d4] sm:$0xf]  ;;  %v11492_v53 = vor.u32 %v14153_v36, %v11489_v27  ;;  %v11609_v24 = vld [vmem:[%s21945_s1 + $0x1528] sm:$0xf0]  ;;  %v12161_v36 = vld [vmem:[%s21945_s1 + $0x1978] sm:$0xf0]  ;;  %v11228_v27 = vor.u32 %v14087_v57, %v11225_v52 }
 0x426   :  { %8761 = vmatpush.bf16.msrb.mxu2 %v11780_v5  ;;  %8730 = vmatmul.bf16.vlgmr.msra.gmra.mxu3 %v15348_v33  ;;  %v11924_v33 = vor.u32 %v14261_v25, %v11921_v2  ;;  %v11324_v19 = vor.u32 %v14111_v29, %v11321_v30  ;;  %v11684_v5 = vor.u32 %v14201_v6, %v11681_v20  ;;  %v11249_v25 = vld [vmem:[%s21945_s1 + $0x1258] sm:$0xf0]  ;;  %v14141_v2 = vld [vmem:[%s21945_s1 + $0x13c4] sm:$0xf]  ;;  %v14351_v57 = vld [vmem:[%s21945_s1 + $0x1a54] sm:$0xf] }
 0x427   :  { %8774 = vmatpush.bf16.msrb.mxu3 %v11972_v15  ;;  %v11876_v15 = vor.u32 %v14249_v21, %v11873_v48  ;;  %v11633_v29 = vld [vmem:[%s21945_s1 + $0x1558] sm:$0xf0]  ;;  %v14237_v30 = vld [vmem:[%s21945_s1 + $0x16c4] sm:$0xf]  ;;  %v11420_v48 = vor.u32 %v14135_v9, %v11417_v4  ;;  %v12164_v55 = vor.u32 %v14321_v63, %v12161_v36  ;;  %v12281_v52 = vld [vmem:[%s21945_s1 + $0x1a68] sm:$0xf0] }
 0x428   :  { %8736 = vmatpush.bf16.msrb.mxu0 %v11372_v40  ;;  %v8510_v7 = vpop.f32.mrf.mxu2  ;;  %v8486_v42 = vpop.f32.mrf.mxu0  ;;  %v12353_v6 = vld [vmem:[%s21945_s1 + $0x1af8] sm:$0xf0]  ;;  %v14417_v20 = vld [vmem:[%s21945_s1 + $0x1c64] sm:$0xf]  ;;  %v14447_v4 = vld [vmem:[%s21945_s1 + $0x1d54] sm:$0xf] }
 0x429   :  { %8749 = vmatpush.bf16.msrb.mxu1 %v11564_v56  ;;  %v8511_v0 = vadd.f32 %v8510_v7, %v8498_v47  ;;  %v8523_v40 = vpop.f32.mrf.mxu3  ;;  %v14243_v56 = vld [vmem:[%s21945_s1 + $0x16f4] sm:$0xf]  ;;  %v8499_v54 = vpop.f32.mrf.mxu1  ;;  %v12545_v21 = vld [vmem:[%s21945_s1 + $0x1c78] sm:$0xf0]  ;;  %v12713_v42 = vld [vmem:[%s21945_s1 + $0x1dc8] sm:$0xf0] }
 0x42a   :  { %8762 = vmatpush.bf16.msrb.mxu2 %v11756_v41  ;;  %v11849_v41 = vld [vmem:[%s21945_s1 + $0x1708] sm:$0xf0]  ;;  %v14315_v7 = vld [vmem:[%s21945_s1 + $0x1934] sm:$0xf]  ;;  %v14297_v63 = vld [vmem:[%s21945_s1 + $0x18a4] sm:$0xf] }
 0x42b   :  { %8775 = vmatpush.bf16.msrb.mxu3 %v11948_v44  ;;  %v21492_v44 = vadd.f32 %v8523_v40, %v8511_v0  ;;  %v12329_v0 = vld [vmem:[%s21945_s1 + $0x1ac8] sm:$0xf0]  ;;  %v14411_v40 = vld [vmem:[%s21945_s1 + $0x1c34] sm:$0xf]  ;;  %v12065_v36 = vld [vmem:[%s21945_s1 + $0x18b8] sm:$0xf0] }
 0x42c   :  { %8737 = vmatpush.bf16.msrb.mxu0 %v11348_v62  ;;  %v11852_v62 = vor.u32 %v14243_v56, %v11849_v41  ;;  %v12521_v56 = vld [vmem:[%s21945_s1 + $0x1c48] sm:$0xf0]  ;;  %v14459_v41 = vld [vmem:[%s21945_s1 + $0x1db4] sm:$0xf]  ;;  %v12332_v54 = vor.u32 %v14363_v59, %v12329_v0 }
 0x42d   :  { %8750 = vmatpush.bf16.msrb.mxu1 %v11540_v10  ;;  %v11441_v10 = vld [vmem:[%s21945_s1 + $0x13d8] sm:$0xf0]  ;;  %v14387_v59 = vld [vmem:[%s21945_s1 + $0x1b74] sm:$0xf] }
 0x42e   :  { %8763 = vmatpush.bf16.msrb.mxu2 %v11732_v14  ;;  %v14189_v14 = vld [vmem:[%s21945_s1 + $0x1544] sm:$0xf]  ;;  %v11444_v50 = vor.u32 %v14141_v2, %v11441_v10  ;;  %v12716_v2 = vor.u32 %v14459_v41, %v12713_v42  ;;  %v12617_v41 = vld [vmem:[%s21945_s1 + $0x1d08] sm:$0xf0] }
 0x42f   :  { %8776 = vmatpush.bf16.msrb.mxu3 %v11924_v33  ;;  %v11252_v33 = vor.u32 %v14093_v34, %v11249_v25  ;;  %v11636_v17 = vor.u32 %v14189_v14, %v11633_v29  ;;  %v12113_v34 = vld [vmem:[%s21945_s1 + $0x1918] sm:$0xf0]  ;;  %v14357_v25 = vld [vmem:[%s21945_s1 + $0x1a84] sm:$0xf] }
 0x430   :  { %8738 = vmatpush.bf16.msrb.mxu0 %v11324_v19  ;;  %v11828_v19 = vor.u32 %v14237_v30, %v11825_v51  ;;  %v8512_v43 = vpop.f32.mrf.mxu2  ;;  %v14405_v10 = vld [vmem:[%s21945_s1 + $0x1c04] sm:$0xf]  ;;  %v12497_v14 = vld [vmem:[%s21945_s1 + $0x1c18] sm:$0xf0] }
 0x431   :  { %8751 = vmatpush.bf16.msrb.mxu1 %v11516_v3  ;;  %v14231_v3 = vld [vmem:[%s21945_s1 + $0x1694] sm:$0xf]  ;;  %v8525_v47 = vpop.f32.mrf.mxu3  ;;  %v12689_v29 = vld [vmem:[%s21945_s1 + $0x1d98] sm:$0xf0] }
 0x432   :  { %8764 = vmatpush.bf16.msrb.mxu2 %v11708_v26  ;;  %v11801_v26 = vld [vmem:[%s21945_s1 + $0x16a8] sm:$0xf0] }
 0x433   :  { %8777 = vmatpush.bf16.msrb.mxu3 %v11900_v38  ;;  %v14369_v38 = vld [vmem:[%s21945_s1 + $0x1ae4] sm:$0xf]  ;;  %v11804_v39 = vor.u32 %v14231_v3, %v11801_v26  ;;  %v12284_v26 = vor.u32 %v14351_v57, %v12281_v52  ;;  %v14327_v52 = vld [vmem:[%s21945_s1 + $0x1994] sm:$0xf] }
 0x434   :  { %8739 = vmatpush.bf16.msrb.mxu0 %v11300_v18  ;;  %v11612_v18 = vor.u32 %v14183_v11, %v11609_v24  ;;  %v12356_v58 = vor.u32 %v14369_v38, %v12353_v6  ;;  %v12665_v11 = vld [vmem:[%s21945_s1 + $0x1d68] sm:$0xf0]  ;;  %v14345_v38 = vld [vmem:[%s21945_s1 + $0x1a24] sm:$0xf] }
 0x435   :  { %8752 = vmatpush.bf16.msrb.mxu1 %v11492_v53  ;;  %v14465_v53 = vld [vmem:[%s21945_s1 + $0x1de4] sm:$0xf] }
 0x436   :  { %8765 = vmatpush.bf16.msrb.mxu2 %v11684_v5  ;;  %v12737_v5 = vld [vmem:[%s21945_s1 + $0x1df8] sm:$0xf0]  ;;  %v14393_v6 = vld [vmem:[%s21945_s1 + $0x1ba4] sm:$0xf] }
 0x437   :  { %8778 = vmatpush.bf16.msrb.mxu3 %v11876_v15  ;;  %v12548_v15 = vor.u32 %v14417_v20, %v12545_v21  ;;  %v12740_v22 = vor.u32 %v14465_v53, %v12737_v5  ;;  %v12449_v20 = vld [vmem:[%s21945_s1 + $0x1bb8] sm:$0xf0]  ;;  %v14441_v21 = vld [vmem:[%s21945_s1 + $0x1d24] sm:$0xf] }
 0x438   :  { %8740 = vmatpush.bf16.msrb.mxu0 %v11276_v60  ;;  %v12140_v60 = vor.u32 %v14315_v7, %v12137_v32  ;;  %v12452_v5 = vor.u32 %v14393_v6, %v12449_v20  ;;  %v12233_v32 = vld [vmem:[%s21945_s1 + $0x1a08] sm:$0xf0]  ;;  %v14657_v20 = vld [vmem:[%s21945_s1 + $0x23e4] sm:$0xf] }
 0x439   :  { %8753 = vmatpush.bf16.msrb.mxu1 %v11468_v1  ;;  %v12524_v1 = vor.u32 %v14411_v40, %v12521_v56  ;;  %v14435_v56 = vld [vmem:[%s21945_s1 + $0x1cf4] sm:$0xf] }
 0x43a   :  { %8766 = vmatpush.bf16.msrb.mxu2 %v11660_v61  ;;  %v14309_v61 = vld [vmem:[%s21945_s1 + $0x1904] sm:$0xf] }
 0x43b   :  { %8779 = vmatpush.bf16.msrb.mxu3 %v11852_v62  ;;  %v12305_v62 = vld [vmem:[%s21945_s1 + $0x1a98] sm:$0xf0]  ;;  %v12116_v30 = vor.u32 %v14309_v61, %v12113_v34 }
 0x43c   :  { %8741 = vmatpush.bf16.msrb.mxu0 %v11252_v33  ;;  %v12308_v51 = vor.u32 %v14357_v25, %v12305_v62  ;;  %v12500_v33 = vor.u32 %v14405_v10, %v12497_v14  ;;  %v14285_v25 = vld [vmem:[%s21945_s1 + $0x1844] sm:$0xf]  ;;  %v12620_v10 = vor.u32 %v14435_v56, %v12617_v41  ;;  %v12209_v14 = vld [vmem:[%s21945_s1 + $0x19d8] sm:$0xf0] }
 0x43d   :  { %8754 = vmatpush.bf16.msrb.mxu1 %v11444_v50  ;;  %v14399_v50 = vld [vmem:[%s21945_s1 + $0x1bd4] sm:$0xf]  ;;  %v14333_v62 = vld [vmem:[%s21945_s1 + $0x19c4] sm:$0xf] }
 0x43e   :  { %8767 = vmatpush.bf16.msrb.mxu2 %v11636_v17  ;;  %v12473_v17 = vld [vmem:[%s21945_s1 + $0x1be8] sm:$0xf0]  ;;  %v12212_v57 = vor.u32 %v14333_v62, %v12209_v14  ;;  %v13457_v62 = vld [vmem:[%s21945_s1 + $0x2398] sm:$0xf0] }
 0x43f   :  { %8780 = vmatpush.bf16.msrb.mxu3 %v11828_v19  ;;  %v12476_v43 = vor.u32 %v14399_v50, %v12473_v17  ;;  %v12185_v50 = vld [vmem:[%s21945_s1 + $0x19a8] sm:$0xf0]  ;;  %v14375_v17 = vld [vmem:[%s21945_s1 + $0x1b14] sm:$0xf] }
 0x440   :  { %8742 = vmatpush.bf16.msrb.mxu0 %v11228_v27  ;;  %v8536_v9 = vpop.f32.mrf.mxu0  ;;  %v12257_v27 = vld [vmem:[%s21945_s1 + $0x1a38] sm:$0xf0] }
 0x441   :  { %8755 = vmatpush.bf16.msrb.mxu1 %v11420_v48  ;;  %v8537_v19 = vadd.f32 %v8536_v9, %v21492_v44  ;;  %v8549_v3 = vpop.f32.mrf.mxu1  ;;  %v12668_v44 = vor.u32 %v14447_v4, %v12665_v11  ;;  %v12641_v48 = vld [vmem:[%s21945_s1 + $0x1d38] sm:$0xf0]  ;;  %v12260_v53 = vor.u32 %v14345_v38, %v12257_v27  ;;  %v12377_v4 = vld [vmem:[%s21945_s1 + $0x1b28] sm:$0xf0]  ;;  %v14423_v11 = vld [vmem:[%s21945_s1 + $0x1c94] sm:$0xf]  ;;  %v12188_v27 = vor.u32 %v14327_v52, %v12185_v50 }
 0x442   :  { %8768 = vmatpush.bf16.msrb.mxu2 %v11612_v18  ;;  %v12068_v18 = vor.u32 %v14297_v63, %v12065_v36  ;;  %v13121_v38 = vld [vmem:[%s21945_s1 + $0x20f8] sm:$0xf0]  ;;  %v12380_v6 = vor.u32 %v14375_v17, %v12377_v4  ;;  %v14489_v17 = vld [vmem:[%s21945_s1 + $0x1ea4] sm:$0xf] }
 0x443   :  { %8781 = vmatpush.bf16.msrb.mxu3 %v11804_v39  ;;  %8743 = vmatmul.bf16.vlgmr.msrb.gmra.mxu0 %v15537_v23  ;;  %v14453_v23 = vld [vmem:[%s21945_s1 + $0x1d84] sm:$0xf]  ;;  %v8550_v47 = vadd.f32 %v8549_v3, %v8537_v19  ;;  %v14291_v39 = vld [vmem:[%s21945_s1 + $0x1874] sm:$0xf]  ;;  %v12569_v19 = vld [vmem:[%s21945_s1 + $0x1ca8] sm:$0xf0] }
 0x444   :  { %8787 = vmatpush.bf16.msra.mxu0 %v12164_v55  ;;  %8756 = vmatmul.bf16.vlgmr.msrb.gmra.mxu1 %v15550_v31  ;;  %v12089_v31 = vld [vmem:[%s21945_s1 + $0x18e8] sm:$0xf0]  ;;  %v14513_v3 = vld [vmem:[%s21945_s1 + $0x1f64] sm:$0xf] }
 0x445   :  { %8800 = vmatpush.bf16.msra.mxu1 %v12356_v58  ;;  %8769 = vmatmul.bf16.vlgmr.msrb.gmra.mxu2 %v15548_v28  ;;  %v14303_v28 = vld [vmem:[%s21945_s1 + $0x18d4] sm:$0xf]  ;;  %v12041_v55 = vld [vmem:[%s21945_s1 + $0x1888] sm:$0xf0]  ;;  %v14537_v4 = vld [vmem:[%s21945_s1 + $0x2024] sm:$0xf] }
 0x446   :  { %8813 = vmatpush.bf16.msra.mxu2 %v12548_v15  ;;  %8782 = vmatmul.bf16.vlgmr.msrb.gmra.mxu3 %v15558_v35  ;;  %v12692_v35 = vor.u32 %v14453_v23, %v12689_v29  ;;  %v12092_v24 = vor.u32 %v14303_v28, %v12089_v31  ;;  %v14339_v58 = vld [vmem:[%s21945_s1 + $0x19f4] sm:$0xf]  ;;  %v12644_v15 = vor.u32 %v14441_v21, %v12641_v48  ;;  %v14381_v23 = vld [vmem:[%s21945_s1 + $0x1b44] sm:$0xf]  ;;  %v12401_v29 = vld [vmem:[%s21945_s1 + $0x1b58] sm:$0xf0] }
 0x447   :  { %8826 = vmatpush.bf16.msra.mxu3 %v12740_v22  ;;  %v12425_v22 = vld [vmem:[%s21945_s1 + $0x1b88] sm:$0xf0]  ;;  %v12236_v61 = vor.u32 %v14339_v58, %v12233_v32  ;;  %v14279_v28 = vld [vmem:[%s21945_s1 + $0x1814] sm:$0xf]  ;;  %v13505_v21 = vld [vmem:[%s21945_s1 + $0x23f8] sm:$0xf0]  ;;  %v12572_v48 = vor.u32 %v14423_v11, %v12569_v19 }
 0x448   :  { %8788 = vmatpush.bf16.msra.mxu0 %v12140_v60  ;;  %v8562_v7 = vpop.f32.mrf.mxu2  ;;  %v8538_v42 = vpop.f32.mrf.mxu0  ;;  %v12044_v60 = vor.u32 %v14291_v39, %v12041_v55  ;;  %v12428_v34 = vor.u32 %v14387_v59, %v12425_v22  ;;  %v11993_v31 = vld [vmem:[%s21945_s1 + $0x1828] sm:$0xf0]  ;;  %v14507_v39 = vld [vmem:[%s21945_s1 + $0x1f34] sm:$0xf] }
 0x449   :  { %8801 = vmatpush.bf16.msra.mxu1 %v12332_v54  ;;  %v8563_v0 = vadd.f32 %v8562_v7, %v8550_v47  ;;  %v8575_v40 = vpop.f32.mrf.mxu3  ;;  %v8551_v54 = vpop.f32.mrf.mxu1  ;;  %v11996_v36 = vor.u32 %v14279_v28, %v11993_v31  ;;  %v13313_v47 = vld [vmem:[%s21945_s1 + $0x2278] sm:$0xf0]  ;;  %v12905_v55 = vld [vmem:[%s21945_s1 + $0x1f48] sm:$0xf0]  ;;  %v14555_v58 = vld [vmem:[%s21945_s1 + $0x20b4] sm:$0xf] }
 0x44a   :  { %8814 = vmatpush.bf16.msra.mxu2 %v12524_v1  ;;  %v13097_v7 = vld [vmem:[%s21945_s1 + $0x20c8] sm:$0xf0]  ;;  %v14603_v32 = vld [vmem:[%s21945_s1 + $0x2234] sm:$0xf]  ;;  %v14501_v42 = vld [vmem:[%s21945_s1 + $0x1f04] sm:$0xf] }
 0x44b   :  { %8827 = vmatpush.bf16.msra.mxu3 %v12716_v2  ;;  %v21691_v1 = vadd.f32 %v8575_v40, %v8563_v0  ;;  %v12017_v2 = vld [vmem:[%s21945_s1 + $0x1858] sm:$0xf0]  ;;  %v13289_v59 = vld [vmem:[%s21945_s1 + $0x2248] sm:$0xf0]  ;;  %v14651_v22 = vld [vmem:[%s21945_s1 + $0x23b4] sm:$0xf]  ;;  %v12908_v40 = vor.u32 %v14507_v39, %v12905_v55  ;;  %v13100_v56 = vor.u32 %v14555_v58, %v13097_v7 }
 0x44c   :  { %8789 = vmatpush.bf16.msra.mxu0 %v12116_v30  ;;  %v14429_v30 = vld [vmem:[%s21945_s1 + $0x1cc4] sm:$0xf]  ;;  %v13481_v0 = vld [vmem:[%s21945_s1 + $0x23c8] sm:$0xf0]  ;;  %v13292_v41 = vor.u32 %v14603_v32, %v13289_v59  ;;  %v14639_v28 = vld [vmem:[%s21945_s1 + $0x2354] sm:$0xf] }
 0x44d   :  { %8802 = vmatpush.bf16.msra.mxu1 %v12308_v51  ;;  %v12593_v51 = vld [vmem:[%s21945_s1 + $0x1cd8] sm:$0xf0]  ;;  %v14549_v54 = vld [vmem:[%s21945_s1 + $0x2084] sm:$0xf]  ;;  %v13433_v31 = vld [vmem:[%s21945_s1 + $0x2368] sm:$0xf0] }
 0x44e   :  { %8815 = vmatpush.bf16.msra.mxu2 %v12500_v33  ;;  %v12020_v33 = vor.u32 %v14285_v25, %v12017_v2  ;;  %v12596_v9 = vor.u32 %v14429_v30, %v12593_v51  ;;  %v14597_v25 = vld [vmem:[%s21945_s1 + $0x2204] sm:$0xf]  ;;  %v13265_v2 = vld [vmem:[%s21945_s1 + $0x2218] sm:$0xf0]  ;;  %v13049_v30 = vld [vmem:[%s21945_s1 + $0x2068] sm:$0xf0]  ;;  %v13436_v19 = vor.u32 %v14639_v28, %v13433_v31 }
 0x44f   :  { %8828 = vmatpush.bf16.msra.mxu3 %v12692_v35  ;;  %v12404_v35 = vor.u32 %v14381_v23, %v12401_v29  ;;  %v13268_v23 = vor.u32 %v14597_v25, %v13265_v2  ;;  %v14543_v29 = vld [vmem:[%s21945_s1 + $0x2054] sm:$0xf]  ;;  %v14621_v25 = vld [vmem:[%s21945_s1 + $0x22c4] sm:$0xf]  ;;  %v13361_v2 = vld [vmem:[%s21945_s1 + $0x22d8] sm:$0xf0] }
 0x450   :  { %8790 = vmatpush.bf16.msra.mxu0 %v12092_v24  ;;  %v8564_v24 = vpop.f32.mrf.mxu2  ;;  %v14591_v51 = vld [vmem:[%s21945_s1 + $0x21d4] sm:$0xf]  ;;  %v13052_v52 = vor.u32 %v14543_v29, %v13049_v30  ;;  %v13364_v29 = vor.u32 %v14621_v25, %v13361_v2  ;;  %v13337_v31 = vld [vmem:[%s21945_s1 + $0x22a8] sm:$0xf0] }
 0x451   :  { %8803 = vmatpush.bf16.msra.mxu1 %v12284_v26  ;;  %v12929_v26 = vld [vmem:[%s21945_s1 + $0x1f78] sm:$0xf0]  ;;  %v8577_v63 = vpop.f32.mrf.mxu3  ;;  %v14627_v58 = vld [vmem:[%s21945_s1 + $0x22f4] sm:$0xf] }
 0x452   :  { %8816 = vmatpush.bf16.msra.mxu2 %v12476_v43  ;;  %v14561_v43 = vld [vmem:[%s21945_s1 + $0x20e4] sm:$0xf]  ;;  %v13025_v24 = vld [vmem:[%s21945_s1 + $0x2038] sm:$0xf0]  ;;  %v14567_v30 = vld [vmem:[%s21945_s1 + $0x2114] sm:$0xf] }
 0x453   :  { %8829 = vmatpush.bf16.msra.mxu3 %v12668_v44  ;;  %v14609_v44 = vld [vmem:[%s21945_s1 + $0x2264] sm:$0xf]  ;;  %v14615_v28 = vld [vmem:[%s21945_s1 + $0x2294] sm:$0xf] }
 0x454   :  { %8791 = vmatpush.bf16.msra.mxu0 %v12068_v18  ;;  %v12932_v18 = vor.u32 %v14513_v3, %v12929_v26  ;;  %v14585_v3 = vld [vmem:[%s21945_s1 + $0x21a4] sm:$0xf]  ;;  %v13217_v26 = vld [vmem:[%s21945_s1 + $0x21b8] sm:$0xf0] }
 0x455   :  { %8804 = vmatpush.bf16.msra.mxu1 %v12260_v53  ;;  %v13124_v53 = vor.u32 %v14561_v43, %v13121_v38  ;;  %v14633_v63 = vld [vmem:[%s21945_s1 + $0x2324] sm:$0xf] }
 0x456   :  { %8817 = vmatpush.bf16.msra.mxu2 %v12452_v5  ;;  %v13316_v5 = vor.u32 %v14609_v44, %v13313_v47  ;;  %v13028_v44 = vor.u32 %v14537_v4, %v13025_v24  ;;  %v13220_v47 = vor.u32 %v14585_v3, %v13217_v26 }
 0x457   :  { %8830 = vmatpush.bf16.msra.mxu3 %v12644_v15  ;;  %v13508_v15 = vor.u32 %v14657_v20, %v13505_v21  ;;  %v14531_v20 = vld [vmem:[%s21945_s1 + $0x1ff4] sm:$0xf] }
 0x458   :  { %8792 = vmatpush.bf16.msra.mxu0 %v12044_v60  ;;  %v12881_v60 = vld [vmem:[%s21945_s1 + $0x1f18] sm:$0xf0] }
 0x459   :  { %8805 = vmatpush.bf16.msra.mxu1 %v12236_v61  ;;  %v13484_v61 = vor.u32 %v14651_v22, %v13481_v0 }
 0x45a   :  { %8818 = vmatpush.bf16.msra.mxu2 %v12428_v34  ;;  %v13073_v34 = vld [vmem:[%s21945_s1 + $0x2098] sm:$0xf0] }
 0x45b   :  { %8831 = vmatpush.bf16.msra.mxu3 %v12620_v10  ;;  %v12884_v10 = vor.u32 %v14501_v42, %v12881_v60  ;;  %v13076_v14 = vor.u32 %v14549_v54, %v13073_v34  ;;  %v12977_v54 = vld [vmem:[%s21945_s1 + $0x1fd8] sm:$0xf0] }
 0x45c   :  { %8793 = vmatpush.bf16.msra.mxu0 %v12020_v33  ;;  %v13241_v33 = vld [vmem:[%s21945_s1 + $0x21e8] sm:$0xf0]  ;;  %v13169_v34 = vld [vmem:[%s21945_s1 + $0x2158] sm:$0xf0] }
 0x45d   :  { %8806 = vmatpush.bf16.msra.mxu1 %v12212_v57  ;;  %v13244_v50 = vor.u32 %v14591_v51, %v13241_v33  ;;  %v13145_v51 = vld [vmem:[%s21945_s1 + $0x2128] sm:$0xf0] }
 0x45e   :  { %8819 = vmatpush.bf16.msra.mxu2 %v12404_v35 }
 0x45f   :  { %8832 = vmatpush.bf16.msra.mxu3 %v12596_v9  ;;  %v12833_v9 = vld [vmem:[%s21945_s1 + $0x1eb8] sm:$0xf0] }
 0x460   :  { %8794 = vmatpush.bf16.msra.mxu0 %v11996_v36  ;;  %v8588_v35 = vpop.f32.mrf.mxu0  ;;  %v13409_v36 = vld [vmem:[%s21945_s1 + $0x2338] sm:$0xf0]  ;;  %v12836_v38 = vor.u32 %v14489_v17, %v12833_v9 }
 0x461   :  { %8807 = vmatpush.bf16.msra.mxu1 %v12188_v27  ;;  %v8601_v11 = vpop.f32.mrf.mxu1  ;;  %v14483_v27 = vld [vmem:[%s21945_s1 + $0x1e74] sm:$0xf] }
 0x462   :  { %8820 = vmatpush.bf16.msra.mxu2 %v12380_v6  ;;  %v8602_v43 = vadd.f32 %v8601_v11, %v8588_v35  ;;  %v12809_v6 = vld [vmem:[%s21945_s1 + $0x1e88] sm:$0xf0] }
 0x463   :  { %8833 = vmatpush.bf16.msra.mxu3 %v12572_v48  ;;  %8795 = vmatmul.bf16.vlgmr.msra.gmra.mxu0 %v15747_v37  ;;  %v14645_v37 = vld [vmem:[%s21945_s1 + $0x2384] sm:$0xf]  ;;  %v13412_v48 = vor.u32 %v14633_v63, %v13409_v36  ;;  %v12812_v7 = vor.u32 %v14483_v27, %v12809_v6 }
 0x464   :  { %8839 = vmatpush.bf16.msrb.mxu0 %v12932_v18  ;;  %8808 = vmatmul.bf16.vlgmr.msra.gmra.mxu1 %v15760_v46  ;;  %v12857_v46 = vld [vmem:[%s21945_s1 + $0x1ee8] sm:$0xf0] }
 0x465   :  { %8852 = vmatpush.bf16.msrb.mxu1 %v13124_v53  ;;  %8821 = vmatmul.bf16.vlgmr.msra.gmra.mxu2 %v15758_v45  ;;  %v14495_v45 = vld [vmem:[%s21945_s1 + $0x1ed4] sm:$0xf]  ;;  %v13001_v18 = vld [vmem:[%s21945_s1 + $0x2008] sm:$0xf0] }
 0x466   :  { %8865 = vmatpush.bf16.msrb.mxu2 %v13316_v5  ;;  %8834 = vmatmul.bf16.vlgmr.msra.gmra.mxu3 %v15768_v49  ;;  %v13460_v49 = vor.u32 %v14645_v37, %v13457_v62  ;;  %v12860_v57 = vor.u32 %v14495_v45, %v12857_v46  ;;  %v14579_v53 = vld [vmem:[%s21945_s1 + $0x2174] sm:$0xf]  ;;  %v13193_v5 = vld [vmem:[%s21945_s1 + $0x2188] sm:$0xf0]  ;;  %v13004_v22 = vor.u32 %v14531_v20, %v13001_v18 }
 0x467   :  { %8878 = vmatpush.bf16.msrb.mxu3 %v13508_v15  ;;  %v13385_v15 = vld [vmem:[%s21945_s1 + $0x2308] sm:$0xf0]  ;;  %v13196_v0 = vor.u32 %v14579_v53, %v13193_v5  ;;  %v14519_v45 = vld [vmem:[%s21945_s1 + $0x1f94] sm:$0xf] }
 0x468   :  { %8840 = vmatpush.bf16.msrb.mxu0 %v12908_v40  ;;  %v8614_v21 = vpop.f32.mrf.mxu2  ;;  %v8590_v59 = vpop.f32.mrf.mxu0  ;;  %v14477_v40 = vld [vmem:[%s21945_s1 + $0x1e44] sm:$0xf]  ;;  %v13388_v60 = vor.u32 %v14627_v58, %v13385_v15 }
 0x469   :  { %8853 = vmatpush.bf16.msrb.mxu1 %v13100_v56  ;;  %v8615_v39 = vadd.f32 %v8614_v21, %v8602_v43  ;;  %v8627_v55 = vpop.f32.mrf.mxu3  ;;  %v12785_v56 = vld [vmem:[%s21945_s1 + $0x1e58] sm:$0xf0]  ;;  %v8603_v42 = vpop.f32.mrf.mxu1 }
 0x46a   :  { %8866 = vmatpush.bf16.msrb.mxu2 %v13292_v41  ;;  %v14525_v41 = vld [vmem:[%s21945_s1 + $0x1fc4] sm:$0xf]  ;;  %v12788_v37 = vor.u32 %v14477_v40, %v12785_v56 }
 0x46b   :  { %8879 = vmatpush.bf16.msrb.mxu3 %v13484_v61  ;;  %v8628_v32 = vadd.f32 %v8627_v55, %v8615_v39  ;;  %v14573_v61 = vld [vmem:[%s21945_s1 + $0x2144] sm:$0xf]  ;;  %v12980_v62 = vor.u32 %v14525_v41, %v12977_v54 }
 0x46c   :  { %8841 = vmatpush.bf16.msrb.mxu0 %v12884_v10  ;;  %v13172_v10 = vor.u32 %v14573_v61, %v13169_v34 }
 0x46d   :  { %8854 = vmatpush.bf16.msrb.mxu1 %v13076_v14  ;;  %v14471_v14 = vld [vmem:[%s21945_s1 + $0x1e14] sm:$0xf] }
 0x46e   :  { %8867 = vmatpush.bf16.msrb.mxu2 %v13268_v23  ;;  %v12761_v23 = vld [vmem:[%s21945_s1 + $0x1e28] sm:$0xf0] }
 0x46f   :  { %8880 = vmatpush.bf16.msrb.mxu3 %v13460_v49  ;;  %v12953_v49 = vld [vmem:[%s21945_s1 + $0x1fa8] sm:$0xf0] }
 0x470   :  { %8842 = vmatpush.bf16.msrb.mxu0 %v12860_v57  ;;  %v8616_v46 = vpop.f32.mrf.mxu2  ;;  %v12764_v57 = vor.u32 %v14471_v14, %v12761_v23  ;;  %v12956_v35 = vor.u32 %v14519_v45, %v12953_v49 }
 0x471   :  { %8855 = vmatpush.bf16.msrb.mxu1 %v13052_v52  ;;  %v8629_v33 = vpop.f32.mrf.mxu3  ;;  %v13148_v52 = vor.u32 %v14567_v30, %v13145_v51 }
 0x472   :  { %8868 = vmatpush.bf16.msrb.mxu2 %v13244_v50  ;;  %v13340_v50 = vor.u32 %v14615_v28, %v13337_v31 }
 0x473   :  { %8881 = vmatpush.bf16.msrb.mxu3 %v13436_v19 }
 0x474   :  { %8843 = vmatpush.bf16.msrb.mxu0 %v12836_v38 }
 0x475   :  { %8856 = vmatpush.bf16.msrb.mxu1 %v13028_v44 }
 0x476   :  { %8869 = vmatpush.bf16.msrb.mxu2 %v13220_v47 }
 0x477   :  { %8882 = vmatpush.bf16.msrb.mxu3 %v13412_v48 }
 0x478   :  { %8844 = vmatpush.bf16.msrb.mxu0 %v12812_v7 }
 0x479   :  { %8857 = vmatpush.bf16.msrb.mxu1 %v13004_v22 }
 0x47a   :  { %8870 = vmatpush.bf16.msrb.mxu2 %v13196_v0 }
 0x47b   :  { %8883 = vmatpush.bf16.msrb.mxu3 %v13388_v60 }
 0x47c   :  { %8845 = vmatpush.bf16.msrb.mxu0 %v12788_v37 }
 0x47d   :  { %8858 = vmatpush.bf16.msrb.mxu1 %v12980_v62 }
 0x47e   :  { %8871 = vmatpush.bf16.msrb.mxu2 %v13172_v10 }
 0x47f   :  { %8884 = vmatpush.bf16.msrb.mxu3 %v13364_v29 }
 0x480   :  { %8846 = vmatpush.bf16.msrb.mxu0 %v12764_v57  ;;  %v8640_v17 = vpop.f32.mrf.mxu0 }
 0x481   :  { %8859 = vmatpush.bf16.msrb.mxu1 %v12956_v35  ;;  %v8641_v9 = vadd.f32 %v8640_v17, %v8628_v32  ;;  %v8653_v4 = vpop.f32.mrf.mxu1 }
 0x482   :  { %8872 = vmatpush.bf16.msrb.mxu2 %v13148_v52 }
 0x483   :  { %8885 = vmatpush.bf16.msrb.mxu3 %v13340_v50  ;;  %8847 = vmatmul.bf16.vlgmr.msrb.gmra.mxu0 %v15959_v8  ;;  %v8654_v11 = vadd.f32 %v8653_v4, %v8641_v9 }
 0x484   :  { %8860 = vmatmul.bf16.vlgmr.msrb.gmra.mxu1 %v15972_v13 }
 0x485   :  { %8873 = vmatmul.bf16.vlgmr.msrb.gmra.mxu2 %v15970_v12 }
 0x486   :  { %8886 = vmatmul.bf16.vlgmr.msrb.gmra.mxu3 %v15980_v16 }
 0x488   :  { %v8666_v19 = vpop.f32.mrf.mxu2  ;;  %v8642_v43 = vpop.f32.mrf.mxu0 }
 0x489   :  { %v8667_v24 = vadd.f32 %v8666_v19, %v8654_v11  ;;  %v8679_v3 = vpop.f32.mrf.mxu3  ;;  %v8655_v63 = vpop.f32.mrf.mxu1 }
 0x48b   :  { %v8680_v26 = vadd.f32 %v8679_v3, %v8667_v24 }
 0x490   :  { %v8668_v36 = vpop.f32.mrf.mxu2 }
 0x491   :  { %v8681_v38 = vpop.f32.mrf.mxu3 }
 0x4a0   :  { %v8692_v44 = vpop.f32.mrf.mxu0 }
 0x4a1   :  { %v8693_v8 = vadd.f32 %v8692_v44, %v8680_v26  ;;  %v8705_v47 = vpop.f32.mrf.mxu1 }
 0x4a3   :  { %v8706_v13 = vadd.f32 %v8705_v47, %v8693_v8 }
 0x4a8   :  { %v8718_v27 = vpop.f32.mrf.mxu2  ;;  %v8694_v16 = vpop.f32.mrf.mxu0 }
 0x4a9   :  { %v8719_v12 = vadd.f32 %v8718_v27, %v8706_v13  ;;  %v8731_v6 = vpop.f32.mrf.mxu3  ;;  %v8707_v20 = vpop.f32.mrf.mxu1 }
 0x4ab   :  { %v8732_v21 = vadd.f32 %v8731_v6, %v8719_v12 }
 0x4b0   :  { %v8720_v48 = vpop.f32.mrf.mxu2 }
 0x4b1   :  { %v8733_v18 = vpop.f32.mrf.mxu3 }
 0x4c0   :  { %v8744_v53 = vpop.f32.mrf.mxu0 }
 0x4c1   :  { %v8757_v5 = vpop.f32.mrf.mxu1  ;;  %v8745_v0 = vadd.f32 %v8744_v53, %v8732_v21 }
 0x4c3   :  { %v8758_v60 = vadd.f32 %v8757_v5, %v8745_v0 }
 0x4c8   :  { %v8770_v39 = vpop.f32.mrf.mxu2  ;;  %v8746_v58 = vpop.f32.mrf.mxu0 }
 0x4c9   :  { %v8783_v55 = vpop.f32.mrf.mxu3  ;;  %v8759_v15 = vpop.f32.mrf.mxu1  ;;  %v8771_v54 = vadd.f32 %v8770_v39, %v8758_v60 }
 0x4cb   :  { %v8784_v25 = vadd.f32 %v8783_v55, %v8771_v54 }
 0x4d0   :  { %v8772_v7 = vpop.f32.mrf.mxu2 }
 0x4d1   :  { %v8785_v32 = vpop.f32.mrf.mxu3 }
 0x4e0   :  { %v8796_v59 = vpop.f32.mrf.mxu0 }
 0x4e1   :  { %v8809_v22 = vpop.f32.mrf.mxu1  ;;  %v8797_v2 = vadd.f32 %v8796_v59, %v8784_v25 }
 0x4e3   :  { %v8810_v37 = vadd.f32 %v8809_v22, %v8797_v2 }
 0x4e8   :  { %v8822_v40 = vpop.f32.mrf.mxu2  ;;  %v8798_v41 = vpop.f32.mrf.mxu0 }
 0x4e9   :  { %v8835_v56 = vpop.f32.mrf.mxu3  ;;  %v8811_v42 = vpop.f32.mrf.mxu1  ;;  %v8823_v62 = vadd.f32 %v8822_v40, %v8810_v37 }
 0x4eb   :  { %v8836_v10 = vadd.f32 %v8835_v56, %v8823_v62 }
 0x4f0   :  { %v8824_v61 = vpop.f32.mrf.mxu2 }
 0x4f1   :  { %v8837_v34 = vpop.f32.mrf.mxu3 }
 0x500   :  { %v8848_v14 = vpop.f32.mrf.mxu0 }
 0x501   :  { %v8861_v23 = vpop.f32.mrf.mxu1  ;;  %v8849_v45 = vadd.f32 %v8848_v14, %v8836_v10 }
 0x503   :  { %v8862_v46 = vadd.f32 %v8861_v23, %v8849_v45 }
 0x508   :  { %v8874_v29 = vpop.f32.mrf.mxu2  ;;  %v8850_v51 = vpop.f32.mrf.mxu0 }
 0x509   :  { %v8875_v49 = vadd.f32 %v8874_v29, %v8862_v46  ;;  %v8887_v30 = vpop.f32.mrf.mxu3  ;;  %v8863_v33 = vpop.f32.mrf.mxu1 }
 0x50b   :  { %v8888_v28 = vadd.f32 %v8887_v30, %v8875_v49 }
 0x50d   :  { %v8893_v31 = vpack.c.bf16 %v8888_v28, %v21691_v1 }
 0x50f   :  { %8896 = vst [vmem:[%s21947_s2 + $0x10] sm:$0xff] %v8893_v31 }
 0x510   :  { %v8876_v57 = vpop.f32.mrf.mxu2 }
 0x511   :  { %v8889_v35 = vpop.f32.mrf.mxu3 }

</bundles_post_ra>
